<compile_context>
chip_gen: v6e
topology: v6e:2x2x1
jax: 0.10.0
libtpu: 0.0.40
codegen_flags: <defaults>
</compile_context>

<pallas_src>
import functools
import numpy as np

import jax
import jax.numpy as jnp
from jax.experimental import pallas as pl
from jax.experimental.pallas import tpu as pltpu

LN_EPS = 1e-5
LANE = 128


def _pick_tile(m):
    """Largest row tile that keeps >=4 (else >=2) grid steps."""
    for min_steps in (4, 2):
        for cand in (2048, 1024, 512, 256, 128, 64, 32, 16, 8):
            if m % cand == 0 and m // cand >= min_steps:
                return cand
    return m


# ----------------------------------------------------------------------------
# Standalone LayerNorm (padded-window fallback path only)
# ----------------------------------------------------------------------------
def _layernorm_kernel(x_ref, g_ref, b_ref, o_ref, *, eps):
    x = x_ref[...].astype(jnp.float32)
    mean = jnp.mean(x, axis=-1, keepdims=True)
    var = jnp.mean(jnp.square(x - mean), axis=-1, keepdims=True)
    xn = (x - mean) * jax.lax.rsqrt(var + eps)
    o_ref[...] = (xn * g_ref[...] + b_ref[...]).astype(o_ref.dtype)


def layernorm(x2d, gamma, beta, *, eps=LN_EPS):
    M, C = x2d.shape
    tile = _pick_tile(M)
    return pl.pallas_call(
        functools.partial(_layernorm_kernel, eps=eps),
        out_shape=jax.ShapeDtypeStruct((M, C), x2d.dtype),
        grid_spec=pltpu.PrefetchScalarGridSpec(
            num_scalar_prefetch=0,
            grid=(M // tile,),
            in_specs=[
                pl.BlockSpec((tile, C), lambda i: (i, 0)),
                pl.BlockSpec((1, C), lambda i: (0, 0)),
                pl.BlockSpec((1, C), lambda i: (0, 0)),
            ],
            out_specs=pl.BlockSpec((tile, C), lambda i: (i, 0)),
        ),
        compiler_params=pltpu.CompilerParams(dimension_semantics=("parallel",)),
    )(x2d, gamma.reshape(1, C), beta.reshape(1, C))


# ----------------------------------------------------------------------------
# Fused window-partition + LN1 + window attention + window-reverse
# ----------------------------------------------------------------------------
def _attn_core(x_ref, gid_ref, g_ref, b_ref, qkvw_ref, qkvb_ref,
               projw_ref, projb_ref, cos_ref, sin_ref, o_ref,
               *, num_heads, head_dim, scale, eps, fuse_ln, nww, wsw):
    ws0 = x_ref.shape[1]
    C = x_ref.shape[3]
    N = ws0 * wsw
    hd = head_dim

    x = x_ref[0].astype(jnp.float32)                              # (ws0, Wp, C)
    # in-VMEM window partition: only whole-(8, C) tile reordering, no lane movement.
    xw = jnp.transpose(x.reshape(ws0, nww, wsw, C),
                       (1, 0, 2, 3)).reshape(nww * N, C)          # (rows, C)

    # ---- LN1 (fused when no spatial padding was needed) ----
    if fuse_ln:
        mean = jnp.mean(xw, axis=-1, keepdims=True)
        var = jnp.mean(jnp.square(xw - mean), axis=-1, keepdims=True)
        xn = (xw - mean) * jax.lax.rsqrt(var + eps) * g_ref[...] + b_ref[...]
    else:
        xn = xw

    # ---- QKV + pre-rotated Q/K columns in a single matmul (rows, 5C) ----
    qkv = jnp.dot(xn.astype(jnp.bfloat16), qkvw_ref[...],
                  preferred_element_type=jnp.float32) + qkvb_ref[...]

    cos = cos_ref[...].astype(jnp.float32)[None]                  # (1, N, C)
    sin = sin_ref[...].astype(jnp.float32)[None]                  # sign-folded

    q = qkv[:, :C].reshape(nww, N, C)
    k = qkv[:, C:2 * C].reshape(nww, N, C)
    v = qkv[:, 2 * C:3 * C].reshape(nww, N, C)
    rq = qkv[:, 3 * C:4 * C].reshape(nww, N, C)                   # rot_half(q) via weights
    rk = qkv[:, 4 * C:5 * C].reshape(nww, N, C)                   # rot_half(k) via weights

    # RoPE: two wide VPU passes, no in-kernel lane shuffles.
    q = ((q * cos + rq * sin) * scale).astype(jnp.bfloat16)
    k = (k * cos + rk * sin).astype(jnp.bfloat16)
    v = v.astype(jnp.bfloat16)

    # head-major batched operands: (num_heads * nww, N, hd)
    qh = jnp.concatenate([q[..., h * hd:(h + 1) * hd] for h in range(num_heads)], axis=0)
    kh = jnp.concatenate([k[..., h * hd:(h + 1) * hd] for h in range(num_heads)], axis=0)
    vh = jnp.concatenate([v[..., h * hd:(h + 1) * hd] for h in range(num_heads)], axis=0)

    # ---- single batched score matmul + one softmax body + single batched PV ----
    s = jnp.einsum('bqd,bkd->bqk', qh, kh, preferred_element_type=jnp.float32)
    if gid_ref is not None:
        gid = gid_ref[0]                                          # (nww, N) int32
        neg = jnp.where(gid[:, :, None] == gid[:, None, :],
                        0.0, -100.0).astype(jnp.float32)          # (nww, N, N)
        s = (s.reshape(num_heads, nww, N, N) + neg[None]).reshape(num_heads * nww, N, N)
    s = s - jnp.max(s, axis=-1, keepdims=True)
    p = jnp.exp(s)
    p = p * pl.reciprocal(jnp.sum(p, axis=-1, keepdims=True), approx=True)
    o = jnp.einsum('bqk,bkd->bqd', p.astype(jnp.bfloat16), vh,
                   preferred_element_type=jnp.float32)            # (H*nww, N, hd)

    # reassemble heads along lanes, then one (rows, C) @ (C, C) projection
    oc = jnp.concatenate([o[h * nww:(h + 1) * nww] for h in range(num_heads)],
                         axis=-1).reshape(nww * N, C)
    y = jnp.dot(oc.astype(jnp.bfloat16), projw_ref[...],
                preferred_element_type=jnp.float32) + projb_ref[...]

    # in-VMEM window reverse back to the (ws0, Wp, C) slab
    yw = jnp.transpose(y.reshape(nww, ws0, wsw, C),
                       (1, 0, 2, 3)).reshape(ws0, nww * wsw, C)
    o_ref[0] = yw.astype(o_ref.dtype)


def _attn_kernel_masked(x_ref, gid_ref, g_ref, b_ref, qkvw_ref, qkvb_ref,
                        projw_ref, projb_ref, cos_ref, sin_ref, o_ref, **kw):
    _attn_core(x_ref, gid_ref, g_ref, b_ref, qkvw_ref, qkvb_ref,
               projw_ref, projb_ref, cos_ref, sin_ref, o_ref, **kw)


def _attn_kernel_nomask(x_ref, g_ref, b_ref, qkvw_ref, qkvb_ref,
                        projw_ref, projb_ref, cos_ref, sin_ref, o_ref, **kw):
    _attn_core(x_ref, None, g_ref, b_ref, qkvw_ref, qkvb_ref,
               projw_ref, projb_ref, cos_ref, sin_ref, o_ref, **kw)


def window_attention_fused(xp, gid, ln_g, ln_b, qkv_w_aug, qkv_b_aug, proj_w, proj_b,
                           cos_t, sin_t, *, ws, num_heads, head_dim, scale,
                           fuse_ln, eps=LN_EPS):
    """One grid step = one row of windows of one image (fused partition/reverse)."""
    B, Hp, Wp, C = xp.shape
    ws0, ws1 = ws
    nww = Wp // ws1
    N = ws0 * ws1
    grid = (B, Hp // ws0)
    kw = dict(num_heads=num_heads, head_dim=head_dim, scale=scale, eps=eps,
              fuse_ln=fuse_ln, nww=nww, wsw=ws1)

    x_spec = pl.BlockSpec((1, ws0, Wp, C), lambda b, r: (b, r, 0, 0))
    o_spec = pl.BlockSpec((1, ws0, Wp, C), lambda b, r: (b, r, 0, 0))
    param_specs = [
        pl.BlockSpec((1, C), lambda b, r: (0, 0)),             # ln1 gamma
        pl.BlockSpec((1, C), lambda b, r: (0, 0)),             # ln1 beta
        pl.BlockSpec((C, 5 * C), lambda b, r: (0, 0)),         # qkv_w_aug (bf16)
        pl.BlockSpec((1, 5 * C), lambda b, r: (0, 0)),         # qkv_b_aug
        pl.BlockSpec((C, C), lambda b, r: (0, 0)),             # proj_w (bf16)
        pl.BlockSpec((1, C), lambda b, r: (0, 0)),             # proj_b
        pl.BlockSpec((N, C), lambda b, r: (0, 0)),             # rope cos (width C)
        pl.BlockSpec((N, C), lambda b, r: (0, 0)),             # rope sin (sign folded)
    ]

    args = [xp]
    if gid is not None:
        kernel = functools.partial(_attn_kernel_masked, **kw)
        in_specs = ([x_spec, pl.BlockSpec((1, nww, N), lambda b, r: (r, 0, 0))]
                    + param_specs)
        args.append(gid)
    else:
        kernel = functools.partial(_attn_kernel_nomask, **kw)
        in_specs = [x_spec] + param_specs
    args += [ln_g.reshape(1, C), ln_b.reshape(1, C),
             qkv_w_aug.astype(jnp.bfloat16), qkv_b_aug.reshape(1, 5 * C),
             proj_w.astype(jnp.bfloat16), proj_b.reshape(1, C),
             cos_t, sin_t]

    T = B * Hp * Wp
    cost = pl.CostEstimate(
        flops=int(2 * T * C * 5 * C + 4 * T * N * C + 2 * T * C * C),
        transcendentals=int(T * N + T * num_heads),
        bytes_accessed=int(8 * T * C + 12 * C * C + 8 * N * C),
    )
    return pl.pallas_call(
        kernel,
        out_shape=jax.ShapeDtypeStruct((B, Hp, Wp, C), xp.dtype),
        grid_spec=pltpu.PrefetchScalarGridSpec(
            num_scalar_prefetch=0, grid=grid,
            in_specs=in_specs, out_specs=o_spec),
        compiler_params=pltpu.CompilerParams(
            dimension_semantics=("parallel", "parallel"),
            vmem_limit_bytes=32 * 1024 * 1024),
        cost_estimate=cost,
    )(*args)


# ----------------------------------------------------------------------------
# Fused residual-1 + LN2 + SwiGLU MLP + residual-2 (lane-dense packed tokens)
# ----------------------------------------------------------------------------
def _mlp_residual_kernel(short_ref, attn_ref, avg_ref, g_ref, b_ref,
                         w1_ref, b1_ref, w2_ref, b2_ref, o_ref, *, eps, hidden_p):
    # residual-1 (shortcut + attention output), rows hold `pack` tokens each.
    x = short_ref[...].astype(jnp.float32) + attn_ref[...].astype(jnp.float32)
    avg = avg_ref[...]
    # per-token LN statistics (f32) via block-averaging matmuls (MXU filler)
    mu = jnp.dot(x, avg, preferred_element_type=jnp.float32)
    xc = x - mu
    var = jnp.dot(xc * xc, avg, preferred_element_type=jnp.float32)
    xn = xc * jax.lax.rsqrt(var + eps) * g_ref[...] + b_ref[...]
    h = jnp.dot(xn.astype(jnp.bfloat16), w1_ref[...],
                preferred_element_type=jnp.float32) + b1_ref[...]
    val = h[:, :hidden_p]
    gate = h[:, hidden_p:]
    act = val * gate * jax.nn.sigmoid(gate)                       # SwiGLU: silu(gate)*x
    y = jnp.dot(act.astype(jnp.bfloat16), w2_ref[...],
                preferred_element_type=jnp.float32) + b2_ref[...]
    o_ref[...] = (x + y).astype(o_ref.dtype)


def mlp_residual(shortcut2d, attn2d, gamma, beta, w1, b1, w2, b2, *, eps=LN_EPS):
    M, C = shortcut2d.shape
    hidden = w2.shape[0]
    assert w1.shape == (C, 2 * hidden)

    # Lane-dense packing: `pack` tokens per 128-lane row; fc1/fc2 become block-diagonal
    # so no in-kernel relayout is needed and all loads/stores are unmasked.
    if C % LANE == 0:
        pack = 1
    elif LANE % C == 0 and M % (LANE // C) == 0:
        pack = LANE // C
    else:
        pack = 1
    W = C * pack
    hidden_p = hidden * pack
    M4 = M // pack

    sp = shortcut2d.reshape(M4, W)
    ap = attn2d.reshape(M4, W)
    eyep = jnp.eye(pack, dtype=jnp.float32)
    avg = jnp.kron(eyep, jnp.full((C, C), 1.0 / C, jnp.float32))          # (W, W)
    w1p = jnp.concatenate([jnp.kron(eyep, w1[:, :hidden]),
                           jnp.kron(eyep, w1[:, hidden:])],
                          axis=1).astype(jnp.bfloat16)                    # (W, 2*hidden_p)
    b1p = jnp.concatenate([jnp.tile(b1[:hidden], pack),
                           jnp.tile(b1[hidden:], pack)]).reshape(1, 2 * hidden_p)
    w2p = jnp.kron(eyep, w2).astype(jnp.bfloat16)                         # (hidden_p, W)
    b2p = jnp.tile(b2, pack).reshape(1, W)
    gp = jnp.tile(gamma, pack).reshape(1, W)
    bp = jnp.tile(beta, pack).reshape(1, W)

    tile = _pick_tile(M4)
    cost = pl.CostEstimate(
        flops=int(6 * M * C * hidden + 4 * M * C * C),
        transcendentals=int(M * hidden + M),
        bytes_accessed=int(12 * M * C + 6 * C * hidden * pack + 4 * W * W),
    )
    kern = functools.partial(_mlp_residual_kernel, eps=eps, hidden_p=hidden_p)
    out = pl.pallas_call(
        kern,
        out_shape=jax.ShapeDtypeStruct((M4, W), shortcut2d.dtype),
        grid_spec=pltpu.PrefetchScalarGridSpec(
            num_scalar_prefetch=0,
            grid=(M4 // tile,),
            in_specs=[
                pl.BlockSpec((tile, W), lambda i: (i, 0)),
                pl.BlockSpec((tile, W), lambda i: (i, 0)),
                pl.BlockSpec((W, W), lambda i: (0, 0)),
                pl.BlockSpec((1, W), lambda i: (0, 0)),
                pl.BlockSpec((1, W), lambda i: (0, 0)),
                pl.BlockSpec((W, 2 * hidden_p), lambda i: (0, 0)),
                pl.BlockSpec((1, 2 * hidden_p), lambda i: (0, 0)),
                pl.BlockSpec((hidden_p, W), lambda i: (0, 0)),
                pl.BlockSpec((1, W), lambda i: (0, 0)),
            ],
            out_specs=pl.BlockSpec((tile, W), lambda i: (i, 0)),
        ),
        compiler_params=pltpu.CompilerParams(
            dimension_semantics=("parallel",),
            vmem_limit_bytes=32 * 1024 * 1024),
        cost_estimate=cost,
    )(sp, ap, avg, gp, bp, w1p, b1p, w2p, b2p)
    return out.reshape(M, C)


# ----------------------------------------------------------------------------
# Glue (plain JAX / numpy)
# ----------------------------------------------------------------------------
def get_window_size(x_size, window_size, shift_size):
    ws, ss = list(window_size), list(shift_size)
    for i in range(len(x_size)):
        if x_size[i] <= window_size[i]:
            ws[i] = x_size[i]
            ss[i] = 0
    return tuple(ws), tuple(ss)


def compute_group_ids_2d(Hp, Wp, window_size, shift_size):
    """Per-window group-id rows (Hp//wh, Wp//ww, N); only built when shift > 0."""
    wh, ww = window_size
    sh, sw = shift_size
    img = np.zeros((Hp, Wp), dtype=np.int32)
    cnt = 0
    for hs in (slice(0, -wh), slice(-wh, -sh), slice(-sh, None)):
        for vs in (slice(0, -ww), slice(-ww, -sw), slice(-sw, None)):
            img[hs, vs] = cnt
            cnt += 1
    gid = img.reshape(Hp // wh, wh, Wp // ww, ww).transpose(0, 2, 1, 3)
    return jnp.asarray(gid.reshape(Hp // wh, Wp // ww, wh * ww))


def make_rope_tables(window_size, head_dim, num_heads):
    """Width-C head-replicated tables, folded so rope(x) = x*cos + rot_half(x)*sin."""
    wh, ww = window_size
    coords = np.stack(np.meshgrid(np.arange(wh), np.arange(ww),
                                  indexing="ij")).reshape(2, -1)
    half = head_dim // 2
    d1 = half // 2
    d2 = half - d1
    inv1 = 10000.0 ** (-(np.arange(d1) / d1))
    inv2 = 10000.0 ** (-(np.arange(d2) / d2))
    s1 = coords[0][:, None] * inv1
    s2 = coords[1][:, None] * inv2
    cos_h = np.concatenate([np.cos(s1), np.cos(s2), np.cos(s1), np.cos(s2)], axis=-1)
    sin_h = np.concatenate([-np.sin(s1), -np.sin(s2), np.sin(s1), np.sin(s2)], axis=-1)
    cos_c = np.tile(cos_h, (1, num_heads))
    sin_c = np.tile(sin_h, (1, num_heads))
    return (jnp.asarray(cos_c, jnp.float32), jnp.asarray(sin_c, jnp.float32))


def augment_qkv(qkv_w, qkv_b, C, head_dim):
    """Append rotate-half'ed Q/K columns so RoPE needs no in-kernel permutation."""
    half = head_dim // 2
    p = np.arange(C)
    perm = (p // head_dim) * head_dim + (p % head_dim + half) % head_dim
    wq, wk = qkv_w[:, :C], qkv_w[:, C:2 * C]
    bq, bk = qkv_b[:C], qkv_b[C:2 * C]
    w_aug = jnp.concatenate([qkv_w, wq[:, perm], wk[:, perm]], axis=1)   # (C, 5C)
    b_aug = jnp.concatenate([qkv_b, bq[perm], bk[perm]])                 # (5C,)
    return w_aug, b_aug


def swin_layer_forward(x, p, window_size, shift_size, gid_shifted,
                       rope_cos, rope_sin, *, num_heads):
    B, H, W, C = x.shape
    ws, ss = get_window_size((H, W), window_size, shift_size)
    head_dim = C // num_heads
    scale = head_dim ** (-0.5)

    shortcut = x
    pad_b = (ws[0] - H % ws[0]) % ws[0]
    pad_r = (ws[1] - W % ws[1]) % ws[1]
    fuse_ln = (pad_b == 0 and pad_r == 0)

    if fuse_ln:
        xp = x                               # LN1 fused into the attention kernel
    else:
        # match PyTorch ordering: norm1 first, then zero-pad the normalized tokens
        xn = layernorm(x.reshape(-1, C), p["ln1_g"], p["ln1_b"]).reshape(B, H, W, C)
        xp = jnp.pad(xn, ((0, 0), (0, pad_b), (0, pad_r), (0, 0)))
    Hp, Wp = H + pad_b, W + pad_r

    shifted = any(i > 0 for i in ss)
    if shifted:
        xs = jnp.roll(xp, shift=(-ss[0], -ss[1]), axis=(1, 2))
        gid = gid_shifted
    else:
        xs = xp
        gid = None                           # no-mask kernel variant

    qkv_w_aug, qkv_b_aug = augment_qkv(p["qkv_w"], p["qkv_b"], C, head_dim)
    aw = window_attention_fused(xs, gid, p["ln1_g"], p["ln1_b"],
                                qkv_w_aug, qkv_b_aug, p["proj_w"], p["proj_b"],
                                rope_cos, rope_sin,
                                ws=ws, num_heads=num_heads, head_dim=head_dim,
                                scale=scale, fuse_ln=fuse_ln)
    if shifted:
        aw = jnp.roll(aw, shift=(ss[0], ss[1]), axis=(1, 2))
    attn_out = aw[:, :H, :W, :]

    out = mlp_residual(shortcut.reshape(-1, C), attn_out.reshape(-1, C),
                       p["ln2_g"], p["ln2_b"],
                       p["fc1_w"], p["fc1_b"], p["fc2_w"], p["fc2_b"])
    return out.reshape(B, H, W, C)


def swin_decoder_stage_forward(x, blocks_params, *, window_size, num_heads):
    B, H, W, C = x.shape
    shift_full = tuple(i // 2 for i in window_size)
    ws, ss = get_window_size((H, W), window_size, shift_full)
    Hp = int(np.ceil(H / ws[0])) * ws[0]
    Wp = int(np.ceil(W / ws[1])) * ws[1]
    head_dim = C // num_heads
    rope_cos, rope_sin = make_rope_tables(ws, head_dim, num_heads)
    gid_shifted = (compute_group_ids_2d(Hp, Wp, ws, ss)
                   if any(s > 0 for s in ss) else None)
    # TODO(synk): MoE branch (MlpMoe) uses data-dependent boolean indexing and the
    # land_mask_pad inputs / upsample are optional; none are exercised here
    # (is_moe=False, land_mask_pad=None, upsample=None).
    for i, p in enumerate(blocks_params):
        blk_shift = (0, 0) if i % 2 == 0 else shift_full
        x = swin_layer_forward(x, p, window_size, blk_shift, gid_shifted,
                               rope_cos, rope_sin, num_heads=num_heads)
    return x.reshape(B, H, W, -1)


# ----------------------------------------------------------------------------
# Main
# ----------------------------------------------------------------------------
if __name__ == "__main__":
    B, H, W, C = 2, 16, 16, 32
    num_heads = 4
    window_size = (8, 8)
    depth = 2
    mlp_hidden = int(C * 4.0)            # mlp_ratio = 4 -> 128 (SwiGLU fc1 -> 2*128)

    key = jax.random.PRNGKey(0)
    kx, kp = jax.random.split(key)
    x = jax.random.normal(kx, (B, H, W, C), jnp.float32)

    blocks = []
    pkeys = jax.random.split(kp, depth)
    for d in range(depth):
        ks = jax.random.split(pkeys[d], 8)

        def w(k, shape, s=0.02):
            return (s * jax.random.normal(k, shape)).astype(jnp.float32)

        blocks.append(dict(
            ln1_g=jnp.ones((C,), jnp.float32),
            ln1_b=jnp.zeros((C,), jnp.float32),
            qkv_w=w(ks[0], (C, 3 * C)),
            qkv_b=w(ks[1], (3 * C,)),
            proj_w=w(ks[2], (C, C)),
            proj_b=w(ks[3], (C,)),
            ln2_g=jnp.ones((C,), jnp.float32),
            ln2_b=jnp.zeros((C,), jnp.float32),
            fc1_w=w(ks[4], (C, 2 * mlp_hidden)),
            fc1_b=w(ks[5], (2 * mlp_hidden,)),
            fc2_w=w(ks[6], (mlp_hidden, C)),
            fc2_b=w(ks[7], (C,)),
        ))

    fwd = jax.jit(functools.partial(swin_decoder_stage_forward,
                                    window_size=window_size, num_heads=num_heads))
    out = fwd(x, blocks)
    jax.block_until_ready(out)
    assert out.shape == (B, H, W, C)
    assert bool(jnp.all(jnp.isfinite(out)))
    print("KERNEL_OK")
</pallas_src>

<mosaic_0001>
module attributes {stable_mosaic.version = 11 : i64} {
  func.func @_attn_kernel_nomask(%arg0: i32, %arg1: i32, %arg2: memref<1x8x16x32xf32, #tpu.memory_space<vmem>>, %arg3: memref<1x32xf32, #tpu.memory_space<vmem>>, %arg4: memref<1x32xf32, #tpu.memory_space<vmem>>, %arg5: memref<32x160xbf16, #tpu.memory_space<vmem>>, %arg6: memref<1x160xf32, #tpu.memory_space<vmem>>, %arg7: memref<32x32xbf16, #tpu.memory_space<vmem>>, %arg8: memref<1x32xf32, #tpu.memory_space<vmem>>, %arg9: memref<64x32xf32, #tpu.memory_space<vmem>>, %arg10: memref<64x32xf32, #tpu.memory_space<vmem>>, %arg11: memref<1x8x16x32xf32, #tpu.memory_space<vmem>>) attributes {dimension_semantics = [#tpu.dimension_semantics<parallel>, #tpu.dimension_semantics<parallel>], iteration_bounds = array<i64: 2, 2>, scalar_prefetch = 0 : i64, scratch_operands = 0 : i64, tpu.core_type = #tpu.core_type<tc>, window_params = [{transform_indices = @transform_0, window_bounds = array<i64: 1, 8, 16, 32>}, {pipeline_mode = #tpu.pipeline_mode<synchronous>, transform_indices = @transform_1, window_bounds = array<i64: 1, 32>}, {pipeline_mode = #tpu.pipeline_mode<synchronous>, transform_indices = @transform_2, window_bounds = array<i64: 1, 32>}, {pipeline_mode = #tpu.pipeline_mode<synchronous>, transform_indices = @transform_3, window_bounds = array<i64: 32, 160>}, {pipeline_mode = #tpu.pipeline_mode<synchronous>, transform_indices = @transform_4, window_bounds = array<i64: 1, 160>}, {pipeline_mode = #tpu.pipeline_mode<synchronous>, transform_indices = @transform_5, window_bounds = array<i64: 32, 32>}, {pipeline_mode = #tpu.pipeline_mode<synchronous>, transform_indices = @transform_6, window_bounds = array<i64: 1, 32>}, {pipeline_mode = #tpu.pipeline_mode<synchronous>, transform_indices = @transform_7, window_bounds = array<i64: 64, 32>}, {pipeline_mode = #tpu.pipeline_mode<synchronous>, transform_indices = @transform_8, window_bounds = array<i64: 64, 32>}, {transform_indices = @transform_9, window_bounds = array<i64: 1, 8, 16, 32>}]} {
    %c0 = arith.constant 0 : index
    %c0_0 = arith.constant 0 : index
    %c0_1 = arith.constant 0 : index
    %c0_2 = arith.constant 0 : index
    %0 = vector.load %arg2[%c0, %c0_0, %c0_1, %c0_2] : memref<1x8x16x32xf32, #tpu.memory_space<vmem>>, vector<1x8x16x32xf32>
    %1 = vector.shape_cast %0 : vector<1x8x16x32xf32> to vector<8x16x32xf32>
    %2 = vector.shape_cast %1 : vector<8x16x32xf32> to vector<8x2x8x32xf32>
    %3 = tpu.transpose %2, [1, 0, 2, 3] : vector<8x2x8x32xf32> -> vector<2x8x8x32xf32>
    %4 = vector.shape_cast %3 : vector<2x8x8x32xf32> to vector<128x32xf32>
    %cst = arith.constant dense<0.000000e+00> : vector<128xf32>
    %5 = vector.multi_reduction <add>, %4, %cst [1] : vector<128x32xf32> to vector<128xf32>
    %6 = vector.shape_cast %5 : vector<128xf32> to vector<128x1xf32>
    %cst_3 = arith.constant 3.200000e+01 : f32
    %7 = vector.broadcast %cst_3 : f32 to vector<128x1xf32>
    %8 = arith.divf %6, %7 : vector<128x1xf32>
    %9 = vector.broadcast %8 : vector<128x1xf32> to vector<128x32xf32>
    %10 = arith.subf %4, %9 : vector<128x32xf32>
    %11 = arith.mulf %10, %10 : vector<128x32xf32>
    %cst_4 = arith.constant dense<0.000000e+00> : vector<128xf32>
    %12 = vector.multi_reduction <add>, %11, %cst_4 [1] : vector<128x32xf32> to vector<128xf32>
    %13 = vector.shape_cast %12 : vector<128xf32> to vector<128x1xf32>
    %cst_5 = arith.constant 3.200000e+01 : f32
    %14 = vector.broadcast %cst_5 : f32 to vector<128x1xf32>
    %15 = arith.divf %13, %14 : vector<128x1xf32>
    %16 = vector.broadcast %8 : vector<128x1xf32> to vector<128x32xf32>
    %17 = arith.subf %4, %16 : vector<128x32xf32>
    %cst_6 = arith.constant 9.99999974E-6 : f32
    %18 = vector.broadcast %cst_6 : f32 to vector<128x1xf32>
    %19 = arith.addf %15, %18 : vector<128x1xf32>
    %20 = math.rsqrt %19 : vector<128x1xf32>
    %21 = vector.broadcast %20 : vector<128x1xf32> to vector<128x32xf32>
    %22 = arith.mulf %17, %21 : vector<128x32xf32>
    %c0_7 = arith.constant 0 : index
    %c0_8 = arith.constant 0 : index
    %23 = vector.load %arg3[%c0_7, %c0_8] : memref<1x32xf32, #tpu.memory_space<vmem>>, vector<1x32xf32>
    %24 = vector.broadcast %23 : vector<1x32xf32> to vector<128x32xf32>
    %25 = arith.mulf %22, %24 : vector<128x32xf32>
    %c0_9 = arith.constant 0 : index
    %c0_10 = arith.constant 0 : index
    %26 = vector.load %arg4[%c0_9, %c0_10] : memref<1x32xf32, #tpu.memory_space<vmem>>, vector<1x32xf32>
    %27 = vector.broadcast %26 : vector<1x32xf32> to vector<128x32xf32>
    %28 = arith.addf %25, %27 : vector<128x32xf32>
    %29 = arith.truncf %28 : vector<128x32xf32> to vector<128x32xbf16>
    %c0_11 = arith.constant 0 : index
    %c0_12 = arith.constant 0 : index
    %30 = vector.load %arg5[%c0_11, %c0_12] : memref<32x160xbf16, #tpu.memory_space<vmem>>, vector<32x160xbf16>
    %cst_13 = arith.constant dense<0.000000e+00> : vector<128x160xf32>
    %31 = tpu.matmul %29, %30, %cst_13 {dimension_numbers = #tpu.dot_dimension_numbers<[1], [0], [0], [1], [0, 0, 1, 1], [], []>} : vector<128x32xbf16>, vector<32x160xbf16>, vector<128x160xf32> -> vector<128x160xf32>
    %c0_14 = arith.constant 0 : index
    %c0_15 = arith.constant 0 : index
    %32 = vector.load %arg6[%c0_14, %c0_15] : memref<1x160xf32, #tpu.memory_space<vmem>>, vector<1x160xf32>
    %33 = vector.broadcast %32 : vector<1x160xf32> to vector<128x160xf32>
    %34 = arith.addf %31, %33 : vector<128x160xf32>
    %c0_16 = arith.constant 0 : index
    %c0_17 = arith.constant 0 : index
    %35 = vector.load %arg9[%c0_16, %c0_17] : memref<64x32xf32, #tpu.memory_space<vmem>>, vector<64x32xf32>
    %36 = vector.shape_cast %35 : vector<64x32xf32> to vector<1x64x32xf32>
    %c0_18 = arith.constant 0 : index
    %c0_19 = arith.constant 0 : index
    %37 = vector.load %arg10[%c0_18, %c0_19] : memref<64x32xf32, #tpu.memory_space<vmem>>, vector<64x32xf32>
    %38 = vector.shape_cast %37 : vector<64x32xf32> to vector<1x64x32xf32>
    %39 = vector.extract_strided_slice %34 {offsets = [0, 0], sizes = [128, 32], strides = [1, 1]} : vector<128x160xf32> to vector<128x32xf32>
    %40 = vector.shape_cast %39 : vector<128x32xf32> to vector<2x64x32xf32>
    %41 = vector.extract_strided_slice %34 {offsets = [0, 32], sizes = [128, 32], strides = [1, 1]} : vector<128x160xf32> to vector<128x32xf32>
    %42 = vector.shape_cast %41 : vector<128x32xf32> to vector<2x64x32xf32>
    %43 = vector.extract_strided_slice %34 {offsets = [0, 64], sizes = [128, 32], strides = [1, 1]} : vector<128x160xf32> to vector<128x32xf32>
    %44 = vector.shape_cast %43 : vector<128x32xf32> to vector<2x64x32xf32>
    %45 = vector.extract_strided_slice %34 {offsets = [0, 96], sizes = [128, 32], strides = [1, 1]} : vector<128x160xf32> to vector<128x32xf32>
    %46 = vector.shape_cast %45 : vector<128x32xf32> to vector<2x64x32xf32>
    %47 = vector.extract_strided_slice %34 {offsets = [0, 128], sizes = [128, 32], strides = [1, 1]} : vector<128x160xf32> to vector<128x32xf32>
    %48 = vector.shape_cast %47 : vector<128x32xf32> to vector<2x64x32xf32>
    %49 = vector.broadcast %36 : vector<1x64x32xf32> to vector<2x64x32xf32>
    %50 = arith.mulf %40, %49 : vector<2x64x32xf32>
    %51 = vector.broadcast %38 : vector<1x64x32xf32> to vector<2x64x32xf32>
    %52 = arith.mulf %46, %51 : vector<2x64x32xf32>
    %53 = arith.addf %50, %52 : vector<2x64x32xf32>
    %cst_20 = arith.constant 0.353553385 : f32
    %54 = vector.broadcast %cst_20 : f32 to vector<2x64x32xf32>
    %55 = arith.mulf %53, %54 : vector<2x64x32xf32>
    %56 = arith.truncf %55 : vector<2x64x32xf32> to vector<2x64x32xbf16>
    %57 = vector.broadcast %36 : vector<1x64x32xf32> to vector<2x64x32xf32>
    %58 = arith.mulf %42, %57 : vector<2x64x32xf32>
    %59 = vector.broadcast %38 : vector<1x64x32xf32> to vector<2x64x32xf32>
    %60 = arith.mulf %48, %59 : vector<2x64x32xf32>
    %61 = arith.addf %58, %60 : vector<2x64x32xf32>
    %62 = arith.truncf %61 : vector<2x64x32xf32> to vector<2x64x32xbf16>
    %63 = arith.truncf %44 : vector<2x64x32xf32> to vector<2x64x32xbf16>
    %64 = vector.extract_strided_slice %56 {offsets = [0, 0, 0], sizes = [2, 64, 8], strides = [1, 1, 1]} : vector<2x64x32xbf16> to vector<2x64x8xbf16>
    %65 = vector.extract_strided_slice %56 {offsets = [0, 0, 8], sizes = [2, 64, 8], strides = [1, 1, 1]} : vector<2x64x32xbf16> to vector<2x64x8xbf16>
    %66 = vector.extract_strided_slice %56 {offsets = [0, 0, 16], sizes = [2, 64, 8], strides = [1, 1, 1]} : vector<2x64x32xbf16> to vector<2x64x8xbf16>
    %67 = vector.extract_strided_slice %56 {offsets = [0, 0, 24], sizes = [2, 64, 8], strides = [1, 1, 1]} : vector<2x64x32xbf16> to vector<2x64x8xbf16>
    %68 = tpu.concatenate %64, %65, %66, %67 in 0 : vector<2x64x8xbf16>, vector<2x64x8xbf16>, vector<2x64x8xbf16>, vector<2x64x8xbf16> -> vector<8x64x8xbf16>
    %69 = vector.extract_strided_slice %62 {offsets = [0, 0, 0], sizes = [2, 64, 8], strides = [1, 1, 1]} : vector<2x64x32xbf16> to vector<2x64x8xbf16>
    %70 = vector.extract_strided_slice %62 {offsets = [0, 0, 8], sizes = [2, 64, 8], strides = [1, 1, 1]} : vector<2x64x32xbf16> to vector<2x64x8xbf16>
    %71 = vector.extract_strided_slice %62 {offsets = [0, 0, 16], sizes = [2, 64, 8], strides = [1, 1, 1]} : vector<2x64x32xbf16> to vector<2x64x8xbf16>
    %72 = vector.extract_strided_slice %62 {offsets = [0, 0, 24], sizes = [2, 64, 8], strides = [1, 1, 1]} : vector<2x64x32xbf16> to vector<2x64x8xbf16>
    %73 = tpu.concatenate %69, %70, %71, %72 in 0 : vector<2x64x8xbf16>, vector<2x64x8xbf16>, vector<2x64x8xbf16>, vector<2x64x8xbf16> -> vector<8x64x8xbf16>
    %74 = vector.extract_strided_slice %63 {offsets = [0, 0, 0], sizes = [2, 64, 8], strides = [1, 1, 1]} : vector<2x64x32xbf16> to vector<2x64x8xbf16>
    %75 = vector.extract_strided_slice %63 {offsets = [0, 0, 8], sizes = [2, 64, 8], strides = [1, 1, 1]} : vector<2x64x32xbf16> to vector<2x64x8xbf16>
    %76 = vector.extract_strided_slice %63 {offsets = [0, 0, 16], sizes = [2, 64, 8], strides = [1, 1, 1]} : vector<2x64x32xbf16> to vector<2x64x8xbf16>
    %77 = vector.extract_strided_slice %63 {offsets = [0, 0, 24], sizes = [2, 64, 8], strides = [1, 1, 1]} : vector<2x64x32xbf16> to vector<2x64x8xbf16>
    %78 = tpu.concatenate %74, %75, %76, %77 in 0 : vector<2x64x8xbf16>, vector<2x64x8xbf16>, vector<2x64x8xbf16>, vector<2x64x8xbf16> -> vector<8x64x8xbf16>
    "tpu.trace_start"() <{level = 10 : i32, message = "bqd,bkd->bqk"}> : () -> ()
    %cst_21 = arith.constant dense<0.000000e+00> : vector<8x64x64xf32>
    %79 = tpu.matmul %68, %73, %cst_21 {dimension_numbers = #tpu.dot_dimension_numbers<[2], [2], [1], [1], [0, 0, 0, 1, 1, 1], [0], [0]>} : vector<8x64x8xbf16>, vector<8x64x8xbf16>, vector<8x64x64xf32> -> vector<8x64x64xf32>
    "tpu.trace_stop"() : () -> ()
    %cst_22 = arith.constant dense<0xFF800000> : vector<8x64xf32>
    %80 = vector.multi_reduction <maximumf>, %79, %cst_22 [2] : vector<8x64x64xf32> to vector<8x64xf32>
    %81 = vector.shape_cast %80 : vector<8x64xf32> to vector<8x64x1xf32>
    %82 = vector.broadcast %81 : vector<8x64x1xf32> to vector<8x64x64xf32>
    %83 = arith.subf %79, %82 : vector<8x64x64xf32>
    %84 = math.exp %83 : vector<8x64x64xf32>
    %cst_23 = arith.constant dense<0.000000e+00> : vector<8x64xf32>
    %85 = vector.multi_reduction <add>, %84, %cst_23 [2] : vector<8x64x64xf32> to vector<8x64xf32>
    %86 = vector.shape_cast %85 : vector<8x64xf32> to vector<8x64x1xf32>
    %87 = tpu.reciprocal %86 {approx = true} : vector<8x64x1xf32> -> vector<8x64x1xf32>
    %88 = vector.broadcast %87 : vector<8x64x1xf32> to vector<8x64x64xf32>
    %89 = arith.mulf %84, %88 : vector<8x64x64xf32>
    %90 = arith.truncf %89 : vector<8x64x64xf32> to vector<8x64x64xbf16>
    "tpu.trace_start"() <{level = 10 : i32, message = "bqk,bkd->bqd"}> : () -> ()
    %cst_24 = arith.constant dense<0.000000e+00> : vector<8x64x8xf32>
    %91 = tpu.matmul %90, %78, %cst_24 {dimension_numbers = #tpu.dot_dimension_numbers<[2], [1], [1], [2], [0, 0, 0, 1, 1, 2], [0], [0]>} : vector<8x64x64xbf16>, vector<8x64x8xbf16>, vector<8x64x8xf32> -> vector<8x64x8xf32>
    "tpu.trace_stop"() : () -> ()
    %92 = vector.extract_strided_slice %91 {offsets = [0, 0, 0], sizes = [2, 64, 8], strides = [1, 1, 1]} : vector<8x64x8xf32> to vector<2x64x8xf32>
    %93 = vector.extract_strided_slice %91 {offsets = [2, 0, 0], sizes = [2, 64, 8], strides = [1, 1, 1]} : vector<8x64x8xf32> to vector<2x64x8xf32>
    %94 = vector.extract_strided_slice %91 {offsets = [4, 0, 0], sizes = [2, 64, 8], strides = [1, 1, 1]} : vector<8x64x8xf32> to vector<2x64x8xf32>
    %95 = vector.extract_strided_slice %91 {offsets = [6, 0, 0], sizes = [2, 64, 8], strides = [1, 1, 1]} : vector<8x64x8xf32> to vector<2x64x8xf32>
    %96 = tpu.concatenate %92, %93, %94, %95 in 2 : vector<2x64x8xf32>, vector<2x64x8xf32>, vector<2x64x8xf32>, vector<2x64x8xf32> -> vector<2x64x32xf32>
    %97 = vector.shape_cast %96 : vector<2x64x32xf32> to vector<128x32xf32>
    %98 = arith.truncf %97 : vector<128x32xf32> to vector<128x32xbf16>
    %c0_25 = arith.constant 0 : index
    %c0_26 = arith.constant 0 : index
    %99 = vector.load %arg7[%c0_25, %c0_26] : memref<32x32xbf16, #tpu.memory_space<vmem>>, vector<32x32xbf16>
    %cst_27 = arith.constant dense<0.000000e+00> : vector<128x32xf32>
    %100 = tpu.matmul %98, %99, %cst_27 {dimension_numbers = #tpu.dot_dimension_numbers<[1], [0], [0], [1], [0, 0, 1, 1], [], []>} : vector<128x32xbf16>, vector<32x32xbf16>, vector<128x32xf32> -> vector<128x32xf32>
    %c0_28 = arith.constant 0 : index
    %c0_29 = arith.constant 0 : index
    %101 = vector.load %arg8[%c0_28, %c0_29] : memref<1x32xf32, #tpu.memory_space<vmem>>, vector<1x32xf32>
    %102 = vector.broadcast %101 : vector<1x32xf32> to vector<128x32xf32>
    %103 = arith.addf %100, %102 : vector<128x32xf32>
    %104 = vector.shape_cast %103 : vector<128x32xf32> to vector<2x8x8x32xf32>
    %105 = tpu.transpose %104, [1, 0, 2, 3] : vector<2x8x8x32xf32> -> vector<8x2x8x32xf32>
    %106 = vector.shape_cast %105 : vector<8x2x8x32xf32> to vector<8x16x32xf32>
    %c0_30 = arith.constant 0 : index
    %c0_31 = arith.constant 0 : index
    %c0_32 = arith.constant 0 : index
    %c0_33 = arith.constant 0 : index
    %107 = vector.load %arg11[%c0_30, %c0_31, %c0_32, %c0_33] : memref<1x8x16x32xf32, #tpu.memory_space<vmem>>, vector<1x8x16x32xf32>
    %108 = vector.shape_cast %107 : vector<1x8x16x32xf32> to vector<8x16x32xf32>
    %109 = vector.shape_cast %106 : vector<8x16x32xf32> to vector<1x8x16x32xf32>
    tpu.vector_store %arg11[%c0_30, %c0_31, %c0_32, %c0_33], %109 {strides = array<i32>} : memref<1x8x16x32xf32, #tpu.memory_space<vmem>>, vector<1x8x16x32xf32>,
    return
  }
  func.func @transform_0(%arg0: i32, %arg1: i32) -> (i32, i32, i32, i32) {
    %c0_i32 = arith.constant 0 : i32
    %c0_i32_0 = arith.constant 0 : i32
    %c0_i32_1 = arith.constant 0 : i32
    return %arg0, %arg1, %c0_i32, %c0_i32_0 : i32, i32, i32, i32
  }
  func.func @transform_1(%arg0: i32, %arg1: i32) -> (i32, i32) {
    %c0_i32 = arith.constant 0 : i32
    %c0_i32_0 = arith.constant 0 : i32
    %c0_i32_1 = arith.constant 0 : i32
    return %c0_i32, %c0_i32_0 : i32, i32
  }
  func.func @transform_2(%arg0: i32, %arg1: i32) -> (i32, i32) {
    %c0_i32 = arith.constant 0 : i32
    %c0_i32_0 = arith.constant 0 : i32
    %c0_i32_1 = arith.constant 0 : i32
    return %c0_i32, %c0_i32_0 : i32, i32
  }
  func.func @transform_3(%arg0: i32, %arg1: i32) -> (i32, i32) {
    %c0_i32 = arith.constant 0 : i32
    %c0_i32_0 = arith.constant 0 : i32
    %c0_i32_1 = arith.constant 0 : i32
    return %c0_i32, %c0_i32_0 : i32, i32
  }
  func.func @transform_4(%arg0: i32, %arg1: i32) -> (i32, i32) {
    %c0_i32 = arith.constant 0 : i32
    %c0_i32_0 = arith.constant 0 : i32
    %c0_i32_1 = arith.constant 0 : i32
    return %c0_i32, %c0_i32_0 : i32, i32
  }
  func.func @transform_5(%arg0: i32, %arg1: i32) -> (i32, i32) {
    %c0_i32 = arith.constant 0 : i32
    %c0_i32_0 = arith.constant 0 : i32
    %c0_i32_1 = arith.constant 0 : i32
    return %c0_i32, %c0_i32_0 : i32, i32
  }
  func.func @transform_6(%arg0: i32, %arg1: i32) -> (i32, i32) {
    %c0_i32 = arith.constant 0 : i32
    %c0_i32_0 = arith.constant 0 : i32
    %c0_i32_1 = arith.constant 0 : i32
    return %c0_i32, %c0_i32_0 : i32, i32
  }
  func.func @transform_7(%arg0: i32, %arg1: i32) -> (i32, i32) {
    %c0_i32 = arith.constant 0 : i32
    %c0_i32_0 = arith.constant 0 : i32
    %c0_i32_1 = arith.constant 0 : i32
    return %c0_i32, %c0_i32_0 : i32, i32
  }
  func.func @transform_8(%arg0: i32, %arg1: i32) -> (i32, i32) {
    %c0_i32 = arith.constant 0 : i32
    %c0_i32_0 = arith.constant 0 : i32
    %c0_i32_1 = arith.constant 0 : i32
    return %c0_i32, %c0_i32_0 : i32, i32
  }
  func.func @transform_9(%arg0: i32, %arg1: i32) -> (i32, i32, i32, i32) {
    %c0_i32 = arith.constant 0 : i32
    %c0_i32_0 = arith.constant 0 : i32
    %c0_i32_1 = arith.constant 0 : i32
    return %arg0, %arg1, %c0_i32, %c0_i32_0 : i32, i32, i32, i32
  }
}

module attributes {stable_mosaic.version = 11 : i64} {
  func.func @_mlp_residual_kernel(%arg0: i32, %arg1: memref<32x128xf32, #tpu.memory_space<vmem>>, %arg2: memref<32x128xf32, #tpu.memory_space<vmem>>, %arg3: memref<128x128xf32, #tpu.memory_space<vmem>>, %arg4: memref<1x128xf32, #tpu.memory_space<vmem>>, %arg5: memref<1x128xf32, #tpu.memory_space<vmem>>, %arg6: memref<128x1024xbf16, #tpu.memory_space<vmem>>, %arg7: memref<1x1024xf32, #tpu.memory_space<vmem>>, %arg8: memref<512x128xbf16, #tpu.memory_space<vmem>>, %arg9: memref<1x128xf32, #tpu.memory_space<vmem>>, %arg10: memref<32x128xf32, #tpu.memory_space<vmem>>) attributes {dimension_semantics = [#tpu.dimension_semantics<parallel>], iteration_bounds = array<i64: 4>, scalar_prefetch = 0 : i64, scratch_operands = 0 : i64, tpu.core_type = #tpu.core_type<tc>, window_params = [{transform_indices = @transform_0, window_bounds = array<i64: 32, 128>}, {transform_indices = @transform_1, window_bounds = array<i64: 32, 128>}, {pipeline_mode = #tpu.pipeline_mode<synchronous>, transform_indices = @transform_2, window_bounds = array<i64: 128, 128>}, {pipeline_mode = #tpu.pipeline_mode<synchronous>, transform_indices = @transform_3, window_bounds = array<i64: 1, 128>}, {pipeline_mode = #tpu.pipeline_mode<synchronous>, transform_indices = @transform_4, window_bounds = array<i64: 1, 128>}, {pipeline_mode = #tpu.pipeline_mode<synchronous>, transform_indices = @transform_5, window_bounds = array<i64: 128, 1024>}, {pipeline_mode = #tpu.pipeline_mode<synchronous>, transform_indices = @transform_6, window_bounds = array<i64: 1, 1024>}, {pipeline_mode = #tpu.pipeline_mode<synchronous>, transform_indices = @transform_7, window_bounds = array<i64: 512, 128>}, {pipeline_mode = #tpu.pipeline_mode<synchronous>, transform_indices = @transform_8, window_bounds = array<i64: 1, 128>}, {transform_indices = @transform_9, window_bounds = array<i64: 32, 128>}]} {
    %c0 = arith.constant 0 : index
    %c0_0 = arith.constant 0 : index
    %0 = vector.load %arg1[%c0, %c0_0] : memref<32x128xf32, #tpu.memory_space<vmem>>, vector<32x128xf32>
    %c0_1 = arith.constant 0 : index
    %c0_2 = arith.constant 0 : index
    %1 = vector.load %arg2[%c0_1, %c0_2] : memref<32x128xf32, #tpu.memory_space<vmem>>, vector<32x128xf32>
    %2 = arith.addf %0, %1 : vector<32x128xf32>
    %c0_3 = arith.constant 0 : index
    %c0_4 = arith.constant 0 : index
    %3 = vector.load %arg3[%c0_3, %c0_4] : memref<128x128xf32, #tpu.memory_space<vmem>>, vector<128x128xf32>
    %cst = arith.constant dense<0.000000e+00> : vector<32x128xf32>
    %4 = tpu.matmul %2, %3, %cst {dimension_numbers = #tpu.dot_dimension_numbers<[1], [0], [0], [1], [0, 0, 1, 1], [], []>} : vector<32x128xf32>, vector<128x128xf32>, vector<32x128xf32> -> vector<32x128xf32>
    %5 = arith.subf %2, %4 : vector<32x128xf32>
    %6 = arith.mulf %5, %5 : vector<32x128xf32>
    %cst_5 = arith.constant dense<0.000000e+00> : vector<32x128xf32>
    %7 = tpu.matmul %6, %3, %cst_5 {dimension_numbers = #tpu.dot_dimension_numbers<[1], [0], [0], [1], [0, 0, 1, 1], [], []>} : vector<32x128xf32>, vector<128x128xf32>, vector<32x128xf32> -> vector<32x128xf32>
    %cst_6 = arith.constant 9.99999974E-6 : f32
    %8 = vector.broadcast %cst_6 : f32 to vector<32x128xf32>
    %9 = arith.addf %7, %8 : vector<32x128xf32>
    %10 = math.rsqrt %9 : vector<32x128xf32>
    %11 = arith.mulf %5, %10 : vector<32x128xf32>
    %c0_7 = arith.constant 0 : index
    %c0_8 = arith.constant 0 : index
    %12 = vector.load %arg4[%c0_7, %c0_8] : memref<1x128xf32, #tpu.memory_space<vmem>>, vector<1x128xf32>
    %13 = vector.broadcast %12 : vector<1x128xf32> to vector<32x128xf32>
    %14 = arith.mulf %11, %13 : vector<32x128xf32>
    %c0_9 = arith.constant 0 : index
    %c0_10 = arith.constant 0 : index
    %15 = vector.load %arg5[%c0_9, %c0_10] : memref<1x128xf32, #tpu.memory_space<vmem>>, vector<1x128xf32>
    %16 = vector.broadcast %15 : vector<1x128xf32> to vector<32x128xf32>
    %17 = arith.addf %14, %16 : vector<32x128xf32>
    %18 = arith.truncf %17 : vector<32x128xf32> to vector<32x128xbf16>
    %c0_11 = arith.constant 0 : index
    %c0_12 = arith.constant 0 : index
    %19 = vector.load %arg6[%c0_11, %c0_12] : memref<128x1024xbf16, #tpu.memory_space<vmem>>, vector<128x1024xbf16>
    %cst_13 = arith.constant dense<0.000000e+00> : vector<32x1024xf32>
    %20 = tpu.matmul %18, %19, %cst_13 {dimension_numbers = #tpu.dot_dimension_numbers<[1], [0], [0], [1], [0, 0, 1, 1], [], []>} : vector<32x128xbf16>, vector<128x1024xbf16>, vector<32x1024xf32> -> vector<32x1024xf32>
    %c0_14 = arith.constant 0 : index
    %c0_15 = arith.constant 0 : index
    %21 = vector.load %arg7[%c0_14, %c0_15] : memref<1x1024xf32, #tpu.memory_space<vmem>>, vector<1x1024xf32>
    %22 = vector.broadcast %21 : vector<1x1024xf32> to vector<32x1024xf32>
    %23 = arith.addf %20, %22 : vector<32x1024xf32>
    %24 = vector.extract_strided_slice %23 {offsets = [0, 0], sizes = [32, 512], strides = [1, 1]} : vector<32x1024xf32> to vector<32x512xf32>
    %25 = vector.extract_strided_slice %23 {offsets = [0, 512], sizes = [32, 512], strides = [1, 1]} : vector<32x1024xf32> to vector<32x512xf32>
    %26 = arith.mulf %24, %25 : vector<32x512xf32>
    %27 = arith.negf %25 : vector<32x512xf32>
    %28 = math.exp %27 : vector<32x512xf32>
    %cst_16 = arith.constant 1.000000e+00 : f32
    %29 = vector.broadcast %cst_16 : f32 to vector<32x512xf32>
    %30 = arith.addf %29, %28 : vector<32x512xf32>
    %31 = arith.divf %29, %30 : vector<32x512xf32>
    %32 = arith.mulf %26, %31 : vector<32x512xf32>
    %33 = arith.truncf %32 : vector<32x512xf32> to vector<32x512xbf16>
    %c0_17 = arith.constant 0 : index
    %c0_18 = arith.constant 0 : index
    %34 = vector.load %arg8[%c0_17, %c0_18] : memref<512x128xbf16, #tpu.memory_space<vmem>>, vector<512x128xbf16>
    %cst_19 = arith.constant dense<0.000000e+00> : vector<32x128xf32>
    %35 = tpu.matmul %33, %34, %cst_19 {dimension_numbers = #tpu.dot_dimension_numbers<[1], [0], [0], [1], [0, 0, 1, 1], [], []>} : vector<32x512xbf16>, vector<512x128xbf16>, vector<32x128xf32> -> vector<32x128xf32>
    %c0_20 = arith.constant 0 : index
    %c0_21 = arith.constant 0 : index
    %36 = vector.load %arg9[%c0_20, %c0_21] : memref<1x128xf32, #tpu.memory_space<vmem>>, vector<1x128xf32>
    %37 = vector.broadcast %36 : vector<1x128xf32> to vector<32x128xf32>
    %38 = arith.addf %35, %37 : vector<32x128xf32>
    %39 = arith.addf %2, %38 : vector<32x128xf32>
    %c0_22 = arith.constant 0 : index
    %c0_23 = arith.constant 0 : index
    %40 = vector.load %arg10[%c0_22, %c0_23] : memref<32x128xf32, #tpu.memory_space<vmem>>, vector<32x128xf32>
    tpu.vector_store %arg10[%c0_22, %c0_23], %39 {strides = array<i32>} : memref<32x128xf32, #tpu.memory_space<vmem>>, vector<32x128xf32>,
    return
  }
  func.func @transform_0(%arg0: i32) -> (i32, i32) {
    %c0_i32 = arith.constant 0 : i32
    %c0_i32_0 = arith.constant 0 : i32
    return %arg0, %c0_i32 : i32, i32
  }
  func.func @transform_1(%arg0: i32) -> (i32, i32) {
    %c0_i32 = arith.constant 0 : i32
    %c0_i32_0 = arith.constant 0 : i32
    return %arg0, %c0_i32 : i32, i32
  }
  func.func @transform_2(%arg0: i32) -> (i32, i32) {
    %c0_i32 = arith.constant 0 : i32
    %c0_i32_0 = arith.constant 0 : i32
    %c0_i32_1 = arith.constant 0 : i32
    return %c0_i32, %c0_i32_0 : i32, i32
  }
  func.func @transform_3(%arg0: i32) -> (i32, i32) {
    %c0_i32 = arith.constant 0 : i32
    %c0_i32_0 = arith.constant 0 : i32
    %c0_i32_1 = arith.constant 0 : i32
    return %c0_i32, %c0_i32_0 : i32, i32
  }
  func.func @transform_4(%arg0: i32) -> (i32, i32) {
    %c0_i32 = arith.constant 0 : i32
    %c0_i32_0 = arith.constant 0 : i32
    %c0_i32_1 = arith.constant 0 : i32
    return %c0_i32, %c0_i32_0 : i32, i32
  }
  func.func @transform_5(%arg0: i32) -> (i32, i32) {
    %c0_i32 = arith.constant 0 : i32
    %c0_i32_0 = arith.constant 0 : i32
    %c0_i32_1 = arith.constant 0 : i32
    return %c0_i32, %c0_i32_0 : i32, i32
  }
  func.func @transform_6(%arg0: i32) -> (i32, i32) {
    %c0_i32 = arith.constant 0 : i32
    %c0_i32_0 = arith.constant 0 : i32
    %c0_i32_1 = arith.constant 0 : i32
    return %c0_i32, %c0_i32_0 : i32, i32
  }
  func.func @transform_7(%arg0: i32) -> (i32, i32) {
    %c0_i32 = arith.constant 0 : i32
    %c0_i32_0 = arith.constant 0 : i32
    %c0_i32_1 = arith.constant 0 : i32
    return %c0_i32, %c0_i32_0 : i32, i32
  }
  func.func @transform_8(%arg0: i32) -> (i32, i32) {
    %c0_i32 = arith.constant 0 : i32
    %c0_i32_0 = arith.constant 0 : i32
    %c0_i32_1 = arith.constant 0 : i32
    return %c0_i32, %c0_i32_0 : i32, i32
  }
  func.func @transform_9(%arg0: i32) -> (i32, i32) {
    %c0_i32 = arith.constant 0 : i32
    %c0_i32_0 = arith.constant 0 : i32
    return %arg0, %c0_i32 : i32, i32
  }
}

module attributes {stable_mosaic.version = 11 : i64} {
  func.func @_attn_kernel_masked(%arg0: i32, %arg1: i32, %arg2: memref<1x8x16x32xf32, #tpu.memory_space<vmem>>, %arg3: memref<1x2x64xi32, #tpu.memory_space<vmem>>, %arg4: memref<1x32xf32, #tpu.memory_space<vmem>>, %arg5: memref<1x32xf32, #tpu.memory_space<vmem>>, %arg6: memref<32x160xbf16, #tpu.memory_space<vmem>>, %arg7: memref<1x160xf32, #tpu.memory_space<vmem>>, %arg8: memref<32x32xbf16, #tpu.memory_space<vmem>>, %arg9: memref<1x32xf32, #tpu.memory_space<vmem>>, %arg10: memref<64x32xf32, #tpu.memory_space<vmem>>, %arg11: memref<64x32xf32, #tpu.memory_space<vmem>>, %arg12: memref<1x8x16x32xf32, #tpu.memory_space<vmem>>) attributes {dimension_semantics = [#tpu.dimension_semantics<parallel>, #tpu.dimension_semantics<parallel>], iteration_bounds = array<i64: 2, 2>, scalar_prefetch = 0 : i64, scratch_operands = 0 : i64, tpu.core_type = #tpu.core_type<tc>, window_params = [{transform_indices = @transform_0, window_bounds = array<i64: 1, 8, 16, 32>}, {transform_indices = @transform_1, window_bounds = array<i64: 1, 2, 64>}, {pipeline_mode = #tpu.pipeline_mode<synchronous>, transform_indices = @transform_2, window_bounds = array<i64: 1, 32>}, {pipeline_mode = #tpu.pipeline_mode<synchronous>, transform_indices = @transform_3, window_bounds = array<i64: 1, 32>}, {pipeline_mode = #tpu.pipeline_mode<synchronous>, transform_indices = @transform_4, window_bounds = array<i64: 32, 160>}, {pipeline_mode = #tpu.pipeline_mode<synchronous>, transform_indices = @transform_5, window_bounds = array<i64: 1, 160>}, {pipeline_mode = #tpu.pipeline_mode<synchronous>, transform_indices = @transform_6, window_bounds = array<i64: 32, 32>}, {pipeline_mode = #tpu.pipeline_mode<synchronous>, transform_indices = @transform_7, window_bounds = array<i64: 1, 32>}, {pipeline_mode = #tpu.pipeline_mode<synchronous>, transform_indices = @transform_8, window_bounds = array<i64: 64, 32>}, {pipeline_mode = #tpu.pipeline_mode<synchronous>, transform_indices = @transform_9, window_bounds = array<i64: 64, 32>}, {transform_indices = @transform_10, window_bounds = array<i64: 1, 8, 16, 32>}]} {
    %c0 = arith.constant 0 : index
    %c0_0 = arith.constant 0 : index
    %c0_1 = arith.constant 0 : index
    %c0_2 = arith.constant 0 : index
    %0 = vector.load %arg2[%c0, %c0_0, %c0_1, %c0_2] : memref<1x8x16x32xf32, #tpu.memory_space<vmem>>, vector<1x8x16x32xf32>
    %1 = vector.shape_cast %0 : vector<1x8x16x32xf32> to vector<8x16x32xf32>
    %2 = vector.shape_cast %1 : vector<8x16x32xf32> to vector<8x2x8x32xf32>
    %3 = tpu.transpose %2, [1, 0, 2, 3] : vector<8x2x8x32xf32> -> vector<2x8x8x32xf32>
    %4 = vector.shape_cast %3 : vector<2x8x8x32xf32> to vector<128x32xf32>
    %cst = arith.constant dense<0.000000e+00> : vector<128xf32>
    %5 = vector.multi_reduction <add>, %4, %cst [1] : vector<128x32xf32> to vector<128xf32>
    %6 = vector.shape_cast %5 : vector<128xf32> to vector<128x1xf32>
    %cst_3 = arith.constant 3.200000e+01 : f32
    %7 = vector.broadcast %cst_3 : f32 to vector<128x1xf32>
    %8 = arith.divf %6, %7 : vector<128x1xf32>
    %9 = vector.broadcast %8 : vector<128x1xf32> to vector<128x32xf32>
    %10 = arith.subf %4, %9 : vector<128x32xf32>
    %11 = arith.mulf %10, %10 : vector<128x32xf32>
    %cst_4 = arith.constant dense<0.000000e+00> : vector<128xf32>
    %12 = vector.multi_reduction <add>, %11, %cst_4 [1] : vector<128x32xf32> to vector<128xf32>
    %13 = vector.shape_cast %12 : vector<128xf32> to vector<128x1xf32>
    %cst_5 = arith.constant 3.200000e+01 : f32
    %14 = vector.broadcast %cst_5 : f32 to vector<128x1xf32>
    %15 = arith.divf %13, %14 : vector<128x1xf32>
    %16 = vector.broadcast %8 : vector<128x1xf32> to vector<128x32xf32>
    %17 = arith.subf %4, %16 : vector<128x32xf32>
    %cst_6 = arith.constant 9.99999974E-6 : f32
    %18 = vector.broadcast %cst_6 : f32 to vector<128x1xf32>
    %19 = arith.addf %15, %18 : vector<128x1xf32>
    %20 = math.rsqrt %19 : vector<128x1xf32>
    %21 = vector.broadcast %20 : vector<128x1xf32> to vector<128x32xf32>
    %22 = arith.mulf %17, %21 : vector<128x32xf32>
    %c0_7 = arith.constant 0 : index
    %c0_8 = arith.constant 0 : index
    %23 = vector.load %arg4[%c0_7, %c0_8] : memref<1x32xf32, #tpu.memory_space<vmem>>, vector<1x32xf32>
    %24 = vector.broadcast %23 : vector<1x32xf32> to vector<128x32xf32>
    %25 = arith.mulf %22, %24 : vector<128x32xf32>
    %c0_9 = arith.constant 0 : index
    %c0_10 = arith.constant 0 : index
    %26 = vector.load %arg5[%c0_9, %c0_10] : memref<1x32xf32, #tpu.memory_space<vmem>>, vector<1x32xf32>
    %27 = vector.broadcast %26 : vector<1x32xf32> to vector<128x32xf32>
    %28 = arith.addf %25, %27 : vector<128x32xf32>
    %29 = arith.truncf %28 : vector<128x32xf32> to vector<128x32xbf16>
    %c0_11 = arith.constant 0 : index
    %c0_12 = arith.constant 0 : index
    %30 = vector.load %arg6[%c0_11, %c0_12] : memref<32x160xbf16, #tpu.memory_space<vmem>>, vector<32x160xbf16>
    %cst_13 = arith.constant dense<0.000000e+00> : vector<128x160xf32>
    %31 = tpu.matmul %29, %30, %cst_13 {dimension_numbers = #tpu.dot_dimension_numbers<[1], [0], [0], [1], [0, 0, 1, 1], [], []>} : vector<128x32xbf16>, vector<32x160xbf16>, vector<128x160xf32> -> vector<128x160xf32>
    %c0_14 = arith.constant 0 : index
    %c0_15 = arith.constant 0 : index
    %32 = vector.load %arg7[%c0_14, %c0_15] : memref<1x160xf32, #tpu.memory_space<vmem>>, vector<1x160xf32>
    %33 = vector.broadcast %32 : vector<1x160xf32> to vector<128x160xf32>
    %34 = arith.addf %31, %33 : vector<128x160xf32>
    %c0_16 = arith.constant 0 : index
    %c0_17 = arith.constant 0 : index
    %35 = vector.load %arg10[%c0_16, %c0_17] : memref<64x32xf32, #tpu.memory_space<vmem>>, vector<64x32xf32>
    %36 = vector.shape_cast %35 : vector<64x32xf32> to vector<1x64x32xf32>
    %c0_18 = arith.constant 0 : index
    %c0_19 = arith.constant 0 : index
    %37 = vector.load %arg11[%c0_18, %c0_19] : memref<64x32xf32, #tpu.memory_space<vmem>>, vector<64x32xf32>
    %38 = vector.shape_cast %37 : vector<64x32xf32> to vector<1x64x32xf32>
    %39 = vector.extract_strided_slice %34 {offsets = [0, 0], sizes = [128, 32], strides = [1, 1]} : vector<128x160xf32> to vector<128x32xf32>
    %40 = vector.shape_cast %39 : vector<128x32xf32> to vector<2x64x32xf32>
    %41 = vector.extract_strided_slice %34 {offsets = [0, 32], sizes = [128, 32], strides = [1, 1]} : vector<128x160xf32> to vector<128x32xf32>
    %42 = vector.shape_cast %41 : vector<128x32xf32> to vector<2x64x32xf32>
    %43 = vector.extract_strided_slice %34 {offsets = [0, 64], sizes = [128, 32], strides = [1, 1]} : vector<128x160xf32> to vector<128x32xf32>
    %44 = vector.shape_cast %43 : vector<128x32xf32> to vector<2x64x32xf32>
    %45 = vector.extract_strided_slice %34 {offsets = [0, 96], sizes = [128, 32], strides = [1, 1]} : vector<128x160xf32> to vector<128x32xf32>
    %46 = vector.shape_cast %45 : vector<128x32xf32> to vector<2x64x32xf32>
    %47 = vector.extract_strided_slice %34 {offsets = [0, 128], sizes = [128, 32], strides = [1, 1]} : vector<128x160xf32> to vector<128x32xf32>
    %48 = vector.shape_cast %47 : vector<128x32xf32> to vector<2x64x32xf32>
    %49 = vector.broadcast %36 : vector<1x64x32xf32> to vector<2x64x32xf32>
    %50 = arith.mulf %40, %49 : vector<2x64x32xf32>
    %51 = vector.broadcast %38 : vector<1x64x32xf32> to vector<2x64x32xf32>
    %52 = arith.mulf %46, %51 : vector<2x64x32xf32>
    %53 = arith.addf %50, %52 : vector<2x64x32xf32>
    %cst_20 = arith.constant 0.353553385 : f32
    %54 = vector.broadcast %cst_20 : f32 to vector<2x64x32xf32>
    %55 = arith.mulf %53, %54 : vector<2x64x32xf32>
    %56 = arith.truncf %55 : vector<2x64x32xf32> to vector<2x64x32xbf16>
    %57 = vector.broadcast %36 : vector<1x64x32xf32> to vector<2x64x32xf32>
    %58 = arith.mulf %42, %57 : vector<2x64x32xf32>
    %59 = vector.broadcast %38 : vector<1x64x32xf32> to vector<2x64x32xf32>
    %60 = arith.mulf %48, %59 : vector<2x64x32xf32>
    %61 = arith.addf %58, %60 : vector<2x64x32xf32>
    %62 = arith.truncf %61 : vector<2x64x32xf32> to vector<2x64x32xbf16>
    %63 = arith.truncf %44 : vector<2x64x32xf32> to vector<2x64x32xbf16>
    %64 = vector.extract_strided_slice %56 {offsets = [0, 0, 0], sizes = [2, 64, 8], strides = [1, 1, 1]} : vector<2x64x32xbf16> to vector<2x64x8xbf16>
    %65 = vector.extract_strided_slice %56 {offsets = [0, 0, 8], sizes = [2, 64, 8], strides = [1, 1, 1]} : vector<2x64x32xbf16> to vector<2x64x8xbf16>
    %66 = vector.extract_strided_slice %56 {offsets = [0, 0, 16], sizes = [2, 64, 8], strides = [1, 1, 1]} : vector<2x64x32xbf16> to vector<2x64x8xbf16>
    %67 = vector.extract_strided_slice %56 {offsets = [0, 0, 24], sizes = [2, 64, 8], strides = [1, 1, 1]} : vector<2x64x32xbf16> to vector<2x64x8xbf16>
    %68 = tpu.concatenate %64, %65, %66, %67 in 0 : vector<2x64x8xbf16>, vector<2x64x8xbf16>, vector<2x64x8xbf16>, vector<2x64x8xbf16> -> vector<8x64x8xbf16>
    %69 = vector.extract_strided_slice %62 {offsets = [0, 0, 0], sizes = [2, 64, 8], strides = [1, 1, 1]} : vector<2x64x32xbf16> to vector<2x64x8xbf16>
    %70 = vector.extract_strided_slice %62 {offsets = [0, 0, 8], sizes = [2, 64, 8], strides = [1, 1, 1]} : vector<2x64x32xbf16> to vector<2x64x8xbf16>
    %71 = vector.extract_strided_slice %62 {offsets = [0, 0, 16], sizes = [2, 64, 8], strides = [1, 1, 1]} : vector<2x64x32xbf16> to vector<2x64x8xbf16>
    %72 = vector.extract_strided_slice %62 {offsets = [0, 0, 24], sizes = [2, 64, 8], strides = [1, 1, 1]} : vector<2x64x32xbf16> to vector<2x64x8xbf16>
    %73 = tpu.concatenate %69, %70, %71, %72 in 0 : vector<2x64x8xbf16>, vector<2x64x8xbf16>, vector<2x64x8xbf16>, vector<2x64x8xbf16> -> vector<8x64x8xbf16>
    %74 = vector.extract_strided_slice %63 {offsets = [0, 0, 0], sizes = [2, 64, 8], strides = [1, 1, 1]} : vector<2x64x32xbf16> to vector<2x64x8xbf16>
    %75 = vector.extract_strided_slice %63 {offsets = [0, 0, 8], sizes = [2, 64, 8], strides = [1, 1, 1]} : vector<2x64x32xbf16> to vector<2x64x8xbf16>
    %76 = vector.extract_strided_slice %63 {offsets = [0, 0, 16], sizes = [2, 64, 8], strides = [1, 1, 1]} : vector<2x64x32xbf16> to vector<2x64x8xbf16>
    %77 = vector.extract_strided_slice %63 {offsets = [0, 0, 24], sizes = [2, 64, 8], strides = [1, 1, 1]} : vector<2x64x32xbf16> to vector<2x64x8xbf16>
    %78 = tpu.concatenate %74, %75, %76, %77 in 0 : vector<2x64x8xbf16>, vector<2x64x8xbf16>, vector<2x64x8xbf16>, vector<2x64x8xbf16> -> vector<8x64x8xbf16>
    "tpu.trace_start"() <{level = 10 : i32, message = "bqd,bkd->bqk"}> : () -> ()
    %cst_21 = arith.constant dense<0.000000e+00> : vector<8x64x64xf32>
    %79 = tpu.matmul %68, %73, %cst_21 {dimension_numbers = #tpu.dot_dimension_numbers<[2], [2], [1], [1], [0, 0, 0, 1, 1, 1], [0], [0]>} : vector<8x64x8xbf16>, vector<8x64x8xbf16>, vector<8x64x64xf32> -> vector<8x64x64xf32>
    "tpu.trace_stop"() : () -> ()
    %c0_22 = arith.constant 0 : index
    %c0_23 = arith.constant 0 : index
    %c0_24 = arith.constant 0 : index
    %80 = vector.load %arg3[%c0_22, %c0_23, %c0_24] : memref<1x2x64xi32, #tpu.memory_space<vmem>>, vector<1x2x64xi32>
    %81 = vector.shape_cast %80 : vector<1x2x64xi32> to vector<2x64xi32>
    %82 = vector.shape_cast %81 : vector<2x64xi32> to vector<2x64x1xi32>
    %83 = vector.shape_cast %81 : vector<2x64xi32> to vector<2x1x64xi32>
    %84 = vector.broadcast %82 : vector<2x64x1xi32> to vector<2x64x64xi32>
    %85 = vector.broadcast %83 : vector<2x1x64xi32> to vector<2x64x64xi32>
    %86 = arith.cmpi eq, %84, %85 : vector<2x64x64xi32>
    %cst_25 = arith.constant 0.000000e+00 : f32
    %cst_26 = arith.constant -1.000000e+02 : f32
    %87 = vector.broadcast %cst_25 : f32 to vector<2x64x64xf32>
    %88 = vector.broadcast %cst_26 : f32 to vector<2x64x64xf32>
    %89 = arith.select %86, %87, %88 : vector<2x64x64xi1>, vector<2x64x64xf32>
    %90 = vector.shape_cast %79 : vector<8x64x64xf32> to vector<4x2x64x64xf32>
    %91 = vector.shape_cast %89 : vector<2x64x64xf32> to vector<1x2x64x64xf32>
    %92 = vector.broadcast %91 : vector<1x2x64x64xf32> to vector<4x2x64x64xf32>
    %93 = arith.addf %90, %92 : vector<4x2x64x64xf32>
    %94 = vector.shape_cast %93 : vector<4x2x64x64xf32> to vector<8x64x64xf32>
    %cst_27 = arith.constant dense<0xFF800000> : vector<8x64xf32>
    %95 = vector.multi_reduction <maximumf>, %94, %cst_27 [2] : vector<8x64x64xf32> to vector<8x64xf32>
    %96 = vector.shape_cast %95 : vector<8x64xf32> to vector<8x64x1xf32>
    %97 = vector.broadcast %96 : vector<8x64x1xf32> to vector<8x64x64xf32>
    %98 = arith.subf %94, %97 : vector<8x64x64xf32>
    %99 = math.exp %98 : vector<8x64x64xf32>
    %cst_28 = arith.constant dense<0.000000e+00> : vector<8x64xf32>
    %100 = vector.multi_reduction <add>, %99, %cst_28 [2] : vector<8x64x64xf32> to vector<8x64xf32>
    %101 = vector.shape_cast %100 : vector<8x64xf32> to vector<8x64x1xf32>
    %102 = tpu.reciprocal %101 {approx = true} : vector<8x64x1xf32> -> vector<8x64x1xf32>
    %103 = vector.broadcast %102 : vector<8x64x1xf32> to vector<8x64x64xf32>
    %104 = arith.mulf %99, %103 : vector<8x64x64xf32>
    %105 = arith.truncf %104 : vector<8x64x64xf32> to vector<8x64x64xbf16>
    "tpu.trace_start"() <{level = 10 : i32, message = "bqk,bkd->bqd"}> : () -> ()
    %cst_29 = arith.constant dense<0.000000e+00> : vector<8x64x8xf32>
    %106 = tpu.matmul %105, %78, %cst_29 {dimension_numbers = #tpu.dot_dimension_numbers<[2], [1], [1], [2], [0, 0, 0, 1, 1, 2], [0], [0]>} : vector<8x64x64xbf16>, vector<8x64x8xbf16>, vector<8x64x8xf32> -> vector<8x64x8xf32>
    "tpu.trace_stop"() : () -> ()
    %107 = vector.extract_strided_slice %106 {offsets = [0, 0, 0], sizes = [2, 64, 8], strides = [1, 1, 1]} : vector<8x64x8xf32> to vector<2x64x8xf32>
    %108 = vector.extract_strided_slice %106 {offsets = [2, 0, 0], sizes = [2, 64, 8], strides = [1, 1, 1]} : vector<8x64x8xf32> to vector<2x64x8xf32>
    %109 = vector.extract_strided_slice %106 {offsets = [4, 0, 0], sizes = [2, 64, 8], strides = [1, 1, 1]} : vector<8x64x8xf32> to vector<2x64x8xf32>
    %110 = vector.extract_strided_slice %106 {offsets = [6, 0, 0], sizes = [2, 64, 8], strides = [1, 1, 1]} : vector<8x64x8xf32> to vector<2x64x8xf32>
    %111 = tpu.concatenate %107, %108, %109, %110 in 2 : vector<2x64x8xf32>, vector<2x64x8xf32>, vector<2x64x8xf32>, vector<2x64x8xf32> -> vector<2x64x32xf32>
    %112 = vector.shape_cast %111 : vector<2x64x32xf32> to vector<128x32xf32>
    %113 = arith.truncf %112 : vector<128x32xf32> to vector<128x32xbf16>
    %c0_30 = arith.constant 0 : index
    %c0_31 = arith.constant 0 : index
    %114 = vector.load %arg8[%c0_30, %c0_31] : memref<32x32xbf16, #tpu.memory_space<vmem>>, vector<32x32xbf16>
    %cst_32 = arith.constant dense<0.000000e+00> : vector<128x32xf32>
    %115 = tpu.matmul %113, %114, %cst_32 {dimension_numbers = #tpu.dot_dimension_numbers<[1], [0], [0], [1], [0, 0, 1, 1], [], []>} : vector<128x32xbf16>, vector<32x32xbf16>, vector<128x32xf32> -> vector<128x32xf32>
    %c0_33 = arith.constant 0 : index
    %c0_34 = arith.constant 0 : index
    %116 = vector.load %arg9[%c0_33, %c0_34] : memref<1x32xf32, #tpu.memory_space<vmem>>, vector<1x32xf32>
    %117 = vector.broadcast %116 : vector<1x32xf32> to vector<128x32xf32>
    %118 = arith.addf %115, %117 : vector<128x32xf32>
    %119 = vector.shape_cast %118 : vector<128x32xf32> to vector<2x8x8x32xf32>
    %120 = tpu.transpose %119, [1, 0, 2, 3] : vector<2x8x8x32xf32> -> vector<8x2x8x32xf32>
    %121 = vector.shape_cast %120 : vector<8x2x8x32xf32> to vector<8x16x32xf32>
    %c0_35 = arith.constant 0 : index
    %c0_36 = arith.constant 0 : index
    %c0_37 = arith.constant 0 : index
    %c0_38 = arith.constant 0 : index
    %122 = vector.load %arg12[%c0_35, %c0_36, %c0_37, %c0_38] : memref<1x8x16x32xf32, #tpu.memory_space<vmem>>, vector<1x8x16x32xf32>
    %123 = vector.shape_cast %122 : vector<1x8x16x32xf32> to vector<8x16x32xf32>
    %124 = vector.shape_cast %121 : vector<8x16x32xf32> to vector<1x8x16x32xf32>
    tpu.vector_store %arg12[%c0_35, %c0_36, %c0_37, %c0_38], %124 {strides = array<i32>} : memref<1x8x16x32xf32, #tpu.memory_space<vmem>>, vector<1x8x16x32xf32>,
    return
  }
  func.func @transform_0(%arg0: i32, %arg1: i32) -> (i32, i32, i32, i32) {
    %c0_i32 = arith.constant 0 : i32
    %c0_i32_0 = arith.constant 0 : i32
    %c0_i32_1 = arith.constant 0 : i32
    return %arg0, %arg1, %c0_i32, %c0_i32_0 : i32, i32, i32, i32
  }
  func.func @transform_1(%arg0: i32, %arg1: i32) -> (i32, i32, i32) {
    %c0_i32 = arith.constant 0 : i32
    %c0_i32_0 = arith.constant 0 : i32
    %c0_i32_1 = arith.constant 0 : i32
    return %arg1, %c0_i32, %c0_i32_0 : i32, i32, i32
  }
  func.func @transform_2(%arg0: i32, %arg1: i32) -> (i32, i32) {
    %c0_i32 = arith.constant 0 : i32
    %c0_i32_0 = arith.constant 0 : i32
    %c0_i32_1 = arith.constant 0 : i32
    return %c0_i32, %c0_i32_0 : i32, i32
  }
  func.func @transform_3(%arg0: i32, %arg1: i32) -> (i32, i32) {
    %c0_i32 = arith.constant 0 : i32
    %c0_i32_0 = arith.constant 0 : i32
    %c0_i32_1 = arith.constant 0 : i32
    return %c0_i32, %c0_i32_0 : i32, i32
  }
  func.func @transform_4(%arg0: i32, %arg1: i32) -> (i32, i32) {
    %c0_i32 = arith.constant 0 : i32
    %c0_i32_0 = arith.constant 0 : i32
    %c0_i32_1 = arith.constant 0 : i32
    return %c0_i32, %c0_i32_0 : i32, i32
  }
  func.func @transform_5(%arg0: i32, %arg1: i32) -> (i32, i32) {
    %c0_i32 = arith.constant 0 : i32
    %c0_i32_0 = arith.constant 0 : i32
    %c0_i32_1 = arith.constant 0 : i32
    return %c0_i32, %c0_i32_0 : i32, i32
  }
  func.func @transform_6(%arg0: i32, %arg1: i32) -> (i32, i32) {
    %c0_i32 = arith.constant 0 : i32
    %c0_i32_0 = arith.constant 0 : i32
    %c0_i32_1 = arith.constant 0 : i32
    return %c0_i32, %c0_i32_0 : i32, i32
  }
  func.func @transform_7(%arg0: i32, %arg1: i32) -> (i32, i32) {
    %c0_i32 = arith.constant 0 : i32
    %c0_i32_0 = arith.constant 0 : i32
    %c0_i32_1 = arith.constant 0 : i32
    return %c0_i32, %c0_i32_0 : i32, i32
  }
  func.func @transform_8(%arg0: i32, %arg1: i32) -> (i32, i32) {
    %c0_i32 = arith.constant 0 : i32
    %c0_i32_0 = arith.constant 0 : i32
    %c0_i32_1 = arith.constant 0 : i32
    return %c0_i32, %c0_i32_0 : i32, i32
  }
  func.func @transform_9(%arg0: i32, %arg1: i32) -> (i32, i32) {
    %c0_i32 = arith.constant 0 : i32
    %c0_i32_0 = arith.constant 0 : i32
    %c0_i32_1 = arith.constant 0 : i32
    return %c0_i32, %c0_i32_0 : i32, i32
  }
  func.func @transform_10(%arg0: i32, %arg1: i32) -> (i32, i32, i32, i32) {
    %c0_i32 = arith.constant 0 : i32
    %c0_i32_0 = arith.constant 0 : i32
    %c0_i32_1 = arith.constant 0 : i32
    return %arg0, %arg1, %c0_i32, %c0_i32_0 : i32, i32, i32, i32
  }
}

</mosaic_0001>

<bundles_post_ra>
// kernel: tile.63
= control target key start
LH: loop header
LB: loop body
LE: loop exit
PB: predicated region body
PF: predicated region fallthrough
CT: control target
= control target key end

     0   :  { %s22_s0 = inlined_call_operand.vmem [shape: f32[32], index: 0, kind: input, shape index: {}]   ;;  %s23_s1 = inlined_call_operand.vmem [shape: f32[4,32], index: 1, kind: output, shape index: {}]  }
   0x1   :  { %v4_v0 = vld [vmem:[%s22_s0] ss:$0 sm:$0xff] }
   0x2   :  { %5 = vst [vmem:[%s23_s1] sm:$0xf] %v4_v0 }

// kernel: tile.64
= control target key start
LH: loop header
LB: loop body
LE: loop exit
PB: predicated region body
PF: predicated region fallthrough
CT: control target
= control target key end

     0   :  { %vm8_vm0 = vcmask 261120   ;;  %s40_s8 = smov 32   ;;  %s41_s9 = smov 64   ;;  %vm14_vm1 = vcmask 1048320   ;;  %vm20_vm2 = vcmask 785920   ;;  %vm26_vm3 = vcmask 523520   ;;  %s58_s0 = inlined_call_operand.vmem [shape: f32[4,32], index: 0, kind: input, shape index: {}]   ;;  %s59_s1 = inlined_call_operand.vmem [shape: f32[1,128], index: 1, kind: output, shape index: {}]  }
   0x1   :  { %v5_v0 = vld [vmem:[%s58_s0] sm:$0xf]  ;;  %s39_s0 = smov 96  }
   0x2   :  { %6 = vst [vmem:[#allocation1] sm:$0xf] %v5_v0 }
   0x9   :  { %v11_v1 = vld [vmem:[#allocation1 + $0x3] sm:$0x1]   ;;  %v23_v2 = vld [vmem:[#allocation1 + $0x1] sm:$0x1]   ;;  %v7_v3 = vld [vmem:[#allocation1] sm:$0x1]  }
   0xa   :  { %12 = vrot.lane.b32.xlu0 %v11_v1, %s39_s0  ;;  %24 = vrot.lane.b32.xlu1 %v23_v2, %s40_s8  ;;  %v17_v4 = vld [vmem:[#allocation1 + $0x2] sm:$0x1]   ;;  %9 = vst.msk [vmem:[#allocation0] sm:$0x1] %vm8_vm0, %v7_v3  }
   0xe   :  { %18 = vrot.lane.b32.xlu0 %v17_v4, %s41_s9 }
  0x7c   :  { %v13_v5 = vpop.permute.xlu0 %12   ;;  %v25_v6 = vpop.permute.xlu1 %24  }
  0x7d   :  { %15 = vst.msk [vmem:[#allocation0] sm:$0x1] %vm14_vm1, %v13_v5  }
  0x80   :  { %v19_v7 = vpop.permute.xlu0 %18  }
  0x81   :  { %21 = vst.msk [vmem:[#allocation0] sm:$0x1] %vm20_vm2, %v19_v7  }
  0x82   :  { %27 = vst.msk [vmem:[#allocation0] sm:$0x1] %vm26_vm3, %v25_v6  }
  0x89   :  { %v32_v8 = vld [vmem:[#allocation0] sm:$0x1] }
  0x8a   :  { %35 = vst [vmem:[%s59_s1] sm:$0x1] %v32_v8 }

// kernel: swin_decoder_stage_forward.5
= control target key start
LH: loop header
LB: loop body
LE: loop exit
PB: predicated region body
PF: predicated region fallthrough
CT: control target
= control target key end

     0   :  { %s2280_s30 = smov 0   ;;  %s2881_s0 = inlined_call_operand.vmem [shape: f32[128,128], index: 0, kind: input, shape index: {}]   ;;  %s2882_s1 = inlined_call_operand.vmem [shape: f32[128,128], index: 1, kind: input, shape index: {}]   ;;  %s2883_s2 = inlined_call_operand.vmem [shape: f32[128,128], index: 2, kind: input, shape index: {}]   ;;  %s2884_s3 = inlined_call_operand.vmem [shape: f32[1,128], index: 3, kind: input, shape index: {}]   ;;  %s2885_s4 = inlined_call_operand.vmem [shape: f32[1,128], index: 4, kind: input, shape index: {}]   ;;  %s2886_s5 = inlined_call_operand.vmem [shape: bf16[128,1024], index: 5, kind: input, shape index: {}]   ;;  %s2887_s6 = inlined_call_operand.vmem [shape: f32[1,1024], index: 6, kind: input, shape index: {}]   ;;  %s2888_s7 = inlined_call_operand.vmem [shape: bf16[512,128], index: 7, kind: input, shape index: {}]   ;;  %s2889_s8 = inlined_call_operand.vmem [shape: f32[1,128], index: 8, kind: input, shape index: {}]   ;;  %s2890_s9 = inlined_call_operand.vmem [shape: f32[128,128], index: 9, kind: output, shape index: {}]  }
   0x1 LB: > { %s1808_s10 = sadd.s32 4294967295, %s2227_s30   ;;  %p1812_p0 = scmp.ge.s32.totalorder %s2227_s30, 1  ;;  %s2227_s30 = sphi %s2280_s30, %s19_s30  }
   0x2   : > { %p299_p1 = scmp.lt.s32.totalorder %s2227_s30, 5 }
   0x4   : > { %p300_p2 = pnand %p1812_p0, %p299_p1 }
   0x5   : > { %s1813_s15 = sshll.u32 (!%p300_p2), %s1808_s10, 2 }
   0x6   : > { %303 = sbr.rel (%p300_p2) target bundleno = 963 (0x3c3), region = 56  ;;  %p341_p3 = scmp.lt.s32.totalorder (!%p300_p2), %s1813_s15, 15 }
   0xb   : > { %v386_v0 = vld [vmem:[%s2883_s2 + $0x78] sm:$0xff]  ;;  %v385_v1 = vld [vmem:[%s2883_s2 + $0x70] sm:$0xff]  ;;  %v384_v2 = vld [vmem:[%s2883_s2 + $0x68] sm:$0xff]  ;;  %s2892_s15 = smov (!%p341_p3, %s1813_s15), 15 }
   0xc   : > { %2032 = vmatprep.subr.mxu0 %v386_v0  ;;  %2070 = vmatprep.subr.mxu1 %v386_v0  ;;  %v383_v3 = vld [vmem:[%s2883_s2 + $0x60] sm:$0xff]  ;;  %v382_v4 = vld [vmem:[%s2883_s2 + $0x58] sm:$0xff]  ;;  %s2303_s22 = sshll.u32 %s2892_s15, 3  ;;  %v381_v7 = vld [vmem:[%s2883_s2 + $0x50] sm:$0xff] }
   0xd   : > { %2033 = vmatpush3.msra.mxu0 %v386_v0  ;;  %2071 = vmatpush3.msra.mxu1 %v386_v0  ;;  %s2309_s25 = scalar_lea.vmem %s2881_s0, %s2303_s22  ;;  %s2315_s28 = scalar_lea.vmem %s2882_s1, %s2303_s22  ;;  %v380_v9 = vld [vmem:[%s2883_s2 + $0x48] sm:$0xff]  ;;  %v379_v10 = vld [vmem:[%s2883_s2 + $0x40] sm:$0xff]  ;;  %v378_v11 = vld [vmem:[%s2883_s2 + $0x38] sm:$0xff] }
   0xe   : > { %2034 = vmatprep.subr.mxu0 %v385_v1  ;;  %2072 = vmatprep.subr.mxu1 %v385_v1  ;;  %v359_v5 = vld [vmem:[%s2309_s25] sm:$0xff]  ;;  %v377_v12 = vld [vmem:[%s2883_s2 + $0x30] sm:$0xff]  ;;  %v376_v13 = vld [vmem:[%s2883_s2 + $0x28] sm:$0xff]  ;;  %s356_s26 = scalar_lea.vmem %s2890_s9, %s2303_s22 }
   0xf   : > { %2035 = vmatpush3.msra.mxu0 %v385_v1  ;;  %2073 = vmatpush3.msra.mxu1 %v385_v1  ;;  %v363_v6 = vld [vmem:[%s2315_s28] sm:$0xff]  ;;  %v374_v15 = vld [vmem:[%s2883_s2 + $0x18] sm:$0xff]  ;;  %v373_v16 = vld [vmem:[%s2883_s2 + $0x10] sm:$0xff] }
  0x10   : > { %2036 = vmatprep.subr.mxu0 %v384_v2  ;;  %2074 = vmatprep.subr.mxu1 %v384_v2  ;;  %v2322_v8 = vadd.f32 %v363_v6, %v359_v5  ;;  %v375_v14 = vld [vmem:[%s2883_s2 + $0x20] sm:$0xff]  ;;  %v372_v17 = vld [vmem:[%s2883_s2 + $0x8] sm:$0xff]  ;;  %v361_v20 = vld [vmem:[%s2309_s25 + $0x10] sm:$0xff] }
  0x11   : > { %2037 = vmatpush3.msra.mxu0 %v384_v2  ;;  %2075 = vmatpush3.msra.mxu1 %v384_v2  ;;  %v360_v18 = vld [vmem:[%s2309_s25 + $0x8] sm:$0xff]  ;;  %v365_v21 = vld [vmem:[%s2315_s28 + $0x10] sm:$0xff]  ;;  %v371_v22 = vld [vmem:[%s2883_s2] sm:$0xff] }
  0x12   : > { %2038 = vmatprep.subr.mxu0 %v383_v3  ;;  %2076 = vmatprep.subr.mxu1 %v383_v3  ;;  %v364_v19 = vld [vmem:[%s2315_s28 + $0x8] sm:$0xff]  ;;  %v2361_v24 = vadd.f32 %v365_v21, %v361_v20  ;;  %v362_v25 = vld [vmem:[%s2309_s25 + $0x18] sm:$0xff]  ;;  %v653_v28 = vld [vmem:[%s2886_s5 + $0x1c0] sm:$0xff] }
  0x13   : > { %2039 = vmatpush3.msra.mxu0 %v383_v3  ;;  %2077 = vmatpush3.msra.mxu1 %v383_v3  ;;  %v2359_v23 = vadd.f32 %v364_v19, %v360_v18  ;;  %v366_v26 = vld [vmem:[%s2315_s28 + $0x18] sm:$0xff]  ;;  %v657_v29 = vld [vmem:[%s2886_s5 + $0x1e0] sm:$0xff]  ;;  %v654_v30 = vld [vmem:[%s2886_s5 + $0x1c8] sm:$0xff] }
  0x14   : > { %2040 = vmatprep.subr.mxu0 %v382_v4  ;;  %2078 = vmatprep.subr.mxu1 %v382_v4  ;;  %v2366_v27 = vadd.f32 %v366_v26, %v362_v25  ;;  %v1877_v31 = vcombine.low %v653_v28, %v657_v29  ;;  %v1878_v32 = vcombine.high %v653_v28, %v657_v29  ;;  %v658_v33 = vld [vmem:[%s2886_s5 + $0x1e8] sm:$0xff]  ;;  %v645_v34 = vld [vmem:[%s2886_s5 + $0x180] sm:$0xff] }
  0x15   : > { %2041 = vmatpush3.msra.mxu0 %v382_v4  ;;  %2064 = vmatprep.mubr.f32.mxu0 %v2322_v8  ;;  %v649_v35 = vld [vmem:[%s2886_s5 + $0x1a0] sm:$0xff]  ;;  %v1879_v36 = vcombine.low %v654_v30, %v658_v33  ;;  %v1880_v37 = vcombine.high %v654_v30, %v658_v33  ;;  %v646_v44 = vld [vmem:[%s2886_s5 + $0x188] sm:$0xff] }
  0x16   : > { %2042 = vmatprep.subr.mxu0 %v381_v7  ;;  %2079 = vmatpush3.msra.mxu1 %v382_v4  ;;  %v1870_v38 = vcombine.high %v645_v34, %v649_v35  ;;  %v1869_v39 = vcombine.low %v645_v34, %v649_v35  ;;  %v650_v45 = vld [vmem:[%s2886_s5 + $0x1a8] sm:$0xff]  ;;  %v637_v56 = vld [vmem:[%s2886_s5 + $0x140] sm:$0xff] }
  0x17   : > { %2043 = vmatpush3.msra.mxu0 %v381_v7  ;;  %2080 = vmatprep.subr.mxu1 %v381_v7  ;;  %v1872_v51 = vcombine.high %v646_v44, %v650_v45  ;;  %v1871_v55 = vcombine.low %v646_v44, %v650_v45  ;;  %v641_v57 = vld [vmem:[%s2886_s5 + $0x160] sm:$0xff]  ;;  %v638_v58 = vld [vmem:[%s2886_s5 + $0x148] sm:$0xff]  ;;  %v2229_v44 = vmov 0   ;;  %v655_v45 = vld [vmem:[%s2886_s5 + $0x1d0] sm:$0xff] }
  0x18   : > { %2044 = vmatprep.subr.mxu0 %v380_v9  ;;  %2081 = vmatpush3.msra.mxu1 %v381_v7  ;;  %v1862_v59 = vcombine.high %v637_v56, %v641_v57  ;;  %v642_v60 = vld [vmem:[%s2886_s5 + $0x168] sm:$0xff]  ;;  %v1861_v61 = vcombine.low %v637_v56, %v641_v57  ;;  %v629_v0 = vld [vmem:[%s2886_s5 + $0x100] sm:$0xff] }
  0x19   : > { %2045 = vmatpush3.msra.mxu0 %v380_v9  ;;  %2082 = vmatprep.subr.mxu1 %v380_v9  ;;  %v1863_v62 = vcombine.low %v638_v58, %v642_v60  ;;  %v1864_v63 = vcombine.high %v638_v58, %v642_v60  ;;  %v633_v1 = vld [vmem:[%s2886_s5 + $0x120] sm:$0xff]  ;;  %v630_v2 = vld [vmem:[%s2886_s5 + $0x108] sm:$0xff] }
  0x1a   : > { %2046 = vmatprep.subr.mxu0 %v379_v10  ;;  %2083 = vmatpush3.msra.mxu1 %v380_v9  ;;  %v1854_v3 = vcombine.high %v629_v0, %v633_v1  ;;  %v634_v4 = vld [vmem:[%s2886_s5 + $0x128] sm:$0xff]  ;;  %v1853_v5 = vcombine.low %v629_v0, %v633_v1  ;;  %v621_v9 = vld [vmem:[%s2886_s5 + $0xc0] sm:$0xff] }
  0x1b   : > { %2047 = vmatpush3.msra.mxu0 %v379_v10  ;;  %2084 = vmatprep.subr.mxu1 %v379_v10  ;;  %v1855_v6 = vcombine.low %v630_v2, %v634_v4  ;;  %v1856_v7 = vcombine.high %v630_v2, %v634_v4  ;;  %v617_v18 = vld [vmem:[%s2886_s5 + $0xa0] sm:$0xff]  ;;  %v614_v19 = vld [vmem:[%s2886_s5 + $0x88] sm:$0xff] }
  0x1c   : > { %2048 = vmatprep.subr.mxu0 %v378_v11  ;;  %2085 = vmatpush3.msra.mxu1 %v379_v10  ;;  %v625_v10 = vld [vmem:[%s2886_s5 + $0xe0] sm:$0xff]  ;;  %v618_v21 = vld [vmem:[%s2886_s5 + $0xa8] sm:$0xff] }
  0x1d   : > { %2049 = vmatpush3.msra.mxu0 %v378_v11  ;;  %2086 = vmatprep.subr.mxu1 %v378_v11  ;;  %v1839_v25 = vcombine.low %v614_v19, %v618_v21  ;;  %v1840_v26 = vcombine.high %v614_v19, %v618_v21  ;;  %v605_v28 = vld [vmem:[%s2886_s5 + $0x40] sm:$0xff]  ;;  %v606_v30 = vld [vmem:[%s2886_s5 + $0x48] sm:$0xff]  ;;  %v639_v21 = vld [vmem:[%s2886_s5 + $0x150] sm:$0xff] }
  0x1e   : > { %2050 = vmatprep.subr.mxu0 %v377_v12  ;;  %2087 = vmatpush3.msra.mxu1 %v378_v11  ;;  %v622_v11 = vld [vmem:[%s2886_s5 + $0xc8] sm:$0xff]  ;;  %v609_v29 = vld [vmem:[%s2886_s5 + $0x60] sm:$0xff] }
  0x1f   : > { %2051 = vmatpush3.msra.mxu0 %v377_v12  ;;  %2088 = vmatprep.subr.mxu1 %v377_v12  ;;  %v1829_v33 = vcombine.low %v605_v28, %v609_v29  ;;  %v1819_v2 = vld [vmem:[%s2884_s3] ss:$0 sm:$0xff] }
  0x20   : > { %2052 = vmatprep.subr.mxu0 %v376_v13  ;;  %2089 = vmatpush3.msra.mxu1 %v377_v12  ;;  %v1846_v12 = vcombine.high %v621_v9, %v625_v10 }
  0x21   : > { %2053 = vmatpush3.msra.mxu0 %v376_v13  ;;  %2090 = vmatprep.subr.mxu1 %v376_v13 }
  0x22   : > { %2054 = vmatprep.subr.mxu0 %v375_v14  ;;  %2091 = vmatpush3.msra.mxu1 %v376_v13  ;;  %v626_v13 = vld [vmem:[%s2886_s5 + $0xe8] sm:$0xff] }
  0x23   : > { %2055 = vmatpush3.msra.mxu0 %v375_v14  ;;  %2092 = vmatprep.subr.mxu1 %v375_v14 }
  0x24   : > { %2056 = vmatprep.subr.mxu0 %v374_v15  ;;  %2093 = vmatpush3.msra.mxu1 %v375_v14  ;;  %v1845_v14 = vcombine.low %v621_v9, %v625_v10  ;;  %v1820_v9 = vld [vmem:[%s2885_s4] ss:$0 sm:$0xff] }
  0x25   : > { %2057 = vmatpush3.msra.mxu0 %v374_v15  ;;  %2094 = vmatprep.subr.mxu1 %v374_v15 }
  0x26   : > { %2058 = vmatprep.subr.mxu0 %v373_v16  ;;  %2095 = vmatpush3.msra.mxu1 %v374_v15  ;;  %v1847_v15 = vcombine.low %v622_v11, %v626_v13 }
  0x27   : > { %2059 = vmatpush3.msra.mxu0 %v373_v16  ;;  %2096 = vmatprep.subr.mxu1 %v373_v16 }
  0x28   : > { %2060 = vmatprep.subr.mxu0 %v372_v17  ;;  %2097 = vmatpush3.msra.mxu1 %v373_v16  ;;  %v1848_v16 = vcombine.high %v622_v11, %v626_v13  ;;  %v647_v11 = vld [vmem:[%s2886_s5 + $0x190] sm:$0xff] }
  0x29   : > { %2061 = vmatpush3.msra.mxu0 %v372_v17  ;;  %2098 = vmatprep.subr.mxu1 %v372_v17  ;;  %v651_v13 = vld [vmem:[%s2886_s5 + $0x1b0] sm:$0xff] }
  0x2a   : > { %2062 = vmatprep.subr.mxu0 %v371_v22  ;;  %2099 = vmatpush3.msra.mxu1 %v372_v17  ;;  %v613_v17 = vld [vmem:[%s2886_s5 + $0x80] sm:$0xff]  ;;  %v1874_v19 = vcombine.high %v647_v11, %v651_v13 }
  0x2b   : > { %2063 = vmatpush3.msra.mxu0 %v371_v22  ;;  %2100 = vmatprep.subr.mxu1 %v371_v22  ;;  %v1838_v20 = vcombine.high %v613_v17, %v617_v18 }
  0x2c   : > { %2065 = vmatmul.mubr.f32.vlgmr.msra.gmra.mxu0 %v2359_v23  ;;  %2101 = vmatpush3.msra.mxu1 %v371_v22  ;;  %v1837_v22 = vcombine.low %v613_v17, %v617_v18 }
  0x2d   : > { %2067 = vmatprep.mubr.f32.mxu0 %v2361_v24  ;;  %1023 = vmatprep.subr.bf16.mxu0 %v1878_v32  ;;  %v610_v32 = vld [vmem:[%s2886_s5 + $0x68] sm:$0xff] }
  0x2e   : > { %1076 = vmatprep.subr.bf16.mxu1 %v1880_v37  ;;  %1024 = vmatpush1.bf16.msra.mxu0 %v1877_v31  ;;  %v1830_v31 = vcombine.high %v605_v28, %v609_v29  ;;  %v1831_v34 = vcombine.low %v606_v30, %v610_v32  ;;  %v1832_v35 = vcombine.high %v606_v30, %v610_v32  ;;  %v601_v37 = vld [vmem:[%s2886_s5 + $0x20] sm:$0xff] }
  0x2f   : > { %1025 = vmatprep.subr.bf16.mxu0 %v1870_v38  ;;  %v598_v38 = vld [vmem:[%s2886_s5 + $0x8] sm:$0xff]  ;;  %v1873_v28 = vcombine.low %v647_v11, %v651_v13  ;;  %v600_v11 = vld [vmem:[%s2886_s5 + $0x18] sm:$0xff] }
  0x30   : > { %2068 = vmatmul.mubr.f32.gmra.mxu0 %v2366_v27 }
  0x31   : > { %1055 = vmatprep.mubr.bf16.mxu0 %v2229_v44 }
  0x32   : > { %1026 = vmatpush1.bf16.msra.mxu0 %v1869_v39 }
  0x33   : > { %1027 = vmatprep.subr.bf16.mxu0 %v1862_v59 }
  0x36   : > { %1028 = vmatpush1.bf16.msra.mxu0 %v1861_v61 }
  0x37   : > { %1029 = vmatprep.subr.bf16.mxu0 %v1854_v3 }
  0x3a   : > { %1030 = vmatpush1.bf16.msra.mxu0 %v1853_v5 }
  0x3b   : > { %1031 = vmatprep.subr.bf16.mxu0 %v1846_v12 }
  0x3e   : > { %1032 = vmatpush1.bf16.msra.mxu0 %v1845_v14 }
  0x3f   : > { %1033 = vmatprep.subr.bf16.mxu0 %v1838_v20 }
  0x42   : > { %1034 = vmatpush1.bf16.msra.mxu0 %v1837_v22 }
  0x43   : > { %1035 = vmatprep.subr.bf16.mxu0 %v1830_v31 }
  0x46   : > { %1036 = vmatpush1.bf16.msra.mxu0 %v1829_v33  ;;  %v631_v33 = vld [vmem:[%s2886_s5 + $0x110] sm:$0xff] }
  0xec   : > { %v2066_v40 = vpop.f32.mrf.mxu0 }
  0xed   : > { %v2389_v41 = vsub.f32 %v2359_v23, %v2066_v40 }
  0xee   : > { %v453_v42 = vpop.f32.mrf.mxu0 }
  0xef   : > { %v2392_v43 = vsub.f32 %v2322_v8, %v453_v42  ;;  %v477_v49 = vmul.f32 %v2389_v41, %v2389_v41  ;;  %v602_v42 = vld [vmem:[%s2886_s5 + $0x28] sm:$0xff] }
  0xf0   : > { %v2069_v46 = vpop.f32.mrf.mxu0 }
  0xf1   : > { %v2401_v47 = vsub.f32 %v2366_v27, %v2069_v46  ;;  %v476_v48 = vmul.f32 %v2392_v43, %v2392_v43  ;;  %v659_v46 = vld [vmem:[%s2886_s5 + $0x1f0] sm:$0xff] }
  0xf2   : > { %v463_v50 = vpop.f32.mrf.mxu0 }
  0xf3   : > { %v2408_v52 = vsub.f32 %v2361_v24, %v463_v50  ;;  %2102 = vmatprep.mubr.f32.mxu1 %v476_v48  ;;  %v479_v53 = vmul.f32 %v2401_v47, %v2401_v47  ;;  %v1823_v48 = vcombine.low %v598_v38, %v602_v42  ;;  %v1881_v50 = vcombine.low %v655_v45, %v659_v46 }
  0xf4   : > { %2103 = vmatmul.mubr.f32.vlgmr.msra.gmra.mxu1 %v477_v49  ;;  %v1824_v49 = vcombine.high %v598_v38, %v602_v42 }
  0xf5   : > { %v478_v54 = vmul.f32 %v2408_v52, %v2408_v52  ;;  %1077 = vmatpush1.bf16.msra.mxu1 %v1879_v36  ;;  %v597_v36 = vld [vmem:[%s2886_s5] sm:$0xff] }
  0xf6   : > { %1078 = vmatprep.subr.bf16.mxu1 %v1872_v51  ;;  %v1821_v39 = vcombine.low %v597_v36, %v601_v37  ;;  %v1822_v40 = vcombine.high %v597_v36, %v601_v37  ;;  %v1882_v51 = vcombine.high %v655_v45, %v659_v46  ;;  %v636_v36 = vld [vmem:[%s2886_s5 + $0x138] sm:$0xff]  ;;  %v623_v46 = vld [vmem:[%s2886_s5 + $0xd0] sm:$0xff] }
  0xf7   : > { %2105 = vmatprep.mubr.f32.mxu1 %v478_v54  ;;  %v660_v54 = vld [vmem:[%s2886_s5 + $0x1f8] sm:$0xff] }
  0xf8   : > { %2106 = vmatmul.mubr.f32.gmra.mxu1 %v479_v53  ;;  %v656_v53 = vld [vmem:[%s2886_s5 + $0x1d8] sm:$0xff]  ;;  %1037 = vmatprep.subr.bf16.mxu0 %v1822_v40 }
  0xf9   : > { %1079 = vmatpush1.bf16.msra.mxu1 %v1871_v55  ;;  %1108 = vmatprep.mubr.bf16.mxu1 %v2229_v44  ;;  %v1883_v55 = vcombine.low %v656_v53, %v660_v54  ;;  %v1884_v56 = vcombine.high %v656_v53, %v660_v54 }
  0xfa   : > { %1080 = vmatprep.subr.bf16.mxu1 %v1864_v63  ;;  %1038 = vmatpush1.bf16.msra.mxu0 %v1821_v39 }
  0xfb   : > { %1129 = vmatprep.subr.bf16.mxu0 %v1882_v51 }
  0xfd   : > { %1081 = vmatpush1.bf16.msra.mxu1 %v1863_v62 }
  0xfe   : > { %1082 = vmatprep.subr.bf16.mxu1 %v1856_v7 }
 0x101   : > { %1083 = vmatpush1.bf16.msra.mxu1 %v1855_v6 }
 0x102   : > { %1084 = vmatprep.subr.bf16.mxu1 %v1848_v16 }
 0x105   : > { %1085 = vmatpush1.bf16.msra.mxu1 %v1847_v15 }
 0x106   : > { %1086 = vmatprep.subr.bf16.mxu1 %v1840_v26  ;;  %v640_v26 = vld [vmem:[%s2886_s5 + $0x158] sm:$0xff] }
 0x109   : > { %1087 = vmatpush1.bf16.msra.mxu1 %v1839_v25  ;;  %v643_v25 = vld [vmem:[%s2886_s5 + $0x170] sm:$0xff] }
 0x10a   : > { %1088 = vmatprep.subr.bf16.mxu1 %v1832_v35  ;;  %v1866_v30 = vcombine.high %v639_v21, %v643_v25  ;;  %v632_v35 = vld [vmem:[%s2886_s5 + $0x118] sm:$0xff]  ;;  %v1865_v38 = vcombine.low %v639_v21, %v643_v25  ;;  %v2122_v21 = vld [vmem:[%s2888_s7 + $0xf0] sm:$0xff]  }
 0x10b   : > { %v1860_v45 = vcombine.high %v632_v35, %v636_v36  ;;  %v1859_v53 = vcombine.low %v632_v35, %v636_v36  ;;  %v2124_v25 = vld [vmem:[%s2888_s7 + $0xb0] sm:$0xff]   ;;  %v2135_v35 = vld [vmem:[%s2888_s7 + $0x18] sm:$0xff]  }
 0x10c   : > { %v2136_v36 = vld [vmem:[%s2888_s7 + $0x98] sm:$0xff]  }
 0x10d   : > { %1089 = vmatpush1.bf16.msra.mxu1 %v1831_v34  ;;  %v635_v34 = vld [vmem:[%s2886_s5 + $0x130] sm:$0xff] }
 0x10e   : > { %1090 = vmatprep.subr.bf16.mxu1 %v1824_v49  ;;  %v1858_v42 = vcombine.high %v631_v33, %v635_v34  ;;  %v624_v49 = vld [vmem:[%s2886_s5 + $0xd8] sm:$0xff]  ;;  %v1857_v51 = vcombine.low %v631_v33, %v635_v34 }
 0x10f   : > { %v2133_v33 = vld [vmem:[%s2888_s7 + $0x58] sm:$0xff]  }
 0x110   : > { %v2134_v34 = vld [vmem:[%s2888_s7 + $0xd8] sm:$0xff]  }
 0x111   : > { %1091 = vmatpush1.bf16.msra.mxu1 %v1823_v48  ;;  %v627_v48 = vld [vmem:[%s2886_s5 + $0xf0] sm:$0xff] }
 0x112   : > { %1182 = vmatprep.subr.bf16.mxu1 %v1884_v56  ;;  %v1850_v54 = vcombine.high %v623_v46, %v627_v48  ;;  %v615_v56 = vld [vmem:[%s2886_s5 + $0x90] sm:$0xff] }
 0x1b4   : > { %v2104_v57 = vpop.f32.mrf.mxu1 }
 0x1b5   : > { %v552_v58 = vadd.f32 1e-05, %v2104_v57  ;;  %v619_v57 = vld [vmem:[%s2886_s5 + $0xb0] sm:$0xff] }
 0x1b6   : > { %v546_v59 = vpop.f32.mrf.mxu1 }
 0x1b7   : > { %2149 = vrsqrt.f32 %v552_v58  ;;  %v547_v60 = vadd.f32 1e-05, %v546_v59  ;;  %v616_v58 = vld [vmem:[%s2886_s5 + $0x98] sm:$0xff] }
 0x1b8   : > { %v2107_v61 = vpop.f32.mrf.mxu1  ;;  %v620_v59 = vld [vmem:[%s2886_s5 + $0xb8] sm:$0xff] }
 0x1b9   : > { %2151 = vrsqrt.f32 %v547_v60  ;;  %v562_v62 = vadd.f32 1e-05, %v2107_v61  ;;  %v1849_v60 = vcombine.low %v623_v46, %v627_v48  ;;  %v2143_v46 = vld [vmem:[%s2888_s7 + $0x8] sm:$0xff]  }
 0x1ba   : > { %v556_v63 = vpop.f32.mrf.mxu1  ;;  %v2144_v48 = vld [vmem:[%s2888_s7 + $0x88] sm:$0xff]  }
 0x1bb   : > { %2153 = vrsqrt.f32 %v562_v62  ;;  %v557_v0 = vadd.f32 1e-05, %v556_v63  ;;  %v1842_v62 = vcombine.high %v615_v56, %v619_v57  ;;  %v1844_v63 = vcombine.high %v616_v58, %v620_v59 }
 0x1bd   : > { %2155 = vrsqrt.f32 %v557_v0  ;;  %v607_v0 = vld [vmem:[%s2886_s5 + $0x50] sm:$0xff] }
 0x1c4   : > { %v2150_v1 = vpop.eup %2149 }
 0x1c5   : > { %v570_v3 = vmul.f32 %v2150_v1, %v2389_v41  ;;  %v648_v41 = vld [vmem:[%s2886_s5 + $0x198] sm:$0xff]  ;;  %v611_v1 = vld [vmem:[%s2886_s5 + $0x70] sm:$0xff] }
 0x1c6   : > { %v2152_v4 = vpop.eup %2151  ;;  %v1833_v13 = vcombine.low %v607_v0, %v611_v1 }
 0x1c7   : > { %v569_v5 = vmul.f32 %v2152_v4, %v2392_v43  ;;  %v581_v6 = vmul.f32 %v1819_v2, %v570_v3  ;;  %v652_v43 = vld [vmem:[%s2886_s5 + $0x1b8] sm:$0xff]  ;;  %v1841_v4 = vcombine.low %v615_v56, %v619_v57 }
 0x1c8   : > { %v2154_v7 = vpop.eup %2153  ;;  %v1876_v20 = vcombine.high %v648_v41, %v652_v43  ;;  %v1875_v29 = vcombine.low %v648_v41, %v652_v43  ;;  %v612_v3 = vld [vmem:[%s2886_s5 + $0x78] sm:$0xff] }
 0x1c9   : > { %v580_v10 = vmul.f32 %v1819_v2, %v569_v5  ;;  %v592_v15 = vadd.f32 %v1820_v9, %v581_v6  ;;  %v572_v17 = vmul.f32 %v2154_v7, %v2401_v47  ;;  %v644_v47 = vld [vmem:[%s2886_s5 + $0x178] sm:$0xff]  ;;  %v1843_v5 = vcombine.low %v616_v58, %v620_v59 }
 0x1ca   : > { %v2156_v12 = vpop.eup %2155  ;;  %v1868_v31 = vcombine.high %v640_v26, %v644_v47  ;;  %v1867_v39 = vcombine.low %v640_v26, %v644_v47  ;;  %v1834_v6 = vcombine.high %v607_v0, %v611_v1  ;;  %v2125_v26 = vld [vmem:[%s2888_s7 + $0x68] sm:$0xff]   ;;  %v663_v0 = vlaneseq }
 0x1cb   : > { %v591_v14 = vadd.f32 %v1820_v9, %v580_v10  ;;  %v571_v16 = vmul.f32 %v2156_v12, %v2408_v52  ;;  %v583_v52 = vmul.f32 %v1819_v2, %v572_v17  ;;  %v603_v10 = vld [vmem:[%s2886_s5 + $0x30] sm:$0xff]  ;;  %v604_v12 = vld [vmem:[%s2886_s5 + $0x38] sm:$0xff]  ;;  %v2126_v47 = vld [vmem:[%s2888_s7 + $0xe8] sm:$0xff]  }
 0x1cc   : > { %v2117_v17 = vld [vmem:[%s2888_s7 + $0x78] sm:$0xff]  }
 0x1cd   : > { %v2522_v18 = vpack.c.bf16 %v592_v15, %v591_v14  ;;  %v582_v22 = vmul.f32 %v1819_v2, %v571_v16  ;;  %v594_v37 = vadd.f32 %v1820_v9, %v583_v52  ;;  %v608_v2 = vld [vmem:[%s2886_s5 + $0x58] sm:$0xff]  ;;  %v1828_v14 = vcombine.high %v600_v11, %v604_v12  ;;  %v2127_v52 = vld [vmem:[%s2888_s7 + $0x28] sm:$0xff]  }
 0x1ce   : > { %v1836_v7 = vcombine.high %v608_v2, %v612_v3  ;;  %v1835_v41 = vcombine.low %v608_v2, %v612_v3  ;;  %v1827_v16 = vcombine.low %v600_v11, %v604_v12  ;;  %v2732_v3 = vshrl.u32 %v663_v0, 7 }
 0x1cf   : > { %1056 = vmatmul.mubr.bf16.vlgmr.msra.gmra.mxu0 %v2522_v18  ;;  %1109 = vmatmul.mubr.bf16.vlgmr.msra.gmra.mxu1 %v2522_v18  ;;  %v593_v32 = vadd.f32 %v1820_v9, %v582_v22  ;;  %v599_v9 = vld [vmem:[%s2886_s5 + $0x10] sm:$0xff] }
 0x1d0   : > { %1130 = vmatpush1.bf16.msra.mxu0 %v1881_v50  ;;  %1183 = vmatpush1.bf16.msra.mxu1 %v1883_v55  ;;  %v628_v50 = vld [vmem:[%s2886_s5 + $0xf8] sm:$0xff]  ;;  %v1826_v43 = vcombine.high %v599_v9, %v603_v10  ;;  %v1825_v15 = vcombine.low %v599_v9, %v603_v10  ;;  %v2123_v22 = vld [vmem:[%s2888_s7 + $0x30] sm:$0xff]   ;;  %v2743_v9 = vld [vmem:[%s2887_s6] sm:$0xff]  ;;  %v685_v10 = vsub.s32 5, %v2732_v3  ;;  %v693_v11 = vsub.s32 7, %v2732_v3 }
 0x1d1   : > { %1131 = vmatprep.subr.bf16.mxu0 %v1874_v19  ;;  %1184 = vmatprep.subr.bf16.mxu1 %v1876_v20  ;;  %v2552_v40 = vpack.c.bf16 %v594_v37, %v593_v32  ;;  %v1852_v55 = vcombine.high %v624_v49, %v628_v50  ;;  %v1851_v61 = vcombine.low %v624_v49, %v628_v50  ;;  %v2118_v19 = vld [vmem:[%s2888_s7 + $0xf8] sm:$0xff]   ;;  %v2121_v20 = vld [vmem:[%s2888_s7 + $0x70] sm:$0xff]   ;;  %v2132_v32 = vld [vmem:[%s2888_s7 + $0xa0] sm:$0xff]  }
 0x1d2   : > { %1065 = vmatprep.mubr.bf16.mxu0 %v2229_v44  ;;  %1118 = vmatprep.mubr.bf16.mxu1 %v2229_v44  ;;  %v2137_v37 = vld [vmem:[%s2888_s7 + $0x50] sm:$0xff]   ;;  %v2145_v49 = vld [vmem:[%s2888_s7 + $0x40] sm:$0xff]  }
 0x1d3   : > { %v2146_v50 = vld [vmem:[%s2888_s7 + $0xc0] sm:$0xff]  }
 0x1d4   : > { %1132 = vmatpush1.bf16.msra.mxu0 %v1873_v28  ;;  %1185 = vmatpush1.bf16.msra.mxu1 %v1875_v29  ;;  %v2128_v28 = vld [vmem:[%s2888_s7 + $0xa8] sm:$0xff]   ;;  %v2129_v29 = vld [vmem:[%s2888_s7 + $0x60] sm:$0xff]  }
 0x1d5   : > { %1133 = vmatprep.subr.bf16.mxu0 %v1866_v30  ;;  %1186 = vmatprep.subr.bf16.mxu1 %v1868_v31  ;;  %v2130_v30 = vld [vmem:[%s2888_s7 + $0xe0] sm:$0xff]  }
 0x1d6   : > { %v2131_v31 = vld [vmem:[%s2888_s7 + $0x20] sm:$0xff]  }
 0x1d7   : > { %1066 = vmatmul.mubr.bf16.gmra.mxu0 %v2552_v40  ;;  %1119 = vmatmul.mubr.bf16.gmra.mxu1 %v2552_v40 }
 0x1d8   : > { %1134 = vmatpush1.bf16.msra.mxu0 %v1865_v38  ;;  %1187 = vmatpush1.bf16.msra.mxu1 %v1867_v39  ;;  %v2138_v38 = vld [vmem:[%s2888_s7 + $0xd0] sm:$0xff]  }
 0x1d9   : > { %1135 = vmatprep.subr.bf16.mxu0 %v1858_v42  ;;  %1188 = vmatprep.subr.bf16.mxu1 %v1860_v45  ;;  %v2139_v39 = vld [vmem:[%s2888_s7 + $0x10] sm:$0xff]   ;;  %v2141_v42 = vld [vmem:[%s2888_s7 + $0x48] sm:$0xff]  }
 0x1da   : > { %1161 = vmatprep.mubr.bf16.mxu0 %v2229_v44  ;;  %1214 = vmatprep.mubr.bf16.mxu1 %v2229_v44  ;;  %v2142_v45 = vld [vmem:[%s2888_s7 + $0xc8] sm:$0xff]  }
 0x1dc   : > { %1136 = vmatpush1.bf16.msra.mxu0 %v1857_v51  ;;  %1189 = vmatpush1.bf16.msra.mxu1 %v1859_v53  ;;  %v2147_v51 = vld [vmem:[%s2888_s7] sm:$0xff]  }
 0x1dd   : > { %1137 = vmatprep.subr.bf16.mxu0 %v1850_v54  ;;  %1190 = vmatprep.subr.bf16.mxu1 %v1852_v55  ;;  %v2148_v53 = vld [vmem:[%s2888_s7 + $0x80] sm:$0xff]  }
 0x1e0   : > { %1138 = vmatpush1.bf16.msra.mxu0 %v1849_v60  ;;  %1191 = vmatpush1.bf16.msra.mxu1 %v1851_v61 }
 0x1e1   : > { %1139 = vmatprep.subr.bf16.mxu0 %v1842_v62  ;;  %1192 = vmatprep.subr.bf16.mxu1 %v1844_v63 }
 0x1e4   : > { %1140 = vmatpush1.bf16.msra.mxu0 %v1841_v4  ;;  %1193 = vmatpush1.bf16.msra.mxu1 %v1843_v5  ;;  %v681_v4 = vsub.s32 4, %v2732_v3  ;;  %v689_v5 = vsub.s32 6, %v2732_v3 }
 0x1e5   : > { %1141 = vmatprep.subr.bf16.mxu0 %v1834_v6  ;;  %1194 = vmatprep.subr.bf16.mxu1 %v1836_v7 }
 0x1e6   : > { %v682_v12 = vrot.slane %v2743_v9, %v681_v4 }
 0x1e8   : > { %1142 = vmatpush1.bf16.msra.mxu0 %v1833_v13  ;;  %1195 = vmatpush1.bf16.msra.mxu1 %v1835_v41  ;;  %v690_v13 = vrot.slane %v2743_v9, %v689_v5 }
 0x1e9   : > { %1143 = vmatprep.subr.bf16.mxu0 %v1826_v43  ;;  %1196 = vmatprep.subr.bf16.mxu1 %v1828_v14 }
 0x1ec   : > { %1144 = vmatpush1.bf16.msra.mxu0 %v1825_v15  ;;  %1197 = vmatpush1.bf16.msra.mxu1 %v1827_v16  ;;  %v686_v16 = vrot.slane %v2743_v9, %v685_v10 }
 0x1ed   : > { %1976 = vmatprep.subr.bf16.mxu0 %v2117_v17  ;;  %2004 = vmatprep.subr.bf16.mxu1 %v2118_v19  ;;  %v2755_v17 = vrot.slane %v2743_v9, %v693_v11 }
 0x1ef   : > { %1162 = vmatmul.mubr.bf16.vlgmr.msra.gmra.mxu0 %v2522_v18  ;;  %1215 = vmatmul.mubr.bf16.vlgmr.msra.gmra.mxu1 %v2522_v18  ;;  %v2119_v18 = vld [vmem:[%s2888_s7 + $0x38] sm:$0xff]  }
 0x1f0   : > { %1171 = vmatprep.mubr.bf16.mxu0 %v2229_v44  ;;  %1224 = vmatprep.mubr.bf16.mxu1 %v2229_v44  ;;  %v2120_v44 = vld [vmem:[%s2888_s7 + $0xb8] sm:$0xff]  }
 0x1f1   : > { %1977 = vmatpush3.bf16.msra.mxu0 %v2119_v18  ;;  %2005 = vmatpush3.bf16.msra.mxu1 %v2120_v44 }
 0x1f2   : > { %1978 = vmatprep.subr.bf16.mxu0 %v2121_v20  ;;  %2006 = vmatprep.subr.bf16.mxu1 %v2122_v21 }
 0x1f5   : > { %1979 = vmatpush3.bf16.msra.mxu0 %v2123_v22  ;;  %2007 = vmatpush3.bf16.msra.mxu1 %v2124_v25 }
 0x1f6   : > { %1980 = vmatprep.subr.bf16.mxu0 %v2125_v26  ;;  %2008 = vmatprep.subr.bf16.mxu1 %v2126_v47 }
 0x1f7   : > { %1172 = vmatmul.mubr.bf16.gmra.mxu0 %v2552_v40  ;;  %1225 = vmatmul.mubr.bf16.gmra.mxu1 %v2552_v40  ;;  %v2140_v40 = vld [vmem:[%s2888_s7 + $0x90] sm:$0xff]  }
 0x1f9   : > { %1981 = vmatpush3.bf16.msra.mxu0 %v2127_v52  ;;  %2009 = vmatpush3.bf16.msra.mxu1 %v2128_v28 }
 0x1fa   : > { %1982 = vmatprep.subr.bf16.mxu0 %v2129_v29  ;;  %2010 = vmatprep.subr.bf16.mxu1 %v2130_v30 }
 0x1fd   : > { %1983 = vmatpush3.bf16.msra.mxu0 %v2131_v31  ;;  %2011 = vmatpush3.bf16.msra.mxu1 %v2132_v32 }
 0x1fe   : > { %1984 = vmatprep.subr.bf16.mxu0 %v2133_v33  ;;  %2012 = vmatprep.subr.bf16.mxu1 %v2134_v34 }
 0x201   : > { %1985 = vmatpush3.bf16.msra.mxu0 %v2135_v35  ;;  %2013 = vmatpush3.bf16.msra.mxu1 %v2136_v36 }
 0x202   : > { %1986 = vmatprep.subr.bf16.mxu0 %v2137_v37  ;;  %2014 = vmatprep.subr.bf16.mxu1 %v2138_v38 }
 0x205   : > { %1987 = vmatpush3.bf16.msra.mxu0 %v2139_v39  ;;  %2015 = vmatpush3.bf16.msra.mxu1 %v2140_v40 }
 0x206   : > { %1988 = vmatprep.subr.bf16.mxu0 %v2141_v42  ;;  %2016 = vmatprep.subr.bf16.mxu1 %v2142_v45 }
 0x209   : > { %1989 = vmatpush3.bf16.msra.mxu0 %v2143_v46  ;;  %2017 = vmatpush3.bf16.msra.mxu1 %v2144_v48 }
 0x20a   : > { %1990 = vmatprep.subr.bf16.mxu0 %v2145_v49  ;;  %2018 = vmatprep.subr.bf16.mxu1 %v2146_v50 }
 0x20d   : > { %1991 = vmatpush3.bf16.msra.mxu0 %v2147_v51  ;;  %2019 = vmatpush3.bf16.msra.mxu1 %v2148_v53 }
 0x28f   : > { %v2708_v54 = vpop.f32.mrf.mxu0  ;;  %v2710_v55 = vpop.f32.mrf.mxu1 }
 0x291   : > { %v2712_v56 = vpop.f32.mrf.mxu0  ;;  %v2714_v57 = vpop.f32.mrf.mxu1 }
 0x293   : > { %v2716_v58 = vpop.f32.mrf.mxu0  ;;  %v2718_v59 = vpop.f32.mrf.mxu1 }
 0x295   : > { %v2720_v60 = vpop.f32.mrf.mxu0  ;;  %v2722_v61 = vpop.f32.mrf.mxu1 }
 0x297   : > { %v2724_v62 = vpop.f32.mrf.mxu0  ;;  %v2726_v63 = vpop.f32.mrf.mxu1 }
 0x299   : > { %v2728_v1 = vpop.f32.mrf.mxu0  ;;  %v2730_v2 = vpop.f32.mrf.mxu1 }
 0x29b   : > { %v2736_v6 = vpop.f32.mrf.mxu0  ;;  %v2738_v7 = vpop.f32.mrf.mxu1 }
 0x29d   : > { %v2749_v41 = vpop.f32.mrf.mxu0  ;;  %v2751_v43 = vpop.f32.mrf.mxu1 }
 0x2af   : > { %v1163_v14 = vpop.f32.mrf.mxu0  ;;  %v1216_v15 = vpop.f32.mrf.mxu1 }
 0x2b0   : > { %v2757_v19 = vadd.f32 %v1163_v14, %v682_v12  ;;  %v2759_v18 = vadd.f32 %v1216_v15, %v690_v13 }
 0x2b1   : > { %v1165_v44 = vpop.f32.mrf.mxu0  ;;  %v1218_v20 = vpop.f32.mrf.mxu1 }
 0x2b2   : > { %v1885_v21 = vmul.f32 -1.442695, %v2757_v19  ;;  %v1887_v22 = vmul.f32 -1.442695, %v2759_v18  ;;  %v2763_v25 = vadd.f32 %v1165_v44, %v686_v16  ;;  %v2766_v26 = vadd.f32 %v1218_v20, %v2755_v17 }
 0x2b3   : > { %v1167_v47 = vpop.f32.mrf.mxu0  ;;  %v1220_v52 = vpop.f32.mrf.mxu1 }
 0x2b4   : > { %2157 = vpow2.f32 %v1885_v21  ;;  %v2768_v28 = vadd.f32 %v1167_v47, %v682_v12  ;;  %v2770_v29 = vadd.f32 %v1220_v52, %v690_v13  ;;  %v1886_v30 = vmul.f32 -1.442695, %v2763_v25 }
 0x2b5   : > { %2159 = vpow2.f32 %v1887_v22  ;;  %v1169_v31 = vpop.f32.mrf.mxu0  ;;  %v1222_v32 = vpop.f32.mrf.mxu1  ;;  %v1888_v33 = vmul.f32 -1.442695, %v2766_v26 }
 0x2b6   : > { %v1889_v34 = vmul.f32 -1.442695, %v2768_v28  ;;  %2161 = vpow2.f32 %v1886_v30  ;;  %v1891_v35 = vmul.f32 -1.442695, %v2770_v29  ;;  %v2776_v36 = vadd.f32 %v1169_v31, %v686_v16 }
 0x2b7   : > { %v2779_v37 = vadd.f32 %v1222_v32, %v2755_v17  ;;  %v1173_v38 = vpop.f32.mrf.mxu0  ;;  %v1226_v39 = vpop.f32.mrf.mxu1  ;;  %2163 = vpow2.f32 %v1888_v33 }
 0x2b8   : > { %v2781_v40 = vadd.f32 %v1173_v38, %v682_v12  ;;  %v2783_v42 = vadd.f32 %v1226_v39, %v690_v13  ;;  %2165 = vpow2.f32 %v1889_v34  ;;  %v1890_v45 = vmul.f32 -1.442695, %v2776_v36 }
 0x2b9   : > { %v1175_v46 = vpop.f32.mrf.mxu0  ;;  %v1228_v48 = vpop.f32.mrf.mxu1  ;;  %2167 = vpow2.f32 %v1891_v35  ;;  %v1892_v49 = vmul.f32 -1.442695, %v2779_v37 }
 0x2ba   : > { %2169 = vpow2.f32 %v1890_v45  ;;  %v1893_v50 = vmul.f32 -1.442695, %v2781_v40  ;;  %v1895_v51 = vmul.f32 -1.442695, %v2783_v42  ;;  %v2789_v53 = vadd.f32 %v1175_v46, %v686_v16 }
 0x2bb   : > { %v1177_v0 = vpop.f32.mrf.mxu0  ;;  %v1230_v4 = vpop.f32.mrf.mxu1  ;;  %2171 = vpow2.f32 %v1892_v49  ;;  %v2802_v32 = vadd.f32 %v1228_v48, %v2755_v17 }
 0x2bc   : > { %v2791_v5 = vadd.f32 %v1177_v0, %v682_v12  ;;  %v2793_v10 = vadd.f32 %v1230_v4, %v690_v13  ;;  %v1894_v11 = vmul.f32 -1.442695, %v2789_v53  ;;  %2173 = vpow2.f32 %v1895_v51 }
 0x2bd   : > { %v1179_v14 = vpop.f32.mrf.mxu0  ;;  %2175 = vpow2.f32 %v1893_v50  ;;  %v1232_v45 = vpop.f32.mrf.mxu1  ;;  %v1896_v50 = vmul.f32 -1.442695, %v2802_v32 }
 0x2be   : > { %v1897_v15 = vmul.f32 -1.442695, %v2791_v5  ;;  %v1899_v44 = vmul.f32 -1.442695, %v2793_v10  ;;  %2177 = vpow2.f32 %v1894_v11  ;;  %v2798_v20 = vadd.f32 %v1179_v14, %v686_v16 }
 0x2bf   : > { %v2806_v48 = vadd.f32 %v1232_v45, %v2755_v17  ;;  %v665_v11 = vsub.s32 0, %v2732_v3 }
 0x2c0   : > { %2179 = vpow2.f32 %v1897_v15  ;;  %v1898_v12 = vmul.f32 -1.442695, %v2798_v20 }
 0x2c1   : > { %v2158_v21 = vpop.eup %2157  ;;  %2181 = vpow2.f32 %v1899_v44  ;;  %v669_v44 = vsub.s32 1, %v2732_v3  ;;  %v2814_v17 = vrot.slane %v2743_v9, %v665_v11 }
 0x2c2   : > { %v2160_v22 = vpop.eup %2159  ;;  %v1299_v47 = vadd.f32 1.0, %v2158_v21 }
 0x2c3   : > { %v1301_v13 = vadd.f32 1.0, %v2160_v22  ;;  %v2162_v52 = vpop.eup %2161  ;;  %v677_v22 = vsub.s32 3, %v2732_v3 }
 0x2c4   : > { %2183 = vrcp.f32 %v1299_v47  ;;  %v2164_v30 = vpop.eup %2163  ;;  %v1300_v31 = vadd.f32 1.0, %v2162_v52  ;;  %v1900_v52 = vmul.f32 -1.442695, %v2806_v48 }
 0x2c5   : > { %2185 = vrcp.f32 %v1301_v13  ;;  %v2166_v33 = vpop.eup %2165  ;;  %v1302_v34 = vadd.f32 1.0, %v2164_v30 }
 0x2c6   : > { %2187 = vpow2.f32 %v1898_v12  ;;  %v2168_v16 = vpop.eup %2167  ;;  %v1303_v35 = vadd.f32 1.0, %v2166_v33  ;;  %v673_v12 = vsub.s32 2, %v2732_v3 }
 0x2c7   : > { %2189 = vrcp.f32 %v1300_v31  ;;  %v2170_v38 = vpop.eup %2169  ;;  %v1305_v39 = vadd.f32 1.0, %v2168_v16 }
 0x2c8   : > { %2191 = vrcp.f32 %v1302_v34  ;;  %v2172_v46 = vpop.eup %2171  ;;  %v1304_v49 = vadd.f32 1.0, %v2170_v38  ;;  %v2817_v34 = vrot.slane %v2743_v9, %v669_v44  ;;  %v2820_v38 = vrot.slane %v2743_v9, %v677_v22 }
 0x2c9   : > { %2193 = vrcp.f32 %v1303_v35  ;;  %v1306_v51 = vadd.f32 1.0, %v2172_v46  ;;  %v2174_v0 = vpop.eup %2173  ;;  %v1058_v46 = vadd.f32 %v2708_v54, %v2814_v17 }
 0x2ca   : > { %2195 = vrcp.f32 %v1305_v39  ;;  %v2176_v4 = vpop.eup %2175  ;;  %v1309_v14 = vadd.f32 1.0, %v2174_v0  ;;  %v674_v39 = vrot.slane %v2743_v9, %v673_v12  ;;  %v1060_v0 = vadd.f32 %v2712_v56, %v2817_v34 }
 0x2cb   : > { %2197 = vrcp.f32 %v1304_v49  ;;  %v2178_v15 = vpop.eup %2177  ;;  %v1307_v16 = vadd.f32 1.0, %v2176_v4  ;;  %v1062_v49 = vadd.f32 %v2716_v58, %v2814_v17  ;;  %v1064_v11 = vadd.f32 %v2720_v60, %v2817_v34 }
 0x2cc   : > { %2199 = vrcp.f32 %v1306_v51  ;;  %v1308_v30 = vadd.f32 1.0, %v2178_v15  ;;  %v1115_v4 = vadd.f32 %v2718_v59, %v674_v39  ;;  %v1117_v54 = vadd.f32 %v2722_v61, %v2820_v38 }
 0x2cd   : > { %2201 = vpow2.f32 %v1896_v50  ;;  %v2180_v21 = vpop.eup %2179  ;;  %v1239_v58 = vmul.f32 %v2768_v28, %v1062_v49  ;;  %v1111_v44 = vadd.f32 %v2710_v55, %v674_v39  ;;  %v1236_v56 = vmul.f32 %v2763_v25, %v1060_v0 }
 0x2ce   : > { %v2182_v47 = vpop.eup %2181  ;;  %v1311_v13 = vadd.f32 1.0, %v2180_v21  ;;  %2203 = vrcp.f32 %v1309_v14  ;;  %v1113_v14 = vadd.f32 %v2714_v57, %v2820_v38  ;;  %v1241_v59 = vmul.f32 %v2770_v29, %v1115_v4 }
 0x2cf   : > { %v1313_v31 = vadd.f32 1.0, %v2182_v47  ;;  %v1240_v60 = vmul.f32 %v2776_v36, %v1064_v11  ;;  %v1235_v22 = vmul.f32 %v2757_v19, %v1058_v46  ;;  %v1242_v61 = vmul.f32 %v2779_v37, %v1117_v54 }
 0x2d0   : > { %2205 = vrcp.f32 %v1311_v13  ;;  %v1238_v57 = vmul.f32 %v2766_v26, %v1113_v14  ;;  %v1237_v28 = vmul.f32 %v2759_v18, %v1111_v44  ;;  %v1125_v19 = vadd.f32 %v2738_v7, %v674_v39 }
 0x2d1   : > { %v2184_v33 = vpop.eup %2183  ;;  %2207 = vrcp.f32 %v1313_v31  ;;  %v1070_v7 = vadd.f32 %v2728_v1, %v2817_v34 }
 0x2d2   : > { %v2186_v35 = vpop.eup %2185  ;;  %2209 = vpow2.f32 %v1900_v52  ;;  %v1347_v25 = vmul.f32 %v2184_v33, %v1235_v22  ;;  %v1249_v0 = vmul.f32 %v2793_v10, %v1125_v19 }
 0x2d3   : > { %v2188_v3 = vpop.eup %2187  ;;  %2211 = vrcp.f32 %v1308_v30 }
 0x2d4   : > { %v2190_v45 = vpop.eup %2189  ;;  %v1312_v50 = vadd.f32 1.0, %v2188_v3  ;;  %2213 = vrcp.f32 %v1307_v16  ;;  %v1349_v16 = vmul.f32 %v2186_v35, %v1237_v28  ;;  %v1121_v3 = vadd.f32 %v2726_v63, %v674_v39 }
 0x2d5   : > { %v2192_v51 = vpop.eup %2191  ;;  %v1348_v13 = vmul.f32 %v2190_v45, %v1236_v56  ;;  %v1072_v35 = vadd.f32 %v2736_v6, %v2814_v17  ;;  %v1074_v39 = vadd.f32 %v2749_v41, %v2817_v34  ;;  %v1244_v6 = vmul.f32 %v2789_v53, %v1070_v7 }
 0x2d6   : > { %v2194_v9 = vpop.eup %2193  ;;  %2215 = vrcp.f32 %v1312_v50  ;;  %v1350_v31 = vmul.f32 %v2192_v51, %v1238_v57  ;;  %v1245_v45 = vmul.f32 %v2783_v42, %v1121_v3  ;;  %v1068_v42 = vadd.f32 %v2724_v62, %v2814_v17 }
 0x2d7   : > { %v2196_v15 = vpop.eup %2195  ;;  %v1351_v47 = vmul.f32 %v2194_v9, %v1239_v58  ;;  %v1247_v10 = vmul.f32 %v2791_v5, %v1072_v35  ;;  %v1248_v54 = vmul.f32 %v2798_v20, %v1074_v39  ;;  %v1123_v5 = vadd.f32 %v2730_v2, %v2820_v38  ;;  %v1901_v2 = vld [vmem:[%s2889_s8] ss:$0 sm:$0xff] }
 0x2d8   : > { %v2198_v21 = vpop.eup %2197  ;;  %v1353_v52 = vmul.f32 %v2196_v15, %v1241_v59  ;;  %v1243_v15 = vmul.f32 %v2781_v40, %v1068_v42  ;;  %v1127_v53 = vadd.f32 %v2751_v43, %v2820_v38 }
 0x2d9   : > { %v2200_v12 = vpop.eup %2199  ;;  %v1352_v55 = vmul.f32 %v2198_v21, %v1240_v60  ;;  %v1363_v26 = vpack.c.bf16 %v1351_v47, %v1347_v25  ;;  %v1246_v17 = vmul.f32 %v2802_v32, %v1123_v5 }
 0x2da   : > { %v2202_v30 = vpop.eup %2201  ;;  %v1354_v29 = vmul.f32 %v2200_v12, %v1242_v61  ;;  %v1365_v37 = vpack.c.bf16 %v1353_v52, %v1349_v16  ;;  %v1250_v40 = vmul.f32 %v2806_v48, %v1127_v53 }
 0x2db   : > { %v1364_v36 = vpack.c.bf16 %v1352_v55, %v1348_v13  ;;  %v2204_v49 = vpop.eup %2203  ;;  %v1310_v50 = vadd.f32 1.0, %v2202_v30 }
 0x2dc   : > { %v1366_v46 = vpack.c.bf16 %v1354_v29, %v1350_v31  ;;  %v1357_v51 = vmul.f32 %v2204_v49, %v1245_v45 }
 0x2dd   : > { %1666 = vmatprep.mubr.bf16.mxu0 %v1364_v36  ;;  %v2206_v18 = vpop.eup %2205  ;;  %2217 = vrcp.f32 %v1310_v50 }
 0x2de   : > { %1715 = vmatprep.mubr.bf16.mxu1 %v1366_v46  ;;  %1667 = vmatmul.mubr.bf16.vlgmr.msra.gmra.mxu0 %v1363_v26  ;;  %v2208_v33 = vpop.eup %2207  ;;  %v1359_v41 = vmul.f32 %v2206_v18, %v1247_v10 }
 0x2df   : > { %1716 = vmatmul.mubr.bf16.vlgmr.msra.gmra.mxu1 %v1365_v37  ;;  %v2210_v63 = vpop.eup %2209  ;;  %v1361_v4 = vmul.f32 %v2208_v33, %v1249_v0 }
 0x2e0   : > { %v2212_v11 = vpop.eup %2211  ;;  %v1314_v9 = vadd.f32 1.0, %v2210_v63 }
 0x2e1   : > { %v2214_v14 = vpop.eup %2213  ;;  %v1369_v58 = vpack.c.bf16 %v1361_v4, %v1357_v51  ;;  %v1356_v34 = vmul.f32 %v2212_v11, %v1244_v6 }
 0x2e2   : > { %2219 = vrcp.f32 %v1314_v9  ;;  %v1355_v56 = vmul.f32 %v2214_v14, %v1243_v15 }
 0x2e3   : > { %v2216_v1 = vpop.eup %2215 }
 0x2e4   : > { %v1360_v44 = vmul.f32 %v2216_v1, %v1248_v54  ;;  %v1367_v62 = vpack.c.bf16 %v1359_v41, %v1355_v56 }
 0x2e6   : > { %v1368_v59 = vpack.c.bf16 %v1360_v44, %v1356_v34 }
 0x2e8   : > { %1674 = vmatprep.mubr.bf16.mxu0 %v1368_v59 }
 0x2e9   : > { %1675 = vmatmul.mubr.bf16.gmra.mxu0 %v1367_v62 }
 0x2ea   : > { %v2218_v20 = vpop.eup %2217 }
 0x2eb   : > { %v1358_v21 = vmul.f32 %v2218_v20, %v1246_v17 }
 0x2ef   : > { %v2220_v60 = vpop.eup %2219 }
 0x2f0   : > { %v1362_v22 = vmul.f32 %v2220_v60, %v1250_v40 }
 0x2f2   : > { %v1370_v57 = vpack.c.bf16 %v1362_v22, %v1358_v21 }
 0x2f4   : > { %1723 = vmatprep.mubr.bf16.mxu1 %v1370_v57 }
 0x2f5   : > { %1724 = vmatmul.mubr.bf16.gmra.mxu1 %v1369_v58 }
 0x39e   : > { %v1992_v47 = vpop.f32.mrf.mxu0 }
 0x39f   : > { %v2020_v61 = vpop.f32.mrf.mxu1 }
 0x3a0   : > { %v1993_v12 = vpop.f32.mrf.mxu0 }
 0x3a1   : > { %v1994_v43 = vadd.f32 %v1993_v12, %v1992_v47  ;;  %v2021_v38 = vpop.f32.mrf.mxu1 }
 0x3a2   : > { %v1995_v28 = vpop.f32.mrf.mxu0  ;;  %v2022_v13 = vadd.f32 %v2021_v38, %v2020_v61 }
 0x3a3   : > { %v1669_v32 = vadd.f32 %v1994_v43, %v1901_v2  ;;  %v2023_v48 = vpop.f32.mrf.mxu1 }
 0x3a4   : > { %v1996_v52 = vpop.f32.mrf.mxu0 }
 0x3a5   : > { %v1718_v55 = vadd.f32 %v2022_v13, %v1669_v32  ;;  %v1997_v30 = vadd.f32 %v1996_v52, %v1995_v28  ;;  %v2024_v25 = vpop.f32.mrf.mxu1 }
 0x3a6   : > { %v2025_v16 = vadd.f32 %v2024_v25, %v2023_v48 }
 0x3a7   : > { %v1732_v31 = vadd.f32 %v1718_v55, %v2322_v8  ;;  %v1672_v29 = vadd.f32 %v1997_v30, %v1901_v2 }
 0x3a9   : > { %1736 = vst [vmem:[%s356_s26] sm:$0xff] %v1732_v31  ;;  %v1721_v36 = vadd.f32 %v2025_v16, %v1672_v29  ;;  %v1998_v3 = vpop.f32.mrf.mxu0 }
 0x3ab   : > { %v1733_v19 = vadd.f32 %v1721_v36, %v2359_v23  ;;  %v1999_v26 = vpop.f32.mrf.mxu0 }
 0x3ac   : > { %v2000_v49 = vadd.f32 %v1999_v26, %v1998_v3 }
 0x3ad   : > { %1737 = vst [vmem:[%s356_s26 + $0x8] sm:$0xff] %v1733_v19  ;;  %v2001_v46 = vpop.f32.mrf.mxu0 }
 0x3ae   : > { %v1677_v18 = vadd.f32 %v2000_v49, %v1901_v2 }
 0x3af   : > { %v2002_v37 = vpop.f32.mrf.mxu0 }
 0x3b0   : > { %v2003_v45 = vadd.f32 %v2002_v37, %v2001_v46 }
 0x3b2   : > { %v1680_v8 = vadd.f32 %v2003_v45, %v1901_v2 }
 0x3b5   : > { %v2026_v50 = vpop.f32.mrf.mxu1 }
 0x3b7   : > { %v2027_v0 = vpop.f32.mrf.mxu1 }
 0x3b8   : > { %v2028_v33 = vadd.f32 %v2027_v0, %v2026_v50 }
 0x3b9   : > { %v2029_v35 = vpop.f32.mrf.mxu1 }
 0x3ba   : > { %v1726_v63 = vadd.f32 %v2028_v33, %v1677_v18 }
 0x3bb   : > { %v2030_v7 = vpop.f32.mrf.mxu1 }
 0x3bc   : > { %v1734_v39 = vadd.f32 %v1726_v63, %v2361_v24  ;;  %v2031_v51 = vadd.f32 %v2030_v7, %v2029_v35 }
 0x3be   : > { %1738 = vst [vmem:[%s356_s26 + $0x10] sm:$0xff] %v1734_v39  ;;  %v1729_v4 = vadd.f32 %v2031_v51, %v1680_v8 }
 0x3c0   : > { %v1735_v23 = vadd.f32 %v1729_v4, %v2366_v27 }
 0x3c2   : > { %1739 = vst [vmem:[%s356_s26 + $0x18] sm:$0xff] %v1735_v23 }
 0x3c3 PF: > { %s19_s30 = sadd.s32 1, %s2227_s30  }
 0x3c4   : > { %p16_p4 = scmp.ge.s32.totalorder %s19_s30, 6  }
 0x3c6   :  { %18 = sbr.rel (!%p16_p4) target bundleno = 1 (0x1), region = 89 }

// kernel: swin_decoder_stage_forward.4
= control target key start
LH: loop header
LB: loop body
LE: loop exit
PB: predicated region body
PF: predicated region fallthrough
CT: control target
= control target key end

     0   :  { %s5194_s30 = smov 0   ;;  %s5196_s10 = smov 0   ;;  %s7327_s0 = inlined_call_operand.vmem [shape: f32[2,16,16,32], index: 0, kind: input, shape index: {}]   ;;  %s7328_s1 = inlined_call_operand.vmem [shape: f32[1,32], index: 1, kind: input, shape index: {}]   ;;  %s7329_s2 = inlined_call_operand.vmem [shape: f32[1,32], index: 2, kind: input, shape index: {}]   ;;  %s7330_s3 = inlined_call_operand.vmem [shape: bf16[32,160], index: 3, kind: input, shape index: {}]   ;;  %s7331_s4 = inlined_call_operand.vmem [shape: f32[1,160], index: 4, kind: input, shape index: {}]   ;;  %s7332_s5 = inlined_call_operand.vmem [shape: bf16[32,32], index: 5, kind: input, shape index: {}]   ;;  %s7333_s6 = inlined_call_operand.vmem [shape: f32[1,32], index: 6, kind: input, shape index: {}]   ;;  %s7334_s7 = inlined_call_operand.vmem [shape: f32[64,32], index: 7, kind: input, shape index: {}]   ;;  %s7335_s8 = inlined_call_operand.vmem [shape: f32[64,32], index: 8, kind: input, shape index: {}]   ;;  %s7336_s9 = inlined_call_operand.vmem [shape: f32[2,16,16,32], index: 9, kind: output, shape index: {}]  }
   0x1   :  { %s5198_s11 = smov 0   ;;  %s5200_s12 = smov 0  }
   0x2   :  { %s5202_s13 = smov 0  }
   0x3 LB: > { %s28_s14 = sadd.s32 1, %s5124_s11  ;;  %s31_s15 = sadd.s32 1, %s5128_s12  ;;  %s5132_s13 = sphi %s5202_s13, %s19_s13   ;;  %s5128_s12 = sphi %s5200_s12, %s7459_s12   ;;  %s5124_s11 = sphi %s5198_s11, %s7458_s11   ;;  %s5120_s10 = sphi %s5196_s10, %s7457_s10   ;;  %s5116_s30 = sphi %s5194_s30, %s7456_s30  }
   0x4   : > { %p29_p0 = scmp.ge.s32.totalorder %s28_s14, 2  ;;  %p4082_p1 = scmp.ge.s32.totalorder %s5132_s13, 1 }
   0x5   : > { %p309_p2 = scmp.lt.s32.totalorder %s5132_s13, 5 }
   0x6   : > { %s7461_s14 = smov (%p29_p0, %s28_s14), 0  ;;  %s7463_s15 = smov (!%p29_p0, %s31_s15), %s5128_s12 }
   0x7   : > { %p310_p3 = pnand %p4082_p1, %p309_p2  ;;  %p33_p4 = scmp.ge.s32.totalorder %s7463_s15, 2 }
   0x9   : > { %s7465_s15 = smov (%p33_p4, %s7463_s15), 0  ;;  %313 = sbr.rel (%p310_p3) target bundleno = 2265 (0x8d9), region = 56 }
   0xe   : > { %s4083_s16 = sshll.u32 %s5116_s30, 3  ;;  %p356_p5 = scmp.lt.s32.totalorder %s5120_s10, 1  ;;  %vm394_vm0 = vcmask 261120   ;;  %vm1351_vm1 = vcmask 64512   ;;  %vm2120_vm2 = vcmask 523264   ;;  %vm3777_vm3 = vcmask 130048  }
   0xf   : > { %p358_p6 = scmp.lt.s32.totalorder %s4083_s16, 15  ;;  %s5135_s22 = smov 32   ;;  %vm3794_vm4 = vcmask 195584  }
  0x10   : > { %s7467_s10 = smov (!%p356_p5, %s5120_s10), 1  ;;  %s5136_s26 = smov 96  }
  0x11   : > { %s7469_s16 = smov (!%p358_p6, %s4083_s16), 15  ;;  %s4085_s17 = sshll.u32 %s7467_s10, 5 }
  0x12   : > { %s4084_s18 = sshll.u32 %s7469_s16, 1  ;;  %s5140_s21 = smov 64  }
  0x13   : > { %s5224_s19 = sadd.s32 %s4085_s17, %s4084_s18  ;;  %s5138_s17 = smov 112  }
  0x14   : > { %s4086_s20 = sshll.u32 %s5224_s19, 3  ;;  %s5139_s18 = smov 104  }
  0x15   : > { %s5232_s23 = scalar_lea.vmem %s7327_s0, %s4086_s20  ;;  %s5143_s29 = smov 24  }
  0x16   : > { %v378_v0 = vld [vmem:[%s5232_s23] sm:$0xff]  ;;  %v380_v2 = vld [vmem:[%s5232_s23 + $0x10] sm:$0xff]  ;;  %v5257_v16 = vld [vmem:[%s5232_s23 + $0x8] sm:$0xff] }
  0x17   : > { %v382_v1 = vld [vmem:[%s5232_s23 + $0x20] sm:$0xff]  ;;  %v395_v3 = vsel %vm394_vm0, %v378_v0, 0.0  ;;  %v384_v5 = vld [vmem:[%s5232_s23 + $0x30] sm:$0xff]  ;;  %v398_v6 = vsel %vm394_vm0, %v380_v2, 0.0  ;;  %v5260_v17 = vld [vmem:[%s5232_s23 + $0x18] sm:$0xff]  ;;  %v419_v18 = vsel %vm394_vm0, %v5257_v16, 0.0 }
  0x18   : > { %v401_v4 = vsel %vm394_vm0, %v382_v1, 0.0  ;;  %396 = vadd.xlane.f32.xlu0 %v395_v3  ;;  %v404_v7 = vsel %vm394_vm0, %v384_v5, 0.0  ;;  %v386_v8 = vld [vmem:[%s5232_s23 + $0x40] sm:$0xff]  ;;  %v388_v9 = vld [vmem:[%s5232_s23 + $0x50] sm:$0xff]  ;;  %v422_v19 = vsel %vm394_vm0, %v5260_v17, 0.0  ;;  %v5267_v20 = vld [vmem:[%s5232_s23 + $0x28] sm:$0xff] }
  0x19   : > { %402 = vadd.xlane.f32.xlu1 %v401_v4  ;;  %v407_v10 = vsel %vm394_vm0, %v386_v8, 0.0  ;;  %v410_v11 = vsel %vm394_vm0, %v388_v9, 0.0  ;;  %v5247_v12 = vld [vmem:[%s5232_s23 + $0x60] sm:$0xff]  ;;  %v5250_v13 = vld [vmem:[%s5232_s23 + $0x70] sm:$0xff]  ;;  %v5270_v21 = vld [vmem:[%s5232_s23 + $0x38] sm:$0xff]  ;;  %v425_v22 = vsel %vm394_vm0, %v5267_v20, 0.0 }
  0x1a   : > { %v413_v14 = vsel %vm394_vm0, %v5247_v12, 0.0  ;;  %v416_v15 = vsel %vm394_vm0, %v5250_v13, 0.0  ;;  %v428_v23 = vsel %vm394_vm0, %v5270_v21, 0.0  ;;  %v5277_v24 = vld [vmem:[%s5232_s23 + $0x48] sm:$0xff]  ;;  %v5280_v25 = vld [vmem:[%s5232_s23 + $0x58] sm:$0xff] }
  0x1b   : > { %v431_v26 = vsel %vm394_vm0, %v5277_v24, 0.0  ;;  %v434_v27 = vsel %vm394_vm0, %v5280_v25, 0.0  ;;  %v5287_v28 = vld [vmem:[%s5232_s23 + $0x68] sm:$0xff]  ;;  %v5290_v29 = vld [vmem:[%s5232_s23 + $0x78] sm:$0xff]  ;;  %s5142_s23 = smov 16  }
  0x1c   : > { %399 = vadd.xlane.f32.xlu0 %v398_v6  ;;  %v437_v30 = vsel %vm394_vm0, %v5287_v28, 0.0  ;;  %v440_v31 = vsel %vm394_vm0, %v5290_v29, 0.0 }
  0x1d   : > { %405 = vadd.xlane.f32.xlu1 %v404_v7 }
  0x20   : > { %408 = vadd.xlane.f32.xlu0 %v407_v10 }
  0x21   : > { %411 = vadd.xlane.f32.xlu1 %v410_v11 }
  0x24   : > { %414 = vadd.xlane.f32.xlu0 %v413_v14 }
  0x25   : > { %417 = vadd.xlane.f32.xlu1 %v416_v15 }
  0x28   : > { %420 = vadd.xlane.f32.xlu0 %v419_v18 }
  0x29   : > { %423 = vadd.xlane.f32.xlu1 %v422_v19 }
  0x2c   : > { %426 = vadd.xlane.f32.xlu0 %v425_v22 }
  0x2d   : > { %429 = vadd.xlane.f32.xlu1 %v428_v23 }
  0x30   : > { %432 = vadd.xlane.f32.xlu0 %v431_v26 }
  0x31   : > { %435 = vadd.xlane.f32.xlu1 %v434_v27 }
  0x34   : > { %438 = vadd.xlane.f32.xlu0 %v437_v30 }
  0x35   : > { %441 = vadd.xlane.f32.xlu1 %v440_v31 }
  0xa1   : > { %v397_v32 = vpop.xlane.xlu0 %396 }
  0xa2   : > { %v403_v33 = vpop.xlane.xlu1 %402  ;;  %v444_v34 = vmul.f32 0.03125, %v397_v32 }
  0xa3   : > { %v446_v35 = vmul.f32 0.03125, %v403_v33 }
  0xa4   : > { %v5296_v36 = vsub.f32 %v378_v0, %v444_v34 }
  0xa5   : > { %v5298_v37 = vsub.f32 %v382_v1, %v446_v35  ;;  %v400_v38 = vpop.xlane.xlu0 %399 }
  0xa6   : > { %v406_v39 = vpop.xlane.xlu1 %405  ;;  %v445_v40 = vmul.f32 0.03125, %v400_v38  ;;  %v476_v42 = vmul.f32 %v5296_v36, %v5296_v36 }
  0xa7   : > { %v447_v41 = vmul.f32 0.03125, %v406_v39  ;;  %v478_v43 = vmul.f32 %v5298_v37, %v5298_v37 }
  0xa8   : > { %v5304_v44 = vsub.f32 %v380_v2, %v445_v40  ;;  %v492_v46 = vsel %vm394_vm0, %v476_v42, 0.0 }
  0xa9   : > { %v5306_v45 = vsub.f32 %v384_v5, %v447_v41  ;;  %493 = vadd.xlane.f32.xlu0 %v492_v46  ;;  %v409_v47 = vpop.xlane.xlu0 %408  ;;  %v498_v49 = vsel %vm394_vm0, %v478_v43, 0.0 }
  0xaa   : > { %v412_v48 = vpop.xlane.xlu1 %411  ;;  %v448_v50 = vmul.f32 0.03125, %v409_v47  ;;  %v477_v52 = vmul.f32 %v5304_v44, %v5304_v44 }
  0xab   : > { %v449_v51 = vmul.f32 0.03125, %v412_v48  ;;  %v479_v53 = vmul.f32 %v5306_v45, %v5306_v45 }
  0xac   : > { %v5314_v54 = vsub.f32 %v386_v8, %v448_v50  ;;  %v495_v56 = vsel %vm394_vm0, %v477_v52, 0.0 }
  0xad   : > { %v5316_v55 = vsub.f32 %v388_v9, %v449_v51  ;;  %499 = vadd.xlane.f32.xlu0 %v498_v49  ;;  %496 = vadd.xlane.f32.xlu1 %v495_v56  ;;  %v415_v57 = vpop.xlane.xlu0 %414  ;;  %v501_v59 = vsel %vm394_vm0, %v479_v53, 0.0  ;;  %v4800_v53 = vld [vmem:[%s7330_s3 + $0x10] ss:$8 sps:$4 sm:$0xff]   ;;  %v4801_v56 = vld [vmem:[%s7330_s3 + $0x4] ss:$8 sps:$4 sm:$0xff]  }
  0xae   : > { %v418_v58 = vpop.xlane.xlu1 %417  ;;  %v450_v60 = vmul.f32 0.03125, %v415_v57  ;;  %v480_v62 = vmul.f32 %v5314_v54, %v5314_v54  ;;  %v4803_v57 = vld [vmem:[%s7330_s3] ss:$8 sps:$4 sm:$0xff]  }
  0xaf   : > { %v451_v61 = vmul.f32 0.03125, %v418_v58  ;;  %v481_v63 = vmul.f32 %v5316_v55, %v5316_v55  ;;  %v5134_v58 = vmov 0  }
  0xb0   : > { %v5325_v0 = vsub.f32 %v5247_v12, %v450_v60  ;;  %v504_v2 = vsel %vm394_vm0, %v480_v62, 0.0  ;;  %750 = vmatprep.mubr.bf16.mxu0 %v5134_v58  ;;  %v5407_v60 = vld [vmem:[%s7334_s7 + $0x38] sm:$0xff]  ;;  %v5421_v62 = vld [vmem:[%s7334_s7 + $0x28] sm:$0xff] }
  0xb1   : > { %v5328_v1 = vsub.f32 %v5250_v13, %v451_v61  ;;  %502 = vadd.xlane.f32.xlu1 %v501_v59  ;;  %505 = vadd.xlane.f32.xlu0 %v504_v2  ;;  %v421_v3 = vpop.xlane.xlu0 %420  ;;  %v507_v5 = vsel %vm394_vm0, %v481_v63, 0.0  ;;  %v5402_v59 = vld [vmem:[%s7334_s7 + $0x30] sm:$0xff]  ;;  %v5416_v61 = vld [vmem:[%s7334_s7 + $0x20] sm:$0xff]  ;;  %v5435_v2 = vld [vmem:[%s7334_s7 + $0x18] sm:$0xff] }
  0xb2   : > { %v424_v4 = vpop.xlane.xlu1 %423  ;;  %v452_v6 = vmul.f32 0.03125, %v421_v3  ;;  %v482_v8 = vmul.f32 %v5325_v0, %v5325_v0  ;;  %v5430_v63 = vld [vmem:[%s7334_s7 + $0x10] sm:$0xff]  ;;  %v5444_v3 = vld [vmem:[%s7334_s7] sm:$0xff] }
  0xb3   : > { %v453_v7 = vmul.f32 0.03125, %v424_v4  ;;  %v483_v9 = vmul.f32 %v5328_v1, %v5328_v1  ;;  %v5449_v4 = vld [vmem:[%s7334_s7 + $0x8] sm:$0xff] }
  0xb4   : > { %v5337_v10 = vsub.f32 %v5257_v16, %v452_v6  ;;  %v510_v12 = vsel %vm394_vm0, %v482_v8, 0.0  ;;  %v5463_v6 = vld [vmem:[%s7335_s8 + $0x8] sm:$0xff]  ;;  %v5477_v8 = vld [vmem:[%s7335_s8 + $0x18] sm:$0xff] }
  0xb5   : > { %v5340_v11 = vsub.f32 %v5260_v17, %v453_v7  ;;  %508 = vadd.xlane.f32.xlu1 %v507_v5  ;;  %511 = vadd.xlane.f32.xlu0 %v510_v12  ;;  %v427_v13 = vpop.xlane.xlu0 %426  ;;  %v513_v15 = vsel %vm394_vm0, %v483_v9, 0.0  ;;  %v5458_v5 = vld [vmem:[%s7335_s8] sm:$0xff]  ;;  %v5472_v7 = vld [vmem:[%s7335_s8 + $0x10] sm:$0xff]  ;;  %v5491_v12 = vld [vmem:[%s7335_s8 + $0x28] sm:$0xff] }
  0xb6   : > { %v430_v14 = vpop.xlane.xlu1 %429  ;;  %v454_v18 = vmul.f32 0.03125, %v427_v13  ;;  %v484_v22 = vmul.f32 %v5337_v10, %v5337_v10  ;;  %v5486_v9 = vld [vmem:[%s7335_s8 + $0x20] sm:$0xff]  ;;  %v5500_v13 = vld [vmem:[%s7335_s8 + $0x30] sm:$0xff] }
  0xb7   : > { %v455_v19 = vmul.f32 0.03125, %v430_v14  ;;  %v485_v16 = vmul.f32 %v5340_v11, %v5340_v11  ;;  %v5505_v14 = vld [vmem:[%s7335_s8 + $0x38] sm:$0xff] }
  0xb8   : > { %v5349_v23 = vsub.f32 %v5267_v20, %v454_v18  ;;  %v516_v26 = vsel %vm394_vm0, %v484_v22, 0.0 }
  0xb9   : > { %v5352_v17 = vsub.f32 %v5270_v21, %v455_v19  ;;  %514 = vadd.xlane.f32.xlu1 %v513_v15  ;;  %517 = vadd.xlane.f32.xlu0 %v516_v26  ;;  %v433_v27 = vpop.xlane.xlu0 %432  ;;  %v519_v31 = vsel %vm394_vm0, %v485_v16, 0.0 }
  0xba   : > { %v436_v30 = vpop.xlane.xlu1 %435  ;;  %v456_v32 = vmul.f32 0.03125, %v433_v27  ;;  %v486_v34 = vmul.f32 %v5349_v23, %v5349_v23 }
  0xbb   : > { %v457_v33 = vmul.f32 0.03125, %v436_v30  ;;  %v487_v20 = vmul.f32 %v5352_v17, %v5352_v17 }
  0xbc   : > { %v5361_v35 = vsub.f32 %v5277_v24, %v456_v32  ;;  %v522_v38 = vsel %vm394_vm0, %v486_v34, 0.0 }
  0xbd   : > { %v5364_v21 = vsub.f32 %v5280_v25, %v457_v33  ;;  %520 = vadd.xlane.f32.xlu1 %v519_v31  ;;  %523 = vadd.xlane.f32.xlu0 %v522_v38  ;;  %v439_v39 = vpop.xlane.xlu0 %438  ;;  %v525_v41 = vsel %vm394_vm0, %v487_v20, 0.0 }
  0xbe   : > { %v442_v40 = vpop.xlane.xlu1 %441  ;;  %v458_v42 = vmul.f32 0.03125, %v439_v39  ;;  %v488_v46 = vmul.f32 %v5361_v35, %v5361_v35 }
  0xbf   : > { %v459_v43 = vmul.f32 0.03125, %v442_v40  ;;  %v489_v24 = vmul.f32 %v5364_v21, %v5364_v21 }
  0xc0   : > { %v5373_v47 = vsub.f32 %v5287_v28, %v458_v42  ;;  %v528_v48 = vsel %vm394_vm0, %v488_v46, 0.0 }
  0xc1   : > { %v5376_v25 = vsub.f32 %v5290_v29, %v459_v43  ;;  %526 = vadd.xlane.f32.xlu1 %v525_v41  ;;  %529 = vadd.xlane.f32.xlu0 %v528_v48  ;;  %v531_v49 = vsel %vm394_vm0, %v489_v24, 0.0  ;;  %v4798_v29 = vld [vmem:[%s7330_s3 + $0x14] ss:$8 sps:$4 sm:$0xff]  }
  0xc2   : > { %v490_v50 = vmul.f32 %v5373_v47, %v5373_v47  ;;  %730 = vmatprep.subr.bf16.mxu0 %v4798_v29 }
  0xc3   : > { %v491_v51 = vmul.f32 %v5376_v25, %v5376_v25  ;;  %731 = vmatpush1.bf16.msra.mxu0 %v4800_v53 }
  0xc4   : > { %v534_v52 = vsel %vm394_vm0, %v490_v50, 0.0  ;;  %732 = vmatprep.subr.bf16.mxu0 %v4801_v56 }
  0xc5   : > { %532 = vadd.xlane.f32.xlu1 %v531_v49  ;;  %535 = vadd.xlane.f32.xlu0 %v534_v52  ;;  %v537_v28 = vsel %vm394_vm0, %v491_v51, 0.0  ;;  %v5515_v51 = vld [vmem:[%s7328_s1] ss:$0 sm:$0xff] }
  0xc7   : > { %733 = vmatpush1.bf16.msra.mxu0 %v4803_v57 }
  0xc9   : > { %538 = vadd.xlane.f32.xlu1 %v537_v28 }
  0xda   : > { %1037 = vrot.lane.b32.xlu1 %v5407_v60, %s5135_s22 }
  0xdb   : > { %1035 = vrot.lane.b32.xlu0 %v5402_v59, %s5135_s22 }
  0xde   : > { %1033 = vrot.lane.b32.xlu1 %v5421_v62, %s5135_s22 }
  0xdf   : > { %1031 = vrot.lane.b32.xlu0 %v5416_v61, %s5135_s22 }
  0xe2   : > { %1029 = vrot.lane.b32.xlu1 %v5435_v2, %s5135_s22 }
  0xe3   : > { %1027 = vrot.lane.b32.xlu0 %v5430_v63, %s5135_s22 }
  0xe6   : > { %1025 = vrot.lane.b32.xlu1 %v5449_v4, %s5135_s22 }
  0xe7   : > { %1023 = vrot.lane.b32.xlu0 %v5444_v3, %s5135_s22 }
  0xea   : > { %873 = vrot.lane.b32.xlu1 %v5463_v6, %s5136_s26 }
  0xeb   : > { %871 = vrot.lane.b32.xlu0 %v5458_v5, %s5136_s26 }
  0xee   : > { %877 = vrot.lane.b32.xlu1 %v5477_v8, %s5136_s26 }
  0xef   : > { %875 = vrot.lane.b32.xlu0 %v5472_v7, %s5136_s26 }
  0xf2   : > { %881 = vrot.lane.b32.xlu1 %v5491_v12, %s5136_s26 }
  0xf3   : > { %879 = vrot.lane.b32.xlu0 %v5486_v9, %s5136_s26 }
  0xf6   : > { %885 = vrot.lane.b32.xlu1 %v5505_v14, %s5136_s26 }
  0xf7   : > { %883 = vrot.lane.b32.xlu0 %v5500_v13, %s5136_s26 }
 0x132   : > { %v494_v15 = vpop.xlane.xlu0 %493 }
 0x133   : > { %v540_v18 = vmul.f32 0.03125, %v494_v15 }
 0x135   : > { %v556_v19 = vadd.f32 1e-05, %v540_v18 }
 0x136   : > { %v497_v22 = vpop.xlane.xlu1 %496  ;;  %v500_v16 = vpop.xlane.xlu0 %499 }
 0x137   : > { %4806 = vrsqrt.f32 %v556_v19  ;;  %v541_v26 = vmul.f32 0.03125, %v497_v22  ;;  %v542_v27 = vmul.f32 0.03125, %v500_v16  ;;  %v5522_v19 = vld [vmem:[%s7329_s2] ss:$0 sm:$0xff] }
 0x139   : > { %v557_v30 = vadd.f32 1e-05, %v541_v26  ;;  %v558_v31 = vadd.f32 1e-05, %v542_v27 }
 0x13a   : > { %v503_v32 = vpop.xlane.xlu1 %502  ;;  %v506_v33 = vpop.xlane.xlu0 %505 }
 0x13b   : > { %4808 = vrsqrt.f32 %v557_v30  ;;  %v543_v34 = vmul.f32 0.03125, %v503_v32  ;;  %v544_v38 = vmul.f32 0.03125, %v506_v33 }
 0x13c   : > { %4810 = vrsqrt.f32 %v558_v31 }
 0x13d   : > { %v559_v20 = vadd.f32 1e-05, %v543_v34  ;;  %v560_v41 = vadd.f32 1e-05, %v544_v38 }
 0x13e   : > { %v509_v39 = vpop.xlane.xlu1 %508  ;;  %v512_v43 = vpop.xlane.xlu0 %511 }
 0x13f   : > { %4812 = vrsqrt.f32 %v559_v20  ;;  %v545_v40 = vmul.f32 0.03125, %v509_v39  ;;  %v546_v49 = vmul.f32 0.03125, %v512_v43 }
 0x141   : > { %v561_v42 = vadd.f32 1e-05, %v545_v40  ;;  %v562_v29 = vadd.f32 1e-05, %v546_v49 }
 0x142   : > { %v515_v46 = vpop.xlane.xlu1 %514  ;;  %v518_v56 = vpop.xlane.xlu0 %517 }
 0x143   : > { %4814 = vrsqrt.f32 %v561_v42  ;;  %v547_v24 = vmul.f32 0.03125, %v515_v46  ;;  %v548_v26 = vmul.f32 0.03125, %v518_v56 }
 0x144   : > { %v4807_v48 = vpop.eup %4806  ;;  %4816 = vrsqrt.f32 %v560_v41 }
 0x145   : > { %v588_v50 = vmul.f32 %v4807_v48, %v5296_v36  ;;  %v563_v52 = vadd.f32 1e-05, %v547_v24  ;;  %v564_v39 = vadd.f32 1e-05, %v548_v26 }
 0x146   : > { %v521_v53 = vpop.xlane.xlu1 %520  ;;  %v524_v42 = vpop.xlane.xlu0 %523 }
 0x147   : > { %v611_v15 = vmul.f32 %v5515_v51, %v588_v50  ;;  %4818 = vrsqrt.f32 %v563_v52  ;;  %v549_v36 = vmul.f32 0.03125, %v521_v53  ;;  %v550_v46 = vmul.f32 0.03125, %v524_v42 }
 0x148   : > { %v4809_v28 = vpop.eup %4808  ;;  %4820 = vrsqrt.f32 %v562_v29 }
 0x149   : > { %v589_v57 = vmul.f32 %v4809_v28, %v5304_v44  ;;  %v4811_v18 = vpop.eup %4810  ;;  %v634_v27 = vadd.f32 %v5522_v19, %v611_v15  ;;  %v565_v32 = vadd.f32 1e-05, %v549_v36  ;;  %v566_v56 = vadd.f32 1e-05, %v550_v46 }
 0x14a   : > { %v590_v44 = vmul.f32 %v4811_v18, %v5298_v37  ;;  %v527_v20 = vpop.xlane.xlu1 %526  ;;  %v530_v15 = vpop.xlane.xlu0 %529 }
 0x14b   : > { %v612_v22 = vmul.f32 %v5515_v51, %v589_v57  ;;  %4822 = vrsqrt.f32 %v565_v32  ;;  %v551_v43 = vmul.f32 0.03125, %v527_v20  ;;  %v552_v36 = vmul.f32 0.03125, %v530_v15 }
 0x14c   : > { %v4813_v16 = vpop.eup %4812  ;;  %v613_v40 = vmul.f32 %v5515_v51, %v590_v44  ;;  %4824 = vrsqrt.f32 %v564_v39 }
 0x14d   : > { %v635_v30 = vadd.f32 %v5522_v19, %v612_v22  ;;  %v591_v31 = vmul.f32 %v4813_v16, %v5306_v45  ;;  %v567_v49 = vadd.f32 1e-05, %v551_v43  ;;  %v568_v32 = vadd.f32 1e-05, %v552_v36 }
 0x14e   : > { %v636_v24 = vadd.f32 %v5522_v19, %v613_v40  ;;  %v533_v29 = vpop.xlane.xlu1 %532  ;;  %v536_v20 = vpop.xlane.xlu0 %535 }
 0x14f   : > { %v650_v33 = vpack.c.bf16 %v635_v30, %v634_v27  ;;  %v614_v38 = vmul.f32 %v5515_v51, %v591_v31  ;;  %4826 = vrsqrt.f32 %v567_v49  ;;  %v554_v39 = vmul.f32 0.03125, %v536_v20 }
 0x150   : > { %v4815_v34 = vpop.eup %4814  ;;  %4828 = vrsqrt.f32 %v566_v56  ;;  %v664_v20 = vlaneseq }
 0x151   : > { %4097 = vmatmul.mubr.msk.bf16.vlgmr.msra.gmra.mxu0 %vm394_vm0, %v650_v33  ;;  %v4817_v41 = vpop.eup %4816  ;;  %v637_v37 = vadd.f32 %v5522_v19, %v614_v38  ;;  %v593_v45 = vmul.f32 %v4815_v34, %v5316_v55  ;;  %v553_v55 = vmul.f32 0.03125, %v533_v29  ;;  %v570_v46 = vadd.f32 1e-05, %v554_v39 }
 0x152   : > { %760 = vmatprep.mubr.bf16.mxu0 %v5134_v58  ;;  %v592_v48 = vmul.f32 %v4817_v41, %v5314_v54  ;;  %v539_v31 = vpop.xlane.xlu1 %538 }
 0x153   : > { %v651_v50 = vpack.c.bf16 %v637_v37, %v636_v24  ;;  %v616_v52 = vmul.f32 %v5515_v51, %v593_v45  ;;  %v569_v26 = vadd.f32 1e-05, %v553_v55 }
 0x154   : > { %v4819_v28 = vpop.eup %4818  ;;  %v615_v57 = vmul.f32 %v5515_v51, %v592_v48 }
 0x155   : > { %v4821_v53 = vpop.eup %4820  ;;  %v639_v18 = vadd.f32 %v5522_v19, %v616_v52  ;;  %v595_v54 = vmul.f32 %v4819_v28, %v5328_v1  ;;  %4830 = vrsqrt.f32 %v569_v26  ;;  %v555_v1 = vmul.f32 0.03125, %v539_v31 }
 0x156   : > { %v638_v22 = vadd.f32 %v5522_v19, %v615_v57  ;;  %v594_v16 = vmul.f32 %v4821_v53, %v5325_v0  ;;  %4832 = vrsqrt.f32 %v568_v32 }
 0x157   : > { %v618_v30 = vmul.f32 %v5515_v51, %v595_v54  ;;  %v571_v42 = vadd.f32 1e-05, %v555_v1 }
 0x158   : > { %v652_v27 = vpack.c.bf16 %v639_v18, %v638_v22  ;;  %v4823_v44 = vpop.eup %4822  ;;  %v617_v33 = vmul.f32 %v5515_v51, %v594_v16 }
 0x159   : > { %4098 = vmatmul.mubr.msk.bf16.gmra.mxu0 %vm394_vm0, %v651_v50  ;;  %v4825_v34 = vpop.eup %4824  ;;  %v641_v38 = vadd.f32 %v5522_v19, %v618_v30  ;;  %v597_v0 = vmul.f32 %v4823_v44, %v5340_v11  ;;  %4834 = vrsqrt.f32 %v571_v42 }
 0x15a   : > { %770 = vmatprep.mubr.bf16.mxu0 %v5134_v58  ;;  %v640_v40 = vadd.f32 %v5522_v19, %v617_v33  ;;  %v596_v41 = vmul.f32 %v4825_v34, %v5337_v10  ;;  %4836 = vrsqrt.f32 %v570_v46  ;;  %v5586_v34 = vpop.permute.xlu1 %1037 }
 0x15b   : > { %v620_v37 = vmul.f32 %v5515_v51, %v597_v0 }
 0x15c   : > { %v653_v43 = vpack.c.bf16 %v641_v38, %v640_v40  ;;  %v4827_v45 = vpop.eup %4826  ;;  %v619_v24 = vmul.f32 %v5515_v51, %v596_v41 }
 0x15d   : > { %v4829_v48 = vpop.eup %4828  ;;  %v643_v11 = vadd.f32 %v5522_v19, %v620_v37  ;;  %v599_v49 = vmul.f32 %v4827_v45, %v5352_v17 }
 0x15e   : > { %v642_v10 = vadd.f32 %v5522_v19, %v619_v24  ;;  %v598_v50 = vmul.f32 %v4829_v48, %v5349_v23  ;;  %v5590_v1 = vpop.permute.xlu1 %1033 }
 0x15f   : > { %v622_v28 = vmul.f32 %v5515_v51, %v599_v49 }
 0x160   : > { %v654_v52 = vpack.c.bf16 %v643_v11, %v642_v10  ;;  %v621_v53 = vmul.f32 %v5515_v51, %v598_v50 }
 0x161   : > { %4099 = vmatmul.mubr.msk.bf16.gmra.mxu0 %vm394_vm0, %v652_v27  ;;  %v645_v57 = vadd.f32 %v5522_v19, %v622_v28 }
 0x162   : > { %780 = vmatprep.mubr.bf16.mxu0 %v5134_v58  ;;  %v4831_v29 = vpop.eup %4830  ;;  %v644_v15 = vadd.f32 %v5522_v19, %v621_v53 }
 0x163   : > { %v4833_v56 = vpop.eup %4832  ;;  %v601_v17 = vmul.f32 %v4831_v29, %v5364_v21 }
 0x164   : > { %v600_v55 = vmul.f32 %v4833_v56, %v5361_v35  ;;  %v655_v23 = vpack.c.bf16 %v645_v57, %v644_v15 }
 0x165   : > { %v624_v18 = vmul.f32 %v5515_v51, %v601_v17 }
 0x166   : > { %v4835_v54 = vpop.eup %4834  ;;  %v623_v36 = vmul.f32 %v5515_v51, %v600_v55 }
 0x167   : > { %v4837_v22 = vpop.eup %4836  ;;  %v647_v16 = vadd.f32 %v5522_v19, %v624_v18  ;;  %v603_v26 = vmul.f32 %v4835_v54, %v5376_v25  ;;  %v5584_v25 = vpop.permute.xlu0 %1035 }
 0x168   : > { %v646_v21 = vadd.f32 %v5522_v19, %v623_v36  ;;  %v602_v27 = vmul.f32 %v4837_v22, %v5373_v47 }
 0x169   : > { %4100 = vmatmul.mubr.msk.bf16.gmra.mxu0 %vm394_vm0, %v653_v43  ;;  %v626_v30 = vmul.f32 %v5515_v51, %v603_v26 }
 0x16a   : > { %790 = vmatprep.mubr.bf16.mxu0 %v5134_v58  ;;  %v656_v35 = vpack.c.bf16 %v647_v16, %v646_v21  ;;  %v625_v44 = vmul.f32 %v5515_v51, %v602_v27  ;;  %v665_v51 = vshrl.u32 %v664_v20, 7 }
 0x16b   : > { %v649_v31 = vadd.f32 %v5522_v19, %v626_v30  ;;  %v5588_v47 = vpop.permute.xlu0 %1031 }
 0x16c   : > { %v648_v32 = vadd.f32 %v5522_v19, %v625_v44  ;;  %v666_v0 = vsub.s32 0, %v665_v51  ;;  %v662_v19 = vld [vmem:[%s7331_s4] sm:$0x3]  ;;  %v670_v40 = vsub.s32 1, %v665_v51 }
 0x16e   : > { %v657_v33 = vpack.c.bf16 %v649_v31, %v648_v32  ;;  %v5601_v41 = vrot.slane %v662_v19, %v666_v0  ;;  %v5605_v43 = vrot.slane %v662_v19, %v670_v40 }
 0x16f   : > { %v5592_v38 = vpop.permute.xlu0 %1027 }
 0x171   : > { %4101 = vmatmul.mubr.msk.bf16.gmra.mxu0 %vm394_vm0, %v654_v52 }
 0x172   : > { %800 = vmatprep.mubr.bf16.mxu0 %v5134_v58 }
 0x173   : > { %v5596_v39 = vpop.permute.xlu0 %1023 }
 0x177   : > { %v5607_v45 = vpop.permute.xlu0 %871 }
 0x179   : > { %4102 = vmatmul.mubr.msk.bf16.gmra.mxu0 %vm394_vm0, %v655_v23 }
 0x17a   : > { %810 = vmatprep.mubr.bf16.mxu0 %v5134_v58 }
 0x17b   : > { %v5636_v18 = vpop.permute.xlu0 %875 }
 0x17f   : > { %v5662_v51 = vpop.permute.xlu0 %879 }
 0x181   : > { %4103 = vmatmul.mubr.msk.bf16.gmra.mxu0 %vm394_vm0, %v656_v35 }
 0x182   : > { %820 = vmatprep.mubr.bf16.mxu0 %v5134_v58  ;;  %v5594_v58 = vpop.permute.xlu1 %1029 }
 0x186   : > { %v5603_v42 = vpop.permute.xlu1 %1025 }
 0x189   : > { %4104 = vmatmul.mubr.msk.bf16.gmra.mxu0 %vm394_vm0, %v657_v33 }
 0x18a   : > { %v5615_v10 = vpop.permute.xlu1 %873 }
 0x18e   : > { %v5643_v16 = vpop.permute.xlu1 %877 }
 0x211   : > { %v752_v37 = vpop.f32.mrf.mxu0 }
 0x212   : > { %v5610_v46 = vadd.f32 %v752_v37, %v5601_v41  ;;  %v5669_v37 = vpop.permute.xlu1 %881 }
 0x213   : > { %v754_v24 = vpop.f32.mrf.mxu0 }
 0x214   : > { %v755_v48 = vadd.f32 %v754_v24, %v5605_v43  ;;  %v895_v11 = vmul.f32 %v5607_v45, %v5610_v46 }
 0x215   : > { %v756_v49 = vpop.f32.mrf.mxu0 }
 0x216   : > { %v5618_v50 = vadd.f32 %v756_v49, %v5601_v41  ;;  %927 = vrot.lane.b32.xlu0 %v895_v11, %s5135_s22  ;;  %v1063_v28 = vmul.f32 %v5458_v5, %v755_v48 }
 0x217   : > { %v758_v52 = vpop.f32.mrf.mxu0 }
 0x218   : > { %v896_v29 = vmul.f32 %v5615_v10, %v5618_v50  ;;  %v759_v53 = vadd.f32 %v758_v52, %v5605_v43  ;;  %v5627_v57 = vpack.c.bf16 %v5618_v50, %v5610_v46 }
 0x219   : > { %v762_v56 = vpop.f32.mrf.mxu0 }
 0x21a   : > { %929 = vrot.lane.b32.xlu1 %v896_v29, %s5135_s22  ;;  %1095 = vrot.lane.b32.xlu0 %v1063_v28, %s5135_s22  ;;  %v1064_v15 = vmul.f32 %v5463_v6, %v759_v53  ;;  %v5633_v55 = vadd.f32 %v762_v56, %v5601_v41  ;;  %v5685_v56 = vpop.permute.xlu0 %883 }
 0x21b   : > { %v764_v17 = vpop.f32.mrf.mxu0 }
 0x21c   : > { %v765_v23 = vadd.f32 %v764_v17, %v5605_v43  ;;  %v897_v21 = vmul.f32 %v5636_v18, %v5633_v55 }
 0x21d   : > { %v766_v54 = vpop.f32.mrf.mxu0 }
 0x21e   : > { %v1065_v36 = vmul.f32 %v5472_v7, %v765_v23  ;;  %v5640_v22 = vadd.f32 %v766_v54, %v5601_v41  ;;  %1097 = vrot.lane.b32.xlu1 %v1064_v15, %s5135_s22 }
 0x21f   : > { %v768_v26 = vpop.f32.mrf.mxu0 }
 0x220   : > { %v769_v27 = vadd.f32 %v768_v26, %v5605_v43  ;;  %1099 = vrot.lane.b32.xlu0 %v1065_v36, %s5135_s22  ;;  %v5651_v30 = vpack.c.bf16 %v5640_v22, %v5633_v55  ;;  %v898_v44 = vmul.f32 %v5643_v16, %v5640_v22 }
 0x221   : > { %v772_v35 = vpop.f32.mrf.mxu0 }
 0x222   : > { %931 = vrot.lane.b32.xlu1 %v897_v21, %s5135_s22  ;;  %v1066_v32 = vmul.f32 %v5477_v8, %v769_v27  ;;  %v5658_v33 = vadd.f32 %v772_v35, %v5601_v41  ;;  %v5698_v27 = vpop.permute.xlu1 %885 }
 0x223   : > { %v774_v31 = vpop.f32.mrf.mxu0 }
 0x224   : > { %v775_v20 = vadd.f32 %v774_v31, %v5605_v43  ;;  %933 = vrot.lane.b32.xlu0 %v898_v44, %s5135_s22  ;;  %v899_v48 = vmul.f32 %v5662_v51, %v5658_v33 }
 0x225   : > { %v776_v0 = vpop.f32.mrf.mxu0 }
 0x226   : > { %v1067_v19 = vmul.f32 %v5486_v9, %v775_v20  ;;  %v5666_v40 = vadd.f32 %v776_v0, %v5601_v41  ;;  %1101 = vrot.lane.b32.xlu1 %v1066_v32, %s5135_s22 }
 0x227   : > { %v778_v24 = vpop.f32.mrf.mxu0 }
 0x228   : > { %v779_v11 = vadd.f32 %v778_v24, %v5605_v43  ;;  %1103 = vrot.lane.b32.xlu0 %v1067_v19, %s5135_s22  ;;  %v5677_v52 = vpack.c.bf16 %v5666_v40, %v5658_v33  ;;  %v900_v28 = vmul.f32 %v5669_v37, %v5666_v40 }
 0x229   : > { %v782_v49 = vpop.f32.mrf.mxu0 }
 0x22a   : > { %v5682_v29 = vadd.f32 %v782_v49, %v5601_v41  ;;  %935 = vrot.lane.b32.xlu1 %v899_v48, %s5135_s22  ;;  %v1068_v17 = vmul.f32 %v5491_v12, %v779_v11 }
 0x22b   : > { %v784_v53 = vpop.f32.mrf.mxu0 }
 0x22c   : > { %v785_v15 = vadd.f32 %v784_v53, %v5605_v43  ;;  %937 = vrot.lane.b32.xlu0 %v900_v28, %s5135_s22  ;;  %v901_v54 = vmul.f32 %v5685_v56, %v5682_v29 }
 0x22d   : > { %v786_v23 = vpop.f32.mrf.mxu0 }
 0x22e   : > { %v5693_v36 = vadd.f32 %v786_v23, %v5601_v41  ;;  %1105 = vrot.lane.b32.xlu1 %v1068_v17, %s5135_s22  ;;  %v1069_v21 = vmul.f32 %v5500_v13, %v785_v15 }
 0x22f   : > { %v788_v26 = vpop.f32.mrf.mxu0 }
 0x230   : > { %939 = vrot.lane.b32.xlu0 %v901_v54, %s5135_s22  ;;  %v5702_v44 = vpack.c.bf16 %v5693_v36, %v5682_v29  ;;  %v902_v20 = vmul.f32 %v5698_v27, %v5693_v36  ;;  %v789_v0 = vadd.f32 %v788_v26, %v5605_v43 }
 0x231   : > { %v792_v35 = vpop.f32.mrf.mxu0 }
 0x232   : > { %v5705_v31 = vadd.f32 %v792_v35, %v5601_v41  ;;  %1107 = vrot.lane.b32.xlu1 %v1069_v21, %s5135_s22  ;;  %v1070_v28 = vmul.f32 %v5505_v14, %v789_v0 }
 0x233   : > { %v794_v32 = vpop.f32.mrf.mxu0 }
 0x234   : > { %v795_v19 = vadd.f32 %v794_v32, %v5605_v43  ;;  %v903_v24 = vmul.f32 %v5607_v45, %v5705_v31 }
 0x235   : > { %v796_v48 = vpop.f32.mrf.mxu0 }
 0x236   : > { %v5715_v11 = vadd.f32 %v796_v48, %v5601_v41  ;;  %941 = vrot.lane.b32.xlu1 %v902_v20, %s5135_s22  ;;  %943 = vrot.lane.b32.xlu0 %v903_v24, %s5135_s22  ;;  %v1071_v53 = vmul.f32 %v5458_v5, %v795_v19 }
 0x237   : > { %v798_v49 = vpop.f32.mrf.mxu0 }
 0x238   : > { %v5723_v15 = vpack.c.bf16 %v5715_v11, %v5705_v31  ;;  %v799_v23 = vadd.f32 %v798_v49, %v5605_v43  ;;  %v904_v26 = vmul.f32 %v5615_v10, %v5715_v11 }
 0x239   : > { %v802_v17 = vpop.f32.mrf.mxu0 }
 0x23a   : > { %1109 = vrot.lane.b32.xlu1 %v1070_v28, %s5135_s22  ;;  %1111 = vrot.lane.b32.xlu0 %v1071_v53, %s5135_s22  ;;  %v5737_v32 = vadd.f32 %v802_v17, %v5601_v41  ;;  %v1072_v0 = vmul.f32 %v5463_v6, %v799_v23 }
 0x23b   : > { %v804_v45 = vpop.f32.mrf.mxu0 }
 0x23c   : > { %v805_v54 = vadd.f32 %v804_v45, %v5605_v43  ;;  %v905_v6 = vmul.f32 %v5636_v18, %v5737_v32 }
 0x23d   : > { %v806_v21 = vpop.f32.mrf.mxu0 }
 0x23e   : > { %v1073_v5 = vmul.f32 %v5472_v7, %v805_v54  ;;  %v5733_v35 = vadd.f32 %v806_v21, %v5601_v41  ;;  %945 = vrot.lane.b32.xlu1 %v904_v26, %s5135_s22 }
 0x23f   : > { %v808_v20 = vpop.f32.mrf.mxu0 }
 0x240   : > { %1115 = vrot.lane.b32.xlu0 %v1073_v5, %s5135_s22  ;;  %v5743_v10 = vpack.c.bf16 %v5733_v35, %v5737_v32  ;;  %v906_v24 = vmul.f32 %v5643_v16, %v5733_v35  ;;  %v809_v49 = vadd.f32 %v808_v20, %v5605_v43 }
 0x241   : > { %v812_v19 = vpop.f32.mrf.mxu0 }
 0x242   : > { %v5746_v7 = vadd.f32 %v812_v19, %v5601_v41  ;;  %1113 = vrot.lane.b32.xlu1 %v1072_v0, %s5135_s22  ;;  %v1074_v23 = vmul.f32 %v5477_v8, %v809_v49 }
 0x243   : > { %v814_v48 = vpop.f32.mrf.mxu0 }
 0x244   : > { %949 = vrot.lane.b32.xlu0 %v906_v24, %s5135_s22  ;;  %v815_v53 = vadd.f32 %v814_v48, %v5605_v43  ;;  %v907_v45 = vmul.f32 %v5662_v51, %v5746_v7 }
 0x245   : > { %v816_v28 = vpop.f32.mrf.mxu0 }
 0x246   : > { %v5757_v17 = vadd.f32 %v816_v28, %v5601_v41  ;;  %947 = vrot.lane.b32.xlu1 %v905_v6, %s5135_s22  ;;  %v1075_v26 = vmul.f32 %v5486_v9, %v815_v53  ;;  %v847_v28 = vmul.f32 %v5444_v3, %v5610_v46  ;;  %v848_v53 = vmul.f32 %v5449_v4, %v5618_v50 }
 0x247   : > { %v818_v16 = vpop.f32.mrf.mxu0 }
 0x248   : > { %951 = vrot.lane.b32.xlu0 %v907_v45, %s5135_s22  ;;  %v5766_v18 = vpack.c.bf16 %v5757_v17, %v5746_v7  ;;  %v819_v51 = vadd.f32 %v818_v16, %v5605_v43  ;;  %v908_v8 = vmul.f32 %v5669_v37, %v5757_v17 }
 0x249   : > { %v822_v54 = vpop.f32.mrf.mxu0 }
 0x24a   : > { %v5770_v21 = vadd.f32 %v822_v54, %v5601_v41  ;;  %1117 = vrot.lane.b32.xlu1 %v1074_v23, %s5135_s22  ;;  %v1076_v24 = vmul.f32 %v5491_v12, %v819_v51 }
 0x24b   : > { %v824_v5 = vpop.f32.mrf.mxu0 }
 0x24c   : > { %1119 = vrot.lane.b32.xlu0 %v1075_v26, %s5135_s22  ;;  %v825_v0 = vadd.f32 %v824_v5, %v5605_v43  ;;  %v909_v9 = vmul.f32 %v5685_v56, %v5770_v21 }
 0x24d   : > { %v826_v20 = vpop.f32.mrf.mxu0 }
 0x24e   : > { %v5779_v19 = vadd.f32 %v826_v20, %v5601_v41  ;;  %953 = vrot.lane.b32.xlu1 %v908_v8, %s5135_s22  ;;  %v1077_v37 = vmul.f32 %v5500_v13, %v825_v0 }
 0x24f   : > { %v828_v48 = vpop.f32.mrf.mxu0 }
 0x250   : > { %955 = vrot.lane.b32.xlu0 %v909_v9, %s5135_s22  ;;  %v5788_v49 = vpack.c.bf16 %v5779_v19, %v5770_v21  ;;  %v829_v41 = vadd.f32 %v828_v48, %v5605_v43  ;;  %v910_v56 = vmul.f32 %v5698_v27, %v5779_v19  ;;  %v1047_v27 = vmul.f32 %v5596_v39, %v5610_v46 }
 0x251   : > { %v849_v9 = vmul.f32 %v5430_v63, %v5633_v55  ;;  %v850_v46 = vmul.f32 %v5435_v2, %v5640_v22 }
 0x252   : > { %1121 = vrot.lane.b32.xlu1 %v1076_v24, %s5135_s22  ;;  %v1078_v12 = vmul.f32 %v5505_v14, %v829_v41  ;;  %v1048_v14 = vmul.f32 %v5603_v42, %v5618_v50 }
 0x254   : > { %1123 = vrot.lane.b32.xlu0 %v1077_v37, %s5135_s22  ;;  %v1049_v37 = vmul.f32 %v5592_v38, %v5633_v55 }
 0x256   : > { %957 = vrot.lane.b32.xlu1 %v910_v56, %s5135_s22  ;;  %v1050_v56 = vmul.f32 %v5594_v58, %v5640_v22  ;;  %v852_v22 = vmul.f32 %v5421_v62, %v5666_v40 }
 0x25a   : > { %1125 = vrot.lane.b32.xlu1 %v1078_v12, %s5135_s22  ;;  %s5137_s22 = smov 120  }
 0x288   : > { %v928_v6 = vpop.permute.xlu0 %927 }
 0x289   : > { %v975_v13 = vadd.f32 %v928_v6, %v847_v28 }
 0x28b   : > { %v991_v23 = vmul.f32 0.35355338, %v975_v13 }
 0x28c   : > { %v930_v43 = vpop.permute.xlu1 %929  ;;  %v1096_v16 = vpop.permute.xlu0 %1095 }
 0x28d   : > { %v976_v45 = vadd.f32 %v930_v43, %v848_v53  ;;  %v1143_v51 = vadd.f32 %v1096_v16, %v1047_v27 }
 0x28f   : > { %v992_v54 = vmul.f32 0.35355338, %v976_v45 }
 0x290   : > { %v1098_v26 = vpop.permute.xlu1 %1097 }
 0x291   : > { %v1007_v5 = vpack.c.bf16 %v992_v54, %v991_v23  ;;  %v1144_v8 = vadd.f32 %v1098_v26, %v1048_v14  ;;  %v851_v23 = vmul.f32 %v5416_v61, %v5658_v33  ;;  %v1051_v14 = vmul.f32 %v5588_v47, %v5658_v33 }
 0x292   : > { %v1100_v20 = vpop.permute.xlu0 %1099  ;;  %v853_v33 = vmul.f32 %v5402_v59, %v5682_v29 }
 0x293   : > { %v1159_v0 = vpack.c.bf16 %v1144_v8, %v1143_v51  ;;  %4328 = vmatprep.mubr.msk.bf16.mxu1 %vm1351_vm1, %v1007_v5  ;;  %v1145_v6 = vadd.f32 %v1100_v20, %v1049_v37  ;;  %v1052_v51 = vmul.f32 %v5590_v1, %v5666_v40 }
 0x294   : > { %v932_v24 = vpop.permute.xlu1 %931 }
 0x295   : > { %v977_v48 = vadd.f32 %v932_v24, %v849_v9  ;;  %1343 = vrot.lane.b32.xlu1 %v1159_v0, %s5136_s26  ;;  %1239 = vrot.lane.b32.xlu0 %v1159_v0, %s5137_s22 }
 0x296   : > { %v934_v50 = vpop.permute.xlu0 %933 }
 0x297   : > { %v978_v41 = vadd.f32 %v934_v50, %v850_v46  ;;  %v993_v28 = vmul.f32 0.35355338, %v977_v48 }
 0x298   : > { %v1102_v12 = vpop.permute.xlu1 %1101 }
 0x299   : > { %v994_v13 = vmul.f32 0.35355338, %v978_v41  ;;  %v1146_v53 = vadd.f32 %v1102_v12, %v1050_v56  ;;  %1255 = vrot.lane.b32.xlu0 %v1159_v0, %s5138_s17  ;;  %v854_v41 = vmul.f32 %v5407_v60, %v5693_v36 }
 0x29a   : > { %v1104_v43 = vpop.permute.xlu0 %1103 }
 0x29b   : > { %v5819_v45 = vpack.c.bf16 %v994_v13, %v993_v28  ;;  %v1160_v16 = vpack.c.bf16 %v1146_v53, %v1145_v6  ;;  %v1147_v20 = vadd.f32 %v1104_v43, %v1051_v14  ;;  %v1053_v13 = vmul.f32 %v5584_v25, %v5682_v29 }
 0x29c   : > { %v936_v55 = vpop.permute.xlu1 %935  ;;  %v1054_v43 = vmul.f32 %v5586_v34, %v5693_v36  ;;  %v856_v36 = vmul.f32 %v5449_v4, %v5715_v11 }
 0x29d   : > { %v979_v54 = vadd.f32 %v936_v55, %v851_v23  ;;  %1271 = vrot.lane.b32.xlu0 %v1159_v0, %s5139_s18  ;;  %1241 = vrot.lane.b32.xlu1 %v1160_v16, %s5137_s22  ;;  %v855_v23 = vmul.f32 %v5444_v3, %v5705_v31 }
 0x29e   : > { %v938_v27 = vpop.permute.xlu0 %937 }
 0x29f   : > { %v980_v26 = vadd.f32 %v938_v27, %v852_v22  ;;  %v995_v9 = vmul.f32 0.35355338, %v979_v54 }
 0x2a0   : > { %v1106_v8 = vpop.permute.xlu1 %1105 }
 0x2a1   : > { %v996_v24 = vmul.f32 0.35355338, %v980_v26  ;;  %v1148_v48 = vadd.f32 %v1106_v8, %v1052_v51  ;;  %1183 = vrot.lane.b32.xlu0 %v1007_v5, %s5137_s22  ;;  %1257 = vrot.lane.b32.xlu1 %v1160_v16, %s5138_s17 }
 0x2a2   : > { %v940_v50 = vpop.permute.xlu0 %939 }
 0x2a3   : > { %v5833_v0 = vpack.c.bf16 %v996_v24, %v995_v9  ;;  %v1161_v46 = vpack.c.bf16 %v1148_v48, %v1147_v20  ;;  %v981_v40 = vadd.f32 %v940_v50, %v853_v33  ;;  %v1055_v20 = vmul.f32 %v5596_v39, %v5705_v31 }
 0x2a4   : > { %v1108_v37 = vpop.permute.xlu1 %1107  ;;  %v1056_v24 = vmul.f32 %v5603_v42, %v5715_v11  ;;  %v858_v50 = vmul.f32 %v5435_v2, %v5733_v35  ;;  %v857_v31 = vmul.f32 %v5430_v63, %v5737_v32 }
 0x2a5   : > { %1199 = vrot.lane.b32.xlu0 %v1007_v5, %s5138_s17  ;;  %1185 = vrot.lane.b32.xlu1 %v5819_v45, %s5137_s22  ;;  %v997_v28 = vmul.f32 0.35355338, %v981_v40  ;;  %v1149_v54 = vadd.f32 %v1108_v37, %v1053_v13 }
 0x2a8   : > { %v942_v56 = vpop.permute.xlu1 %941  ;;  %v944_v12 = vpop.permute.xlu0 %943 }
 0x2a9   : > { %v982_v6 = vadd.f32 %v942_v56, %v854_v41  ;;  %1215 = vrot.lane.b32.xlu0 %v1007_v5, %s5139_s18  ;;  %1201 = vrot.lane.b32.xlu1 %v5819_v45, %s5138_s17  ;;  %v983_v14 = vadd.f32 %v944_v12, %v855_v23  ;;  %v1057_v41 = vmul.f32 %v5592_v38, %v5737_v32 }
 0x2ab   : > { %v998_v53 = vmul.f32 0.35355338, %v982_v6  ;;  %v999_v8 = vmul.f32 0.35355338, %v983_v14  ;;  %v1058_v6 = vmul.f32 %v5594_v58, %v5733_v35 }
 0x2ac   : > { %v1110_v55 = vpop.permute.xlu1 %1109  ;;  %v1112_v5 = vpop.permute.xlu0 %1111 }
 0x2ad   : > { %v5851_v22 = vpack.c.bf16 %v998_v53, %v997_v28  ;;  %v1150_v27 = vadd.f32 %v1110_v55, %v1054_v43  ;;  %1345 = vrot.lane.b32.xlu0 %v1160_v16, %s5136_s26  ;;  %1217 = vrot.lane.b32.xlu1 %v5819_v45, %s5139_s18  ;;  %v1151_v4 = vadd.f32 %v1112_v5, %v1055_v20 }
 0x2ae   : > { %v859_v28 = vmul.f32 %v5416_v61, %v5746_v7  ;;  %v860_v55 = vmul.f32 %v5421_v62, %v5757_v17  ;;  %v861_v5 = vmul.f32 %v5402_v59, %v5770_v21  ;;  %v1061_v20 = vmul.f32 %v5584_v25, %v5770_v21 }
 0x2af   : > { %v5856_v29 = vpack.c.bf16 %v1150_v27, %v1149_v54  ;;  %v1060_v27 = vmul.f32 %v5590_v1, %v5757_v17  ;;  %v862_v1 = vmul.f32 %v5407_v60, %v5779_v19 }
 0x2b0   : > { %v946_v26 = vpop.permute.xlu1 %945 }
 0x2b1   : > { %v984_v51 = vadd.f32 %v946_v26, %v856_v36  ;;  %1273 = vrot.lane.b32.xlu0 %v1160_v16, %s5139_s18  ;;  %1243 = vrot.lane.b32.xlu1 %v1161_v46, %s5137_s22 }
 0x2b2   : > { %v1116_v3 = vpop.permute.xlu0 %1115 }
 0x2b3   : > { %v1000_v9 = vmul.f32 0.35355338, %v984_v51  ;;  %v1153_v13 = vadd.f32 %v1116_v3, %v1057_v41 }
 0x2b4   : > { %v1114_v48 = vpop.permute.xlu1 %1113 }
 0x2b5   : > { %v5868_v37 = vpack.c.bf16 %v1000_v9, %v999_v8  ;;  %v1152_v33 = vadd.f32 %v1114_v48, %v1056_v24  ;;  %1347 = vrot.lane.b32.xlu1 %v1161_v46, %s5136_s26  ;;  %1187 = vrot.lane.b32.xlu0 %v5833_v0, %s5137_s22  ;;  %v1062_v24 = vmul.f32 %v5586_v34, %v5779_v19 }
 0x2b6   : > { %v950_v16 = vpop.permute.xlu0 %949 }
 0x2b7   : > { %v1163_v40 = vpack.c.bf16 %v1152_v33, %v1151_v4  ;;  %v986_v39 = vadd.f32 %v950_v16, %v858_v50 }
 0x2b8   : > { %v948_v42 = vpop.permute.xlu1 %947 }
 0x2b9   : > { %v985_v11 = vadd.f32 %v948_v42, %v857_v31  ;;  %1259 = vrot.lane.b32.xlu1 %v1161_v46, %s5138_s17  ;;  %1203 = vrot.lane.b32.xlu0 %v5833_v0, %s5138_s17  ;;  %v1002_v56 = vmul.f32 0.35355338, %v986_v39 }
 0x2ba   : > { %v952_v2 = vpop.permute.xlu0 %951 }
 0x2bb   : > { %v1001_v12 = vmul.f32 0.35355338, %v985_v11  ;;  %v987_v38 = vadd.f32 %v952_v2, %v859_v28 }
 0x2bc   : > { %v1118_v63 = vpop.permute.xlu1 %1117 }
 0x2bd   : > { %v5884_v53 = vpack.c.bf16 %v1002_v56, %v1001_v12  ;;  %v1154_v43 = vadd.f32 %v1118_v63, %v1058_v6  ;;  %1275 = vrot.lane.b32.xlu1 %v1161_v46, %s5139_s18  ;;  %1219 = vrot.lane.b32.xlu0 %v5833_v0, %s5139_s18  ;;  %v1003_v61 = vmul.f32 0.35355338, %v987_v38  ;;  %v1059_v46 = vmul.f32 %v5588_v47, %v5746_v7 }
 0x2be   : > { %v1120_v23 = vpop.permute.xlu0 %1119 }
 0x2bf   : > { %v1164_v32 = vpack.c.bf16 %v1154_v43, %v1153_v13  ;;  %v1155_v36 = vadd.f32 %v1120_v23, %v1059_v46 }
 0x2c0   : > { %v954_v58 = vpop.permute.xlu1 %953 }
 0x2c1   : > { %v988_v35 = vadd.f32 %v954_v58, %v860_v55  ;;  %1277 = vrot.lane.b32.xlu1 %v5856_v29, %s5139_s18  ;;  %1245 = vrot.lane.b32.xlu0 %v5856_v29, %s5137_s22 }
 0x2c2   : > { %v956_v62 = vpop.permute.xlu0 %955 }
 0x2c3   : > { %v1004_v54 = vmul.f32 0.35355338, %v988_v35  ;;  %v989_v47 = vadd.f32 %v956_v62, %v861_v5 }
 0x2c4   : > { %v1122_v14 = vpop.permute.xlu1 %1121 }
 0x2c5   : > { %v5901_v26 = vpack.c.bf16 %v1004_v54, %v1003_v61  ;;  %v1156_v51 = vadd.f32 %v1122_v14, %v1060_v27  ;;  %1349 = vrot.lane.b32.xlu0 %v5856_v29, %s5136_s26  ;;  %1189 = vrot.lane.b32.xlu1 %v5851_v22, %s5137_s22  ;;  %v1005_v8 = vmul.f32 0.35355338, %v989_v47 }
 0x2c6   : > { %v1124_v59 = vpop.permute.xlu0 %1123 }
 0x2c7   : > { %v1165_v7 = vpack.c.bf16 %v1156_v51, %v1155_v36  ;;  %v1157_v50 = vadd.f32 %v1124_v59, %v1061_v20 }
 0x2c8   : > { %v958_v17 = vpop.permute.xlu1 %957 }
 0x2c9   : > { %v990_v3 = vadd.f32 %v958_v17, %v862_v1  ;;  %1261 = vrot.lane.b32.xlu0 %v5856_v29, %s5138_s17  ;;  %1205 = vrot.lane.b32.xlu1 %v5851_v22, %s5138_s17 }
 0x2cb   : > { %v1006_v9 = vmul.f32 0.35355338, %v990_v3 }
 0x2cc   : > { %v1126_v48 = vpop.permute.xlu1 %1125 }
 0x2cd   : > { %v5917_v60 = vpack.c.bf16 %v1006_v9, %v1005_v8  ;;  %v1158_v4 = vadd.f32 %v1126_v48, %v1062_v24  ;;  %1221 = vrot.lane.b32.xlu0 %v5851_v22, %s5139_s18  ;;  %1279 = vrot.lane.b32.xlu1 %v1163_v40, %s5139_s18 }
 0x2cf   : > { %v1166_v29 = vpack.c.bf16 %v1158_v4, %v1157_v50 }
 0x2d1   : > { %1247 = vrot.lane.b32.xlu0 %v1163_v40, %s5137_s22  ;;  %1249 = vrot.lane.b32.xlu1 %v1164_v32, %s5137_s22 }
 0x2d5   : > { %1441 = vrot.lane.b32.xlu0 %v1163_v40, %s5136_s26  ;;  %1193 = vrot.lane.b32.xlu1 %v5884_v53, %s5137_s22 }
 0x2d9   : > { %1263 = vrot.lane.b32.xlu0 %v1163_v40, %s5138_s17  ;;  %1209 = vrot.lane.b32.xlu1 %v5884_v53, %s5138_s17 }
 0x2dd   : > { %1191 = vrot.lane.b32.xlu0 %v5868_v37, %s5137_s22  ;;  %1251 = vrot.lane.b32.xlu1 %v1165_v7, %s5137_s22 }
 0x2e1   : > { %1207 = vrot.lane.b32.xlu0 %v5868_v37, %s5138_s17  ;;  %1445 = vrot.lane.b32.xlu1 %v1165_v7, %s5136_s26 }
 0x2e5   : > { %1443 = vrot.lane.b32.xlu0 %v1164_v32, %s5136_s26  ;;  %1267 = vrot.lane.b32.xlu1 %v1165_v7, %s5138_s17 }
 0x2e9   : > { %1265 = vrot.lane.b32.xlu0 %v1164_v32, %s5138_s17  ;;  %1283 = vrot.lane.b32.xlu1 %v1165_v7, %s5139_s18 }
 0x2ed   : > { %1281 = vrot.lane.b32.xlu0 %v1164_v32, %s5139_s18  ;;  %1211 = vrot.lane.b32.xlu1 %v5901_v26, %s5138_s17 }
 0x2f1   : > { %1195 = vrot.lane.b32.xlu0 %v5901_v26, %s5137_s22  ;;  %1285 = vrot.lane.b32.xlu1 %v1166_v29, %s5139_s18 }
 0x2f5   : > { %1197 = vrot.lane.b32.xlu1 %v5917_v60, %s5137_s22  ;;  %1253 = vrot.lane.b32.xlu0 %v1166_v29, %s5137_s22 }
 0x2f9   : > { %1213 = vrot.lane.b32.xlu1 %v5917_v60, %s5138_s17  ;;  %1223 = vrot.lane.b32.xlu0 %v5868_v37, %s5139_s18 }
 0x2fd   : > { %1447 = vrot.lane.b32.xlu0 %v1166_v29, %s5136_s26 }
 0x301   : > { %1269 = vrot.lane.b32.xlu0 %v1166_v29, %s5138_s17 }
 0x307   : > { %v1240_v25 = vpop.permute.xlu0 %1239  ;;  %v1344_v34 = vpop.permute.xlu1 %1343 }
 0x308   : > { %1538 = vrot.lane.b32.xlu0 %v1240_v25, %s5136_s26  ;;  %v1365_v3 = vsel %vm1351_vm1, %v1344_v34, 0 }
 0x30b   : > { %v1256_v21 = vpop.permute.xlu0 %1255 }
 0x30c   : > { %1732 = vrot.lane.b32.xlu1 %v1256_v21, %s5136_s26 }
 0x30f   : > { %v1242_v19 = vpop.permute.xlu1 %1241  ;;  %v1272_v33 = vpop.permute.xlu0 %1271 }
 0x310   : > { %1926 = vrot.lane.b32.xlu0 %v1272_v33, %s5136_s26 }
 0x313   : > { %v1258_v16 = vpop.permute.xlu1 %1257  ;;  %v1184_v40 = vpop.permute.xlu0 %1183 }
 0x314   : > { %1734 = vrot.lane.b32.xlu1 %v1258_v16, %s5136_s26  ;;  %1540 = vrot.lane.b32.xlu0 %v1242_v19, %s5136_s26 }
 0x315   : > { %4360 = vmatprep.mubr.msk.bf16.mxu0 %vm1351_vm1, %v1184_v40 }
 0x317   : > { %v5961_v39 = vpop.permute.xlu1 %1185  ;;  %v5963_v31 = vpop.permute.xlu0 %1199 }
 0x31b   : > { %v5965_v42 = vpop.permute.xlu1 %1201  ;;  %v5967_v11 = vpop.permute.xlu0 %1215 }
 0x31f   : > { %v5969_v2 = vpop.permute.xlu1 %1217  ;;  %v1346_v41 = vpop.permute.xlu0 %1345 }
 0x320   : > { %v1368_v47 = vsel %vm1351_vm1, %v1346_v41, 0 }
 0x323   : > { %v1244_v56 = vpop.permute.xlu1 %1243  ;;  %v1274_v12 = vpop.permute.xlu0 %1273 }
 0x324   : > { %1928 = vrot.lane.b32.xlu1 %v1274_v12, %s5136_s26 }
 0x327   : > { %v1348_v6 = vpop.permute.xlu1 %1347  ;;  %v5972_v28 = vpop.permute.xlu0 %1187 }
 0x328   : > { %1542 = vrot.lane.b32.xlu1 %v1244_v56, %s5136_s26  ;;  %v1371_v5 = vsel %vm1351_vm1, %v1348_v6, 0 }
 0x32b   : > { %v1260_v63 = vpop.permute.xlu1 %1259  ;;  %v5975_v13 = vpop.permute.xlu0 %1203 }
 0x32c   : > { %1736 = vrot.lane.b32.xlu0 %v1260_v63, %s5136_s26 }
 0x32f   : > { %v1276_v43 = vpop.permute.xlu1 %1275  ;;  %v5978_v23 = vpop.permute.xlu0 %1219 }
 0x330   : > { %1930 = vrot.lane.b32.xlu0 %v1276_v43, %s5136_s26 }
 0x333   : > { %v1278_v38 = vpop.permute.xlu1 %1277  ;;  %v1246_v32 = vpop.permute.xlu0 %1245 }
 0x334   : > { %1544 = vrot.lane.b32.xlu1 %v1246_v32, %s5136_s26 }
 0x337   : > { %v5982_v55 = vpop.permute.xlu1 %1189  ;;  %v1350_v58 = vpop.permute.xlu0 %1349 }
 0x338   : > { %4596 = vmatprep.subr.msk.bf16.mxu1 %vm1351_vm1, %v1350_v58  ;;  %v1374_v35 = vsel %vm1351_vm1, %v1350_v58, 0 }
 0x339   : > { %4321 = vmatpush3.bf16.xpose.msra.mxu1 %v1374_v35 }
 0x33a   : > { %4597 = vmatprep.subr.msk.bf16.mxu1 %vm1351_vm1, %v1348_v6 }
 0x33b   : > { %v5987_v61 = vpop.permute.xlu1 %1205  ;;  %v1262_v46 = vpop.permute.xlu0 %1261 }
 0x33c   : > { %1738 = vrot.lane.b32.xlu0 %v1262_v46, %s5136_s26 }
 0x33f   : > { %v1280_v54 = vpop.permute.xlu1 %1279  ;;  %v5990_v27 = vpop.permute.xlu0 %1221 }
 0x340   : > { %1932 = vrot.lane.b32.xlu0 %v1278_v38, %s5136_s26 }
 0x341   : > { %4323 = vmatpush3.bf16.xpose.msra.mxu1 %v1371_v5 }
 0x342   : > { %4598 = vmatprep.subr.msk.bf16.mxu1 %vm1351_vm1, %v1346_v41 }
 0x343   : > { %v1250_v62 = vpop.permute.xlu1 %1249  ;;  %v1248_v14 = vpop.permute.xlu0 %1247 }
 0x344   : > { %1635 = vrot.lane.b32.xlu1 %v1248_v14, %s5136_s26 }
 0x347   : > { %v5996_v36 = vpop.permute.xlu1 %1193  ;;  %v5998_v51 = vpop.permute.xlu0 %1441 }
 0x348   : > { %v1462_v33 = vsel %vm1351_vm1, %v5998_v51, 0 }
 0x349   : > { %4325 = vmatpush3.bf16.xpose.msra.mxu1 %v1368_v47 }
 0x34a   : > { %4599 = vmatprep.subr.msk.bf16.mxu1 %vm1351_vm1, %v1344_v34 }
 0x34b   : > { %v6002_v7 = vpop.permute.xlu1 %1209  ;;  %v1264_v1 = vpop.permute.xlu0 %1263 }
 0x34c   : > { %1829 = vrot.lane.b32.xlu1 %v1264_v1, %s5136_s26 }
 0x34f   : > { %v6005_v17 = vpop.permute.xlu0 %1191  ;;  %v1252_v59 = vpop.permute.xlu1 %1251 }
 0x350   : > { %2023 = vrot.lane.b32.xlu1 %v1280_v54, %s5136_s26 }
 0x351   : > { %4327 = vmatpush3.bf16.xpose.msra.mxu1 %v1365_v3 }
 0x353   : > { %v6009_v8 = vpop.permute.xlu0 %1207  ;;  %v1446_v20 = vpop.permute.xlu1 %1445 }
 0x354   : > { %1637 = vrot.lane.b32.xlu1 %v1250_v62, %s5136_s26  ;;  %v1468_v25 = vsel %vm1351_vm1, %v1446_v20, 0 }
 0x357   : > { %v1444_v9 = vpop.permute.xlu0 %1443  ;;  %v1268_v48 = vpop.permute.xlu1 %1267 }
 0x358   : > { %4329 = vmatmul.mubr.msk.bf16.vlgmr.msra.gmra.mxu1 %vm1351_vm1, %v5819_v45  ;;  %v1465_v21 = vsel %vm1351_vm1, %v1444_v9, 0 }
 0x359   : > { %4332 = vmatprep.mubr.msk.bf16.mxu1 %vm1351_vm1, %v5833_v0 }
 0x35b   : > { %v1266_v24 = vpop.permute.xlu0 %1265  ;;  %v1284_v4 = vpop.permute.xlu1 %1283 }
 0x35c   : > { %1831 = vrot.lane.b32.xlu1 %v1266_v24, %s5136_s26 }
 0x35f   : > { %v1282_v50 = vpop.permute.xlu0 %1281  ;;  %v6057_v34 = vpop.permute.xlu1 %1211 }
 0x360   : > { %4333 = vmatmul.mubr.msk.bf16.gmra.mxu1 %vm1351_vm1, %v5851_v22  ;;  %1639 = vrot.lane.b32.xlu1 %v1252_v59, %s5136_s26 }
 0x361   : > { %2025 = vrot.lane.b32.xlu0 %v1282_v50, %s5136_s26  ;;  %4344 = vmatprep.mubr.msk.bf16.mxu1 %vm1351_vm1, %v5868_v37 }
 0x363   : > { %v6023_v45 = vpop.permute.xlu0 %1195  ;;  %v6066_v19 = vpop.permute.xlu1 %1285 }
 0x364   : > { %2027 = vrot.lane.b32.xlu1 %v1284_v4, %s5136_s26 }
 0x365   : > { %1833 = vrot.lane.b32.xlu0 %v1268_v48, %s5136_s26 }
 0x367   : > { %v1254_v0 = vpop.permute.xlu0 %1253  ;;  %v6078_v16 = vpop.permute.xlu1 %1197 }
 0x368   : > { %1641 = vrot.lane.b32.xlu1 %v1254_v0, %s5136_s26 }
 0x369   : > { %1227 = vrot.lane.b32.xlu0 %v5901_v26, %s5139_s18 }
 0x36b   : > { %v6030_v22 = vpop.permute.xlu0 %1223  ;;  %v6084_v40 = vpop.permute.xlu1 %1213 }
 0x36c   : > { %1225 = vrot.lane.b32.xlu1 %v5884_v53, %s5139_s18 }
 0x36d   : > { %1301 = vrot.lane.b32.xlu0 %v5702_v44, %s5137_s22 }
 0x36f   : > { %v1448_v37 = vpop.permute.xlu0 %1447 }
 0x370   : > { %1229 = vrot.lane.b32.xlu1 %v5917_v60, %s5139_s18  ;;  %4600 = vmatprep.subr.msk.bf16.mxu1 %vm1351_vm1, %v1448_v37  ;;  %v1471_v29 = vsel %vm1351_vm1, %v1448_v37, 0 }
 0x371   : > { %1297 = vrot.lane.b32.xlu0 %v5651_v30, %s5137_s22  ;;  %4337 = vmatpush3.bf16.xpose.msra.mxu1 %v1471_v29 }
 0x372   : > { %4601 = vmatprep.subr.msk.bf16.mxu1 %vm1351_vm1, %v1446_v20 }
 0x373   : > { %v1270_v41 = vpop.permute.xlu0 %1269 }
 0x374   : > { %1299 = vrot.lane.b32.xlu1 %v5677_v52, %s5137_s22 }
 0x375   : > { %1309 = vrot.lane.b32.xlu0 %v5788_v49, %s5137_s22 }
 0x378   : > { %1295 = vrot.lane.b32.xlu1 %v5627_v57, %s5137_s22 }
 0x379   : > { %1315 = vrot.lane.b32.xlu0 %v5677_v52, %s5138_s17  ;;  %4339 = vmatpush3.bf16.xpose.msra.mxu1 %v1468_v25 }
 0x37a   : > { %4602 = vmatprep.subr.msk.bf16.mxu1 %vm1351_vm1, %v1444_v9 }
 0x37c   : > { %1317 = vrot.lane.b32.xlu1 %v5702_v44, %s5138_s17 }
 0x37d   : > { %1313 = vrot.lane.b32.xlu0 %v5651_v30, %s5138_s17 }
 0x37e   : > { %v6093_v56 = vpop.permute.xlu1 %1732 }
 0x37f   : > { %v1753_v59 = vsel %vm1351_vm1, %v6093_v56, 0 }
 0x380   : > { %1307 = vrot.lane.b32.xlu1 %v5766_v18, %s5137_s22 }
 0x381   : > { %1311 = vrot.lane.b32.xlu0 %v5627_v57, %s5138_s17  ;;  %4341 = vmatpush3.bf16.xpose.msra.mxu1 %v1465_v21 }
 0x382   : > { %4603 = vmatprep.subr.msk.bf16.mxu1 %vm1351_vm1, %v5998_v51 }
 0x384   : > { %1305 = vrot.lane.b32.xlu1 %v5743_v10, %s5137_s22 }
 0x385   : > { %1325 = vrot.lane.b32.xlu0 %v5788_v49, %s5138_s17 }
 0x386   : > { %v1735_v12 = vpop.permute.xlu1 %1734 }
 0x387   : > { %v1756_v47 = vsel %vm1351_vm1, %v1735_v12, 0 }
 0x388   : > { %2863 = vrot.lane.b32.xlu1 %v5702_v44, %s5140_s21 }
 0x389   : > { %1323 = vrot.lane.b32.xlu0 %v5766_v18, %s5138_s17  ;;  %4343 = vmatpush3.bf16.xpose.msra.mxu1 %v1462_v33 }
 0x38c   : > { %1303 = vrot.lane.b32.xlu1 %v5723_v15, %s5137_s22 }
 0x38d   : > { %2857 = vrot.lane.b32.xlu0 %v5627_v57, %s5140_s21 }
 0x390   : > { %2861 = vrot.lane.b32.xlu1 %v5677_v52, %s5140_s21  ;;  %4345 = vmatmul.mubr.msk.bf16.vlgmr.msra.gmra.mxu1 %vm1351_vm1, %v5884_v53 }
 0x391   : > { %1835 = vrot.lane.b32.xlu0 %v1270_v41, %s5136_s26  ;;  %4348 = vmatprep.mubr.msk.bf16.mxu1 %vm1351_vm1, %v5901_v26  ;;  %v1539_v26 = vpop.permute.xlu0 %1538 }
 0x392   : > { %v1559_v32 = vsel %vm1351_vm1, %v1539_v26, 0 }
 0x394   : > { %1333 = vrot.lane.b32.xlu1 %v5702_v44, %s5139_s18 }
 0x395   : > { %2952 = vrot.lane.b32.xlu0 %v5788_v49, %s5140_s21 }
 0x396   : > { %v6107_v53 = vpop.permute.xlu1 %1928 }
 0x398   : > { %2859 = vrot.lane.b32.xlu1 %v5651_v30, %s5140_s21  ;;  %4349 = vmatmul.mubr.msk.bf16.gmra.mxu1 %vm1351_vm1, %v5917_v60 }
 0x399   : > { %1319 = vrot.lane.b32.xlu0 %v5723_v15, %s5138_s17  ;;  %4376 = vmatprep.mubr.msk.bf16.mxu1 %vm1351_vm1, %v6005_v17 }
 0x39a   : > { %v1543_v44 = vpop.permute.xlu1 %1542 }
 0x39c   : > { %1331 = vrot.lane.b32.xlu1 %v5677_v52, %s5139_s18 }
 0x39d   : > { %2950 = vrot.lane.b32.xlu0 %v5766_v18, %s5140_s21 }
 0x3a0   : > { %1321 = vrot.lane.b32.xlu1 %v5743_v10, %s5138_s17  ;;  %s7278_s17 = scalar_lea.vmem %s7336_s9, %s4086_s20 }
 0x3a1   : > { %1339 = vrot.lane.b32.xlu0 %v5766_v18, %s5139_s18  ;;  %v6126_v18 = vpop.permute.xlu0 %1926 }
 0x3a4   : > { %1329 = vrot.lane.b32.xlu1 %v5651_v30, %s5139_s18  ;;  %v1565_v30 = vsel %vm1351_vm1, %v1543_v44, 0 }
 0x3a5   : > { %1337 = vrot.lane.b32.xlu0 %v5743_v10, %s5139_s18  ;;  %v1541_v6 = vpop.permute.xlu0 %1540 }
 0x3a6   : > { %v1545_v60 = vpop.permute.xlu1 %1544  ;;  %v1562_v63 = vsel %vm1351_vm1, %v1541_v6, 0 }
 0x3a7   : > { %4604 = vmatprep.subr.msk.bf16.mxu0 %vm1351_vm1, %v1545_v60  ;;  %v1568_v52 = vsel %vm1351_vm1, %v1545_v60, 0 }
 0x3a8   : > { %4353 = vmatpush3.bf16.xpose.msra.mxu0 %v1568_v52  ;;  %1327 = vrot.lane.b32.xlu1 %v5627_v57, %s5139_s18 }
 0x3a9   : > { %4605 = vmatprep.subr.msk.bf16.mxu0 %vm1351_vm1, %v1543_v44  ;;  %v1737_v57 = vpop.permute.xlu0 %1736 }
 0x3aa   : > { %v1759_v62 = vsel %vm1351_vm1, %v1737_v57, 0 }
 0x3ac   : > { %1341 = vrot.lane.b32.xlu1 %v5788_v49, %s5139_s18 }
 0x3ad   : > { %v6140_v49 = vpop.permute.xlu0 %1930 }
 0x3ae   : > { %v1953_v29 = vsel %vm1351_vm1, %v6140_v49, 0 }
 0x3b0   : > { %4355 = vmatpush3.bf16.xpose.msra.mxu0 %v1565_v30  ;;  %2948 = vrot.lane.b32.xlu1 %v5743_v10, %s5140_s21 }
 0x3b1   : > { %4606 = vmatprep.subr.msk.bf16.mxu0 %vm1351_vm1, %v1541_v6  ;;  %v1739_v10 = vpop.permute.xlu0 %1738 }
 0x3b2   : > { %v1762_v35 = vsel %vm1351_vm1, %v1739_v10, 0 }
 0x3b4   : > { %2946 = vrot.lane.b32.xlu1 %v5723_v15, %s5140_s21 }
 0x3b5   : > { %v1933_v5 = vpop.permute.xlu0 %1932 }
 0x3b6   : > { %v6138_v43 = vpop.permute.xlu1 %1635  ;;  %v1956_v4 = vsel %vm1351_vm1, %v1933_v5, 0 }
 0x3b8   : > { %4357 = vmatpush3.bf16.xpose.msra.mxu0 %v1562_v63 }
 0x3b9   : > { %4607 = vmatprep.subr.msk.bf16.mxu0 %vm1351_vm1, %v1539_v26 }
 0x3be   : > { %v6142_v38 = vpop.permute.xlu1 %1829 }
 0x3bf   : > { %v1850_v30 = vsel %vm1351_vm1, %v6142_v38, 0 }
 0x3c0   : > { %4359 = vmatpush3.bf16.xpose.msra.mxu0 %v1559_v32 }
 0x3c1   : > { %4612 = vmatprep.subr.msk.bf16.mxu0 %vm1351_vm1, %v1739_v10 }
 0x3c2   : > { %v6146_v58 = vpop.permute.xlu1 %2023 }
 0x3c6   : > { %v1638_v46 = vpop.permute.xlu1 %1637 }
 0x3c7   : > { %4361 = vmatmul.mubr.msk.bf16.vlgmr.msra.gmra.mxu0 %vm1351_vm1, %v5961_v39  ;;  %v1659_v37 = vsel %vm1351_vm1, %v1638_v46, 0 }
 0x3c8   : > { %4364 = vmatprep.mubr.msk.bf16.mxu0 %vm1351_vm1, %v5972_v28  ;;  %4385 = vmatpush3.bf16.xpose.msra.mxu0 %v1762_v35 }
 0x3c9   : > { %4613 = vmatprep.subr.msk.bf16.mxu0 %vm1351_vm1, %v1737_v57 }
 0x3ce   : > { %v6154_v54 = vpop.permute.xlu1 %1831 }
 0x3cf   : > { %4365 = vmatmul.mubr.msk.bf16.gmra.mxu0 %vm1351_vm1, %v5982_v55 }
 0x3d0   : > { %4387 = vmatpush3.bf16.xpose.msra.mxu0 %v1759_v62  ;;  %4392 = vmatprep.mubr.msk.bf16.mxu0 %vm1351_vm1, %v5963_v31 }
 0x3d1   : > { %4614 = vmatprep.subr.msk.bf16.mxu0 %vm1351_vm1, %v1735_v12 }
 0x3d2   : > { %v1640_v39 = vpop.permute.xlu1 %1639 }
 0x3d3   : > { %v6162_v28 = vpop.permute.xlu0 %2025  ;;  %v1662_v24 = vsel %vm1351_vm1, %v1640_v39, 0 }
 0x3d6   : > { %v6164_v14 = vpop.permute.xlu1 %2027 }
 0x3d7   : > { %v6166_v51 = vpop.permute.xlu0 %1833 }
 0x3d8   : > { %4389 = vmatpush3.bf16.xpose.msra.mxu0 %v1756_v47 }
 0x3d9   : > { %4615 = vmatprep.subr.msk.bf16.mxu0 %vm1351_vm1, %v6093_v56 }
 0x3da   : > { %v1642_v55 = vpop.permute.xlu1 %1641 }
 0x3db   : > { %v6171_v1 = vpop.permute.xlu0 %1227  ;;  %4608 = vmatprep.subr.msk.bf16.mxu1 %vm1351_vm1, %v1642_v55  ;;  %v1665_v31 = vsel %vm1351_vm1, %v1642_v55, 0 }
 0x3dc   : > { %4369 = vmatpush3.bf16.xpose.msra.mxu1 %v1665_v31 }
 0x3dd   : > { %4609 = vmatprep.subr.msk.bf16.mxu1 %vm1351_vm1, %v1640_v39 }
 0x3de   : > { %v6176_v17 = vpop.permute.xlu1 %1225 }
 0x3df   : > { %v1302_v3 = vpop.permute.xlu0 %1301 }
 0x3e0   : > { %3041 = vrot.lane.b32.xlu0 %v1302_v3, %s5140_s21  ;;  %4391 = vmatpush3.bf16.xpose.msra.mxu0 %v1753_v59 }
 0x3e1   : > { %4620 = vmatprep.subr.msk.bf16.mxu0 %vm1351_vm1, %v1933_v5 }
 0x3e2   : > { %v6182_v20 = vpop.permute.xlu1 %1229 }
 0x3e3   : > { %v1298_v9 = vpop.permute.xlu0 %1297 }
 0x3e4   : > { %1335 = vrot.lane.b32.xlu0 %v5723_v15, %s5139_s18  ;;  %4371 = vmatpush3.bf16.xpose.msra.mxu1 %v1662_v24 }
 0x3e5   : > { %4610 = vmatprep.subr.msk.bf16.mxu1 %vm1351_vm1, %v1638_v46 }
 0x3e6   : > { %v1300_v48 = vpop.permute.xlu1 %1299 }
 0x3e7   : > { %v1310_v50 = vpop.permute.xlu0 %1309  ;;  %3039 = vrot.lane.b32.xlu1 %v1300_v48, %s5140_s21  ;;  %4393 = vmatmul.mubr.msk.bf16.vlgmr.msra.gmra.mxu0 %vm1351_vm1, %v5965_v42 }
 0x3e8   : > { %2029 = vrot.lane.b32.xlu0 %v6066_v19, %s5136_s26  ;;  %4396 = vmatprep.mubr.msk.bf16.mxu0 %vm1351_vm1, %v5975_v13  ;;  %v1656_v19 = vsel %vm1351_vm1, %v6138_v43, 0  ;;  %s5141_s26 = smov 8  }
 0x3e9   : > { %4417 = vmatpush3.bf16.xpose.msra.mxu0 %v1956_v4 }
 0x3ea   : > { %4621 = vmatprep.subr.msk.bf16.mxu0 %vm1351_vm1, %v6140_v49  ;;  %v1296_v15 = vpop.permute.xlu1 %1295 }
 0x3eb   : > { %v1316_v0 = vpop.permute.xlu0 %1315  ;;  %3035 = vrot.lane.b32.xlu1 %v1296_v15, %s5140_s21 }
 0x3ec   : > { %3037 = vrot.lane.b32.xlu0 %v1298_v9, %s5140_s21  ;;  %4373 = vmatpush3.bf16.xpose.msra.mxu1 %v1659_v37 }
 0x3ed   : > { %4611 = vmatprep.subr.msk.bf16.mxu1 %vm1351_vm1, %v6138_v43 }
 0x3ee   : > { %v1318_v42 = vpop.permute.xlu1 %1317 }
 0x3ef   : > { %v1314_v13 = vpop.permute.xlu0 %1313  ;;  %3219 = vrot.lane.b32.xlu1 %v1318_v42, %s5140_s21  ;;  %4397 = vmatmul.mubr.msk.bf16.gmra.mxu0 %vm1351_vm1, %v5987_v61 }
 0x3f0   : > { %3130 = vrot.lane.b32.xlu0 %v1310_v50, %s5140_s21  ;;  %4424 = vmatprep.mubr.msk.bf16.mxu0 %vm1351_vm1, %v5967_v11  ;;  %v1950_v11 = vsel %vm1351_vm1, %v6107_v53, 0 }
 0x3f1   : > { %4419 = vmatpush3.bf16.xpose.msra.mxu0 %v1953_v29 }
 0x3f2   : > { %4622 = vmatprep.subr.msk.bf16.mxu0 %vm1351_vm1, %v6107_v53  ;;  %v1308_v25 = vpop.permute.xlu1 %1307  ;;  %v1947_v53 = vsel %vm1351_vm1, %v6126_v18, 0 }
 0x3f3   : > { %v1312_v21 = vpop.permute.xlu0 %1311  ;;  %3217 = vrot.lane.b32.xlu1 %v1316_v0, %s5140_s21 }
 0x3f4   : > { %3128 = vrot.lane.b32.xlu0 %v1308_v25, %s5140_s21  ;;  %4375 = vmatpush3.bf16.xpose.msra.mxu1 %v1656_v19 }
 0x3f6   : > { %v1306_v61 = vpop.permute.xlu1 %1305 }
 0x3f7   : > { %v1326_v33 = vpop.permute.xlu0 %1325  ;;  %3126 = vrot.lane.b32.xlu1 %v1306_v61, %s5140_s21 }
 0x3f9   : > { %4421 = vmatpush3.bf16.xpose.msra.mxu0 %v1950_v11 }
 0x3fa   : > { %4623 = vmatprep.subr.msk.bf16.mxu0 %vm1351_vm1, %v6126_v18  ;;  %v2864_v41 = vpop.permute.xlu1 %2863 }
 0x3fb   : > { %v6222_v56 = vpop.permute.xlu0 %1323  ;;  %4377 = vmatmul.mubr.msk.bf16.vlgmr.msra.gmra.mxu1 %vm1351_vm1, %v5996_v36  ;;  %3215 = vrot.lane.b32.xlu1 %v1314_v13, %s5140_s21 }
 0x3fc   : > { %7370 = vst [vmem:[#allocation2_spill] sm:$0xff] %v6222_v56  ;;  %4380 = vmatprep.mubr.msk.bf16.mxu1 %vm1351_vm1, %v6023_v45 }
 0x3fe   : > { %v1304_v12 = vpop.permute.xlu1 %1303 }
 0x3ff   : > { %v2858_v44 = vpop.permute.xlu0 %2857  ;;  %3124 = vrot.lane.b32.xlu0 %v1304_v12, %s5140_s21  ;;  %3213 = vrot.lane.b32.xlu1 %v1312_v21, %s5140_s21 }
 0x401   : > { %4423 = vmatpush3.bf16.xpose.msra.mxu0 %v1947_v53 }
 0x402   : > { %4448 = vmatprep.subr.bf16.mxu0 %v2864_v41  ;;  %v2862_v26 = vpop.permute.xlu1 %2861 }
 0x403   : > { %v1836_v60 = vpop.permute.xlu0 %1835  ;;  %4381 = vmatmul.mubr.msk.bf16.gmra.mxu1 %vm1351_vm1, %v6078_v16  ;;  %3308 = vrot.lane.b32.xlu1 %v1326_v33, %s5140_s21  ;;  %v1856_v16 = vsel %vm1351_vm1, %v6166_v51, 0 }
 0x404   : > { %4616 = vmatprep.subr.msk.bf16.mxu1 %vm1351_vm1, %v1836_v60  ;;  %v1859_v36 = vsel %vm1351_vm1, %v1836_v60, 0  ;;  %4408 = vmatprep.mubr.msk.bf16.mxu1 %vm1351_vm1, %v6009_v8  ;;  %v2050_v60 = vsel %vm1351_vm1, %v6164_v14, 0 }
 0x405   : > { %4401 = vmatpush3.bf16.xpose.msra.mxu1 %v1859_v36 }
 0x406   : > { %4617 = vmatprep.subr.msk.bf16.mxu1 %vm1351_vm1, %v6166_v51  ;;  %v1334_v45 = vpop.permute.xlu1 %1333 }
 0x407   : > { %3397 = vrot.lane.b32.xlu1 %v1334_v45, %s5140_s21 }
 0x408   : > { %4425 = vmatmul.mubr.msk.bf16.vlgmr.msra.gmra.mxu0 %vm1351_vm1, %v5969_v2  ;;  %v1853_v2 = vsel %vm1351_vm1, %v6154_v54, 0 }
 0x409   : > { %4428 = vmatprep.mubr.msk.bf16.mxu0 %vm1351_vm1, %v5978_v23  ;;  %4449 = vmatpush3.bf16.msra.mxu0 %v2864_v41  ;;  %v6255_v23 = vpop.permute.xlu0 %2952 }
 0x40a   : > { %4450 = vmatprep.subr.bf16.mxu0 %v2862_v26  ;;  %v2860_v52 = vpop.permute.xlu1 %2859 }
 0x40d   : > { %4403 = vmatpush3.bf16.xpose.msra.mxu1 %v1856_v16  ;;  %4451 = vmatpush3.bf16.msra.mxu0 %v2862_v26  ;;  %v6306_v62 = vpop.permute.xlu0 %1319  ;;  %v2047_v16 = vsel %vm1351_vm1, %v6162_v28, 0 }
 0x40e   : > { %4618 = vmatprep.subr.msk.bf16.mxu1 %vm1351_vm1, %v6154_v54  ;;  %4452 = vmatprep.subr.bf16.mxu0 %v2860_v52  ;;  %v6300_v54 = vpop.permute.xlu1 %1331  ;;  %7373 = vst [vmem:[#allocation5_spill] sm:$0xff] %v6306_v62 }
 0x40f   : > { %7371 = vst [vmem:[#allocation3_spill] sm:$0xff] %v6300_v54 }
 0x410   : > { %4429 = vmatmul.mubr.msk.bf16.gmra.mxu0 %vm1351_vm1, %v5990_v27 }
 0x411   : > { %4453 = vmatpush3.bf16.msra.mxu0 %v2860_v52  ;;  %v6310_v39 = vpop.permute.xlu0 %2950 }
 0x412   : > { %4454 = vmatprep.subr.bf16.mxu0 %v2858_v44 }
 0x415   : > { %4405 = vmatpush3.bf16.xpose.msra.mxu1 %v1853_v2  ;;  %4455 = vmatpush3.bf16.msra.mxu0 %v2858_v44  ;;  %v6314_v47 = vpop.permute.xlu0 %1339  ;;  %v2044_v2 = vsel %vm1351_vm1, %v6146_v58, 0 }
 0x416   : > { %4619 = vmatprep.subr.msk.bf16.mxu1 %vm1351_vm1, %v6142_v38  ;;  %4464 = vmatprep.subr.bf16.mxu0 %v6255_v23  ;;  %7376 = vst [vmem:[#allocation8_spill] sm:$0xff] %v6314_v47 }
 0x418   : > { %v6260_v8 = vpop.f32.mrf.mxu1 }
 0x419   : > { %v2127_v6 = vsel %vm2120_vm2, %v6260_v8, -inf  ;;  %v6318_v31 = vpop.permute.xlu0 %1337 }
 0x41a   : > { %v6262_v18 = vpop.f32.mrf.mxu1  ;;  %7378 = vst [vmem:[#allocation10_spill] sm:$0xff] %v6318_v31 }
 0x41b   : > { %v2121_v63 = vsel %vm2120_vm2, %v6262_v18, -inf }
 0x41c   : > { %v6264_v27 = vpop.f32.mrf.mxu1 }
 0x41d   : > { %4407 = vmatpush3.bf16.xpose.msra.mxu1 %v1850_v30  ;;  %v2130_v49 = vsel %vm2120_vm2, %v6264_v27, -inf }
 0x41e   : > { %2128 = vmax.xlane.f32.xlu0 %v2127_v6  ;;  %v6270_v57 = vpop.f32.mrf.mxu1 }
 0x41f   : > { %v2124_v10 = vsel %vm2120_vm2, %v6270_v57, -inf }
 0x420   : > { %v6274_v43 = vpop.f32.mrf.mxu1 }
 0x421   : > { %v2139_v32 = vsel %vm2120_vm2, %v6274_v43, -inf }
 0x422   : > { %2122 = vmax.xlane.f32.xlu0 %v2121_v63  ;;  %v6282_v38 = vpop.f32.mrf.mxu1 }
 0x424   : > { %4409 = vmatmul.mubr.msk.bf16.vlgmr.msra.gmra.mxu1 %vm1351_vm1, %v6002_v7  ;;  %v6288_v35 = vpop.f32.mrf.mxu1  ;;  %v2133_v7 = vsel %vm2120_vm2, %v6282_v38, -inf }
 0x425   : > { %4412 = vmatprep.mubr.msk.bf16.mxu1 %vm1351_vm1, %v6057_v34  ;;  %v2142_v34 = vsel %vm2120_vm2, %v6288_v35, -inf }
 0x426   : > { %2131 = vmax.xlane.f32.xlu0 %v2130_v49  ;;  %v6298_v46 = vpop.f32.mrf.mxu1 }
 0x427   : > { %v2136_v5 = vsel %vm2120_vm2, %v6298_v46, -inf }
 0x42a   : > { %2140 = vmax.xlane.f32.xlu0 %v2139_v32 }
 0x42b   : > { %2125 = vmax.xlane.f32.xlu1 %v2124_v10 }
 0x42c   : > { %4413 = vmatmul.mubr.msk.bf16.gmra.mxu1 %vm1351_vm1, %v6084_v40  ;;  %v6304_v40 = vpop.permute.xlu1 %1321 }
 0x42d   : > { %4440 = vmatprep.mubr.msk.bf16.mxu1 %vm1351_vm1, %v6030_v22  ;;  %7372 = vst [vmem:[#allocation4_spill] sm:$0xff] %v6304_v40 }
 0x42e   : > { %2134 = vmax.xlane.f32.xlu0 %v2133_v7 }
 0x42f   : > { %2143 = vmax.xlane.f32.xlu1 %v2142_v34 }
 0x430   : > { %v6308_v22 = vpop.permute.xlu1 %1329 }
 0x431   : > { %7374 = vst [vmem:[#allocation6_spill] sm:$0xff] %v6308_v22 }
 0x433   : > { %2137 = vmax.xlane.f32.xlu1 %v2136_v5 }
 0x434   : > { %v6312_v51 = vpop.permute.xlu1 %1327 }
 0x435   : > { %7375 = vst [vmem:[#allocation7_spill] sm:$0xff] %v6312_v51 }
 0x438   : > { %v6316_v55 = vpop.permute.xlu1 %1341 }
 0x439   : > { %7377 = vst [vmem:[#allocation9_spill] sm:$0xff] %v6316_v55 }
 0x43c   : > { %v6320_v3 = vpop.permute.xlu1 %2948 }
 0x43d   : > { %7379 = vst [vmem:[#allocation11_spill] sm:$0xff] %v6320_v3 }
 0x440   : > { %v6332_v4 = vpop.permute.xlu1 %2946 }
 0x441   : > { %7381 = vst [vmem:[#allocation13_spill] sm:$0xff] %v6332_v4 }
 0x450   : > { %v6322_v59 = vpop.f32.mrf.mxu1 }
 0x451   : > { %v2151_v9 = vsel %vm2120_vm2, %v6322_v59, -inf }
 0x452   : > { %v6326_v24 = vpop.permute.xlu0 %3041  ;;  %v6328_v48 = vpop.f32.mrf.mxu1  ;;  %2152 = vmax.xlane.f32.xlu0 %v2151_v9 }
 0x453   : > { %7380 = vst [vmem:[#allocation12_spill] sm:$0xff] %v6326_v24  ;;  %v2145_v15 = vsel %vm2120_vm2, %v6328_v48, -inf }
 0x454   : > { %v6330_v50 = vpop.f32.mrf.mxu1 }
 0x455   : > { %v2154_v0 = vsel %vm2120_vm2, %v6330_v50, -inf }
 0x456   : > { %v6338_v37 = vpop.permute.xlu0 %1335  ;;  %v6340_v42 = vpop.f32.mrf.mxu1  ;;  %2146 = vmax.xlane.f32.xlu0 %v2145_v15  ;;  %2155 = vmax.xlane.f32.xlu1 %v2154_v0 }
 0x457   : > { %7382 = vst [vmem:[#allocation14_spill] sm:$0xff] %v6338_v37  ;;  %v2148_v21 = vsel %vm2120_vm2, %v6340_v42, -inf }
 0x458   : > { %v6342_v13 = vpop.f32.mrf.mxu1 }
 0x459   : > { %v6344_v29 = vpop.permute.xlu1 %3039  ;;  %v2163_v25 = vsel %vm2120_vm2, %v6342_v13, -inf }
 0x45a   : > { %7383 = vst [vmem:[#allocation15_spill] sm:$0xff] %v6344_v29  ;;  %v2030_v19 = vpop.permute.xlu0 %2029  ;;  %v6350_v61 = vpop.f32.mrf.mxu1  ;;  %2164 = vmax.xlane.f32.xlu0 %v2163_v25  ;;  %2149 = vmax.xlane.f32.xlu1 %v2148_v21 }
 0x45b   : > { %4624 = vmatprep.subr.msk.bf16.mxu1 %vm1351_vm1, %v2030_v19  ;;  %v2053_v33 = vsel %vm1351_vm1, %v2030_v19, 0  ;;  %v2157_v41 = vsel %vm2120_vm2, %v6350_v61, -inf }
 0x45c   : > { %4433 = vmatpush3.bf16.xpose.msra.mxu1 %v2053_v33  ;;  %v6354_v11 = vpop.f32.mrf.mxu1 }
 0x45d   : > { %4625 = vmatprep.subr.msk.bf16.mxu1 %vm1351_vm1, %v6164_v14  ;;  %v2166_v12 = vsel %vm2120_vm2, %v6354_v11, -inf  ;;  %v6362_v44 = vpop.permute.xlu1 %3035 }
 0x45e   : > { %7384 = vst [vmem:[#allocation16_spill] sm:$0xff] %v6362_v44  ;;  %v6364_v53 = vpop.f32.mrf.mxu1  ;;  %2158 = vmax.xlane.f32.xlu0 %v2157_v41  ;;  %2167 = vmax.xlane.f32.xlu1 %v2166_v12  ;;  %v6423_v19 = vpop.permute.xlu0 %3037 }
 0x45f   : > { %v2160_v26 = vsel %vm2120_vm2, %v6364_v53, -inf  ;;  %7388 = vst [vmem:[#allocation20_spill] sm:$0xff] %v6423_v19 }
 0x461   : > { %v3220_v36 = vpop.permute.xlu1 %3219 }
 0x462   : > { %2161 = vmax.xlane.f32.xlu1 %v2160_v26  ;;  %v6425_v33 = vpop.permute.xlu0 %3130 }
 0x463   : > { %7389 = vst [vmem:[#allocation21_spill] sm:$0xff] %v6425_v33 }
 0x464   : > { %4435 = vmatpush3.bf16.xpose.msra.mxu1 %v2050_v60 }
 0x465   : > { %4626 = vmatprep.subr.msk.bf16.mxu1 %vm1351_vm1, %v6162_v28  ;;  %v3218_v45 = vpop.permute.xlu1 %3217 }
 0x466   : > { %v6427_v41 = vpop.permute.xlu0 %3128 }
 0x467   : > { %7390 = vst [vmem:[#allocation22_spill] sm:$0xff] %v6427_v41 }
 0x469   : > { %v6376_v52 = vpop.permute.xlu1 %3126 }
 0x46a   : > { %7385 = vst [vmem:[#allocation17_spill] sm:$0xff] %v6376_v52 }
 0x46c   : > { %4437 = vmatpush3.bf16.xpose.msra.mxu1 %v2047_v16 }
 0x46d   : > { %4627 = vmatprep.subr.msk.bf16.mxu1 %vm1351_vm1, %v6146_v58  ;;  %v3216_v14 = vpop.permute.xlu1 %3215 }
 0x471   : > { %v3214_v30 = vpop.permute.xlu1 %3213  ;;  %v6429_v12 = vpop.permute.xlu0 %3124 }
 0x472   : > { %7391 = vst [vmem:[#allocation23_spill] sm:$0xff] %v6429_v12 }
 0x474   : > { %4439 = vmatpush3.bf16.xpose.msra.mxu1 %v2044_v2 }
 0x475   : > { %4512 = vmatprep.subr.bf16.mxu1 %v3220_v36  ;;  %v6384_v28 = vpop.permute.xlu1 %3308 }
 0x476   : > { %7386 = vst [vmem:[#allocation18_spill] sm:$0xff] %v6384_v28 }
 0x479   : > { %v6390_v6 = vpop.permute.xlu1 %3397 }
 0x47a   : > { %7387 = vst [vmem:[#allocation19_spill] sm:$0xff] %v6390_v6 }
 0x47b   : > { %4441 = vmatmul.mubr.msk.bf16.vlgmr.msra.gmra.mxu1 %vm1351_vm1, %v6176_v17 }
 0x47c   : > { %4444 = vmatprep.mubr.msk.bf16.mxu1 %vm1351_vm1, %v6171_v1  ;;  %4513 = vmatpush3.bf16.msra.mxu1 %v3220_v36 }
 0x47d   : > { %4514 = vmatprep.subr.bf16.mxu1 %v3218_v45 }
 0x480   : > { %4515 = vmatpush3.bf16.msra.mxu1 %v3218_v45 }
 0x481   : > { %4516 = vmatprep.subr.bf16.mxu1 %v3216_v14 }
 0x483   : > { %4445 = vmatmul.mubr.msk.bf16.gmra.mxu1 %vm1351_vm1, %v6182_v20 }
 0x484   : > { %4517 = vmatpush3.bf16.msra.mxu1 %v3216_v14 }
 0x485   : > { %4518 = vmatprep.subr.bf16.mxu1 %v3214_v30 }
 0x487   : > { %v6388_v58 = vpop.f32.mrf.mxu0 }
 0x488   : > { %4519 = vmatpush3.bf16.msra.mxu1 %v3214_v30  ;;  %v2175_v17 = vsel %vm2120_vm2, %v6388_v58, -inf }
 0x489   : > { %4544 = vmatprep.subr.bf16.mxu1 %v6390_v6  ;;  %v6395_v1 = vpop.f32.mrf.mxu0  ;;  %2176 = vmax.xlane.f32.xlu0 %v2175_v17 }
 0x48a   : > { %v2169_v20 = vsel %vm2120_vm2, %v6395_v1, -inf }
 0x48b   : > { %v6397_v63 = vpop.f32.mrf.mxu0 }
 0x48c   : > { %v2178_v49 = vsel %vm2120_vm2, %v6397_v63, -inf }
 0x48d   : > { %v6403_v32 = vpop.f32.mrf.mxu0  ;;  %2170 = vmax.xlane.f32.xlu0 %v2169_v20  ;;  %2179 = vmax.xlane.f32.xlu1 %v2178_v49 }
 0x48e   : > { %v2172_v34 = vsel %vm2120_vm2, %v6403_v32, -inf }
 0x48f   : > { %v6405_v10 = vpop.f32.mrf.mxu0 }
 0x490   : > { %v2187_v7 = vsel %vm2120_vm2, %v6405_v10, -inf }
 0x491   : > { %v6411_v5 = vpop.f32.mrf.mxu0  ;;  %2188 = vmax.xlane.f32.xlu0 %v2187_v7  ;;  %2173 = vmax.xlane.f32.xlu1 %v2172_v34 }
 0x492   : > { %v2181_v15 = vsel %vm2120_vm2, %v6411_v5, -inf }
 0x493   : > { %v6413_v9 = vpop.f32.mrf.mxu0 }
 0x494   : > { %v2190_v0 = vsel %vm2120_vm2, %v6413_v9, -inf }
 0x495   : > { %v6419_v25 = vpop.f32.mrf.mxu0  ;;  %2182 = vmax.xlane.f32.xlu0 %v2181_v15  ;;  %2191 = vmax.xlane.f32.xlu1 %v2190_v0 }
 0x496   : > { %v2184_v21 = vsel %vm2120_vm2, %v6419_v25, -inf }
 0x499   : > { %2185 = vmax.xlane.f32.xlu1 %v2184_v21 }
 0x4a7   : > { %v2129_v26 = vpop.xlane.xlu0 %2128  ;;  %v6431_v36 = vpop.f32.mrf.mxu0 }
 0x4a8   : > { %v2223_v49 = vsel %vm2120_vm2, %v6431_v36, -inf  ;;  %v2315_v15 = vsub.f32 %v6260_v8, %v2129_v26 }
 0x4a9   : > { %v6435_v16 = vpop.f32.mrf.mxu0 }
 0x4aa   : > { %v2381_v31 = vmul.f32 1.442695, %v2315_v15 }
 0x4ab   : > { %v2123_v60 = vpop.xlane.xlu0 %2122  ;;  %v6443_v20 = vpop.f32.mrf.mxu0 }
 0x4ac   : > { %v2226_v37 = vsel %vm2120_vm2, %v6443_v20, -inf  ;;  %v2313_v55 = vsub.f32 %v6262_v18, %v2123_v60  ;;  %4838 = vpow2.f32 %v2381_v31 }
 0x4ad   : > { %v6452_v21 = vpop.f32.mrf.mxu0 }
 0x4af   : > { %v2132_v14 = vpop.xlane.xlu0 %2131 }
 0x4b0   : > { %v2316_v18 = vsub.f32 %v6264_v27, %v2132_v14 }
 0x4b3   : > { %v2141_v0 = vpop.xlane.xlu0 %2140 }
 0x4b4   : > { %v2319_v8 = vsub.f32 %v6274_v43, %v2141_v0  ;;  %v2126_v26 = vpop.xlane.xlu1 %2125 }
 0x4b6   : > { %v2389_v15 = vmul.f32 1.442695, %v2319_v8 }
 0x4b7   : > { %v2135_v51 = vpop.xlane.xlu0 %2134 }
 0x4b8   : > { %v2317_v43 = vsub.f32 %v6282_v38, %v2135_v51  ;;  %v2314_v38 = vsub.f32 %v6270_v57, %v2126_v26 }
 0x4b9   : > { %v6496_v26 = vpop.eup %4838 }
 0x4ba   : > { %v2385_v51 = vmul.f32 1.442695, %v2317_v43 }
 0x4bb   : > { %v6433_v45 = vpop.f32.mrf.mxu1 }
 0x4bc   : > { %v2199_v2 = vsel %vm2120_vm2, %v6433_v45, -inf }
 0x4bd   : > { %v6439_v30 = vpop.f32.mrf.mxu1  ;;  %2200 = vmax.xlane.f32.xlu0 %v2199_v2 }
 0x4be   : > { %v2193_v2 = vsel %vm2120_vm2, %v6439_v30, -inf }
 0x4bf   : > { %v6441_v17 = vpop.f32.mrf.mxu1 }
 0x4c0   : > { %v2202_v7 = vsel %vm2120_vm2, %v6441_v17, -inf }
 0x4c1   : > { %v6449_v34 = vpop.f32.mrf.mxu1  ;;  %2224 = vmax.xlane.f32.xlu0 %v2223_v49  ;;  %2203 = vmax.xlane.f32.xlu1 %v2202_v7  ;;  %v6461_v49 = vpop.f32.mrf.mxu0  ;;  %v2217_v7 = vsel %vm2120_vm2, %v6435_v16, -inf }
 0x4c2   : > { %v2196_v62 = vsel %vm2120_vm2, %v6449_v34, -inf  ;;  %v2235_v27 = vsel %vm2120_vm2, %v6461_v49, -inf }
 0x4c3   : > { %v6458_v47 = vpop.f32.mrf.mxu1  ;;  %v6471_v60 = vpop.f32.mrf.mxu0 }
 0x4c4   : > { %v2211_v0 = vsel %vm2120_vm2, %v6458_v47, -inf  ;;  %v2229_v57 = vsel %vm2120_vm2, %v6471_v60, -inf }
 0x4c5   : > { %2194 = vmax.xlane.f32.xlu0 %v2193_v2  ;;  %2227 = vmax.xlane.f32.xlu1 %v2226_v37  ;;  %v6468_v6 = vpop.f32.mrf.mxu1  ;;  %v2377_v37 = vmul.f32 1.442695, %v2313_v55  ;;  %v2220_v2 = vsel %vm2120_vm2, %v6452_v21, -inf  ;;  %v2144_v55 = vpop.xlane.xlu1 %2143 }
 0x4c6   : > { %v6482_v31 = vpop.f32.mrf.mxu0 }
 0x4c7   : > { %v6478_v28 = vpop.f32.mrf.mxu1  ;;  %4840 = vpow2.f32 %v2377_v37  ;;  %v2238_v8 = vsel %vm2120_vm2, %v6482_v31, -inf  ;;  %v2320_v37 = vsub.f32 %v6288_v35, %v2144_v55 }
 0x4c8   : > { %4842 = vpow2.f32 %v2389_v15  ;;  %v2214_v14 = vsel %vm2120_vm2, %v6478_v28, -inf }
 0x4c9   : > { %2218 = vmax.xlane.f32.xlu0 %v2217_v7  ;;  %2197 = vmax.xlane.f32.xlu1 %v2196_v62  ;;  %v2383_v62 = vmul.f32 1.442695, %v2316_v18  ;;  %v2379_v7 = vmul.f32 1.442695, %v2314_v38  ;;  %v2205_v18 = vsel %vm2120_vm2, %v6468_v6, -inf  ;;  %v2138_v15 = vpop.xlane.xlu1 %2137 }
 0x4ca   : > { %v2391_v43 = vmul.f32 1.442695, %v2320_v37 }
 0x4cb   : > { %4844 = vpow2.f32 %v2383_v62  ;;  %v6501_v62 = vpop.f32.mrf.mxu0 }
 0x4cc   : > { %4846 = vpow2.f32 %v2385_v51  ;;  %v2232_v38 = vsel %vm2120_vm2, %v6501_v62, -inf  ;;  %v2511_v51 = vsel %vm2120_vm2, %v6496_v26, 0.0 }
 0x4cd   : > { %2212 = vmax.xlane.f32.xlu0 %v2211_v0  ;;  %2221 = vmax.xlane.f32.xlu1 %v2220_v2  ;;  %v6492_v0 = vpop.f32.mrf.mxu1  ;;  %4848 = vpow2.f32 %v2379_v7  ;;  %v2318_v2 = vsub.f32 %v6298_v46, %v2138_v15 }
 0x4ce   : > { %v2208_v35 = vsel %vm2120_vm2, %v6492_v0, -inf  ;;  %4850 = vpow2.f32 %v2391_v43 }
 0x4d1   : > { %2236 = vmax.xlane.f32.xlu0 %v2235_v27  ;;  %2215 = vmax.xlane.f32.xlu1 %v2214_v14  ;;  %v2387_v27 = vmul.f32 1.442695, %v2318_v2 }
 0x4d3   : > { %4852 = vpow2.f32 %v2387_v27 }
 0x4d4   : > { %v6503_v55 = vpop.eup %4840 }
 0x4d5   : > { %2206 = vmax.xlane.f32.xlu0 %v2205_v18  ;;  %2239 = vmax.xlane.f32.xlu1 %v2238_v8  ;;  %v6509_v14 = vpop.eup %4842  ;;  %v2505_v7 = vsel %vm2120_vm2, %v6503_v55, 0.0 }
 0x4d6   : > { %7392 = vst [vmem:[#allocation24_spill] sm:$0xff] %v6509_v14  ;;  %v2523_v37 = vsel %vm2120_vm2, %v6509_v14, 0.0 }
 0x4d8   : > { %v6511_v8 = vpop.eup %4844 }
 0x4d9   : > { %2230 = vmax.xlane.f32.xlu0 %v2229_v57  ;;  %2209 = vmax.xlane.f32.xlu1 %v2208_v35  ;;  %v6517_v18 = vpop.eup %4846  ;;  %v6520_v57 = vpop.f32.mrf.mxu0  ;;  %v2514_v2 = vsel %vm2120_vm2, %v6511_v8, 0.0 }
 0x4da   : > { %v2517_v35 = vsel %vm2120_vm2, %v6517_v18, 0.0  ;;  %v6528_v27 = vpop.eup %4848 }
 0x4db   : > { %v2153_v46 = vpop.xlane.xlu0 %2152 }
 0x4dc   : > { %v2323_v15 = vsub.f32 %v6322_v59, %v2153_v46 }
 0x4dd   : > { %2233 = vmax.xlane.f32.xlu1 %v2232_v38  ;;  %2512 = vadd.xlane.f32.xlu0 %v2511_v51  ;;  %v6530_v51 = vpop.f32.mrf.mxu0 }
 0x4de   : > { %v2397_v38 = vmul.f32 1.442695, %v2323_v15 }
 0x4df   : > { %v6542_v12 = vpop.f32.mrf.mxu0  ;;  %v2147_v15 = vpop.xlane.xlu0 %2146 }
 0x4e0   : > { %4854 = vpow2.f32 %v2397_v38  ;;  %v2321_v40 = vsub.f32 %v6328_v48, %v2147_v15  ;;  %v2274_v52 = vsel %vm2120_vm2, %v6542_v12, -inf  ;;  %v2156_v48 = vpop.xlane.xlu1 %2155 }
 0x4e1   : > { %2506 = vadd.xlane.f32.xlu0 %v2505_v7  ;;  %2524 = vadd.xlane.f32.xlu1 %v2523_v37  ;;  %v2508_v7 = vsel %vm2120_vm2, %v6528_v27, 0.0  ;;  %v6538_v37 = vpop.eup %4850  ;;  %v6555_v56 = vpop.f32.mrf.mxu0  ;;  %v2324_v4 = vsub.f32 %v6330_v50, %v2156_v48  ;;  %v2265_v50 = vsel %vm2120_vm2, %v6530_v51, -inf }
 0x4e2   : > { %7393 = vst [vmem:[#allocation25_spill] sm:$0xff] %v6555_v56 }
 0x4e3   : > { %v2165_v15 = vpop.xlane.xlu0 %2164  ;;  %v6563_v33 = vpop.f32.mrf.mxu0 }
 0x4e4   : > { %v6522_v43 = vpop.f32.mrf.mxu1  ;;  %v2150_v19 = vpop.xlane.xlu1 %2149  ;;  %v2327_v29 = vsub.f32 %v6342_v13, %v2165_v15 }
 0x4e5   : > { %2515 = vadd.xlane.f32.xlu0 %v2514_v2  ;;  %2518 = vadd.xlane.f32.xlu1 %v2517_v35  ;;  %v2526_v2 = vsel %vm2120_vm2, %v6538_v37, 0.0  ;;  %v6546_v35 = vpop.eup %4852  ;;  %v6573_v44 = vpop.f32.mrf.mxu0  ;;  %v2322_v14 = vsub.f32 %v6340_v42, %v2150_v19 }
 0x4e6   : > { %v6532_v59 = vpop.f32.mrf.mxu1  ;;  %v2405_v3 = vmul.f32 1.442695, %v2327_v29 }
 0x4e7   : > { %v6586_v15 = vpop.f32.mrf.mxu0 }
 0x4e8   : > { %v6534_v46 = vpop.f32.mrf.mxu1  ;;  %v2286_v29 = vsel %vm2120_vm2, %v6586_v15, -inf }
 0x4e9   : > { %2509 = vadd.xlane.f32.xlu0 %v2508_v7  ;;  %v2250_v22 = vsel %vm2120_vm2, %v6534_v46, -inf  ;;  %v2520_v7 = vsel %vm2120_vm2, %v6546_v35, 0.0 }
 0x4ea   : > { %2251 = vmax.xlane.f32.xlu1 %v2250_v22  ;;  %v6551_v38 = vpop.f32.mrf.mxu1  ;;  %v2393_v22 = vmul.f32 1.442695, %v2321_v40 }
 0x4eb   : > { %v2244_v54 = vsel %vm2120_vm2, %v6551_v38, -inf }
 0x4ec   : > { %v6559_v41 = vpop.f32.mrf.mxu1  ;;  %4856 = vpow2.f32 %v2393_v22 }
 0x4ed   : > { %2527 = vadd.xlane.f32.xlu0 %v2526_v2  ;;  %v2247_v2 = vsel %vm2120_vm2, %v6522_v43, -inf  ;;  %v6567_v40 = vpop.eup %4854  ;;  %4858 = vpow2.f32 %v2405_v3 }
 0x4ee   : > { %2275 = vmax.xlane.f32.xlu1 %v2274_v52  ;;  %v2268_v52 = vsel %vm2120_vm2, %v6555_v56, -inf  ;;  %7394 = vst [vmem:[#allocation26_spill] sm:$0xff] %v6567_v40  ;;  %v2535_v22 = vsel %vm2120_vm2, %v6567_v40, 0.0  ;;  %v2399_v40 = vmul.f32 1.442695, %v2324_v4  ;;  %v2259_v4 = vsel %vm2120_vm2, %v6559_v41, -inf }
 0x4f0   : > { %4860 = vpow2.f32 %v2399_v40  ;;  %v6607_v40 = vpop.f32.mrf.mxu0 }
 0x4f1   : > { %2521 = vadd.xlane.f32.xlu0 %v2520_v7  ;;  %v6569_v7 = vpop.f32.mrf.mxu1 }
 0x4f2   : > { %2245 = vmax.xlane.f32.xlu1 %v2244_v54  ;;  %v2271_v54 = vsel %vm2120_vm2, %v6520_v57, -inf }
 0x4f3   : > { %v6578_v24 = vpop.f32.mrf.mxu1 }
 0x4f4   : > { %v2262_v13 = vsel %vm2120_vm2, %v6578_v24, -inf }
 0x4f5   : > { %2248 = vmax.xlane.f32.xlu0 %v2247_v2  ;;  %v2159_v2 = vpop.xlane.xlu0 %2158  ;;  %v6600_v3 = vpop.f32.mrf.mxu1 }
 0x4f6   : > { %2269 = vmax.xlane.f32.xlu1 %v2268_v52  ;;  %v2241_v52 = vsel %vm2120_vm2, %v6532_v59, -inf  ;;  %v2325_v56 = vsub.f32 %v6350_v61, %v2159_v2 }
 0x4f8   : > { %v2401_v48 = vmul.f32 1.442695, %v2325_v56 }
 0x4f9   : > { %2272 = vmax.xlane.f32.xlu0 %v2271_v54  ;;  %v2168_v54 = vpop.xlane.xlu1 %2167  ;;  %v6593_v61 = vpop.eup %4856 }
 0x4fa   : > { %2536 = vadd.xlane.f32.xlu1 %v2535_v22  ;;  %7395 = vst [vmem:[#allocation27_spill] sm:$0xff] %v6593_v61  ;;  %v2395_v22 = vmul.f32 1.442695, %v2322_v14  ;;  %v2328_v2 = vsub.f32 %v6354_v11, %v2168_v54  ;;  %4862 = vpow2.f32 %v2401_v48  ;;  %v2529_v56 = vsel %vm2120_vm2, %v6593_v61, 0.0 }
 0x4fb   : > { %v2283_v14 = vsel %vm2120_vm2, %v6563_v33, -inf  ;;  %v2256_v11 = vsel %vm2120_vm2, %v6600_v3, -inf  ;;  %v2253_v54 = vsel %vm2120_vm2, %v6569_v7, -inf  ;;  %v2277_v48 = vsel %vm2120_vm2, %v6573_v44, -inf }
 0x4fc   : > { %4864 = vpow2.f32 %v2395_v22  ;;  %v2407_v19 = vmul.f32 1.442695, %v2328_v2 }
 0x4fd   : > { %2242 = vmax.xlane.f32.xlu0 %v2241_v52  ;;  %v2162_v42 = vpop.xlane.xlu1 %2161 }
 0x4fe   : > { %2263 = vmax.xlane.f32.xlu1 %v2262_v13  ;;  %v2326_v52 = vsub.f32 %v6364_v53, %v2162_v42  ;;  %4866 = vpow2.f32 %v2407_v19  ;;  %v6613_v53 = vpop.eup %4858 }
 0x4ff   : > { %7396 = vst [vmem:[#allocation28_spill] sm:$0xff] %v6613_v53  ;;  %v2547_v22 = vsel %vm2120_vm2, %v6613_v53, 0.0 }
 0x500   : > { %v2403_v13 = vmul.f32 1.442695, %v2326_v52 }
 0x501   : > { %2266 = vmax.xlane.f32.xlu0 %v2265_v50  ;;  %v2280_v50 = vsel %vm2120_vm2, %v6607_v40, -inf }
 0x502   : > { %2287 = vmax.xlane.f32.xlu1 %v2286_v29  ;;  %4868 = vpow2.f32 %v2403_v13  ;;  %v6617_v29 = vpop.eup %4860 }
 0x505   : > { %2260 = vmax.xlane.f32.xlu0 %v2259_v4  ;;  %v2538_v4 = vsel %vm2120_vm2, %v6617_v29, 0.0 }
 0x506   : > { %2530 = vadd.xlane.f32.xlu1 %v2529_v56 }
 0x507   : > { %v6621_v2 = vpop.eup %4862 }
 0x508   : > { %7397 = vst [vmem:[#allocation29_spill] sm:$0xff] %v6621_v2  ;;  %v2541_v56 = vsel %vm2120_vm2, %v6621_v2, 0.0 }
 0x509   : > { %2284 = vmax.xlane.f32.xlu0 %v2283_v14  ;;  %v6625_v42 = vpop.eup %4864 }
 0x50a   : > { %2257 = vmax.xlane.f32.xlu1 %v2256_v11  ;;  %7398 = vst [vmem:[#allocation30_spill] sm:$0xff] %v6625_v42  ;;  %v2532_v19 = vsel %vm2120_vm2, %v6625_v42, 0.0 }
 0x50b   : > { %v6631_v52 = vpop.eup %4866 }
 0x50c   : > { %7399 = vst [vmem:[#allocation31_spill] sm:$0xff] %v6631_v52  ;;  %v2550_v14 = vsel %vm2120_vm2, %v6631_v52, 0.0 }
 0x50d   : > { %2254 = vmax.xlane.f32.xlu0 %v2253_v54 }
 0x50e   : > { %2281 = vmax.xlane.f32.xlu1 %v2280_v50 }
 0x50f   : > { %v6635_v11 = vpop.eup %4868 }
 0x510   : > { %7400 = vst [vmem:[#allocation32_spill] sm:$0xff] %v6635_v11  ;;  %v2544_v13 = vsel %vm2120_vm2, %v6635_v11, 0.0 }
 0x511   : > { %2278 = vmax.xlane.f32.xlu0 %v2277_v48 }
 0x512   : > { %2548 = vadd.xlane.f32.xlu1 %v2547_v22  ;;  %v2177_v54 = vpop.xlane.xlu0 %2176 }
 0x513   : > { %v2331_v22 = vsub.f32 %v6388_v58, %v2177_v54 }
 0x515   : > { %2539 = vadd.xlane.f32.xlu0 %v2538_v4 }
 0x516   : > { %2542 = vadd.xlane.f32.xlu1 %v2541_v56  ;;  %v2171_v50 = vpop.xlane.xlu0 %2170  ;;  %v2180_v48 = vpop.xlane.xlu1 %2179 }
 0x517   : > { %v2332_v56 = vsub.f32 %v6397_v63, %v2180_v48  ;;  %v2329_v2 = vsub.f32 %v6395_v1, %v2171_v50 }
 0x519   : > { %2533 = vadd.xlane.f32.xlu0 %v2532_v19  ;;  %v2413_v19 = vmul.f32 1.442695, %v2331_v22  ;;  %v2415_v42 = vmul.f32 1.442695, %v2332_v56  ;;  %v2409_v58 = vmul.f32 1.442695, %v2329_v2 }
 0x51a   : > { %v2189_v4 = vpop.xlane.xlu0 %2188  ;;  %v2174_v53 = vpop.xlane.xlu1 %2173 }
 0x51b   : > { %4870 = vpow2.f32 %v2413_v19  ;;  %v2335_v63 = vsub.f32 %v6405_v10, %v2189_v4 }
 0x51c   : > { %4872 = vpow2.f32 %v2415_v42 }
 0x51d   : > { %2551 = vadd.xlane.f32.xlu0 %v2550_v14  ;;  %v2330_v14 = vsub.f32 %v6403_v32, %v2174_v53  ;;  %4874 = vpow2.f32 %v2409_v58  ;;  %v2421_v22 = vmul.f32 1.442695, %v2335_v63 }
 0x51e   : > { %v2183_v11 = vpop.xlane.xlu0 %2182  ;;  %v2192_v54 = vpop.xlane.xlu1 %2191 }
 0x51f   : > { %v2411_v1 = vmul.f32 1.442695, %v2330_v14  ;;  %v2333_v50 = vsub.f32 %v6411_v5, %v2183_v11  ;;  %v2336_v56 = vsub.f32 %v6413_v9, %v2192_v54 }
 0x521   : > { %2545 = vadd.xlane.f32.xlu0 %v2544_v13  ;;  %4876 = vpow2.f32 %v2411_v1  ;;  %v2417_v10 = vmul.f32 1.442695, %v2333_v50  ;;  %v2423_v14 = vmul.f32 1.442695, %v2336_v56 }
 0x522   : > { %v2186_v11 = vpop.xlane.xlu1 %2185  ;;  %4878 = vpow2.f32 %v2421_v22 }
 0x523   : > { %4880 = vpow2.f32 %v2417_v10  ;;  %v2334_v9 = vsub.f32 %v6419_v25, %v2186_v11 }
 0x524   : > { %4882 = vpow2.f32 %v2423_v14 }
 0x525   : > { %v2419_v56 = vmul.f32 1.442695, %v2334_v9 }
 0x527   : > { %4884 = vpow2.f32 %v2419_v56 }
 0x528   : > { %v6676_v22 = vpop.eup %4870 }
 0x529   : > { %v2559_v9 = vsel %vm2120_vm2, %v6676_v22, 0.0 }
 0x53b   : > { %v6642_v52 = vpop.f32.mrf.mxu1 }
 0x53c   : > { %v2295_v13 = vsel %vm2120_vm2, %v6642_v52, -inf }
 0x53d   : > { %v6647_v61 = vpop.f32.mrf.mxu1  ;;  %2296 = vmax.xlane.f32.xlu1 %v2295_v13 }
 0x53e   : > { %v2289_v32 = vsel %vm2120_vm2, %v6647_v61, -inf }
 0x53f   : > { %v6650_v48 = vpop.f32.mrf.mxu1 }
 0x540   : > { %v2298_v5 = vsel %vm2120_vm2, %v6650_v48, -inf }
 0x541   : > { %v6655_v53 = vpop.f32.mrf.mxu1  ;;  %2290 = vmax.xlane.f32.xlu1 %v2289_v32 }
 0x542   : > { %v2292_v63 = vsel %vm2120_vm2, %v6655_v53, -inf }
 0x543   : > { %v6658_v2 = vpop.f32.mrf.mxu1 }
 0x544   : > { %v2307_v42 = vsel %vm2120_vm2, %v6658_v2, -inf }
 0x545   : > { %v6664_v4 = vpop.f32.mrf.mxu1  ;;  %2308 = vmax.xlane.f32.xlu0 %v2307_v42  ;;  %2299 = vmax.xlane.f32.xlu1 %v2298_v5  ;;  %v6682_v42 = vpop.eup %4872 }
 0x546   : > { %v2201_v19 = vpop.xlane.xlu0 %2200  ;;  %v2301_v58 = vsel %vm2120_vm2, %v6664_v4, -inf  ;;  %v2562_v14 = vsel %vm2120_vm2, %v6682_v42, 0.0 }
 0x547   : > { %v6666_v13 = vpop.f32.mrf.mxu1  ;;  %v2339_v32 = vsub.f32 %v6433_v45, %v2201_v19  ;;  %v6686_v19 = vpop.eup %4874 }
 0x548   : > { %7401 = vst [vmem:[#allocation33_spill] sm:$0xff] %v6666_v13  ;;  %v2310_v25 = vsel %vm2120_vm2, %v6666_v13, -inf  ;;  %v2553_v13 = vsel %vm2120_vm2, %v6686_v19, 0.0 }
 0x549   : > { %v6673_v54 = vpop.f32.mrf.mxu1  ;;  %2302 = vmax.xlane.f32.xlu0 %v2301_v58  ;;  %2293 = vmax.xlane.f32.xlu1 %v2292_v63  ;;  %v2429_v58 = vmul.f32 1.442695, %v2339_v32 }
 0x54a   : > { %7402 = vst [vmem:[#allocation34_spill] sm:$0xff] %v6673_v54  ;;  %v2204_v1 = vpop.xlane.xlu1 %2203  ;;  %v2225_v50 = vpop.xlane.xlu0 %2224  ;;  %v2304_v10 = vsel %vm2120_vm2, %v6673_v54, -inf }
 0x54b   : > { %v2347_v63 = vsub.f32 %v6431_v36, %v2225_v50  ;;  %v6692_v54 = vpop.eup %4876  ;;  %4886 = vpow2.f32 %v2429_v58  ;;  %v2340_v56 = vsub.f32 %v6441_v17, %v2204_v1 }
 0x54c   : > { %v6695_v50 = vpop.eup %4878 }
 0x54d   : > { %2311 = vmax.xlane.f32.xlu0 %v2310_v25  ;;  %2305 = vmax.xlane.f32.xlu1 %v2304_v10  ;;  %v2445_v36 = vmul.f32 1.442695, %v2347_v63  ;;  %v2571_v17 = vsel %vm2120_vm2, %v6695_v50, 0.0  ;;  %v2431_v1 = vmul.f32 1.442695, %v2340_v56 }
 0x54e   : > { %v2228_v5 = vpop.xlane.xlu1 %2227  ;;  %v2195_v11 = vpop.xlane.xlu0 %2194 }
 0x54f   : > { %v2337_v45 = vsub.f32 %v6439_v30, %v2195_v11  ;;  %v2556_v11 = vsel %vm2120_vm2, %v6692_v54, 0.0 }
 0x551   : > { %v2425_v25 = vmul.f32 1.442695, %v2337_v45  ;;  %2563 = vadd.xlane.f32.xlu0 %v2562_v14  ;;  %2560 = vadd.xlane.f32.xlu1 %v2559_v9  ;;  %v6702_v45 = vpop.eup %4880 }
 0x552   : > { %v2198_v10 = vpop.xlane.xlu1 %2197  ;;  %v2219_v32 = vpop.xlane.xlu0 %2218 }
 0x553   : > { %v2345_v30 = vsub.f32 %v6435_v16, %v2219_v32  ;;  %4888 = vpow2.f32 %v2425_v25  ;;  %v2348_v25 = vsub.f32 %v6443_v20, %v2228_v5  ;;  %v2565_v32 = vsel %vm2120_vm2, %v6702_v45, 0.0 }
 0x554   : > { %4890 = vpow2.f32 %v2445_v36 }
 0x555   : > { %v2441_v14 = vmul.f32 1.442695, %v2345_v30  ;;  %2557 = vadd.xlane.f32.xlu0 %v2556_v11  ;;  %2554 = vadd.xlane.f32.xlu1 %v2553_v13  ;;  %v6711_v30 = vpop.eup %4882 }
 0x556   : > { %v2222_v58 = vpop.xlane.xlu1 %2221  ;;  %v2213_v63 = vpop.xlane.xlu0 %2212  ;;  %v2574_v20 = vsel %vm2120_vm2, %v6711_v30, 0.0 }
 0x557   : > { %v2346_v16 = vsub.f32 %v6452_v21, %v2222_v58  ;;  %v2343_v9 = vsub.f32 %v6458_v47, %v2213_v63  ;;  %4892 = vpow2.f32 %v2441_v14  ;;  %v2338_v47 = vsub.f32 %v6449_v34, %v2198_v10  ;;  %v6716_v5 = vpop.eup %4884 }
 0x558   : > { %v2447_v58 = vmul.f32 1.442695, %v2348_v25  ;;  %v2568_v34 = vsel %vm2120_vm2, %v6716_v5, 0.0 }
 0x559   : > { %v2443_v13 = vmul.f32 1.442695, %v2346_v16  ;;  %2572 = vadd.xlane.f32.xlu1 %v2571_v17  ;;  %2566 = vadd.xlane.f32.xlu0 %v2565_v32  ;;  %v2437_v36 = vmul.f32 1.442695, %v2343_v9  ;;  %v2427_v63 = vmul.f32 1.442695, %v2338_v47  ;;  %v6720_v17 = vpop.eup %4886 }
 0x55a   : > { %v2216_v11 = vpop.xlane.xlu1 %2215  ;;  %v2237_v21 = vpop.xlane.xlu0 %2236  ;;  %7403 = vst [vmem:[#allocation35_spill] sm:$0xff] %v6720_v17 }
 0x55b   : > { %4894 = vpow2.f32 %v2443_v13  ;;  %v2351_v16 = vsub.f32 %v6461_v49, %v2237_v21  ;;  %v2344_v25 = vsub.f32 %v6478_v28, %v2216_v11 }
 0x55c   : > { %4896 = vpow2.f32 %v2431_v1 }
 0x55d   : > { %2575 = vadd.xlane.f32.xlu1 %v2574_v20  ;;  %4898 = vpow2.f32 %v2437_v36  ;;  %v2453_v49 = vmul.f32 1.442695, %v2351_v16  ;;  %v2439_v11 = vmul.f32 1.442695, %v2344_v25 }
 0x55e   : > { %v2240_v56 = vpop.xlane.xlu1 %2239  ;;  %v2207_v14 = vpop.xlane.xlu0 %2206  ;;  %4900 = vpow2.f32 %v2447_v58  ;;  %v2583_v58 = vsel %vm2120_vm2, %v6720_v17, 0.0 }
 0x55f   : > { %v2341_v9 = vsub.f32 %v6468_v6, %v2207_v14  ;;  %4902 = vpow2.f32 %v2427_v63  ;;  %v2352_v14 = vsub.f32 %v6482_v31, %v2240_v56 }
 0x560   : > { %v6724_v10 = vpop.eup %4888 }
 0x561   : > { %7404 = vst [vmem:[#allocation36_spill] sm:$0xff] %v6724_v10  ;;  %v2433_v1 = vmul.f32 1.442695, %v2341_v9  ;;  %2569 = vadd.xlane.f32.xlu1 %v2568_v34  ;;  %v2577_v13 = vsel %vm2120_vm2, %v6724_v10, 0.0  ;;  %v6730_v21 = vpop.eup %4890  ;;  %v2455_v56 = vmul.f32 1.442695, %v2352_v14 }
 0x562   : > { %v2210_v32 = vpop.xlane.xlu1 %2209  ;;  %v2231_v36 = vpop.xlane.xlu0 %2230  ;;  %2578 = vadd.xlane.f32.xlu0 %v2577_v13  ;;  %v2607_v34 = vsel %vm2120_vm2, %v6730_v21, 0.0 }
 0x563   : > { %v2349_v6 = vsub.f32 %v6471_v60, %v2231_v36  ;;  %4904 = vpow2.f32 %v2433_v1  ;;  %v2342_v47 = vsub.f32 %v6492_v0, %v2210_v32 }
 0x564   : > { %v6735_v20 = vpop.eup %4892  ;;  %4906 = vpow2.f32 %v2453_v49 }
 0x565   : > { %v2449_v28 = vmul.f32 1.442695, %v2349_v6  ;;  %2584 = vadd.xlane.f32.xlu1 %v2583_v58  ;;  %v2601_v16 = vsel %vm2120_vm2, %v6735_v20, 0.0  ;;  %v2435_v0 = vmul.f32 1.442695, %v2342_v47 }
 0x566   : > { %v2234_v63 = vpop.xlane.xlu1 %2233  ;;  %v2513_v60 = vpop.xlane.xlu0 %2512  ;;  %2602 = vadd.xlane.f32.xlu0 %v2601_v16 }
 0x567   : > { %4908 = vpow2.f32 %v2449_v28  ;;  %v2350_v25 = vsub.f32 %v6501_v62, %v2234_v63 }
 0x568   : > { %v6740_v9 = vpop.eup %4894  ;;  %4910 = vpow2.f32 %v2439_v11 }
 0x569   : > { %v6744_v1 = vpop.eup %4896  ;;  %2608 = vadd.xlane.f32.xlu1 %v2607_v34  ;;  %v2604_v31 = vsel %vm2120_vm2, %v6740_v9, 0.0  ;;  %4912 = vpow2.f32 %v2435_v0  ;;  %v2451_v47 = vmul.f32 1.442695, %v2350_v25 }
 0x56a   : > { %v2525_v32 = vpop.xlane.xlu1 %2524  ;;  %v2507_v13 = vpop.xlane.xlu0 %2506  ;;  %2605 = vadd.xlane.f32.xlu0 %v2604_v31  ;;  %v2586_v49 = vsel %vm2120_vm2, %v6744_v1, 0.0  ;;  %4914 = vpow2.f32 %v2455_v56 }
 0x56b   : > { %v6749_v36 = vpop.eup %4898  ;;  %4916 = vrcp.f32 %v2513_v60 }
 0x56c   : > { %7405 = vst [vmem:[#allocation37_spill] sm:$0xff] %v6749_v36  ;;  %v6753_v6 = vpop.eup %4900  ;;  %v2595_v28 = vsel %vm2120_vm2, %v6749_v36, 0.0 }
 0x56d   : > { %2587 = vadd.xlane.f32.xlu1 %v2586_v49  ;;  %v6757_v62 = vpop.eup %4902  ;;  %v2610_v14 = vsel %vm2120_vm2, %v6753_v6, 0.0 }
 0x56e   : > { %v2519_v58 = vpop.xlane.xlu1 %2518  ;;  %v2516_v11 = vpop.xlane.xlu0 %2515  ;;  %2596 = vadd.xlane.f32.xlu0 %v2595_v28  ;;  %7406 = vst [vmem:[#allocation38_spill] sm:$0xff] %v6757_v62  ;;  %v2580_v31 = vsel %vm2120_vm2, %v6757_v62, 0.0 }
 0x56f   : > { %4918 = vrcp.f32 %v2516_v11 }
 0x570   : > { %v6761_v63 = vpop.eup %4904  ;;  %4920 = vrcp.f32 %v2507_v13 }
 0x571   : > { %7407 = vst [vmem:[#allocation39_spill] sm:$0xff] %v6761_v63  ;;  %2611 = vadd.xlane.f32.xlu1 %v2610_v14  ;;  %4922 = vpow2.f32 %v2451_v47  ;;  %v2589_v16 = vsel %vm2120_vm2, %v6761_v63, 0.0  ;;  %v6765_v60 = vpop.eup %4906 }
 0x572   : > { %v2510_v0 = vpop.xlane.xlu0 %2509  ;;  %2590 = vadd.xlane.f32.xlu0 %v2589_v16  ;;  %7408 = vst [vmem:[#allocation40_spill] sm:$0xff] %v6765_v60  ;;  %v2619_v28 = vsel %vm2120_vm2, %v6765_v60, 0.0 }
 0x573   : > { %v2252_v34 = vpop.xlane.xlu1 %2251  ;;  %4924 = vrcp.f32 %v2510_v0 }
 0x574   : > { %v6769_v56 = vpop.eup %4908 }
 0x575   : > { %7409 = vst [vmem:[#allocation41_spill] sm:$0xff] %v6769_v56  ;;  %2581 = vadd.xlane.f32.xlu1 %v2580_v31  ;;  %v2613_v25 = vsel %vm2120_vm2, %v6769_v56, 0.0  ;;  %v6773_v49 = vpop.eup %4910 }
 0x576   : > { %v2528_v13 = vpop.xlane.xlu0 %2527  ;;  %7410 = vst [vmem:[#allocation42_spill] sm:$0xff] %v6773_v49  ;;  %2614 = vadd.xlane.f32.xlu0 %v2613_v25  ;;  %v6779_v11 = vpop.eup %4912  ;;  %v2598_v14 = vsel %vm2120_vm2, %v6773_v49, 0.0 }
 0x577   : > { %v6775_v47 = vpop.xlane.xlu1 %2275  ;;  %4926 = vrcp.f32 %v2528_v13  ;;  %7411 = vst [vmem:[#allocation43_spill] sm:$0xff] %v6779_v11  ;;  %v6783_v0 = vpop.eup %4914  ;;  %v2592_v25 = vsel %vm2120_vm2, %v6779_v11, 0.0 }
 0x578   : > { %4928 = vrcp.f32 %v2519_v58  ;;  %7412 = vst [vmem:[#allocation44_spill] sm:$0xff] %v6783_v0  ;;  %v4917_v56 = vpop.eup %4916  ;;  %v2622_v58 = vsel %vm2120_vm2, %v6783_v0, 0.0 }
 0x579   : > { %2620 = vadd.xlane.f32.xlu1 %v2619_v28  ;;  %4930 = vrcp.f32 %v2525_v32 }
 0x57a   : > { %v2522_v16 = vpop.xlane.xlu0 %2521  ;;  %2599 = vadd.xlane.f32.xlu0 %v2598_v14 }
 0x57b   : > { %v2246_v31 = vpop.xlane.xlu1 %2245  ;;  %4932 = vrcp.f32 %v2522_v16 }
 0x57c   : > { %v4919_v13 = vpop.eup %4918 }
 0x57d   : > { %2593 = vadd.xlane.f32.xlu1 %v2592_v25  ;;  %v4921_v60 = vpop.eup %4920  ;;  %v2764_v14 = vmul.f32 %v4919_v13, %v6511_v8  ;;  %v2763_v25 = vmul.f32 %v4917_v56, %v6496_v26  ;;  %v2356_v8 = vsub.f32 %v6534_v46, %v2252_v34  ;;  %v2364_v46 = vsub.f32 %v6542_v12, %v6775_v47 }
 0x57e   : > { %v2249_v32 = vpop.xlane.xlu0 %2248  ;;  %v6789_v28 = vpop.eup %4922  ;;  %2623 = vadd.xlane.f32.xlu0 %v2622_v58  ;;  %v2761_v17 = vmul.f32 %v4921_v60, %v6503_v55  ;;  %v2354_v34 = vsub.f32 %v6551_v38, %v2246_v31  ;;  %v7415_v38 = vld [vmem:[#allocation11_spill] sm:$0xff] }
 0x57f   : > { %v2270_v36 = vpop.xlane.xlu1 %2269  ;;  %v2355_v63 = vsub.f32 %v6522_v43, %v2249_v32  ;;  %v2616_v0 = vsel %vm2120_vm2, %v6789_v28, 0.0 }
 0x580   : > { %v4925_v49 = vpop.eup %4924 }
 0x581   : > { %v2461_v16 = vmul.f32 1.442695, %v2355_v63  ;;  %v2762_v11 = vmul.f32 %v4925_v49, %v6528_v27  ;;  %v2826_v63 = vpack.c.bf16 %v2764_v14, %v2763_v25  ;;  %v2479_v25 = vmul.f32 1.442695, %v2364_v46 }
 0x582   : > { %v2273_v62 = vpop.xlane.xlu0 %2272  ;;  %2617 = vadd.xlane.f32.xlu0 %v2616_v0 }
 0x583   : > { %4934 = vpow2.f32 %v2461_v16  ;;  %v6798_v10 = vpop.xlane.xlu1 %2536  ;;  %v2363_v43 = vsub.f32 %v6520_v57, %v2273_v62  ;;  %v2825_v58 = vpack.c.bf16 %v2762_v11, %v2761_v17  ;;  %v2463_v17 = vmul.f32 1.442695, %v2356_v8 }
 0x584   : > { %v4927_v13 = vpop.eup %4926 }
 0x585   : > { %v2477_v55 = vmul.f32 1.442695, %v2363_v43  ;;  %4456 = vmatprep.mubr.msk.bf16.mxu0 %vm2120_vm2, %v2825_v58  ;;  %v4929_v27 = vpop.eup %4928  ;;  %v2768_v62 = vmul.f32 %v4927_v13, %v6538_v37  ;;  %v7414_v37 = vld [vmem:[#allocation25_spill] sm:$0xff] }
 0x586   : > { %4457 = vmatmul.mubr.msk.bf16.vlgmr.msra.gmra.mxu0 %vm2120_vm2, %v2826_v63  ;;  %v2243_v26 = vpop.xlane.xlu0 %2242  ;;  %v4931_v60 = vpop.eup %4930  ;;  %v2765_v0 = vmul.f32 %v4929_v27, %v6517_v18  ;;  %v2362_v43 = vsub.f32 %v7414_v37, %v2270_v36  ;;  %v2459_v18 = vmul.f32 1.442695, %v2354_v34  ;;  %v7416_v13 = vld [vmem:[#allocation13_spill] sm:$0xff] }
 0x587   : > { %4936 = vpow2.f32 %v2477_v55  ;;  %v2264_v56 = vpop.xlane.xlu1 %2263  ;;  %4465 = vmatpush3.bf16.msra.mxu0 %v6255_v23  ;;  %v2353_v49 = vsub.f32 %v6532_v59, %v2243_v26  ;;  %v7413_v23 = vld [vmem:[#allocation24_spill] sm:$0xff] }
 0x588   : > { %v4933_v57 = vpop.eup %4932  ;;  %4466 = vmatprep.subr.bf16.mxu0 %v6310_v39  ;;  %v2767_v16 = vmul.f32 %v4931_v60, %v7413_v23  ;;  %v2475_v36 = vmul.f32 1.442695, %v2362_v43  ;;  %v2360_v63 = vsub.f32 %v6578_v24, %v2264_v56  ;;  %v7417_v56 = vld [vmem:[#allocation12_spill] sm:$0xff] }
 0x589   : > { %v2457_v11 = vmul.f32 1.442695, %v2353_v49  ;;  %v2766_v32 = vmul.f32 %v4933_v57, %v6546_v35 }
 0x58a   : > { %v2267_v14 = vpop.xlane.xlu0 %2266  ;;  %v2828_v31 = vpack.c.bf16 %v2768_v62, %v2767_v16  ;;  %v2471_v49 = vmul.f32 1.442695, %v2360_v63 }
 0x58b   : > { %4938 = vpow2.f32 %v2457_v11  ;;  %v2288_v59 = vpop.xlane.xlu1 %2287  ;;  %4467 = vmatpush3.bf16.msra.mxu0 %v6310_v39  ;;  %v2361_v12 = vsub.f32 %v6530_v51, %v2267_v14  ;;  %v2827_v47 = vpack.c.bf16 %v2766_v32, %v2765_v0 }
 0x58c   : > { %4940 = vpow2.f32 %v2463_v17  ;;  %4468 = vmatprep.subr.bf16.mxu0 %v7415_v38  ;;  %v2368_v57 = vsub.f32 %v6586_v15, %v2288_v59 }
 0x58d   : > { %v2473_v58 = vmul.f32 1.442695, %v2361_v12  ;;  %4460 = vmatprep.mubr.msk.bf16.mxu0 %vm2120_vm2, %v2827_v47 }
 0x58e   : > { %4461 = vmatmul.mubr.msk.bf16.gmra.mxu0 %vm2120_vm2, %v2828_v31  ;;  %v2261_v35 = vpop.xlane.xlu0 %2260  ;;  %v2487_v0 = vmul.f32 1.442695, %v2368_v57 }
 0x58f   : > { %4942 = vpow2.f32 %v2473_v58  ;;  %v2531_v8 = vpop.xlane.xlu1 %2530  ;;  %4469 = vmatpush3.bf16.msra.mxu0 %v7415_v38  ;;  %v2359_v39 = vsub.f32 %v6559_v41, %v2261_v35 }
 0x590   : > { %v6822_v51 = vpop.eup %4934  ;;  %4944 = vpow2.f32 %v2479_v25  ;;  %4470 = vmatprep.subr.bf16.mxu0 %v7416_v13 }
 0x591   : > { %4946 = vpow2.f32 %v2459_v18  ;;  %v2469_v55 = vmul.f32 1.442695, %v2359_v39  ;;  %v2631_v27 = vsel %vm2120_vm2, %v6822_v51, 0.0 }
 0x592   : > { %2632 = vadd.xlane.f32.xlu0 %v2631_v27  ;;  %v2285_v26 = vpop.xlane.xlu0 %2284  ;;  %4948 = vpow2.f32 %v2475_v36 }
 0x593   : > { %4471 = vmatpush3.bf16.msra.mxu0 %v7416_v13  ;;  %v2367_v60 = vsub.f32 %v6563_v33, %v2285_v26  ;;  %v2258_v24 = vpop.xlane.xlu1 %2257  ;;  %4950 = vpow2.f32 %v2469_v55 }
 0x594   : > { %v6830_v41 = vpop.eup %4936  ;;  %4480 = vmatprep.subr.bf16.mxu0 %v7417_v56  ;;  %v2358_v34 = vsub.f32 %v6600_v3, %v2258_v24  ;;  %4952 = vpow2.f32 %v2471_v49 }
 0x595   : > { %v2485_v17 = vmul.f32 1.442695, %v2367_v60  ;;  %v2655_v46 = vsel %vm2120_vm2, %v6830_v41, 0.0 }
 0x596   : > { %2656 = vadd.xlane.f32.xlu0 %v2655_v46  ;;  %v2255_v62 = vpop.xlane.xlu0 %2254  ;;  %v2467_v59 = vmul.f32 1.442695, %v2358_v34 }
 0x597   : > { %v2357_v33 = vsub.f32 %v6569_v7, %v2255_v62  ;;  %4954 = vpow2.f32 %v2485_v17  ;;  %v2282_v23 = vpop.xlane.xlu1 %2281 }
 0x598   : > { %v6838_v11 = vpop.eup %4938  ;;  %4956 = vpow2.f32 %v2487_v0  ;;  %v2366_v25 = vsub.f32 %v6607_v40, %v2282_v23 }
 0x599   : > { %v6840_v32 = vpop.eup %4940  ;;  %v2465_v15 = vmul.f32 1.442695, %v2357_v33  ;;  %v2625_v14 = vsel %vm2120_vm2, %v6838_v11, 0.0 }
 0x59a   : > { %2626 = vadd.xlane.f32.xlu1 %v2625_v14  ;;  %v2279_v16 = vpop.xlane.xlu0 %2278  ;;  %v2634_v7 = vsel %vm2120_vm2, %v6840_v32, 0.0  ;;  %v2483_v58 = vmul.f32 1.442695, %v2366_v25  ;;  %v7419_v25 = vld [vmem:[#allocation30_spill] sm:$0xff] }
 0x59b   : > { %v2365_v12 = vsub.f32 %v6573_v44, %v2279_v16  ;;  %4958 = vpow2.f32 %v2465_v15  ;;  %v2549_v31 = vpop.xlane.xlu1 %2548 }
 0x59c   : > { %v6845_v3 = vpop.eup %4942  ;;  %4960 = vrcp.f32 %v2531_v8 }
 0x59d   : > { %v6849_v47 = vpop.eup %4944  ;;  %v2481_v37 = vmul.f32 1.442695, %v2365_v12  ;;  %v2649_v43 = vsel %vm2120_vm2, %v6845_v3, 0.0  ;;  %4962 = vpow2.f32 %v2467_v59  ;;  %v7418_v12 = vld [vmem:[#allocation27_spill] sm:$0xff] }
 0x59e   : > { %v6854_v38 = vpop.eup %4946  ;;  %2635 = vadd.xlane.f32.xlu1 %v2634_v7  ;;  %2650 = vadd.xlane.f32.xlu0 %v2649_v43  ;;  %v2540_v44 = vpop.xlane.xlu0 %2539  ;;  %v2658_v40 = vsel %vm2120_vm2, %v6849_v47, 0.0 }
 0x59f   : > { %4964 = vpow2.f32 %v2481_v37  ;;  %v6856_v18 = vpop.eup %4948  ;;  %v2628_v35 = vsel %vm2120_vm2, %v6854_v38, 0.0  ;;  %v2543_v27 = vpop.xlane.xlu1 %2542 }
 0x5a0   : > { %4966 = vrcp.f32 %v2540_v44  ;;  %v6862_v39 = vpop.eup %4950  ;;  %v2652_v63 = vsel %vm2120_vm2, %v6856_v18, 0.0  ;;  %v7420_v44 = vld [vmem:[#allocation26_spill] sm:$0xff] }
 0x5a1   : > { %4968 = vrcp.f32 %v6798_v10  ;;  %v6865_v36 = vpop.eup %4952  ;;  %v2643_v13 = vsel %vm2120_vm2, %v6862_v39, 0.0 }
 0x5a2   : > { %2659 = vadd.xlane.f32.xlu1 %v2658_v40  ;;  %2629 = vadd.xlane.f32.xlu0 %v2628_v35  ;;  %v2534_v8 = vpop.xlane.xlu0 %2533  ;;  %v2646_v60 = vsel %vm2120_vm2, %v6865_v36, 0.0 }
 0x5a3   : > { %4970 = vrcp.f32 %v2534_v8 }
 0x5a4   : > { %4972 = vpow2.f32 %v2483_v58  ;;  %v6871_v55 = vpop.eup %4954 }
 0x5a5   : > { %v6873_v10 = vpop.eup %4956  ;;  %v2667_v49 = vsel %vm2120_vm2, %v6871_v55, 0.0 }
 0x5a6   : > { %2653 = vadd.xlane.f32.xlu1 %v2652_v63  ;;  %2644 = vadd.xlane.f32.xlu0 %v2643_v13  ;;  %v2552_v26 = vpop.xlane.xlu0 %2551  ;;  %v2670_v34 = vsel %vm2120_vm2, %v6873_v10, 0.0 }
 0x5a7   : > { %4974 = vrcp.f32 %v2552_v26  ;;  %v7422_v26 = vld [vmem:[#allocation31_spill] sm:$0xff] }
 0x5a8   : > { %4976 = vrcp.f32 %v2543_v27  ;;  %v6879_v57 = vpop.eup %4958  ;;  %v7421_v27 = vld [vmem:[#allocation15_spill] sm:$0xff] }
 0x5a9   : > { %4978 = vrcp.f32 %v2549_v31  ;;  %v4961_v17 = vpop.eup %4960  ;;  %v2637_v33 = vsel %vm2120_vm2, %v6879_v57, 0.0 }
 0x5aa   : > { %2647 = vadd.xlane.f32.xlu1 %v2646_v60  ;;  %2668 = vadd.xlane.f32.xlu0 %v2667_v49  ;;  %v2546_v24 = vpop.xlane.xlu0 %2545  ;;  %v6881_v46 = vpop.eup %4962  ;;  %v2769_v7 = vmul.f32 %v4961_v17, %v7418_v12  ;;  %v7423_v49 = vld [vmem:[#allocation29_spill] sm:$0xff]  ;;  %v7424_v17 = vld [vmem:[#allocation32_spill] sm:$0xff] }
 0x5ab   : > { %4980 = vrcp.f32 %v2546_v24  ;;  %v2640_v16 = vsel %vm2120_vm2, %v6881_v46, 0.0 }
 0x5ac   : > { %v6883_v62 = vpop.eup %4964 }
 0x5ad   : > { %v4967_v0 = vpop.eup %4966  ;;  %v2661_v59 = vsel %vm2120_vm2, %v6883_v62, 0.0 }
 0x5ae   : > { %2671 = vadd.xlane.f32.xlu1 %v2670_v34  ;;  %2638 = vadd.xlane.f32.xlu0 %v2637_v33  ;;  %v4969_v15 = vpop.eup %4968  ;;  %v2772_v23 = vmul.f32 %v4967_v0, %v6617_v29  ;;  %v7425_v33 = vld [vmem:[#allocation28_spill] sm:$0xff] }
 0x5af   : > { %v2771_v31 = vmul.f32 %v4969_v15, %v7420_v44 }
 0x5b0   : > { %v4971_v14 = vpop.eup %4970 }
 0x5b1   : > { %v2770_v37 = vmul.f32 %v4971_v14, %v7419_v25  ;;  %v6896_v43 = vpop.eup %4972  ;;  %v2830_v40 = vpack.c.bf16 %v2772_v23, %v2771_v31  ;;  %v7426_v14 = vld [vmem:[#allocation20_spill] sm:$0xff] }
 0x5b2   : > { %2641 = vadd.xlane.f32.xlu1 %v2640_v16  ;;  %2662 = vadd.xlane.f32.xlu0 %v2661_v59  ;;  %v2664_v29 = vsel %vm2120_vm2, %v6896_v43, 0.0  ;;  %v7428_v16 = vld [vmem:[#allocation21_spill] sm:$0xff] }
 0x5b3   : > { %v2829_v58 = vpack.c.bf16 %v2770_v37, %v2769_v7 }
 0x5b4   : > { %v4975_v35 = vpop.eup %4974 }
 0x5b5   : > { %4472 = vmatprep.mubr.msk.bf16.mxu0 %vm2120_vm2, %v2829_v58  ;;  %v4977_v8 = vpop.eup %4976  ;;  %v2776_v60 = vmul.f32 %v4975_v35, %v7422_v26 }
 0x5b6   : > { %2665 = vadd.xlane.f32.xlu0 %v2664_v29  ;;  %4473 = vmatmul.mubr.msk.bf16.vlgmr.msra.gmra.mxu0 %vm2120_vm2, %v2830_v40  ;;  %v4979_v63 = vpop.eup %4978  ;;  %v2773_v24 = vmul.f32 %v4977_v8, %v7423_v49 }
 0x5b7   : > { %4481 = vmatpush3.bf16.msra.mxu0 %v7417_v56  ;;  %v2775_v0 = vmul.f32 %v4979_v63, %v7425_v33  ;;  %v7427_v56 = vld [vmem:[#allocation16_spill] sm:$0xff] }
 0x5b8   : > { %v4981_v13 = vpop.eup %4980  ;;  %4482 = vmatprep.subr.bf16.mxu0 %v7421_v27 }
 0x5b9   : > { %v2774_v34 = vmul.f32 %v4981_v13, %v7424_v17  ;;  %v2832_v23 = vpack.c.bf16 %v2776_v60, %v2775_v0 }
 0x5bb   : > { %4483 = vmatpush3.bf16.msra.mxu0 %v7421_v27  ;;  %v2831_v15 = vpack.c.bf16 %v2774_v34, %v2773_v24 }
 0x5bc   : > { %4484 = vmatprep.subr.bf16.mxu0 %v7426_v14 }
 0x5bd   : > { %4476 = vmatprep.mubr.msk.bf16.mxu0 %vm2120_vm2, %v2831_v15 }
 0x5be   : > { %4477 = vmatmul.mubr.msk.bf16.gmra.mxu0 %vm2120_vm2, %v2832_v23 }
 0x5bf   : > { %4485 = vmatpush3.bf16.msra.mxu0 %v7426_v14 }
 0x5c0   : > { %4486 = vmatprep.subr.bf16.mxu0 %v7427_v56 }
 0x5c3   : > { %4487 = vmatpush3.bf16.msra.mxu0 %v7427_v56 }
 0x5c4   : > { %4496 = vmatprep.subr.bf16.mxu0 %v7428_v16 }
 0x5c6   : > { %v2297_v59 = vpop.xlane.xlu1 %2296 }
 0x5c7   : > { %v2371_v12 = vsub.f32 %v6642_v52, %v2297_v59 }
 0x5c9   : > { %v2493_v7 = vmul.f32 1.442695, %v2371_v12 }
 0x5ca   : > { %v2291_v25 = vpop.xlane.xlu1 %2290 }
 0x5cb   : > { %4982 = vpow2.f32 %v2493_v7  ;;  %v2369_v37 = vsub.f32 %v6647_v61, %v2291_v25 }
 0x5cd   : > { %v2489_v44 = vmul.f32 1.442695, %v2369_v37 }
 0x5ce   : > { %v2300_v31 = vpop.xlane.xlu1 %2299  ;;  %v6919_v58 = vpop.xlane.xlu0 %2308 }
 0x5cf   : > { %4984 = vpow2.f32 %v2489_v44  ;;  %v2372_v40 = vsub.f32 %v6650_v48, %v2300_v31 }
 0x5d1   : > { %v2495_v35 = vmul.f32 1.442695, %v2372_v40 }
 0x5d2   : > { %v2294_v29 = vpop.xlane.xlu1 %2293  ;;  %v6922_v8 = vpop.xlane.xlu0 %2302 }
 0x5d3   : > { %4986 = vpow2.f32 %v2495_v35  ;;  %v2370_v63 = vsub.f32 %v6655_v53, %v2294_v29 }
 0x5d5   : > { %v2491_v52 = vmul.f32 1.442695, %v2370_v63 }
 0x5d6   : > { %v6925_v13 = vpop.xlane.xlu1 %2305  ;;  %v6927_v27 = vpop.xlane.xlu0 %2311 }
 0x5d7   : > { %4988 = vpow2.f32 %v2491_v52 }
 0x5d8   : > { %v6929_v61 = vpop.eup %4982 }
 0x5d9   : > { %v2679_v26 = vsel %vm2120_vm2, %v6929_v61, 0.0 }
 0x5da   : > { %v2561_v60 = vpop.xlane.xlu1 %2560  ;;  %2680 = vadd.xlane.f32.xlu0 %v2679_v26  ;;  %v2564_v48 = vpop.xlane.xlu0 %2563 }
 0x5db   : > { %4990 = vrcp.f32 %v2561_v60 }
 0x5dc   : > { %v6933_v49 = vpop.eup %4984  ;;  %4992 = vrcp.f32 %v2564_v48 }
 0x5dd   : > { %v2673_v53 = vsel %vm2120_vm2, %v6933_v49, 0.0 }
 0x5de   : > { %v2555_v24 = vpop.xlane.xlu1 %2554  ;;  %2674 = vadd.xlane.f32.xlu0 %v2673_v53  ;;  %v2558_v17 = vpop.xlane.xlu0 %2557 }
 0x5df   : > { %4994 = vrcp.f32 %v2555_v24  ;;  %v7429_v24 = vld [vmem:[#allocation22_spill] sm:$0xff] }
 0x5e0   : > { %v6937_v34 = vpop.eup %4986  ;;  %4996 = vrcp.f32 %v2558_v17 }
 0x5e1   : > { %v2682_v33 = vsel %vm2120_vm2, %v6937_v34, 0.0 }
 0x5e2   : > { %v2573_v0 = vpop.xlane.xlu1 %2572  ;;  %2683 = vadd.xlane.f32.xlu0 %v2682_v33  ;;  %v2567_v23 = vpop.xlane.xlu0 %2566 }
 0x5e4   : > { %v6941_v15 = vpop.eup %4988 }
 0x5e5   : > { %v2676_v14 = vsel %vm2120_vm2, %v6941_v15, 0.0 }
 0x5e6   : > { %v2576_v56 = vpop.xlane.xlu1 %2575  ;;  %2677 = vadd.xlane.f32.xlu1 %v2676_v14 }
 0x5e7   : > { %4998 = vrcp.f32 %v2576_v56 }
 0x5e8   : > { %5000 = vrcp.f32 %v2567_v23  ;;  %v4991_v59 = vpop.eup %4990  ;;  %v7432_v23 = vld [vmem:[#allocation17_spill] sm:$0xff] }
 0x5e9   : > { %5002 = vrcp.f32 %v2573_v0  ;;  %v4993_v7 = vpop.eup %4992  ;;  %v2779_v31 = vmul.f32 %v4991_v59, %v6676_v22  ;;  %v7431_v0 = vld [vmem:[#allocation2_spill] sm:$0xff] }
 0x5ea   : > { %v2570_v12 = vpop.xlane.xlu1 %2569  ;;  %v2780_v40 = vmul.f32 %v4993_v7, %v6682_v42 }
 0x5eb   : > { %5004 = vrcp.f32 %v2570_v12  ;;  %v2579_v37 = vpop.xlane.xlu0 %2578 }
 0x5ec   : > { %v4995_v25 = vpop.eup %4994  ;;  %v2834_v60 = vpack.c.bf16 %v2780_v40, %v2779_v31 }
 0x5ed   : > { %v4997_v44 = vpop.eup %4996  ;;  %v2777_v35 = vmul.f32 %v4995_v25, %v6686_v19  ;;  %v2373_v25 = vsub.f32 %v6664_v4, %v6922_v8 }
 0x5ee   : > { %v2585_v29 = vpop.xlane.xlu1 %2584  ;;  %v2778_v63 = vmul.f32 %v4997_v44, %v6692_v54  ;;  %v7430_v54 = vld [vmem:[#allocation3_spill] sm:$0xff]  ;;  %v7433_v44 = vld [vmem:[#allocation4_spill] sm:$0xff] }
 0x5ef   : > { %v2603_v52 = vpop.xlane.xlu0 %2602  ;;  %v2497_v4 = vmul.f32 1.442695, %v2373_v25 }
 0x5f0   : > { %v2833_v26 = vpack.c.bf16 %v2778_v63, %v2777_v35  ;;  %5006 = vrcp.f32 %v2603_v52  ;;  %v7436_v63 = vld [vmem:[#allocation18_spill] sm:$0xff] }
 0x5f2   : > { %4488 = vmatprep.mubr.msk.bf16.mxu0 %vm2120_vm2, %v2833_v26  ;;  %v2609_v48 = vpop.xlane.xlu1 %2608 }
 0x5f3   : > { %4489 = vmatmul.mubr.msk.bf16.vlgmr.msra.gmra.mxu0 %vm2120_vm2, %v2834_v60  ;;  %v2606_v53 = vpop.xlane.xlu0 %2605 }
 0x5f4   : > { %4497 = vmatpush3.bf16.msra.mxu0 %v7428_v16  ;;  %v4999_v22 = vpop.eup %4998  ;;  %5008 = vrcp.f32 %v2606_v53 }
 0x5f5   : > { %4498 = vmatprep.subr.bf16.mxu0 %v7429_v24  ;;  %v5001_v42 = vpop.eup %5000  ;;  %v2784_v16 = vmul.f32 %v4999_v22, %v6711_v30  ;;  %5010 = vrcp.f32 %v2609_v48 }
 0x5f6   : > { %v2588_v19 = vpop.xlane.xlu1 %2587  ;;  %v5003_v17 = vpop.eup %5002  ;;  %v2781_v56 = vmul.f32 %v5001_v42, %v6702_v45  ;;  %v7434_v45 = vld [vmem:[#allocation23_spill] sm:$0xff]  ;;  %v7437_v42 = vld [vmem:[#allocation33_spill] sm:$0xff] }
 0x5f7   : > { %3395 = vrot.lane.b32.xlu1 %v7430_v54, %s5140_s21  ;;  %v2597_v14 = vpop.xlane.xlu0 %2596  ;;  %v2783_v7 = vmul.f32 %v5003_v17, %v6695_v50 }
 0x5f8   : > { %v5005_v33 = vpop.eup %5004  ;;  %4499 = vmatpush3.bf16.msra.mxu0 %v7429_v24  ;;  %3306 = vrot.lane.b32.xlu0 %v7431_v0, %s5140_s21  ;;  %v7438_v0 = vld [vmem:[#allocation34_spill] sm:$0xff] }
 0x5f9   : > { %4500 = vmatprep.subr.bf16.mxu0 %v7432_v23  ;;  %v2782_v59 = vmul.f32 %v5005_v33, %v6716_v5  ;;  %v2836_v40 = vpack.c.bf16 %v2784_v16, %v2783_v7  ;;  %v7435_v5 = vld [vmem:[#allocation6_spill] sm:$0xff]  ;;  %v2374_v16 = vsub.f32 %v7438_v0, %v6925_v13  ;;  %v7441_v13 = vld [vmem:[#allocation35_spill] sm:$0xff]  ;;  %v7448_v0 = vld [vmem:[#allocation41_spill] sm:$0xff] }
 0x5fa   : > { %v2612_v12 = vpop.xlane.xlu1 %2611 }
 0x5fb   : > { %5012 = vrcp.f32 %v2612_v12  ;;  %3304 = vrot.lane.b32.xlu1 %v7433_v44, %s5140_s21  ;;  %v2835_v31 = vpack.c.bf16 %v2782_v59, %v2781_v56  ;;  %v2591_v30 = vpop.xlane.xlu0 %2590  ;;  %v2499_v44 = vmul.f32 1.442695, %v2374_v16 }
 0x5fc   : > { %5014 = vrcp.f32 %v2588_v19  ;;  %4501 = vmatpush3.bf16.msra.mxu0 %v7432_v23  ;;  %v2376_v19 = vsub.f32 %v7437_v42, %v6927_v27 }
 0x5fd   : > { %5016 = vrcp.f32 %v2579_v37  ;;  %4502 = vmatprep.subr.bf16.mxu0 %v7434_v45  ;;  %4492 = vmatprep.mubr.msk.bf16.mxu0 %vm2120_vm2, %v2835_v31  ;;  %v5007_v8 = vpop.eup %5006  ;;  %v2375_v37 = vsub.f32 %v6658_v2, %v6919_v58 }
 0x5fe   : > { %5018 = vrcp.f32 %v2585_v29  ;;  %v2582_v50 = vpop.xlane.xlu1 %2581  ;;  %4493 = vmatmul.mubr.msk.bf16.gmra.mxu0 %vm2120_vm2, %v2836_v40  ;;  %v2793_v29 = vmul.f32 %v5007_v8, %v6735_v20  ;;  %v2503_v23 = vmul.f32 1.442695, %v2376_v19 }
 0x5ff   : > { %5020 = vrcp.f32 %v2582_v50  ;;  %3393 = vrot.lane.b32.xlu1 %v7435_v5, %s5140_s21  ;;  %v2615_v35 = vpop.xlane.xlu0 %2614  ;;  %v2501_v53 = vmul.f32 1.442695, %v2375_v37 }
 0x600   : > { %4503 = vmatpush3.bf16.msra.mxu0 %v7434_v45  ;;  %5022 = vpow2.f32 %v2497_v4 }
 0x601   : > { %4528 = vmatprep.subr.bf16.mxu0 %v7436_v63  ;;  %v5009_v52 = vpop.eup %5008  ;;  %5024 = vrcp.f32 %v2591_v30  ;;  %v7442_v30 = vld [vmem:[#allocation19_spill] sm:$0xff] }
 0x602   : > { %v2621_v26 = vpop.xlane.xlu1 %2620  ;;  %v2794_v60 = vmul.f32 %v5009_v52, %v6740_v9  ;;  %v5011_v24 = vpop.eup %5010  ;;  %v7444_v52 = vld [vmem:[#allocation39_spill] sm:$0xff] }
 0x603   : > { %v2600_v48 = vpop.xlane.xlu0 %2599  ;;  %v2795_v20 = vmul.f32 %v5011_v24, %v6730_v21  ;;  %v7439_v21 = vld [vmem:[#allocation36_spill] sm:$0xff] }
 0x604   : > { %5026 = vrcp.f32 %v2600_v48  ;;  %v2841_v22 = vpack.c.bf16 %v2794_v60, %v2793_v29  ;;  %v7445_v29 = vld [vmem:[#allocation43_spill] sm:$0xff] }
 0x605   : > { %5028 = vrcp.f32 %v2597_v14 }
 0x606   : > { %v2594_v2 = vpop.xlane.xlu1 %2593  ;;  %4520 = vmatprep.mubr.msk.bf16.mxu1 %vm2120_vm2, %v2841_v22  ;;  %v7446_v22 = vld [vmem:[#allocation37_spill] sm:$0xff] }
 0x607   : > { %5030 = vrcp.f32 %v2594_v2  ;;  %v2624_v17 = vpop.xlane.xlu0 %2623 }
 0x608   : > { %v5013_v58 = vpop.eup %5012  ;;  %5032 = vpow2.f32 %v2501_v53 }
 0x609   : > { %v5015_v54 = vpop.eup %5014  ;;  %v2796_v9 = vmul.f32 %v5013_v58, %v6753_v6  ;;  %5034 = vrcp.f32 %v2624_v17  ;;  %v7440_v6 = vld [vmem:[#allocation38_spill] sm:$0xff] }
 0x60a   : > { %v5017_v33 = vpop.eup %5016  ;;  %5036 = vrcp.f32 %v2615_v35  ;;  %v2788_v59 = vmul.f32 %v5015_v54, %v6744_v1  ;;  %v7443_v35 = vld [vmem:[#allocation42_spill] sm:$0xff] }
 0x60b   : > { %v5019_v27 = vpop.eup %5018  ;;  %v2842_v14 = vpack.c.bf16 %v2796_v9, %v2795_v20  ;;  %5038 = vrcp.f32 %v2621_v26  ;;  %v2618_v12 = vpop.xlane.xlu0 %2617  ;;  %v2785_v7 = vmul.f32 %v5017_v33, %v7439_v21  ;;  %v7447_v20 = vld [vmem:[#allocation44_spill] sm:$0xff] }
 0x60c   : > { %v5021_v56 = vpop.eup %5020  ;;  %5040 = vrcp.f32 %v2618_v12  ;;  %v2787_v31 = vmul.f32 %v5019_v27, %v7441_v13  ;;  %v7449_v27 = vld [vmem:[#allocation40_spill] sm:$0xff] }
 0x60d   : > { %4521 = vmatmul.mubr.msk.bf16.vlgmr.msra.gmra.mxu1 %vm2120_vm2, %v2842_v14  ;;  %v2786_v25 = vmul.f32 %v5021_v56, %v7440_v6  ;;  %5042 = vpow2.f32 %v2503_v23  ;;  %v6992_v45 = vpop.eup %5022 }
 0x60e   : > { %4545 = vmatpush3.bf16.msra.mxu1 %v7442_v30  ;;  %v2838_v50 = vpack.c.bf16 %v2788_v59, %v2787_v31  ;;  %v5025_v1 = vpop.eup %5024  ;;  %5044 = vpow2.f32 %v2499_v44  ;;  %v2685_v53 = vsel %vm2120_vm2, %v6992_v45, 0.0 }
 0x60f   : > { %v2837_v40 = vpack.c.bf16 %v2786_v25, %v2785_v7  ;;  %v2789_v26 = vmul.f32 %v5025_v1, %v7444_v52 }
 0x611   : > { %4504 = vmatprep.mubr.msk.bf16.mxu0 %vm2120_vm2, %v2837_v40  ;;  %v5027_v4 = vpop.eup %5026 }
 0x612   : > { %4505 = vmatmul.mubr.msk.bf16.vlgmr.msra.gmra.mxu0 %vm2120_vm2, %v2838_v50  ;;  %v5029_v5 = vpop.eup %5028  ;;  %v2792_v37 = vmul.f32 %v5027_v4, %v7443_v35 }
 0x613   : > { %4529 = vmatpush3.bf16.msra.mxu0 %v7436_v63  ;;  %v2791_v24 = vmul.f32 %v5029_v5, %v7446_v22 }
 0x614   : > { %v5031_v8 = vpop.eup %5030 }
 0x615   : > { %v2790_v60 = vmul.f32 %v5031_v8, %v7445_v29  ;;  %v7000_v48 = vpop.eup %5032  ;;  %v2840_v58 = vpack.c.bf16 %v2792_v37, %v2791_v24  ;;  %v7450_v8 = vld [vmem:[#allocation7_spill] sm:$0xff]  ;;  %v7451_v37 = vld [vmem:[#allocation5_spill] sm:$0xff] }
 0x616   : > { %v5035_v42 = vpop.eup %5034  ;;  %v2691_v54 = vsel %vm2120_vm2, %v7000_v48, 0.0 }
 0x617   : > { %2686 = vadd.xlane.f32.xlu0 %v2685_v53  ;;  %v2839_v19 = vpack.c.bf16 %v2790_v60, %v2789_v26  ;;  %v5037_v2 = vpop.eup %5036  ;;  %v2800_v9 = vmul.f32 %v5035_v42, %v7447_v20  ;;  %v7452_v42 = vld [vmem:[#allocation9_spill] sm:$0xff] }
 0x618   : > { %v5039_v63 = vpop.eup %5038  ;;  %v2797_v16 = vmul.f32 %v5037_v2, %v7448_v0  ;;  %v7454_v0 = vld [vmem:[#allocation8_spill] sm:$0xff] }
 0x619   : > { %4508 = vmatprep.mubr.msk.bf16.mxu0 %vm2120_vm2, %v2839_v19  ;;  %v5041_v17 = vpop.eup %5040  ;;  %v2799_v14 = vmul.f32 %v5039_v63, %v7449_v27 }
 0x61a   : > { %4509 = vmatmul.mubr.msk.bf16.gmra.mxu0 %vm2120_vm2, %v2840_v58  ;;  %v7010_v33 = vpop.eup %5042  ;;  %v2798_v23 = vmul.f32 %v5041_v17, %v6789_v28 }
 0x61b   : > { %2692 = vadd.xlane.f32.xlu0 %v2691_v54  ;;  %v2633_v56 = vpop.xlane.xlu0 %2632  ;;  %v2694_v12 = vsel %vm2120_vm2, %v7010_v33, 0.0  ;;  %v2844_v21 = vpack.c.bf16 %v2800_v9, %v2799_v14  ;;  %v7017_v7 = vpop.eup %5044 }
 0x61c   : > { %v2843_v59 = vpack.c.bf16 %v2798_v23, %v2797_v16  ;;  %v2688_v6 = vsel %vm2120_vm2, %v7017_v7, 0.0  ;;  %5046 = vrcp.f32 %v2633_v56 }
 0x61e   : > { %4524 = vmatprep.mubr.msk.bf16.mxu1 %vm2120_vm2, %v2843_v59 }
 0x61f   : > { %2695 = vadd.xlane.f32.xlu0 %v2694_v12  ;;  %4525 = vmatmul.mubr.msk.bf16.gmra.mxu1 %vm2120_vm2, %v2844_v21  ;;  %v2657_v25 = vpop.xlane.xlu0 %2656 }
 0x623   : > { %2689 = vadd.xlane.f32.xlu1 %v2688_v6  ;;  %v2627_v28 = vpop.xlane.xlu1 %2626 }
 0x627   : > { %v2636_v44 = vpop.xlane.xlu1 %2635  ;;  %v2651_v13 = vpop.xlane.xlu0 %2650 }
 0x628   : > { %5048 = vrcp.f32 %v2636_v44 }
 0x629   : > { %5050 = vrcp.f32 %v2657_v25  ;;  %v5047_v1 = vpop.eup %5046 }
 0x62a   : > { %5052 = vrcp.f32 %v2627_v28  ;;  %v7028_v52 = vmul.f32 %v5047_v1, %v6822_v51  ;;  %v7453_v51 = vld [vmem:[#allocation10_spill] sm:$0xff] }
 0x62b   : > { %v2660_v31 = vpop.xlane.xlu1 %2659  ;;  %v2630_v30 = vpop.xlane.xlu0 %2629 }
 0x62c   : > { %5054 = vrcp.f32 %v2660_v31 }
 0x62d   : > { %5056 = vrcp.f32 %v2630_v30 }
 0x62e   : > { %5058 = vrcp.f32 %v2651_v13 }
 0x62f   : > { %v2654_v40 = vpop.xlane.xlu1 %2653  ;;  %v2645_v50 = vpop.xlane.xlu0 %2644 }
 0x630   : > { %5060 = vrcp.f32 %v2654_v40 }
 0x631   : > { %5062 = vrcp.f32 %v2645_v50 }
 0x633   : > { %v2648_v4 = vpop.xlane.xlu1 %2647  ;;  %v2669_v5 = vpop.xlane.xlu0 %2668 }
 0x634   : > { %3391 = vrot.lane.b32.xlu1 %v7450_v8, %s5140_s21  ;;  %5064 = vrcp.f32 %v2648_v4 }
 0x635   : > { %v5049_v35 = vpop.eup %5048  ;;  %3302 = vrot.lane.b32.xlu0 %v7451_v37, %s5140_s21  ;;  %5066 = vrcp.f32 %v2669_v5 }
 0x636   : > { %v7031_v26 = vmul.f32 %v5049_v35, %v6840_v32  ;;  %v5051_v29 = vpop.eup %5050 }
 0x637   : > { %v2672_v60 = vpop.xlane.xlu1 %2671  ;;  %v7033_v53 = vpop.xlane.xlu0 %2638  ;;  %v7042_v32 = vmul.f32 %v5051_v29, %v6830_v41 }
 0x638   : > { %v5053_v22 = vpop.eup %5052  ;;  %v2846_v24 = vpack.c.bf16 %v7031_v26, %v7028_v52  ;;  %3486 = vrot.lane.b32.xlu1 %v7452_v42, %s5140_s21  ;;  %5068 = vrcp.f32 %v2672_v60 }
 0x639   : > { %v5055_v19 = vpop.eup %5054  ;;  %3482 = vrot.lane.b32.xlu0 %v7453_v51, %s5140_s21  ;;  %v2801_v54 = vmul.f32 %v5053_v22, %v6838_v11  ;;  %v7455_v11 = vld [vmem:[#allocation14_spill] sm:$0xff] }
 0x63a   : > { %v5057_v2 = vpop.eup %5056  ;;  %v7045_v58 = vmul.f32 %v5055_v19, %v6849_v47 }
 0x63b   : > { %v5059_v63 = vpop.eup %5058  ;;  %v2663_v17 = vpop.xlane.xlu0 %2662  ;;  %v2802_v20 = vmul.f32 %v5057_v2, %v6854_v38 }
 0x63c   : > { %v2850_v9 = vpack.c.bf16 %v7045_v58, %v7042_v32  ;;  %3484 = vrot.lane.b32.xlu1 %v7454_v0, %s5140_s21  ;;  %5070 = vrcp.f32 %v2663_v17  ;;  %v2809_v41 = vmul.f32 %v5059_v63, %v6845_v3  ;;  %v2642_v40 = vpop.xlane.xlu1 %2641 }
 0x63d   : > { %v5061_v16 = vpop.eup %5060  ;;  %v2845_v23 = vpack.c.bf16 %v2802_v20, %v2801_v54 }
 0x63e   : > { %v2810_v47 = vmul.f32 %v5061_v16, %v6856_v18  ;;  %v5063_v27 = vpop.eup %5062 }
 0x63f   : > { %4536 = vmatprep.mubr.msk.bf16.mxu0 %vm2120_vm2, %v2845_v23  ;;  %v2666_v14 = vpop.xlane.xlu0 %2665  ;;  %v7060_v59 = vmul.f32 %v5063_v27, %v6862_v39 }
 0x640   : > { %3480 = vrot.lane.b32.xlu1 %v7455_v11, %s5140_s21  ;;  %5072 = vrcp.f32 %v2666_v14  ;;  %v2849_v38 = vpack.c.bf16 %v2810_v47, %v2809_v41 }
 0x641   : > { %v5065_v56 = vpop.eup %5064 }
 0x642   : > { %4552 = vmatprep.mubr.msk.bf16.mxu1 %vm2120_vm2, %v2849_v38  ;;  %v7063_v12 = vmul.f32 %v5065_v56, %v6865_v36  ;;  %v5067_v3 = vpop.eup %5066 }
 0x643   : > { %v7068_v6 = vmul.f32 %v5067_v3, %v6871_v55 }
 0x644   : > { %v2848_v18 = vpack.c.bf16 %v7063_v12, %v7060_v59 }
 0x645   : > { %v5069_v21 = vpop.eup %5068 }
 0x646   : > { %v7071_v25 = vmul.f32 %v5069_v21, %v6873_v10  ;;  %v7083_v5 = vpop.f32.mrf.mxu0 }
 0x648   : > { %v2852_v28 = vpack.c.bf16 %v7071_v25, %v7068_v6  ;;  %v7091_v29 = vpop.f32.mrf.mxu0 }
 0x649   : > { %v5071_v44 = vpop.eup %5070 }
 0x64a   : > { %v7076_v13 = vmul.f32 %v5071_v44, %v6883_v62  ;;  %v7095_v42 = vpop.f32.mrf.mxu0 }
 0x64c   : > { %v7097_v19 = vpop.f32.mrf.mxu0 }
 0x64d   : > { %v5073_v39 = vpop.eup %5072 }
 0x64e   : > { %v7079_v36 = vmul.f32 %v5073_v39, %v6896_v43  ;;  %v7099_v51 = vpop.f32.mrf.mxu0 }
 0x650   : > { %v2851_v31 = vpack.c.bf16 %v7079_v36, %v7076_v13  ;;  %v7101_v2 = vpop.f32.mrf.mxu0 }
 0x663   : > { %v2681_v30 = vpop.xlane.xlu0 %2680 }
 0x664   : > { %5074 = vrcp.f32 %v2681_v30 }
 0x667   : > { %v2675_v55 = vpop.xlane.xlu0 %2674 }
 0x66b   : > { %v2684_v10 = vpop.xlane.xlu0 %2683 }
 0x66c   : > { %5076 = vrcp.f32 %v2684_v10 }
 0x66d   : > { %5078 = vrcp.f32 %v2642_v40 }
 0x66e   : > { %5080 = vrcp.f32 %v7033_v53 }
 0x66f   : > { %v2678_v50 = vpop.xlane.xlu1 %2677  ;;  %v3307_v1 = vpop.permute.xlu0 %3306 }
 0x670   : > { %4530 = vmatprep.subr.bf16.mxu0 %v3307_v1  ;;  %5082 = vrcp.f32 %v2678_v50 }
 0x671   : > { %4531 = vmatpush3.bf16.msra.mxu0 %v3307_v1  ;;  %v5075_v62 = vpop.eup %5074  ;;  %5084 = vrcp.f32 %v2675_v55 }
 0x672   : > { %v7086_v35 = vmul.f32 %v5075_v62, %v6929_v61  ;;  %v7103_v61 = vpop.f32.mrf.mxu0 }
 0x673   : > { %v3396_v4 = vpop.permute.xlu1 %3395 }
 0x674   : > { %4546 = vmatprep.subr.bf16.mxu1 %v3396_v4 }
 0x675   : > { %4547 = vmatpush3.bf16.msra.mxu1 %v3396_v4 }
 0x677   : > { %v3305_v43 = vpop.permute.xlu1 %3304 }
 0x678   : > { %4532 = vmatprep.subr.bf16.mxu0 %v3305_v43 }
 0x679   : > { %v5077_v8 = vpop.eup %5076  ;;  %4533 = vmatpush3.bf16.msra.mxu0 %v3305_v43 }
 0x67a   : > { %v7089_v37 = vmul.f32 %v5077_v8, %v6937_v34  ;;  %v7105_v34 = vpop.f32.mrf.mxu0  ;;  %v5079_v47 = vpop.eup %5078 }
 0x67b   : > { %v3394_v60 = vpop.permute.xlu1 %3393  ;;  %v5081_v14 = vpop.eup %5080  ;;  %v2806_v56 = vmul.f32 %v5079_v47, %v6881_v46 }
 0x67c   : > { %v2854_v22 = vpack.c.bf16 %v7089_v37, %v7086_v35  ;;  %4548 = vmatprep.subr.bf16.mxu1 %v3394_v60  ;;  %v7107_v63 = vpop.f32.mrf.mxu0  ;;  %v2805_v53 = vmul.f32 %v5081_v14, %v6879_v57 }
 0x67d   : > { %4549 = vmatpush3.bf16.msra.mxu1 %v3394_v60  ;;  %v5083_v30 = vpop.eup %5082 }
 0x67e   : > { %v7109_v17 = vpop.f32.mrf.mxu0  ;;  %v2847_v44 = vpack.c.bf16 %v2806_v56, %v2805_v53  ;;  %v5085_v55 = vpop.eup %5084  ;;  %v2818_v52 = vmul.f32 %v5083_v30, %v6941_v15 }
 0x680   : > { %v7111_v54 = vpop.f32.mrf.mxu0 }
 0x682   : > { %v7114_v0 = vpop.f32.mrf.mxu0 }
 0x684   : > { %v7116_v23 = vpop.f32.mrf.mxu0 }
 0x686   : > { %v7118_v27 = vpop.f32.mrf.mxu0 }
 0x688   : > { %v7121_v3 = vpop.f32.mrf.mxu0 }
 0x68a   : > { %v7124_v39 = vpop.f32.mrf.mxu0 }
 0x6a0   : > { %v2687_v20 = vpop.xlane.xlu0 %2686 }
 0x6a4   : > { %v2693_v16 = vpop.xlane.xlu0 %2692 }
 0x6a8   : > { %v2696_v41 = vpop.xlane.xlu0 %2695 }
 0x6ac   : > { %v2690_v11 = vpop.xlane.xlu1 %2689  ;;  %v3303_v38 = vpop.permute.xlu0 %3302 }
 0x6ad   : > { %4534 = vmatprep.subr.bf16.mxu0 %v3303_v38  ;;  %5086 = vrcp.f32 %v2690_v11 }
 0x6ae   : > { %4535 = vmatpush3.bf16.msra.mxu0 %v3303_v38  ;;  %5088 = vrcp.f32 %v2687_v20 }
 0x6af   : > { %5090 = vrcp.f32 %v2696_v41 }
 0x6b0   : > { %v3392_v21 = vpop.permute.xlu1 %3391  ;;  %5092 = vrcp.f32 %v2693_v16  ;;  %v3483_v32 = vpop.permute.xlu0 %3482 }
 0x6b1   : > { %4537 = vmatmul.mubr.msk.bf16.vlgmr.msra.gmra.mxu0 %vm2120_vm2, %v2846_v24  ;;  %4550 = vmatprep.subr.bf16.mxu1 %v3392_v21  ;;  %v2817_v24 = vmul.f32 %v5085_v55, %v6933_v49 }
 0x6b2   : > { %4540 = vmatprep.mubr.msk.bf16.mxu0 %vm2120_vm2, %v2847_v44  ;;  %4551 = vmatpush3.bf16.msra.mxu1 %v3392_v21 }
 0x6b3   : > { %v4490_v46 = vpop.f32.mrf.mxu0  ;;  %v2853_v15 = vpack.c.bf16 %v2818_v52, %v2817_v24  ;;  %v4805_v24 = vld [vmem:[%s7332_s5] sm:$0xff]  }
 0x6b4   : > { %v3487_v40 = vpop.permute.xlu1 %3486 }
 0x6b5   : > { %v3093_v57 = vpop.f32.mrf.mxu0  ;;  %4553 = vmatmul.mubr.msk.bf16.vlgmr.msra.gmra.mxu1 %vm2120_vm2, %v2850_v9  ;;  %4560 = vmatprep.subr.bf16.mxu0 %v3487_v40 }
 0x6b6   : > { %4556 = vmatprep.mubr.msk.bf16.mxu1 %vm2120_vm2, %v2851_v31  ;;  %4561 = vmatpush3.bf16.msra.mxu0 %v3487_v40 }
 0x6b7   : > { %v4491_v26 = vpop.f32.mrf.mxu0 }
 0x6b8   : > { %v4678_v10 = vpack.i.bf16 %v4491_v26, %v4490_v46  ;;  %v3485_v50 = vpop.permute.xlu1 %3484  ;;  %v4804_v46 = vld [vmem:[%s7332_s5 + $0x8] sm:$0xff]  }
 0x6b9   : > { %v3096_v1 = vpop.f32.mrf.mxu0  ;;  %4541 = vmatmul.mubr.msk.bf16.gmra.mxu0 %vm2120_vm2, %v2848_v18  ;;  %4562 = vmatprep.subr.bf16.mxu0 %v3485_v50 }
 0x6ba   : > { %v4683_v58 = vpack.i.bf16 %v3096_v1, %v3093_v57  ;;  %4679 = vrot.lane.b32.xlu1 %v4678_v10, %s5141_s26  ;;  %4563 = vmatpush3.bf16.msra.mxu0 %v3485_v50  ;;  %v5087_v49 = vpop.eup %5086 }
 0x6bb   : > { %4568 = vmatprep.mubr.msk.bf16.mxu0 %vm2120_vm2, %v2853_v15  ;;  %4564 = vmatprep.subr.bf16.mxu0 %v3483_v32  ;;  %v5089_v12 = vpop.eup %5088  ;;  %v2822_v13 = vmul.f32 %v5087_v49, %v7017_v7 }
 0x6bc   : > { %4684 = vrot.lane.b32.xlu0 %v4683_v58, %s5141_s26  ;;  %v3481_v9 = vpop.permute.xlu1 %3480  ;;  %v2821_v31 = vmul.f32 %v5089_v12, %v6992_v45  ;;  %v5091_v62 = vpop.eup %5090  ;;  %4576 = vmatprep.subr.bf16.mxu1 %v4804_v46 }
 0x6bd   : > { %4557 = vmatmul.mubr.msk.bf16.gmra.mxu1 %vm2120_vm2, %v2852_v28  ;;  %v5093_v6 = vpop.eup %5092  ;;  %v2824_v7 = vmul.f32 %v5091_v62, %v7010_v33 }
 0x6be   : > { %v4494_v59 = vpop.f32.mrf.mxu0  ;;  %4565 = vmatpush3.bf16.msra.mxu0 %v3483_v32  ;;  %v2855_v8 = vpack.c.bf16 %v2822_v13, %v2821_v31  ;;  %v2823_v45 = vmul.f32 %v5093_v6, %v7000_v48  ;;  %4577 = vmatpush3.bf16.msra.mxu1 %v4804_v46 }
 0x6bf   : > { %4566 = vmatprep.subr.bf16.mxu0 %v3481_v9  ;;  %4578 = vmatprep.subr.bf16.mxu1 %v4805_v24 }
 0x6c0   : > { %v3109_v18 = vpop.f32.mrf.mxu0  ;;  %v2856_v25 = vpack.c.bf16 %v2824_v7, %v2823_v45 }
 0x6c2   : > { %v4495_v36 = vpop.f32.mrf.mxu0  ;;  %4567 = vmatpush3.bf16.msra.mxu0 %v3481_v9  ;;  %4579 = vmatpush3.bf16.msra.mxu1 %v4805_v24 }
 0x6c3   : > { %v4688_v4 = vpack.i.bf16 %v4495_v36, %v4494_v59 }
 0x6c4   : > { %v3112_v43 = vpop.f32.mrf.mxu0 }
 0x6c5   : > { %v4693_v60 = vpack.i.bf16 %v3112_v43, %v3109_v18  ;;  %4689 = vrot.lane.b32.xlu1 %v4688_v4, %s5141_s26  ;;  %4569 = vmatmul.mubr.msk.bf16.vlgmr.msra.gmra.mxu0 %vm2120_vm2, %v2854_v22 }
 0x6c6   : > { %4572 = vmatprep.mubr.msk.bf16.mxu0 %vm2120_vm2, %v2855_v8 }
 0x6c7   : > { %4694 = vrot.lane.b32.xlu0 %v4693_v60, %s5141_s26 }
 0x6cd   : > { %v4522_v28 = vpop.f32.mrf.mxu1  ;;  %4573 = vmatmul.mubr.msk.bf16.gmra.mxu0 %vm2120_vm2, %v2856_v25 }
 0x6cf   : > { %v3271_v20 = vpop.f32.mrf.mxu1 }
 0x6d1   : > { %v4523_v16 = vpop.f32.mrf.mxu1 }
 0x6d2   : > { %v4698_v41 = vpack.i.bf16 %v4523_v16, %v4522_v28  ;;  %v4506_v47 = vpop.f32.mrf.mxu0 }
 0x6d3   : > { %v3274_v35 = vpop.f32.mrf.mxu1 }
 0x6d4   : > { %v4708_v37 = vpack.i.bf16 %v3274_v35, %v3271_v20  ;;  %v3182_v22 = vpop.f32.mrf.mxu0  ;;  %4699 = vrot.lane.b32.xlu1 %v4698_v41, %s5142_s23 }
 0x6d6   : > { %v4507_v14 = vpop.f32.mrf.mxu0  ;;  %4709 = vrot.lane.b32.xlu0 %v4708_v37, %s5142_s23 }
 0x6d7   : > { %v4703_v33 = vpack.i.bf16 %v4507_v14, %v4506_v47 }
 0x6d8   : > { %v3185_v11 = vpop.f32.mrf.mxu0 }
 0x6d9   : > { %v4713_v48 = vpack.i.bf16 %v3185_v11, %v3182_v22  ;;  %4704 = vrot.lane.b32.xlu1 %v4703_v33, %s5141_s26 }
 0x6da   : > { %v4510_v55 = vpop.f32.mrf.mxu0 }
 0x6db   : > { %4714 = vrot.lane.b32.xlu0 %v4713_v48, %s5141_s26 }
 0x6dc   : > { %v3198_v40 = vpop.f32.mrf.mxu0 }
 0x6de   : > { %v4511_v57 = vpop.f32.mrf.mxu0 }
 0x6df   : > { %v4526_v38 = vpop.f32.mrf.mxu1  ;;  %v4763_v25 = vpack.i.bf16 %v4511_v57, %v4510_v55 }
 0x6e0   : > { %v3201_v52 = vpop.f32.mrf.mxu0 }
 0x6e1   : > { %v3287_v56 = vpop.f32.mrf.mxu1  ;;  %v4758_v20 = vpack.i.bf16 %v3201_v52, %v3198_v40 }
 0x6e3   : > { %v4527_v53 = vpop.f32.mrf.mxu1 }
 0x6e4   : > { %v4718_v21 = vpack.i.bf16 %v4527_v53, %v4526_v38 }
 0x6e5   : > { %v3290_v44 = vpop.f32.mrf.mxu1 }
 0x6e6   : > { %v4723_v30 = vpack.i.bf16 %v3290_v44, %v3287_v56  ;;  %4719 = vrot.lane.b32.xlu1 %v4718_v21, %s5142_s23 }
 0x6e8   : > { %4724 = vrot.lane.b32.xlu0 %v4723_v30, %s5142_s23 }
 0x72c   : > { %v4680_v53 = vpop.permute.xlu1 %4679 }
 0x72d   : > { %v4681_v24 = vunpack.i.l.bf16 %v4680_v53 }
 0x72e   : > { %v4685_v21 = vpop.permute.xlu0 %4684 }
 0x737   : > { %v4690_v44 = vpop.permute.xlu1 %4689 }
 0x739   : > { %v4695_v30 = vpop.permute.xlu0 %4694 }
 0x746   : > { %v4700_v46 = vpop.permute.xlu1 %4699 }
 0x748   : > { %v4710_v55 = vpop.permute.xlu0 %4709 }
 0x74b   : > { %v7190_v40 = vpop.permute.xlu1 %4704 }
 0x74d   : > { %v7192_v57 = vpop.permute.xlu0 %4714 }
 0x758   : > { %v4720_v52 = vpop.permute.xlu1 %4719 }
 0x771   : > { %v4538_v26 = vpop.f32.mrf.mxu0 }
 0x773   : > { %v3360_v10 = vpop.f32.mrf.mxu0 }
 0x775   : > { %v4539_v50 = vpop.f32.mrf.mxu0  ;;  %v4554_v1 = vpop.f32.mrf.mxu1 }
 0x776   : > { %v4733_v36 = vpack.i.bf16 %v4539_v50, %v4538_v26  ;;  %v4682_v26 = vunpack.i.h.bf16 %v4680_v53  ;;  %v4686_v50 = vunpack.i.l.bf16 %v4685_v21 }
 0x777   : > { %v3363_v15 = vpop.f32.mrf.mxu0  ;;  %v3449_v32 = vpop.f32.mrf.mxu1 }
 0x778   : > { %v4743_v62 = vpack.i.bf16 %v3363_v15, %v3360_v10  ;;  %v4687_v10 = vunpack.i.h.bf16 %v4685_v21  ;;  %v4702_v15 = vunpack.i.h.bf16 %v4700_v46 }
 0x779   : > { %v4542_v58 = vpop.f32.mrf.mxu0  ;;  %v4555_v49 = vpop.f32.mrf.mxu1 }
 0x77a   : > { %v4728_v9 = vpack.i.bf16 %v4555_v49, %v4554_v1  ;;  %v4725_v1 = vpop.permute.xlu0 %4724  ;;  %v4711_v49 = vunpack.i.l.bf16 %v4710_v55 }
 0x77b   : > { %v3376_v59 = vpop.f32.mrf.mxu0  ;;  %v3452_v12 = vpop.f32.mrf.mxu1 }
 0x77c   : > { %v4738_v18 = vpack.i.bf16 %v3452_v12, %v3449_v32  ;;  %4729 = vrot.lane.b32.xlu1 %v4728_v9, %s5143_s29  ;;  %v4701_v32 = vunpack.i.l.bf16 %v4700_v46 }
 0x77d   : > { %v4558_v13 = vpop.f32.mrf.mxu1  ;;  %v4543_v31 = vpop.f32.mrf.mxu0 }
 0x77e   : > { %4739 = vrot.lane.b32.xlu0 %v4738_v18, %s5143_s29  ;;  %v4783_v22 = vpack.i.bf16 %v4543_v31, %v4542_v58  ;;  %v4712_v58 = vunpack.i.h.bf16 %v4710_v55  ;;  %v3764_v18 = vsel %vm1351_vm1, %v7095_v42, %v4682_v26  ;;  %v3761_v31 = vsel %vm1351_vm1, %v7091_v29, %v4686_v50 }
 0x77f   : > { %v3465_v4 = vpop.f32.mrf.mxu1  ;;  %v3379_v60 = vpop.f32.mrf.mxu0 }
 0x780   : > { %4734 = vrot.lane.b32.xlu1 %v4733_v36, %s5142_s23  ;;  %v4778_v33 = vpack.i.bf16 %v3379_v60, %v3376_v59  ;;  %v3762_v36 = vsel %vm1351_vm1, %v7097_v19, %v4687_v10  ;;  %v4692_v19 = vunpack.i.h.bf16 %v4690_v44 }
 0x781   : > { %v4559_v43 = vpop.f32.mrf.mxu1  ;;  %v3779_v42 = vsel %vm3777_vm3, %v3762_v36, %v4712_v58  ;;  %v4716_v58 = vunpack.i.l.bf16 %v7192_v57 }
 0x782   : > { %v4748_v8 = vpack.i.bf16 %v4559_v43, %v4558_v13  ;;  %4744 = vrot.lane.b32.xlu0 %v4743_v62, %s5142_s23  ;;  %v3763_v13 = vsel %vm1351_vm1, %v7083_v5, %v4681_v24  ;;  %v3781_v62 = vsel %vm3777_vm3, %v3764_v18, %v4702_v15  ;;  %v4706_v15 = vunpack.i.l.bf16 %v7190_v40 }
 0x783   : > { %v3468_v6 = vpop.f32.mrf.mxu1  ;;  %v3780_v43 = vsel %vm3777_vm3, %v3763_v13, %v4701_v32  ;;  %v4717_v32 = vunpack.i.h.bf16 %v7192_v57 }
 0x784   : > { %v4753_v7 = vpack.i.bf16 %v3468_v6, %v3465_v4  ;;  %4749 = vrot.lane.b32.xlu1 %v4748_v8, %s5143_s29  ;;  %v3778_v6 = vsel %vm3777_vm3, %v3761_v31, %v4711_v49  ;;  %v3771_v57 = vsel %vm1351_vm1, %v7107_v63, %v4706_v15 }
 0x785   : > { %v4570_v45 = vpop.f32.mrf.mxu0 }
 0x786   : > { %4754 = vrot.lane.b32.xlu0 %v4753_v7, %s5143_s29 }
 0x787   : > { %v3538_v28 = vpop.f32.mrf.mxu0 }
 0x788   : > { %4764 = vrot.lane.b32.xlu1 %v4763_v25, %s5141_s26 }
 0x789   : > { %v4571_v16 = vpop.f32.mrf.mxu0 }
 0x78a   : > { %v4768_v41 = vpack.i.bf16 %v4571_v16, %v4570_v45  ;;  %4759 = vrot.lane.b32.xlu0 %v4758_v20, %s5141_s26  ;;  %v4697_v20 = vunpack.i.h.bf16 %v4695_v30  ;;  %v4696_v16 = vunpack.i.l.bf16 %v4695_v30 }
 0x78b   : > { %v3541_v47 = vpop.f32.mrf.mxu0 }
 0x78c   : > { %v4773_v35 = vpack.i.bf16 %v3541_v47, %v3538_v28  ;;  %4769 = vrot.lane.b32.xlu1 %v4768_v41, %s5143_s29  ;;  %v4691_v28 = vunpack.i.l.bf16 %v4690_v44  ;;  %v3766_v21 = vsel %vm1351_vm1, %v7105_v34, %v4697_v20  ;;  %v3765_v44 = vsel %vm1351_vm1, %v7101_v2, %v4696_v16 }
 0x78d   : > { %v4574_v37 = vpop.f32.mrf.mxu0  ;;  %v4707_v34 = vunpack.i.h.bf16 %v7190_v40 }
 0x78e   : > { %4774 = vrot.lane.b32.xlu0 %v4773_v35, %s5143_s29  ;;  %v4722_v35 = vunpack.i.h.bf16 %v4720_v52  ;;  %v3767_v53 = vsel %vm1351_vm1, %v7099_v51, %v4691_v28 }
 0x78f   : > { %v3554_v14 = vpop.f32.mrf.mxu0  ;;  %v3772_v40 = vsel %vm1351_vm1, %v7111_v54, %v4707_v34 }
 0x790   : > { %4784 = vrot.lane.b32.xlu1 %v4783_v22, %s5142_s23 }
 0x791   : > { %v4575_v11 = vpop.f32.mrf.mxu0 }
 0x792   : > { %v4793_v48 = vpack.i.bf16 %v4575_v11, %v4574_v37  ;;  %4779 = vrot.lane.b32.xlu0 %v4778_v33, %s5142_s23  ;;  %v4721_v37 = vunpack.i.l.bf16 %v4720_v52  ;;  %v4726_v33 = vunpack.i.l.bf16 %v4725_v1 }
 0x793   : > { %v3557_v38 = vpop.f32.mrf.mxu0 }
 0x794   : > { %v4788_v56 = vpack.i.bf16 %v3557_v38, %v3554_v14  ;;  %4794 = vrot.lane.b32.xlu1 %v4793_v48, %s5143_s29  ;;  %v4727_v14 = vunpack.i.h.bf16 %v4725_v1  ;;  %v3784_v55 = vsel %vm3777_vm3, %v3767_v53, %v4721_v37  ;;  %v3782_v24 = vsel %vm3777_vm3, %v3765_v44, %v4726_v33 }
 0x796   : > { %4789 = vrot.lane.b32.xlu0 %v4788_v56, %s5143_s29  ;;  %v3768_v56 = vsel %vm1351_vm1, %v7103_v61, %v4692_v19  ;;  %v3783_v61 = vsel %vm3777_vm3, %v3766_v21, %v4727_v14 }
 0x797   : > { %v3785_v46 = vsel %vm3777_vm3, %v3768_v56, %v4722_v35 }
 0x7ee   : > { %v4730_v9 = vpop.permute.xlu1 %4729 }
 0x7ef   : > { %v4732_v59 = vunpack.i.h.bf16 %v4730_v9  ;;  %v4731_v12 = vunpack.i.l.bf16 %v4730_v9 }
 0x7f0   : > { %v4740_v4 = vpop.permute.xlu0 %4739 }
 0x7f1   : > { %v4742_v8 = vunpack.i.h.bf16 %v4740_v4  ;;  %v4741_v60 = vunpack.i.l.bf16 %v4740_v4  ;;  %v3798_v7 = vsel %vm3794_vm4, %v3781_v62, %v4732_v59  ;;  %v3797_v5 = vsel %vm3794_vm4, %v3780_v43, %v4731_v12 }
 0x7f2   : > { %v4735_v45 = vpop.permute.xlu1 %4734  ;;  %v3812_v22 = vpack.c.bf16 %v3798_v7, %v3797_v5  ;;  %v3770_v43 = vsel %vm1351_vm1, %v7114_v0, %v4717_v32 }
 0x7f3   : > { %v3795_v25 = vsel %vm3794_vm4, %v3778_v6, %v4741_v60  ;;  %v3796_v29 = vsel %vm3794_vm4, %v3779_v42, %v4742_v8  ;;  %v4737_v59 = vunpack.i.h.bf16 %v4735_v45  ;;  %v4736_v12 = vunpack.i.l.bf16 %v4735_v45 }
 0x7f4   : > { %v3811_v41 = vpack.c.bf16 %v3796_v29, %v3795_v25  ;;  %v4745_v47 = vpop.permute.xlu0 %4744  ;;  %v3769_v8 = vsel %vm1351_vm1, %v7109_v17, %v4716_v58 }
 0x7f5   : > { %v4747_v13 = vunpack.i.h.bf16 %v4745_v47  ;;  %v4746_v36 = vunpack.i.l.bf16 %v4745_v47  ;;  %v3789_v6 = vsel %vm3777_vm3, %v3772_v40, %v4737_v59  ;;  %v3788_v42 = vsel %vm3777_vm3, %v3771_v57, %v4736_v12 }
 0x7f6   : > { %v4750_v11 = vpop.permute.xlu1 %4749  ;;  %4580 = vmatprep.mubr.msk.bf16.mxu1 %vm394_vm0, %v3811_v41 }
 0x7f7   : > { %v4752_v48 = vunpack.i.h.bf16 %v4750_v11  ;;  %v4751_v38 = vunpack.i.l.bf16 %v4750_v11  ;;  %4581 = vmatmul.mubr.msk.bf16.vlgmr.msra.gmra.mxu1 %vm394_vm0, %v3812_v22  ;;  %v3786_v45 = vsel %vm3777_vm3, %v3769_v8, %v4746_v36  ;;  %v3787_v54 = vsel %vm3777_vm3, %v3770_v43, %v4747_v13 }
 0x7f8   : > { %v4755_v30 = vpop.permute.xlu0 %4754 }
 0x7f9   : > { %v4757_v52 = vunpack.i.h.bf16 %v4755_v30  ;;  %v4756_v26 = vunpack.i.l.bf16 %v4755_v30  ;;  %v3802_v10 = vsel %vm3794_vm4, %v3785_v46, %v4752_v48  ;;  %v3801_v51 = vsel %vm3794_vm4, %v3784_v55, %v4751_v38 }
 0x7fa   : > { %v4765_v50 = vpop.permute.xlu1 %4764  ;;  %v3814_v18 = vpack.c.bf16 %v3802_v10, %v3801_v51 }
 0x7fb   : > { %v3799_v2 = vsel %vm3794_vm4, %v3782_v24, %v4756_v26  ;;  %v3800_v1 = vsel %vm3794_vm4, %v3783_v61, %v4757_v52  ;;  %v4767_v0 = vunpack.i.h.bf16 %v4765_v50  ;;  %v4766_v28 = vunpack.i.l.bf16 %v4765_v50  ;;  %v4169_v50 = vld [vmem:[%s7333_s6] ss:$0 sm:$0xff] }
 0x7fc   : > { %v3813_v49 = vpack.c.bf16 %v3800_v1, %v3799_v2  ;;  %v4760_v9 = vpop.permute.xlu0 %4759 }
 0x7fd   : > { %v4762_v20 = vunpack.i.h.bf16 %v4760_v9  ;;  %v4761_v16 = vunpack.i.l.bf16 %v4760_v9  ;;  %v3776_v56 = vsel %vm1351_vm1, %v7121_v3, %v4767_v0  ;;  %v3775_v53 = vsel %vm1351_vm1, %v7116_v23, %v4766_v28 }
 0x7fe   : > { %v4770_v31 = vpop.permute.xlu1 %4769  ;;  %4584 = vmatprep.mubr.msk.bf16.mxu1 %vm394_vm0, %v3813_v49 }
 0x7ff   : > { %v4772_v4 = vunpack.i.h.bf16 %v4770_v31  ;;  %v4771_v62 = vunpack.i.l.bf16 %v4770_v31  ;;  %4585 = vmatmul.mubr.msk.bf16.gmra.mxu1 %vm394_vm0, %v3814_v18  ;;  %v3774_v21 = vsel %vm1351_vm1, %v7124_v39, %v4762_v20  ;;  %v3773_v44 = vsel %vm1351_vm1, %v7118_v27, %v4761_v16 }
 0x800   : > { %v4775_v60 = vpop.permute.xlu0 %4774 }
 0x801   : > { %v4777_v7 = vunpack.i.h.bf16 %v4775_v60  ;;  %v4776_v5 = vunpack.i.l.bf16 %v4775_v60  ;;  %v3806_v19 = vsel %vm3794_vm4, %v3789_v6, %v4772_v4  ;;  %v3805_v63 = vsel %vm3794_vm4, %v3788_v42, %v4771_v62 }
 0x802   : > { %v4785_v25 = vpop.permute.xlu1 %4784  ;;  %v3816_v35 = vpack.c.bf16 %v3806_v19, %v3805_v63 }
 0x803   : > { %v3803_v29 = vsel %vm3794_vm4, %v3786_v45, %v4776_v5  ;;  %v3804_v17 = vsel %vm3794_vm4, %v3787_v54, %v4777_v7  ;;  %v4787_v37 = vunpack.i.h.bf16 %v4785_v25  ;;  %v4786_v22 = vunpack.i.l.bf16 %v4785_v25 }
 0x804   : > { %v3815_v41 = vpack.c.bf16 %v3804_v17, %v3803_v29  ;;  %v4780_v47 = vpop.permute.xlu0 %4779 }
 0x805   : > { %v4782_v14 = vunpack.i.h.bf16 %v4780_v47  ;;  %v4781_v33 = vunpack.i.l.bf16 %v4780_v47  ;;  %v3793_v46 = vsel %vm3777_vm3, %v3776_v56, %v4787_v37  ;;  %v3792_v55 = vsel %vm3777_vm3, %v3775_v53, %v4786_v22 }
 0x806   : > { %v4795_v11 = vpop.permute.xlu1 %4794  ;;  %4588 = vmatprep.mubr.msk.bf16.mxu1 %vm394_vm0, %v3815_v41 }
 0x807   : > { %v4797_v48 = vunpack.i.h.bf16 %v4795_v11  ;;  %v4796_v38 = vunpack.i.l.bf16 %v4795_v11  ;;  %4589 = vmatmul.mubr.msk.bf16.gmra.mxu1 %vm394_vm0, %v3816_v35  ;;  %v3790_v24 = vsel %vm3777_vm3, %v3773_v44, %v4781_v33  ;;  %v3791_v3 = vsel %vm3777_vm3, %v3774_v21, %v4782_v14 }
 0x808   : > { %v4790_v30 = vpop.permute.xlu0 %4789 }
 0x809   : > { %v4792_v52 = vunpack.i.h.bf16 %v4790_v30  ;;  %v4791_v26 = vunpack.i.l.bf16 %v4790_v30  ;;  %v3810_v23 = vsel %vm3794_vm4, %v3793_v46, %v4797_v48  ;;  %v3809_v61 = vsel %vm3794_vm4, %v3792_v55, %v4796_v38 }
 0x80a   : > { %v3818_v51 = vpack.c.bf16 %v3810_v23, %v3809_v61 }
 0x80b   : > { %v3807_v39 = vsel %vm3794_vm4, %v3790_v24, %v4791_v26  ;;  %v3808_v27 = vsel %vm3794_vm4, %v3791_v3, %v4792_v52 }
 0x80c   : > { %v3817_v10 = vpack.c.bf16 %v3808_v27, %v3807_v39 }
 0x80e   : > { %4592 = vmatprep.mubr.msk.bf16.mxu1 %vm394_vm0, %v3817_v10 }
 0x80f   : > { %4593 = vmatmul.mubr.msk.bf16.gmra.mxu1 %vm394_vm0, %v3818_v51 }
 0x8b7   : > { %v4582_v34 = vpop.f32.mrf.mxu1 }
 0x8b8   : > { %v3909_v2 = vadd.f32 %v4582_v34, %v4169_v50 }
 0x8b9   : > { %v3900_v1 = vpop.f32.mrf.mxu1 }
 0x8ba   : > { %3967 = vst.msk [vmem:[%s7278_s17 + $0x20] sm:$0xff] %vm394_vm0, %v3909_v2  ;;  %v3901_v15 = vadd.f32 %v4169_v50, %v3900_v1 }
 0x8bb   : > { %v4583_v32 = vpop.f32.mrf.mxu1 }
 0x8bc   : > { %3963 = vst.msk [vmem:[%s7278_s17] sm:$0xff] %vm394_vm0, %v3901_v15  ;;  %v3912_v58 = vadd.f32 %v4583_v32, %v4169_v50 }
 0x8bd   : > { %v3903_v49 = vpop.f32.mrf.mxu1 }
 0x8be   : > { %3969 = vst.msk [vmem:[%s7278_s17 + $0x30] sm:$0xff] %vm394_vm0, %v3912_v58  ;;  %v3904_v9 = vadd.f32 %v4169_v50, %v3903_v49 }
 0x8bf   : > { %v4586_v59 = vpop.f32.mrf.mxu1 }
 0x8c0   : > { %3965 = vst.msk [vmem:[%s7278_s17 + $0x10] sm:$0xff] %vm394_vm0, %v3904_v9  ;;  %v3925_v12 = vadd.f32 %v4586_v59, %v4169_v50 }
 0x8c1   : > { %v3916_v18 = vpop.f32.mrf.mxu1 }
 0x8c2   : > { %3975 = vst.msk [vmem:[%s7278_s17 + $0x60] sm:$0xff] %vm394_vm0, %v3925_v12  ;;  %v3917_v13 = vadd.f32 %v4169_v50, %v3916_v18 }
 0x8c3   : > { %v4587_v36 = vpop.f32.mrf.mxu1 }
 0x8c4   : > { %3971 = vst.msk [vmem:[%s7278_s17 + $0x40] sm:$0xff] %vm394_vm0, %v3917_v13  ;;  %v3928_v31 = vadd.f32 %v4587_v36, %v4169_v50 }
 0x8c5   : > { %v3919_v4 = vpop.f32.mrf.mxu1 }
 0x8c6   : > { %3977 = vst.msk [vmem:[%s7278_s17 + $0x70] sm:$0xff] %vm394_vm0, %v3928_v31  ;;  %v3920_v62 = vadd.f32 %v4169_v50, %v3919_v4 }
 0x8c7   : > { %v4590_v40 = vpop.f32.mrf.mxu1 }
 0x8c8   : > { %3973 = vst.msk [vmem:[%s7278_s17 + $0x50] sm:$0xff] %vm394_vm0, %v3920_v62  ;;  %v3941_v57 = vadd.f32 %v4590_v40, %v4169_v50 }
 0x8c9   : > { %v3932_v43 = vpop.f32.mrf.mxu1 }
 0x8ca   : > { %3968 = vst.msk [vmem:[%s7278_s17 + $0x28] sm:$0xff] %vm394_vm0, %v3941_v57  ;;  %v3933_v8 = vadd.f32 %v4169_v50, %v3932_v43 }
 0x8cb   : > { %v4591_v60 = vpop.f32.mrf.mxu1 }
 0x8cc   : > { %3964 = vst.msk [vmem:[%s7278_s17 + $0x8] sm:$0xff] %vm394_vm0, %v3933_v8  ;;  %v3944_v6 = vadd.f32 %v4591_v60, %v4169_v50 }
 0x8cd   : > { %v3935_v42 = vpop.f32.mrf.mxu1 }
 0x8ce   : > { %3970 = vst.msk [vmem:[%s7278_s17 + $0x38] sm:$0xff] %vm394_vm0, %v3944_v6  ;;  %v3936_v7 = vadd.f32 %v4169_v50, %v3935_v42 }
 0x8cf   : > { %v4594_v5 = vpop.f32.mrf.mxu1 }
 0x8d0   : > { %3966 = vst.msk [vmem:[%s7278_s17 + $0x18] sm:$0xff] %vm394_vm0, %v3936_v7  ;;  %v3957_v45 = vadd.f32 %v4594_v5, %v4169_v50 }
 0x8d1   : > { %v3948_v54 = vpop.f32.mrf.mxu1 }
 0x8d2   : > { %3976 = vst.msk [vmem:[%s7278_s17 + $0x68] sm:$0xff] %vm394_vm0, %v3957_v45  ;;  %v3949_v19 = vadd.f32 %v4169_v50, %v3948_v54 }
 0x8d3   : > { %v4595_v63 = vpop.f32.mrf.mxu1 }
 0x8d4   : > { %3972 = vst.msk [vmem:[%s7278_s17 + $0x48] sm:$0xff] %vm394_vm0, %v3949_v19  ;;  %v3960_v25 = vadd.f32 %v4595_v63, %v4169_v50 }
 0x8d5   : > { %v3951_v0 = vpop.f32.mrf.mxu1 }
 0x8d6   : > { %3978 = vst.msk [vmem:[%s7278_s17 + $0x78] sm:$0xff] %vm394_vm0, %v3960_v25  ;;  %v3952_v29 = vadd.f32 %v4169_v50, %v3951_v0 }
 0x8d8   : > { %3974 = vst.msk [vmem:[%s7278_s17 + $0x58] sm:$0xff] %vm394_vm0, %v3952_v29 }
 0x8d9 PF: > { %s19_s13 = sadd.s32 1, %s5132_s13   ;;  %s7456_s30 = smov %s5124_s11 }
 0x8da   : > { %p16_p7 = scmp.ge.s32.totalorder %s19_s13, 6   ;;  %s7457_s10 = smov %s5128_s12 }
 0x8db   : > { %s7458_s11 = smov %s7461_s14  ;;  %s7459_s12 = smov %s7465_s15 }
 0x8dc   :  { %18 = sbr.rel (!%p16_p7) target bundleno = 3 (0x3), region = 86 }

// kernel: swin_decoder_stage_forward.6
= control target key start
LH: loop header
LB: loop body
LE: loop exit
PB: predicated region body
PF: predicated region fallthrough
CT: control target
= control target key end

     0   :  { %s5463_s13 = smov 0   ;;  %s5465_s14 = smov 0   ;;  %s7844_s0 = inlined_call_operand.vmem [shape: f32[2,16,16,32], index: 0, kind: input, shape index: {}]   ;;  %s7845_s1 = inlined_call_operand.vmem [shape: s32[2,2,64], index: 1, kind: input, shape index: {}]   ;;  %s7846_s2 = inlined_call_operand.vmem [shape: f32[1,32], index: 2, kind: input, shape index: {}]   ;;  %s7847_s3 = inlined_call_operand.vmem [shape: f32[1,32], index: 3, kind: input, shape index: {}]   ;;  %s7848_s4 = inlined_call_operand.vmem [shape: bf16[32,160], index: 4, kind: input, shape index: {}]   ;;  %s7849_s5 = inlined_call_operand.vmem [shape: f32[1,160], index: 5, kind: input, shape index: {}]   ;;  %s7850_s6 = inlined_call_operand.vmem [shape: bf16[32,32], index: 6, kind: input, shape index: {}]   ;;  %s7851_s7 = inlined_call_operand.vmem [shape: f32[1,32], index: 7, kind: input, shape index: {}]   ;;  %s7852_s8 = inlined_call_operand.vmem [shape: f32[64,32], index: 8, kind: input, shape index: {}]   ;;  %s7853_s9 = inlined_call_operand.vmem [shape: f32[64,32], index: 9, kind: input, shape index: {}]   ;;  %s7854_s10 = inlined_call_operand.vmem [shape: f32[2,16,16,32], index: 10, kind: output, shape index: {}]  }
   0x1   :  { %s5467_s15 = smov 0   ;;  %s5469_s16 = smov 0  }
   0x2   :  { %s5471_s17 = smov 0  }
   0x3 LB: > { %s29_s18 = sadd.s32 1, %s5386_s15  ;;  %s32_s19 = sadd.s32 1, %s5390_s16  ;;  %s5394_s17 = sphi %s5471_s17, %s20_s17   ;;  %s5390_s16 = sphi %s5469_s16, %s8052_s16   ;;  %s5386_s15 = sphi %s5467_s15, %s8051_s15   ;;  %s5382_s14 = sphi %s5465_s14, %s8050_s14   ;;  %s5378_s13 = sphi %s5463_s13, %s8049_s13  }
   0x4   : > { %p30_p0 = scmp.ge.s32.totalorder %s29_s18, 2  ;;  %p4335_p1 = scmp.ge.s32.totalorder %s5394_s17, 1 }
   0x5   : > { %p343_p2 = scmp.lt.s32.totalorder %s5394_s17, 5 }
   0x6   : > { %s8054_s18 = smov (%p30_p0, %s29_s18), 0  ;;  %s8056_s19 = smov (!%p30_p0, %s32_s19), %s5390_s16 }
   0x7   : > { %p344_p3 = pnand %p4335_p1, %p343_p2  ;;  %p34_p4 = scmp.ge.s32.totalorder %s8056_s19, 2 }
   0x9   : > { %s8058_s19 = smov (%p34_p4, %s8056_s19), 0  ;;  %347 = sbr.rel (%p344_p3) target bundleno = 2292 (0x8f4), region = 60 }
   0xe   : > { %s4336_s20 = sshll.u32 %s5378_s13, 3  ;;  %p396_p5 = scmp.lt.s32.totalorder %s5382_s14, 1  ;;  %vm438_vm0 = vcmask 261120   ;;  %vm1395_vm8 = vcmask 64512   ;;  %vm2361_vm11 = vcmask 523264  }
   0xf   : > { %p398_p6 = scmp.lt.s32.totalorder %s4336_s20, 15  ;;  %s5397_s28 = smov 32  }
  0x10   : > { %s8060_s14 = smov (!%p396_p5, %s5382_s14), 1  ;;  %p406_p7 = scmp.lt.s32.totalorder %s5378_s13, 1 }
  0x11   : > { %s8062_s20 = smov (!%p398_p6, %s4336_s20), 15  ;;  %s4338_s21 = sshll.u32 %s8060_s14, 5 }
  0x12   : > { %s4337_s22 = sshll.u32 %s8062_s20, 1  ;;  %s8064_s13 = smov (!%p406_p7, %s5378_s13), 1 }
  0x13   : > { %s5496_s23 = sadd.s32 %s4338_s21, %s4337_s22  ;;  %s4340_s14 = sshll.u32 %s8064_s13, 1 }
  0x14   : > { %s4339_s24 = sshll.u32 %s5496_s23, 3  ;;  %s409_s29 = scalar_lea.vmem %s7845_s1, %s4340_s14 }
  0x15   : > { %s5504_s27 = scalar_lea.vmem %s7844_s0, %s4339_s24  ;;  %s5399_s25 = smov 96  }
  0x16   : > { %v422_v0 = vld [vmem:[%s5504_s27] sm:$0xff]  ;;  %v424_v2 = vld [vmem:[%s5504_s27 + $0x10] sm:$0xff]  ;;  %v5529_v16 = vld [vmem:[%s5504_s27 + $0x8] sm:$0xff]  ;;  %s5401_s14 = smov 120   ;;  %s5402_s20 = smov 112  }
  0x17   : > { %v426_v1 = vld [vmem:[%s5504_s27 + $0x20] sm:$0xff]  ;;  %v439_v3 = vsel %vm438_vm0, %v422_v0, 0.0  ;;  %v428_v5 = vld [vmem:[%s5504_s27 + $0x30] sm:$0xff]  ;;  %v442_v6 = vsel %vm438_vm0, %v424_v2, 0.0  ;;  %v5532_v17 = vld [vmem:[%s5504_s27 + $0x18] sm:$0xff]  ;;  %v463_v18 = vsel %vm438_vm0, %v5529_v16, 0.0 }
  0x18   : > { %v445_v4 = vsel %vm438_vm0, %v426_v1, 0.0  ;;  %440 = vadd.xlane.f32.xlu0 %v439_v3  ;;  %v448_v7 = vsel %vm438_vm0, %v428_v5, 0.0  ;;  %v430_v8 = vld [vmem:[%s5504_s27 + $0x40] sm:$0xff]  ;;  %v432_v9 = vld [vmem:[%s5504_s27 + $0x50] sm:$0xff]  ;;  %v466_v19 = vsel %vm438_vm0, %v5532_v17, 0.0  ;;  %v5539_v20 = vld [vmem:[%s5504_s27 + $0x28] sm:$0xff] }
  0x19   : > { %446 = vadd.xlane.f32.xlu1 %v445_v4  ;;  %v451_v10 = vsel %vm438_vm0, %v430_v8, 0.0  ;;  %v454_v11 = vsel %vm438_vm0, %v432_v9, 0.0  ;;  %v5519_v12 = vld [vmem:[%s5504_s27 + $0x60] sm:$0xff]  ;;  %v5522_v13 = vld [vmem:[%s5504_s27 + $0x70] sm:$0xff]  ;;  %v5542_v21 = vld [vmem:[%s5504_s27 + $0x38] sm:$0xff]  ;;  %v469_v22 = vsel %vm438_vm0, %v5539_v20, 0.0 }
  0x1a   : > { %v457_v14 = vsel %vm438_vm0, %v5519_v12, 0.0  ;;  %v460_v15 = vsel %vm438_vm0, %v5522_v13, 0.0  ;;  %v472_v23 = vsel %vm438_vm0, %v5542_v21, 0.0  ;;  %v5549_v24 = vld [vmem:[%s5504_s27 + $0x48] sm:$0xff]  ;;  %v5552_v25 = vld [vmem:[%s5504_s27 + $0x58] sm:$0xff]  ;;  %s5403_s21 = smov 64  }
  0x1b   : > { %v475_v26 = vsel %vm438_vm0, %v5549_v24, 0.0  ;;  %v478_v27 = vsel %vm438_vm0, %v5552_v25, 0.0  ;;  %v5559_v28 = vld [vmem:[%s5504_s27 + $0x68] sm:$0xff]  ;;  %v5562_v29 = vld [vmem:[%s5504_s27 + $0x78] sm:$0xff]  ;;  %s5407_s30 = smov 24   ;;  %s7795_s27 = scalar_lea.vmem %s7854_s10, %s4339_s24 }
  0x1c   : > { %443 = vadd.xlane.f32.xlu0 %v442_v6  ;;  %v481_v30 = vsel %vm438_vm0, %v5559_v28, 0.0  ;;  %v484_v31 = vsel %vm438_vm0, %v5562_v29, 0.0 }
  0x1d   : > { %449 = vadd.xlane.f32.xlu1 %v448_v7 }
  0x20   : > { %452 = vadd.xlane.f32.xlu0 %v451_v10 }
  0x21   : > { %455 = vadd.xlane.f32.xlu1 %v454_v11 }
  0x24   : > { %458 = vadd.xlane.f32.xlu0 %v457_v14 }
  0x25   : > { %461 = vadd.xlane.f32.xlu1 %v460_v15 }
  0x28   : > { %464 = vadd.xlane.f32.xlu0 %v463_v18 }
  0x29   : > { %467 = vadd.xlane.f32.xlu1 %v466_v19 }
  0x2c   : > { %470 = vadd.xlane.f32.xlu0 %v469_v22 }
  0x2d   : > { %473 = vadd.xlane.f32.xlu1 %v472_v23 }
  0x30   : > { %476 = vadd.xlane.f32.xlu0 %v475_v26 }
  0x31   : > { %479 = vadd.xlane.f32.xlu1 %v478_v27 }
  0x34   : > { %482 = vadd.xlane.f32.xlu0 %v481_v30 }
  0x35   : > { %485 = vadd.xlane.f32.xlu1 %v484_v31 }
  0xa1   : > { %v441_v32 = vpop.xlane.xlu0 %440 }
  0xa2   : > { %v447_v33 = vpop.xlane.xlu1 %446  ;;  %v488_v34 = vmul.f32 0.03125, %v441_v32 }
  0xa3   : > { %v490_v35 = vmul.f32 0.03125, %v447_v33 }
  0xa4   : > { %v5568_v36 = vsub.f32 %v422_v0, %v488_v34 }
  0xa5   : > { %v5570_v37 = vsub.f32 %v426_v1, %v490_v35  ;;  %v444_v38 = vpop.xlane.xlu0 %443 }
  0xa6   : > { %v450_v39 = vpop.xlane.xlu1 %449  ;;  %v489_v40 = vmul.f32 0.03125, %v444_v38  ;;  %v520_v42 = vmul.f32 %v5568_v36, %v5568_v36 }
  0xa7   : > { %v491_v41 = vmul.f32 0.03125, %v450_v39  ;;  %v522_v43 = vmul.f32 %v5570_v37, %v5570_v37 }
  0xa8   : > { %v5576_v44 = vsub.f32 %v424_v2, %v489_v40  ;;  %v536_v46 = vsel %vm438_vm0, %v520_v42, 0.0 }
  0xa9   : > { %v5578_v45 = vsub.f32 %v428_v5, %v491_v41  ;;  %537 = vadd.xlane.f32.xlu0 %v536_v46  ;;  %v453_v47 = vpop.xlane.xlu0 %452  ;;  %v542_v49 = vsel %vm438_vm0, %v522_v43, 0.0 }
  0xaa   : > { %v456_v48 = vpop.xlane.xlu1 %455  ;;  %v492_v50 = vmul.f32 0.03125, %v453_v47  ;;  %v521_v52 = vmul.f32 %v5576_v44, %v5576_v44 }
  0xab   : > { %v493_v51 = vmul.f32 0.03125, %v456_v48  ;;  %v523_v53 = vmul.f32 %v5578_v45, %v5578_v45 }
  0xac   : > { %v5586_v54 = vsub.f32 %v430_v8, %v492_v50  ;;  %v539_v56 = vsel %vm438_vm0, %v521_v52, 0.0 }
  0xad   : > { %v5588_v55 = vsub.f32 %v432_v9, %v493_v51  ;;  %543 = vadd.xlane.f32.xlu0 %v542_v49  ;;  %540 = vadd.xlane.f32.xlu1 %v539_v56  ;;  %v459_v57 = vpop.xlane.xlu0 %458  ;;  %v545_v59 = vsel %vm438_vm0, %v523_v53, 0.0  ;;  %v5056_v53 = vld [vmem:[%s7848_s4 + $0x10] ss:$8 sps:$4 sm:$0xff]   ;;  %v5057_v56 = vld [vmem:[%s7848_s4 + $0x4] ss:$8 sps:$4 sm:$0xff]  }
  0xae   : > { %v462_v58 = vpop.xlane.xlu1 %461  ;;  %v494_v60 = vmul.f32 0.03125, %v459_v57  ;;  %v524_v62 = vmul.f32 %v5586_v54, %v5586_v54  ;;  %v5059_v57 = vld [vmem:[%s7848_s4] ss:$8 sps:$4 sm:$0xff]  }
  0xaf   : > { %v495_v61 = vmul.f32 0.03125, %v462_v58  ;;  %v525_v63 = vmul.f32 %v5588_v55, %v5588_v55  ;;  %v5396_v58 = vmov 0  }
  0xb0   : > { %v5597_v0 = vsub.f32 %v5519_v12, %v494_v60  ;;  %v548_v2 = vsel %vm438_vm0, %v524_v62, 0.0  ;;  %794 = vmatprep.mubr.bf16.mxu0 %v5396_v58  ;;  %v5679_v60 = vld [vmem:[%s7852_s8 + $0x38] sm:$0xff]  ;;  %v5689_v62 = vld [vmem:[%s7852_s8 + $0x20] sm:$0xff] }
  0xb1   : > { %v5600_v1 = vsub.f32 %v5522_v13, %v495_v61  ;;  %546 = vadd.xlane.f32.xlu1 %v545_v59  ;;  %549 = vadd.xlane.f32.xlu0 %v548_v2  ;;  %v465_v3 = vpop.xlane.xlu0 %464  ;;  %v551_v5 = vsel %vm438_vm0, %v525_v63, 0.0  ;;  %v5674_v59 = vld [vmem:[%s7852_s8 + $0x30] sm:$0xff]  ;;  %v708_v61 = vlaneseq  ;;  %v5694_v63 = vld [vmem:[%s7852_s8 + $0x28] sm:$0xff]  ;;  %v5398_v2 = vmov 1966171168  }
  0xb2   : > { %v468_v4 = vpop.xlane.xlu1 %467  ;;  %v496_v6 = vmul.f32 0.03125, %v465_v3  ;;  %v526_v8 = vmul.f32 %v5597_v0, %v5597_v0  ;;  %v2236_v3 = vunpack.c.l.s4 %v5398_v2 }
  0xb3   : > { %v497_v7 = vmul.f32 0.03125, %v468_v4  ;;  %v527_v9 = vmul.f32 %v5600_v1, %v5600_v1  ;;  %v5697_v4 = vshrl.u32 %v708_v61, 7 }
  0xb4   : > { %v5609_v10 = vsub.f32 %v5529_v16, %v496_v6  ;;  %v554_v12 = vsel %vm438_vm0, %v526_v8, 0.0  ;;  %v5706_v6 = vld [vmem:[%s7852_s8 + $0x10] sm:$0xff] }
  0xb5   : > { %v5612_v11 = vsub.f32 %v5532_v17, %v497_v7  ;;  %552 = vadd.xlane.f32.xlu1 %v551_v5  ;;  %555 = vadd.xlane.f32.xlu0 %v554_v12  ;;  %v471_v13 = vpop.xlane.xlu0 %470  ;;  %v557_v15 = vsel %vm438_vm0, %v527_v9, 0.0  ;;  %v2237_v5 = vunpack.c.0.s8 %v2236_v3  ;;  %v5711_v7 = vld [vmem:[%s7852_s8 + $0x18] sm:$0xff]  ;;  %v2164_v9 = vld [vmem:[%s409_s29] sm:$0x3] }
  0xb6   : > { %v474_v14 = vpop.xlane.xlu1 %473  ;;  %v498_v18 = vmul.f32 0.03125, %v471_v13  ;;  %v528_v22 = vmul.f32 %v5609_v10, %v5609_v10  ;;  %v5729_v13 = vld [vmem:[%s7852_s8] sm:$0xff] }
  0xb7   : > { %v499_v19 = vmul.f32 0.03125, %v474_v14  ;;  %v529_v16 = vmul.f32 %v5612_v11, %v5612_v11  ;;  %v5717_v8 = vsub.s32 %v2237_v5, %v5697_v4  ;;  %v5734_v14 = vld [vmem:[%s7852_s8 + $0x8] sm:$0xff] }
  0xb8   : > { %v5621_v23 = vsub.f32 %v5539_v20, %v498_v18  ;;  %v560_v26 = vsel %vm438_vm0, %v528_v22, 0.0  ;;  %v5748_v18 = vld [vmem:[%s7853_s9 + $0x8] sm:$0xff]  ;;  %v5762_v22 = vld [vmem:[%s7853_s9 + $0x18] sm:$0xff] }
  0xb9   : > { %v5624_v17 = vsub.f32 %v5542_v21, %v499_v19  ;;  %558 = vadd.xlane.f32.xlu1 %v557_v15  ;;  %561 = vadd.xlane.f32.xlu0 %v560_v26  ;;  %v477_v27 = vpop.xlane.xlu0 %476  ;;  %v563_v31 = vsel %vm438_vm0, %v529_v16, 0.0  ;;  %7905 = vst [vmem:[#allocation2_spill] sm:$0xff] %v5717_v8  ;;  %v5720_v12 = vrot.slane %v2164_v9, %v5717_v8  ;;  %v5743_v15 = vld [vmem:[%s7853_s9] sm:$0xff]  ;;  %v5757_v19 = vld [vmem:[%s7853_s9 + $0x10] sm:$0xff]  ;;  %v5776_v26 = vld [vmem:[%s7853_s9 + $0x28] sm:$0xff] }
  0xba   : > { %v480_v30 = vpop.xlane.xlu1 %479  ;;  %v500_v32 = vmul.f32 0.03125, %v477_v27  ;;  %v530_v34 = vmul.f32 %v5621_v23, %v5621_v23  ;;  %v5771_v16 = vld [vmem:[%s7853_s9 + $0x20] sm:$0xff]  ;;  %v5783_v27 = vsub.s32 0, %v5697_v4 }
  0xbb   : > { %v501_v33 = vmul.f32 0.03125, %v480_v30  ;;  %v531_v20 = vmul.f32 %v5624_v17, %v5624_v17  ;;  %7906 = vst [vmem:[#allocation3_spill] sm:$0xff] %v5720_v12  ;;  %v5788_v30 = vld [vmem:[%s7853_s9 + $0x30] sm:$0xff] }
  0xbc   : > { %v5633_v35 = vsub.f32 %v5549_v24, %v500_v32  ;;  %v566_v38 = vsel %vm438_vm0, %v530_v34, 0.0  ;;  %v2168_v32 = vrot.slane %v2164_v9, %v5783_v27  ;;  %v714_v34 = vsub.s32 1, %v5697_v4 }
  0xbd   : > { %v5636_v21 = vsub.f32 %v5552_v25, %v501_v33  ;;  %564 = vadd.xlane.f32.xlu1 %v563_v31  ;;  %567 = vadd.xlane.f32.xlu0 %v566_v38  ;;  %v483_v39 = vpop.xlane.xlu0 %482  ;;  %v569_v41 = vsel %vm438_vm0, %v531_v20, 0.0  ;;  %v5793_v31 = vld [vmem:[%s7853_s9 + $0x38] sm:$0xff] }
  0xbe   : > { %v486_v40 = vpop.xlane.xlu1 %485  ;;  %v502_v42 = vmul.f32 0.03125, %v483_v39  ;;  %v532_v46 = vmul.f32 %v5633_v35, %v5633_v35 }
  0xbf   : > { %v503_v43 = vmul.f32 0.03125, %v486_v40  ;;  %v533_v24 = vmul.f32 %v5636_v21, %v5636_v21 }
  0xc0   : > { %v5645_v47 = vsub.f32 %v5559_v28, %v502_v42  ;;  %v572_v48 = vsel %vm438_vm0, %v532_v46, 0.0 }
  0xc1   : > { %v5648_v25 = vsub.f32 %v5562_v29, %v503_v43  ;;  %570 = vadd.xlane.f32.xlu1 %v569_v41  ;;  %573 = vadd.xlane.f32.xlu0 %v572_v48  ;;  %v575_v49 = vsel %vm438_vm0, %v533_v24, 0.0  ;;  %v5054_v29 = vld [vmem:[%s7848_s4 + $0x14] ss:$8 sps:$4 sm:$0xff]   ;;  %v2203_v41 = vrot.slane %v2164_v9, %v714_v34 }
  0xc2   : > { %v534_v50 = vmul.f32 %v5645_v47, %v5645_v47  ;;  %774 = vmatprep.subr.bf16.mxu0 %v5054_v29 }
  0xc3   : > { %v535_v51 = vmul.f32 %v5648_v25, %v5648_v25  ;;  %775 = vmatpush1.bf16.msra.mxu0 %v5056_v53 }
  0xc4   : > { %v578_v52 = vsel %vm438_vm0, %v534_v50, 0.0  ;;  %776 = vmatprep.subr.bf16.mxu0 %v5057_v56 }
  0xc5   : > { %576 = vadd.xlane.f32.xlu1 %v575_v49  ;;  %579 = vadd.xlane.f32.xlu0 %v578_v52  ;;  %v581_v28 = vsel %vm438_vm0, %v535_v51, 0.0 }
  0xc7   : > { %777 = vmatpush1.bf16.msra.mxu0 %v5059_v57 }
  0xc9   : > { %582 = vadd.xlane.f32.xlu1 %v581_v28 }
  0xda   : > { %1081 = vrot.lane.b32.xlu1 %v5679_v60, %s5397_s28 }
  0xdb   : > { %1079 = vrot.lane.b32.xlu0 %v5674_v59, %s5397_s28 }
  0xde   : > { %1077 = vrot.lane.b32.xlu1 %v5694_v63, %s5397_s28 }
  0xdf   : > { %1075 = vrot.lane.b32.xlu0 %v5689_v62, %s5397_s28 }
  0xe2   : > { %1073 = vrot.lane.b32.xlu1 %v5711_v7, %s5397_s28 }
  0xe3   : > { %1071 = vrot.lane.b32.xlu0 %v5706_v6, %s5397_s28 }
  0xe6   : > { %1069 = vrot.lane.b32.xlu1 %v5734_v14, %s5397_s28 }
  0xe7   : > { %1067 = vrot.lane.b32.xlu0 %v5729_v13, %s5397_s28 }
  0xea   : > { %917 = vrot.lane.b32.xlu1 %v5748_v18, %s5399_s25 }
  0xeb   : > { %915 = vrot.lane.b32.xlu0 %v5743_v15, %s5399_s25 }
  0xee   : > { %921 = vrot.lane.b32.xlu1 %v5762_v22, %s5399_s25 }
  0xef   : > { %919 = vrot.lane.b32.xlu0 %v5757_v19, %s5399_s25 }
  0xf2   : > { %925 = vrot.lane.b32.xlu1 %v5776_v26, %s5399_s25 }
  0xf3   : > { %923 = vrot.lane.b32.xlu0 %v5771_v16, %s5399_s25 }
  0xf6   : > { %929 = vrot.lane.b32.xlu1 %v5793_v31, %s5399_s25 }
  0xf7   : > { %927 = vrot.lane.b32.xlu0 %v5788_v30, %s5399_s25 }
  0xfa   : > { %2174 = vbcast.lane.b32.xlu1 %v2168_v32, 264 }
  0xfb   : > { %2170 = vbcast.lane.b32.xlu0 %v2168_v32, 256 }
  0xfe   : > { %2182 = vbcast.lane.b32.xlu1 %v2168_v32, 280 }
  0xff   : > { %2178 = vbcast.lane.b32.xlu0 %v2168_v32, 272 }
 0x102   : > { %2190 = vbcast.lane.b32.xlu1 %v2168_v32, 296 }
 0x103   : > { %2186 = vbcast.lane.b32.xlu0 %v2168_v32, 288 }
 0x106   : > { %2198 = vbcast.lane.b32.xlu1 %v2168_v32, 312 }
 0x107   : > { %2194 = vbcast.lane.b32.xlu0 %v2168_v32, 304  ;;  %v5807_v32 = vld [vmem:[%s7846_s2] ss:$0 sm:$0xff] }
 0x10a   : > { %2209 = vbcast.lane.b32.xlu1 %v2203_v41, 264 }
 0x10b   : > { %2205 = vbcast.lane.b32.xlu0 %v2203_v41, 256 }
 0x10e   : > { %2217 = vbcast.lane.b32.xlu1 %v2203_v41, 280 }
 0x10f   : > { %2213 = vbcast.lane.b32.xlu0 %v2203_v41, 272 }
 0x112   : > { %2225 = vbcast.lane.b32.xlu1 %v2203_v41, 296 }
 0x113   : > { %2221 = vbcast.lane.b32.xlu0 %v2203_v41, 288 }
 0x116   : > { %2233 = vbcast.lane.b32.xlu1 %v2203_v41, 312 }
 0x117   : > { %2229 = vbcast.lane.b32.xlu0 %v2203_v41, 304 }
 0x132   : > { %v538_v33 = vpop.xlane.xlu0 %537 }
 0x133   : > { %v584_v20 = vmul.f32 0.03125, %v538_v33 }
 0x135   : > { %v600_v38 = vadd.f32 1e-05, %v584_v20 }
 0x136   : > { %v541_v39 = vpop.xlane.xlu1 %540  ;;  %v544_v40 = vpop.xlane.xlu0 %543 }
 0x137   : > { %5062 = vrsqrt.f32 %v600_v38  ;;  %v585_v42 = vmul.f32 0.03125, %v541_v39  ;;  %v586_v43 = vmul.f32 0.03125, %v544_v40 }
 0x139   : > { %v601_v46 = vadd.f32 1e-05, %v585_v42  ;;  %v602_v24 = vadd.f32 1e-05, %v586_v43 }
 0x13a   : > { %v547_v48 = vpop.xlane.xlu1 %546  ;;  %v550_v49 = vpop.xlane.xlu0 %549 }
 0x13b   : > { %5064 = vrsqrt.f32 %v601_v46  ;;  %v587_v50 = vmul.f32 0.03125, %v547_v48  ;;  %v588_v52 = vmul.f32 0.03125, %v550_v49 }
 0x13c   : > { %5066 = vrsqrt.f32 %v602_v24 }
 0x13d   : > { %v603_v51 = vadd.f32 1e-05, %v587_v50  ;;  %v604_v53 = vadd.f32 1e-05, %v588_v52 }
 0x13e   : > { %v553_v28 = vpop.xlane.xlu1 %552  ;;  %v556_v57 = vpop.xlane.xlu0 %555 }
 0x13f   : > { %5068 = vrsqrt.f32 %v603_v51  ;;  %v589_v29 = vmul.f32 0.03125, %v553_v28  ;;  %v590_v5 = vmul.f32 0.03125, %v556_v57 }
 0x141   : > { %v605_v56 = vadd.f32 1e-05, %v589_v29  ;;  %v606_v38 = vadd.f32 1e-05, %v590_v5 }
 0x142   : > { %v559_v61 = vpop.xlane.xlu1 %558  ;;  %v562_v40 = vpop.xlane.xlu0 %561 }
 0x143   : > { %5070 = vrsqrt.f32 %v605_v56  ;;  %v591_v2 = vmul.f32 0.03125, %v559_v61  ;;  %v592_v49 = vmul.f32 0.03125, %v562_v40 }
 0x144   : > { %v5063_v3 = vpop.eup %5062  ;;  %5072 = vrsqrt.f32 %v604_v53 }
 0x145   : > { %v632_v9 = vmul.f32 %v5063_v3, %v5568_v36  ;;  %v607_v33 = vadd.f32 1e-05, %v591_v2  ;;  %v5814_v36 = vld [vmem:[%s7847_s3] ss:$0 sm:$0xff]  ;;  %v608_v61 = vadd.f32 1e-05, %v592_v49 }
 0x146   : > { %v565_v39 = vpop.xlane.xlu1 %564  ;;  %v568_v5 = vpop.xlane.xlu0 %567 }
 0x147   : > { %v655_v43 = vmul.f32 %v5807_v32, %v632_v9  ;;  %5074 = vrsqrt.f32 %v607_v33  ;;  %v593_v24 = vmul.f32 0.03125, %v565_v39  ;;  %v594_v33 = vmul.f32 0.03125, %v568_v5 }
 0x148   : > { %v5065_v20 = vpop.eup %5064  ;;  %5076 = vrsqrt.f32 %v606_v38 }
 0x149   : > { %v633_v42 = vmul.f32 %v5065_v20, %v5576_v44  ;;  %v5067_v46 = vpop.eup %5066  ;;  %v678_v50 = vadd.f32 %v5814_v36, %v655_v43  ;;  %v609_v28 = vadd.f32 1e-05, %v593_v24 }
 0x14a   : > { %v634_v44 = vmul.f32 %v5067_v46, %v5570_v37  ;;  %v571_v56 = vpop.xlane.xlu1 %570  ;;  %v574_v49 = vpop.xlane.xlu0 %573 }
 0x14b   : > { %v656_v48 = vmul.f32 %v5807_v32, %v633_v42  ;;  %5078 = vrsqrt.f32 %v609_v28  ;;  %v595_v9 = vmul.f32 0.03125, %v571_v56 }
 0x14c   : > { %v5069_v41 = vpop.eup %5068  ;;  %v657_v2 = vmul.f32 %v5807_v32, %v634_v44  ;;  %5080 = vrsqrt.f32 %v608_v61 }
 0x14d   : > { %v679_v51 = vadd.f32 %v5814_v36, %v656_v48  ;;  %v635_v52 = vmul.f32 %v5069_v41, %v5578_v45  ;;  %v611_v39 = vadd.f32 1e-05, %v595_v9  ;;  %v610_v48 = vadd.f32 1e-05, %v594_v33 }
 0x14e   : > { %v680_v20 = vadd.f32 %v5814_v36, %v657_v2  ;;  %v577_v46 = vpop.xlane.xlu1 %576  ;;  %v580_v5 = vpop.xlane.xlu0 %579 }
 0x14f   : > { %v694_v29 = vpack.c.bf16 %v679_v51, %v678_v50  ;;  %v658_v57 = vmul.f32 %v5807_v32, %v635_v52  ;;  %5082 = vrsqrt.f32 %v611_v39  ;;  %v596_v51 = vmul.f32 0.03125, %v574_v49 }
 0x150   : > { %v5071_v53 = vpop.eup %5070  ;;  %5084 = vrsqrt.f32 %v610_v48 }
 0x151   : > { %4351 = vmatmul.mubr.msk.bf16.vlgmr.msra.gmra.mxu0 %vm438_vm0, %v694_v29  ;;  %v5073_v3 = vpop.eup %5072  ;;  %v681_v37 = vadd.f32 %v5814_v36, %v658_v57  ;;  %v637_v45 = vmul.f32 %v5071_v53, %v5588_v55  ;;  %v597_v55 = vmul.f32 0.03125, %v577_v46  ;;  %v612_v61 = vadd.f32 1e-05, %v596_v51 }
 0x152   : > { %804 = vmatprep.mubr.bf16.mxu0 %v5396_v58  ;;  %v636_v38 = vmul.f32 %v5073_v3, %v5586_v54  ;;  %v583_v57 = vpop.xlane.xlu1 %582 }
 0x153   : > { %v695_v40 = vpack.c.bf16 %v681_v37, %v680_v20  ;;  %v660_v42 = vmul.f32 %v5807_v32, %v637_v45  ;;  %v613_v28 = vadd.f32 1e-05, %v597_v55  ;;  %v598_v37 = vmul.f32 0.03125, %v580_v5 }
 0x154   : > { %v5075_v43 = vpop.eup %5074  ;;  %v659_v41 = vmul.f32 %v5807_v32, %v636_v38 }
 0x155   : > { %v5077_v24 = vpop.eup %5076  ;;  %v683_v50 = vadd.f32 %v5814_v36, %v660_v42  ;;  %v639_v54 = vmul.f32 %v5075_v43, %v5600_v1  ;;  %5086 = vrsqrt.f32 %v613_v28  ;;  %v599_v1 = vmul.f32 0.03125, %v583_v57 }
 0x156   : > { %v682_v44 = vadd.f32 %v5814_v36, %v659_v41  ;;  %v638_v52 = vmul.f32 %v5077_v24, %v5597_v0  ;;  %5088 = vrsqrt.f32 %v612_v61  ;;  %v614_v42 = vadd.f32 1e-05, %v598_v37  ;;  %v5878_v37 = vpop.permute.xlu1 %1081 }
 0x157   : > { %v662_v53 = vmul.f32 %v5807_v32, %v639_v54  ;;  %v615_v20 = vadd.f32 1e-05, %v599_v1 }
 0x158   : > { %v696_v29 = vpack.c.bf16 %v683_v50, %v682_v44  ;;  %v5079_v56 = vpop.eup %5078  ;;  %v661_v2 = vmul.f32 %v5807_v32, %v638_v52 }
 0x159   : > { %4352 = vmatmul.mubr.msk.bf16.gmra.mxu0 %vm438_vm0, %v695_v40  ;;  %v5081_v3 = vpop.eup %5080  ;;  %v685_v9 = vadd.f32 %v5814_v36, %v662_v53  ;;  %v641_v0 = vmul.f32 %v5079_v56, %v5612_v11  ;;  %5090 = vrsqrt.f32 %v615_v20 }
 0x15a   : > { %814 = vmatprep.mubr.bf16.mxu0 %v5396_v58  ;;  %v684_v45 = vadd.f32 %v5814_v36, %v661_v2  ;;  %v640_v33 = vmul.f32 %v5081_v3, %v5609_v10  ;;  %5092 = vrsqrt.f32 %v614_v42 }
 0x15b   : > { %v664_v39 = vmul.f32 %v5807_v32, %v641_v0 }
 0x15c   : > { %v697_v38 = vpack.c.bf16 %v685_v9, %v684_v45  ;;  %v5083_v40 = vpop.eup %5082  ;;  %v663_v43 = vmul.f32 %v5807_v32, %v640_v33  ;;  %v5882_v45 = vpop.permute.xlu1 %1077 }
 0x15d   : > { %v5085_v46 = vpop.eup %5084  ;;  %v687_v11 = vadd.f32 %v5814_v36, %v664_v39  ;;  %v643_v24 = vmul.f32 %v5083_v40, %v5624_v17 }
 0x15e   : > { %v686_v10 = vadd.f32 %v5814_v36, %v663_v43  ;;  %v642_v48 = vmul.f32 %v5085_v46, %v5621_v23 }
 0x15f   : > { %v666_v49 = vmul.f32 %v5807_v32, %v643_v24 }
 0x160   : > { %v698_v41 = vpack.c.bf16 %v687_v11, %v686_v10  ;;  %v665_v50 = vmul.f32 %v5807_v32, %v642_v48 }
 0x161   : > { %4353 = vmatmul.mubr.msk.bf16.gmra.mxu0 %vm438_vm0, %v696_v29  ;;  %v689_v51 = vadd.f32 %v5814_v36, %v666_v49 }
 0x162   : > { %824 = vmatprep.mubr.bf16.mxu0 %v5396_v58  ;;  %v5087_v55 = vpop.eup %5086  ;;  %v688_v44 = vadd.f32 %v5814_v36, %v665_v50 }
 0x163   : > { %v5089_v54 = vpop.eup %5088  ;;  %v645_v17 = vmul.f32 %v5087_v55, %v5636_v21 }
 0x164   : > { %v644_v52 = vmul.f32 %v5089_v54, %v5633_v35  ;;  %v699_v23 = vpack.c.bf16 %v689_v51, %v688_v44 }
 0x165   : > { %v668_v28 = vmul.f32 %v5807_v32, %v645_v17  ;;  %v2242_v17 = vcombine.high %v5720_v12, %v5720_v12 }
 0x166   : > { %v5091_v29 = vpop.eup %5090  ;;  %v667_v53 = vmul.f32 %v5807_v32, %v644_v52 }
 0x167   : > { %v5093_v56 = vpop.eup %5092  ;;  %v691_v57 = vadd.f32 %v5814_v36, %v668_v28  ;;  %v647_v61 = vmul.f32 %v5091_v29, %v5648_v25  ;;  %v5876_v25 = vpop.permute.xlu0 %1079  ;;  %v2256_v52 = vrot.slane %v2242_v17, %v5717_v8 }
 0x168   : > { %v690_v21 = vadd.f32 %v5814_v36, %v667_v53  ;;  %v646_v2 = vmul.f32 %v5093_v56, %v5645_v47  ;;  %v7855_v53 = vmov -100.0  }
 0x169   : > { %4354 = vmatmul.mubr.msk.bf16.gmra.mxu0 %vm438_vm0, %v697_v38  ;;  %v670_v3 = vmul.f32 %v5807_v32, %v647_v61 }
 0x16a   : > { %834 = vmatprep.mubr.bf16.mxu0 %v5396_v58  ;;  %v700_v35 = vpack.c.bf16 %v691_v57, %v690_v21  ;;  %v669_v5 = vmul.f32 %v5807_v32, %v646_v2  ;;  %v5886_v32 = vpop.permute.xlu1 %1073 }
 0x16b   : > { %v693_v1 = vadd.f32 %v5814_v36, %v670_v3  ;;  %v5880_v47 = vpop.permute.xlu0 %1075 }
 0x16c   : > { %v692_v9 = vadd.f32 %v5814_v36, %v669_v5 }
 0x16e   : > { %v701_v0 = vpack.c.bf16 %v693_v1, %v692_v9  ;;  %v5890_v20 = vpop.permute.xlu1 %1069 }
 0x16f   : > { %v5884_v33 = vpop.permute.xlu0 %1071 }
 0x171   : > { %4355 = vmatmul.mubr.msk.bf16.gmra.mxu0 %vm438_vm0, %v698_v41 }
 0x172   : > { %844 = vmatprep.mubr.bf16.mxu0 %v5396_v58  ;;  %v5894_v38 = vpop.permute.xlu1 %917 }
 0x176   : > { %v5898_v40 = vpop.permute.xlu1 %921 }
 0x179   : > { %4356 = vmatmul.mubr.msk.bf16.gmra.mxu0 %vm438_vm0, %v699_v23  ;;  %v5930_v23 = vrot.slane %v2256_v52, %v5783_v27 }
 0x17a   : > { %854 = vmatprep.mubr.bf16.mxu0 %v5396_v58  ;;  %v5902_v43 = vpop.permute.xlu1 %925 }
 0x17b   : > { %7915 = vst [vmem:[#allocation12_spill] sm:$0xff] %v5930_v23 }
 0x17e   : > { %v5906_v11 = vpop.permute.xlu1 %929 }
 0x181   : > { %4357 = vmatmul.mubr.msk.bf16.gmra.mxu0 %vm438_vm0, %v700_v35 }
 0x182   : > { %864 = vmatprep.mubr.bf16.mxu0 %v5396_v58  ;;  %v5888_v58 = vpop.permute.xlu0 %1067  ;;  %v5912_v48 = vpop.permute.xlu1 %2174 }
 0x183   : > { %7908 = vst [vmem:[#allocation5_spill] sm:$0xff] %v5912_v48 }
 0x186   : > { %v5892_v36 = vpop.permute.xlu0 %915  ;;  %v5916_v49 = vpop.permute.xlu1 %2182 }
 0x187   : > { %7910 = vst [vmem:[#allocation7_spill] sm:$0xff] %v5916_v49 }
 0x189   : > { %4358 = vmatmul.mubr.msk.bf16.gmra.mxu0 %vm438_vm0, %v701_v0 }
 0x18a   : > { %v5896_v39 = vpop.permute.xlu0 %919  ;;  %v5920_v50 = vpop.permute.xlu1 %2190 }
 0x18b   : > { %7912 = vst [vmem:[#allocation9_spill] sm:$0xff] %v5920_v50 }
 0x18e   : > { %v5900_v42 = vpop.permute.xlu0 %923  ;;  %v5924_v51 = vpop.permute.xlu1 %2198 }
 0x18f   : > { %7914 = vst [vmem:[#allocation11_spill] sm:$0xff] %v5924_v51 }
 0x192   : > { %v5904_v46 = vpop.permute.xlu0 %927  ;;  %v2210_v28 = vpop.permute.xlu1 %2209 }
 0x193   : > { %vm2274_vm2 = vcmp.eq.s32.totalorder %v2210_v28, %v5930_v23 }
 0x194   : > { %v5940_v57 = vsel %vm2274_vm2, 0.0, %v7855_v53 }
 0x195   : > { %7918 = vst [vmem:[#allocation15_spill] sm:$0xff] %v5940_v57 }
 0x196   : > { %v5910_v10 = vpop.permute.xlu0 %2170  ;;  %v2218_v61 = vpop.permute.xlu1 %2217 }
 0x197   : > { %7907 = vst [vmem:[#allocation4_spill] sm:$0xff] %v5910_v10  ;;  %vm2276_vm3 = vcmp.eq.s32.totalorder %v2218_v61, %v5930_v23 }
 0x198   : > { %v5945_v2 = vsel %vm2276_vm3, 0.0, %v7855_v53 }
 0x199   : > { %7919 = vst [vmem:[#allocation16_spill] sm:$0xff] %v5945_v2 }
 0x19a   : > { %v5914_v41 = vpop.permute.xlu0 %2178  ;;  %v2226_v3 = vpop.permute.xlu1 %2225 }
 0x19b   : > { %7909 = vst [vmem:[#allocation6_spill] sm:$0xff] %v5914_v41  ;;  %vm2278_vm5 = vcmp.eq.s32.totalorder %v2226_v3, %v5930_v23 }
 0x19c   : > { %v5953_v1 = vsel %vm2278_vm5, 0.0, %v7855_v53  ;;  %vm4035_vm5 = vcmask 195584  }
 0x19d   : > { %7921 = vst [vmem:[#allocation18_spill] sm:$0xff] %v5953_v1 }
 0x19e   : > { %v5918_v55 = vpop.permute.xlu0 %2186  ;;  %v2234_v0 = vpop.permute.xlu1 %2233 }
 0x19f   : > { %7911 = vst [vmem:[#allocation8_spill] sm:$0xff] %v5918_v55  ;;  %vm2280_vm7 = vcmp.eq.s32.totalorder %v2234_v0, %v5930_v23 }
 0x1a0   : > { %v5960_v17 = vsel %vm2280_vm7, 0.0, %v7855_v53 }
 0x1a1   : > { %7923 = vst [vmem:[#allocation20_spill] sm:$0xff] %v5960_v17 }
 0x1a2   : > { %v5922_v54 = vpop.permute.xlu0 %2194 }
 0x1a3   : > { %7913 = vst [vmem:[#allocation10_spill] sm:$0xff] %v5922_v54 }
 0x1a6   : > { %v2206_v44 = vpop.permute.xlu0 %2205 }
 0x1a7   : > { %vm2273_vm1 = vcmp.eq.s32.totalorder %v2206_v44, %v5930_v23  ;;  %v706_v44 = vld [vmem:[%s7849_s5] sm:$0x3] }
 0x1a8   : > { %v5937_v56 = vsel %vm2273_vm1, 0.0, %v7855_v53  ;;  %v5966_v52 = vrot.slane %v706_v44, %v5783_v27  ;;  %v5970_v28 = vrot.slane %v706_v44, %v714_v34 }
 0x1a9   : > { %7917 = vst [vmem:[#allocation14_spill] sm:$0xff] %v5937_v56 }
 0x1aa   : > { %v5932_v29 = vpop.permute.xlu0 %2213 }
 0x1ab   : > { %7916 = vst [vmem:[#allocation13_spill] sm:$0xff] %v5932_v29 }
 0x1ae   : > { %v2222_v21 = vpop.permute.xlu0 %2221 }
 0x1af   : > { %vm2277_vm4 = vcmp.eq.s32.totalorder %v2222_v21, %v5930_v23 }
 0x1b0   : > { %v5948_v35 = vsel %vm2277_vm4, 0.0, %v7855_v53  ;;  %vm4018_vm4 = vcmask 130048  }
 0x1b1   : > { %7920 = vst [vmem:[#allocation17_spill] sm:$0xff] %v5948_v35 }
 0x1b2   : > { %v2230_v5 = vpop.permute.xlu0 %2229 }
 0x1b3   : > { %vm2279_vm6 = vcmp.eq.s32.totalorder %v2230_v5, %v5930_v23 }
 0x1b4   : > { %v5956_v9 = vsel %vm2279_vm6, 0.0, %v7855_v53 }
 0x1b5   : > { %7922 = vst [vmem:[#allocation19_spill] sm:$0xff] %v5956_v9 }
 0x211   : > { %v796_v61 = vpop.f32.mrf.mxu0 }
 0x212   : > { %v5973_v21 = vadd.f32 %v796_v61, %v5966_v52 }
 0x213   : > { %v798_v3 = vpop.f32.mrf.mxu0 }
 0x214   : > { %v799_v5 = vadd.f32 %v798_v3, %v5970_v28  ;;  %v939_v0 = vmul.f32 %v5892_v36, %v5973_v21 }
 0x215   : > { %v800_v53 = vpop.f32.mrf.mxu0 }
 0x216   : > { %v5979_v24 = vadd.f32 %v800_v53, %v5966_v52  ;;  %971 = vrot.lane.b32.xlu0 %v939_v0, %s5397_s28  ;;  %v1107_v4 = vmul.f32 %v5743_v15, %v799_v5 }
 0x217   : > { %v802_v1 = vpop.f32.mrf.mxu0 }
 0x218   : > { %v940_v34 = vmul.f32 %v5894_v38, %v5979_v24  ;;  %v803_v3 = vadd.f32 %v802_v1, %v5970_v28  ;;  %v5991_v53 = vpack.c.bf16 %v5979_v24, %v5973_v21 }
 0x219   : > { %v806_v44 = vpop.f32.mrf.mxu0 }
 0x21a   : > { %973 = vrot.lane.b32.xlu1 %v940_v34, %s5397_s28  ;;  %1139 = vrot.lane.b32.xlu0 %v1107_v4, %s5397_s28  ;;  %v1108_v4 = vmul.f32 %v5748_v18, %v803_v3  ;;  %v5999_v1 = vadd.f32 %v806_v44, %v5966_v52 }
 0x21b   : > { %v808_v61 = vpop.f32.mrf.mxu0 }
 0x21c   : > { %v809_v17 = vadd.f32 %v808_v61, %v5970_v28  ;;  %v941_v57 = vmul.f32 %v5896_v39, %v5999_v1 }
 0x21d   : > { %v810_v0 = vpop.f32.mrf.mxu0 }
 0x21e   : > { %1339 = vrot.lane.b32.xlu1 %v5991_v53, %s5401_s14  ;;  %1355 = vrot.lane.b32.xlu0 %v5991_v53, %s5402_s20  ;;  %v1109_v34 = vmul.f32 %v5757_v19, %v809_v17  ;;  %v6003_v61 = vadd.f32 %v810_v0, %v5966_v52 }
 0x21f   : > { %v812_v5 = vpop.f32.mrf.mxu0 }
 0x220   : > { %v942_v3 = vmul.f32 %v5898_v40, %v6003_v61  ;;  %v813_v44 = vadd.f32 %v812_v5, %v5970_v28 }
 0x221   : > { %v816_v35 = vpop.f32.mrf.mxu0 }
 0x222   : > { %1141 = vrot.lane.b32.xlu1 %v1108_v4, %s5397_s28  ;;  %1143 = vrot.lane.b32.xlu0 %v1109_v34, %s5397_s28  ;;  %v1110_v0 = vmul.f32 %v5762_v22, %v813_v44  ;;  %v6016_v4 = vadd.f32 %v816_v35, %v5966_v52  ;;  %v6020_v34 = vpack.c.bf16 %v6003_v61, %v5999_v1 }
 0x223   : > { %v818_v9 = vpop.f32.mrf.mxu0 }
 0x225   : > { %v820_v2 = vpop.f32.mrf.mxu0 }
 0x226   : > { %977 = vrot.lane.b32.xlu0 %v942_v3, %s5397_s28  ;;  %975 = vrot.lane.b32.xlu1 %v941_v57, %s5397_s28  ;;  %v819_v3 = vadd.f32 %v818_v9, %v5970_v28  ;;  %v943_v57 = vmul.f32 %v5900_v42, %v6016_v4  ;;  %v6029_v44 = vadd.f32 %v820_v2, %v5966_v52 }
 0x227   : > { %v822_v17 = vpop.f32.mrf.mxu0 }
 0x228   : > { %v1111_v23 = vmul.f32 %v5771_v16, %v819_v3  ;;  %v944_v50 = vmul.f32 %v5902_v43, %v6029_v44  ;;  %v823_v55 = vadd.f32 %v822_v17, %v5970_v28 }
 0x229   : > { %v826_v56 = vpop.f32.mrf.mxu0 }
 0x22a   : > { %1341 = vrot.lane.b32.xlu0 %v6020_v34, %s5401_s14  ;;  %1145 = vrot.lane.b32.xlu1 %v1110_v0, %s5397_s28  ;;  %v6037_v0 = vpack.c.bf16 %v6029_v44, %v6016_v4  ;;  %v1112_v51 = vmul.f32 %v5776_v26, %v823_v55 }
 0x22b   : > { %v828_v5 = vpop.f32.mrf.mxu0 }
 0x22c   : > { %v829_v54 = vadd.f32 %v828_v5, %v5970_v28 }
 0x22d   : > { %v830_v35 = vpop.f32.mrf.mxu0 }
 0x22e   : > { %1357 = vrot.lane.b32.xlu0 %v6020_v34, %s5402_s20  ;;  %979 = vrot.lane.b32.xlu1 %v943_v57, %s5397_s28  ;;  %v6060_v10 = vadd.f32 %v830_v35, %v5966_v52 }
 0x22f   : > { %v832_v29 = vpop.f32.mrf.mxu0 }
 0x231   : > { %v836_v9 = vpop.f32.mrf.mxu0 }
 0x232   : > { %1147 = vrot.lane.b32.xlu0 %v1111_v23, %s5397_s28  ;;  %1343 = vrot.lane.b32.xlu1 %v6037_v0, %s5401_s14  ;;  %v6050_v23 = vadd.f32 %v826_v56, %v5966_v52  ;;  %v946_v56 = vmul.f32 %v5906_v11, %v6060_v10  ;;  %v6067_v5 = vadd.f32 %v836_v9, %v5966_v52 }
 0x233   : > { %v838_v2 = vpop.f32.mrf.mxu0  ;;  %v833_v9 = vadd.f32 %v832_v29, %v5970_v28 }
 0x234   : > { %v945_v48 = vmul.f32 %v5904_v46, %v6050_v23  ;;  %v839_v35 = vadd.f32 %v838_v2, %v5970_v28 }
 0x235   : > { %v840_v57 = vpop.f32.mrf.mxu0 }
 0x236   : > { %981 = vrot.lane.b32.xlu0 %v944_v50, %s5397_s28  ;;  %3102 = vrot.lane.b32.xlu1 %v6037_v0, %s5403_s21  ;;  %v1113_v50 = vmul.f32 %v5788_v30, %v829_v54  ;;  %v6071_v54 = vpack.c.bf16 %v6060_v10, %v6050_v23  ;;  %v1115_v41 = vmul.f32 %v5743_v15, %v839_v35 }
 0x237   : > { %v842_v3 = vpop.f32.mrf.mxu0  ;;  %v6090_v2 = vadd.f32 %v840_v57, %v5966_v52 }
 0x239   : > { %v846_v49 = vpop.f32.mrf.mxu0 }
 0x23a   : > { %1359 = vrot.lane.b32.xlu0 %v6037_v0, %s5402_s20  ;;  %1149 = vrot.lane.b32.xlu1 %v1112_v51, %s5397_s28 }
 0x23b   : > { %v848_v17 = vpop.f32.mrf.mxu0 }
 0x23d   : > { %v850_v55 = vpop.f32.mrf.mxu0 }
 0x23e   : > { %1151 = vrot.lane.b32.xlu1 %v1113_v50, %s5397_s28  ;;  %983 = vrot.lane.b32.xlu0 %v945_v48, %s5397_s28  ;;  %v947_v48 = vmul.f32 %v5892_v36, %v6067_v5  ;;  %v1114_v36 = vmul.f32 %v5793_v31, %v833_v9 }
 0x23f   : > { %v852_v51 = vpop.f32.mrf.mxu0 }
 0x241   : > { %v856_v50 = vpop.f32.mrf.mxu0 }
 0x242   : > { %985 = vrot.lane.b32.xlu1 %v946_v56, %s5397_s28  ;;  %1345 = vrot.lane.b32.xlu0 %v6071_v54, %s5401_s14  ;;  %v849_v56 = vadd.f32 %v848_v17, %v5970_v28  ;;  %v6099_v15 = vadd.f32 %v856_v50, %v5966_v52  ;;  %v6120_v50 = vadd.f32 %v846_v49, %v5966_v52 }
 0x243   : > { %v858_v8 = vpop.f32.mrf.mxu0 }
 0x244   : > { %v1117_v12 = vmul.f32 %v5757_v19, %v849_v56  ;;  %v843_v19 = vadd.f32 %v842_v3, %v5970_v28  ;;  %v951_v35 = vmul.f32 %v5900_v42, %v6099_v15  ;;  %v949_v56 = vmul.f32 %v5896_v39, %v6120_v50 }
 0x245   : > { %v860_v29 = vpop.f32.mrf.mxu0 }
 0x246   : > { %1361 = vrot.lane.b32.xlu1 %v6071_v54, %s5402_s20  ;;  %987 = vrot.lane.b32.xlu0 %v947_v48, %s5397_s28  ;;  %v6094_v48 = vadd.f32 %v850_v55, %v5966_v52  ;;  %v859_v55 = vadd.f32 %v858_v8, %v5970_v28 }
 0x247   : > { %v862_v17 = vpop.f32.mrf.mxu0 }
 0x248   : > { %v950_v57 = vmul.f32 %v5898_v40, %v6094_v48  ;;  %v1116_v40 = vmul.f32 %v5748_v18, %v843_v19  ;;  %v1119_v8 = vmul.f32 %v5771_v16, %v859_v55  ;;  %v853_v16 = vadd.f32 %v852_v51, %v5970_v28 }
 0x24a   : > { %3104 = vrot.lane.b32.xlu1 %v6071_v54, %s5403_s21  ;;  %1155 = vrot.lane.b32.xlu0 %v1115_v41, %s5397_s28  ;;  %v948_v41 = vmul.f32 %v5894_v38, %v6090_v2  ;;  %v866_v38 = vpop.f32.mrf.mxu0  ;;  %v1118_v39 = vmul.f32 %v5762_v22, %v853_v16  ;;  %v863_v22 = vadd.f32 %v862_v17, %v5970_v28 }
 0x24b   : > { %v6124_v3 = vadd.f32 %v866_v38, %v5966_v52  ;;  %v891_v38 = vmul.f32 %v5729_v13, %v5973_v21  ;;  %v1092_v16 = vmul.f32 %v5890_v20, %v5979_v24 }
 0x24c   : > { %v868_v9 = vpop.f32.mrf.mxu0 }
 0x24d   : > { %v869_v42 = vadd.f32 %v868_v9, %v5970_v28  ;;  %v953_v18 = vmul.f32 %v5904_v46, %v6124_v3  ;;  %v6149_v46 = vadd.f32 %v860_v29, %v5966_v52  ;;  %v1120_v29 = vmul.f32 %v5776_v26, %v863_v22 }
 0x24e   : > { %1153 = vrot.lane.b32.xlu1 %v1114_v36, %s5397_s28  ;;  %1159 = vrot.lane.b32.xlu0 %v1117_v12, %s5397_s28  ;;  %v6111_v12 = vpack.c.bf16 %v6090_v2, %v6067_v5  ;;  %v870_v49 = vpop.f32.mrf.mxu0  ;;  %v892_v26 = vmul.f32 %v5734_v14, %v5979_v24  ;;  %v1093_v24 = vmul.f32 %v5884_v33, %v5999_v1 }
 0x24f   : > { %v1121_v36 = vmul.f32 %v5788_v30, %v869_v42  ;;  %v952_v51 = vmul.f32 %v5902_v43, %v6149_v46 }
 0x250   : > { %v872_v19 = vpop.f32.mrf.mxu0 }
 0x251   : > { %v873_v43 = vadd.f32 %v872_v19, %v5970_v28  ;;  %v893_v19 = vmul.f32 %v5706_v6, %v5999_v1 }
 0x252   : > { %989 = vrot.lane.b32.xlu1 %v948_v41, %s5397_s28  ;;  %993 = vrot.lane.b32.xlu0 %v950_v57, %s5397_s28  ;;  %v6138_v41 = vadd.f32 %v870_v49, %v5966_v52  ;;  %v6142_v57 = vpack.c.bf16 %v6094_v48, %v6120_v50  ;;  %v6166_v52 = vpack.c.bf16 %v6149_v46, %v6099_v15 }
 0x253   : > { %v1122_v17 = vmul.f32 %v5793_v31, %v873_v43  ;;  %v1091_v49 = vmul.f32 %v5888_v58, %v5973_v21  ;;  %v894_v43 = vmul.f32 %v5711_v7, %v6003_v61 }
 0x254   : > { %v6153_v30 = vpack.c.bf16 %v6138_v41, %v6124_v3  ;;  %v954_v55 = vmul.f32 %v5906_v11, %v6138_v41 }
 0x256   : > { %1347 = vrot.lane.b32.xlu1 %v6111_v12, %s5401_s14  ;;  %995 = vrot.lane.b32.xlu0 %v951_v35, %s5397_s28 }
 0x25a   : > { %1157 = vrot.lane.b32.xlu1 %v1116_v40, %s5397_s28  ;;  %1163 = vrot.lane.b32.xlu0 %v1119_v8, %s5397_s28 }
 0x25e   : > { %991 = vrot.lane.b32.xlu1 %v949_v56, %s5397_s28  ;;  %999 = vrot.lane.b32.xlu0 %v953_v18, %s5397_s28 }
 0x262   : > { %1349 = vrot.lane.b32.xlu1 %v6142_v57, %s5401_s14  ;;  %1167 = vrot.lane.b32.xlu0 %v1121_v36, %s5397_s28 }
 0x266   : > { %1161 = vrot.lane.b32.xlu1 %v1118_v39, %s5397_s28  ;;  %1353 = vrot.lane.b32.xlu0 %v6153_v30, %s5401_s14 }
 0x26a   : > { %997 = vrot.lane.b32.xlu1 %v952_v51, %s5397_s28  ;;  %1369 = vrot.lane.b32.xlu0 %v6153_v30, %s5402_s20 }
 0x26e   : > { %1351 = vrot.lane.b32.xlu1 %v6166_v52, %s5401_s14 }
 0x272   : > { %1165 = vrot.lane.b32.xlu1 %v1120_v29, %s5397_s28 }
 0x276   : > { %1001 = vrot.lane.b32.xlu1 %v954_v55, %s5397_s28 }
 0x27a   : > { %1169 = vrot.lane.b32.xlu1 %v1122_v17, %s5397_s28  ;;  %s5404_s28 = smov 104  }
 0x288   : > { %v972_v35 = vpop.permute.xlu0 %971 }
 0x289   : > { %v1019_v40 = vadd.f32 %v972_v35, %v891_v38 }
 0x28b   : > { %v1035_v42 = vmul.f32 0.35355338, %v1019_v40 }
 0x28c   : > { %v974_v8 = vpop.permute.xlu1 %973  ;;  %v1140_v9 = vpop.permute.xlu0 %1139 }
 0x28d   : > { %v1020_v28 = vadd.f32 %v974_v8, %v892_v26  ;;  %v1187_v51 = vadd.f32 %v1140_v9, %v1091_v49  ;;  %v1094_v26 = vmul.f32 %v5886_v32, %v6003_v61 }
 0x28f   : > { %v1036_v56 = vmul.f32 0.35355338, %v1020_v28 }
 0x290   : > { %v6182_v11 = vpop.permute.xlu1 %1339  ;;  %v6184_v18 = vpop.permute.xlu0 %1355 }
 0x291   : > { %7924 = vst [vmem:[#allocation21_spill] sm:$0xff] %v6184_v18  ;;  %v1051_v31 = vpack.c.bf16 %v1036_v56, %v1035_v42 }
 0x293   : > { %4582 = vmatprep.mubr.msk.bf16.mxu1 %vm1395_vm8, %v1051_v31 }
 0x294   : > { %v1142_v36 = vpop.permute.xlu1 %1141  ;;  %v1144_v39 = vpop.permute.xlu0 %1143 }
 0x295   : > { %v1188_v22 = vadd.f32 %v1142_v36, %v1092_v16  ;;  %v1189_v7 = vadd.f32 %v1144_v39, %v1093_v24  ;;  %v895_v16 = vmul.f32 %v5689_v62, %v6016_v4  ;;  %v896_v39 = vmul.f32 %v5694_v63, %v6029_v44 }
 0x296   : > { %v1095_v62 = vmul.f32 %v5880_v47, %v6016_v4  ;;  %v897_v4 = vmul.f32 %v5674_v59, %v6050_v23 }
 0x297   : > { %v1203_v29 = vpack.c.bf16 %v1188_v22, %v1187_v51 }
 0x298   : > { %v976_v55 = vpop.permute.xlu1 %975  ;;  %v978_v17 = vpop.permute.xlu0 %977 }
 0x299   : > { %v1021_v35 = vadd.f32 %v976_v55, %v893_v19  ;;  %v1022_v21 = vadd.f32 %v978_v17, %v894_v43  ;;  %1387 = vrot.lane.b32.xlu1 %v1203_v29, %s5399_s25  ;;  %1283 = vrot.lane.b32.xlu0 %v1203_v29, %s5401_s14  ;;  %v1096_v55 = vmul.f32 %v5882_v45, %v6029_v44 }
 0x29b   : > { %v1037_v38 = vmul.f32 0.35355338, %v1021_v35  ;;  %v1038_v40 = vmul.f32 0.35355338, %v1022_v21 }
 0x29c   : > { %v1146_v6 = vpop.permute.xlu1 %1145  ;;  %v6201_v8 = vpop.permute.xlu0 %1341 }
 0x29d   : > { %v6203_v9 = vpack.c.bf16 %v1038_v40, %v1037_v38  ;;  %v1190_v28 = vadd.f32 %v1146_v6, %v1094_v26  ;;  %1299 = vrot.lane.b32.xlu0 %v1203_v29, %s5402_s20  ;;  %v898_v6 = vmul.f32 %v5679_v60, %v6060_v10 }
 0x29f   : > { %v1204_v42 = vpack.c.bf16 %v1190_v28, %v1189_v7 }
 0x2a0   : > { %v980_v56 = vpop.permute.xlu1 %979  ;;  %v6206_v49 = vpop.permute.xlu0 %1357 }
 0x2a1   : > { %1315 = vrot.lane.b32.xlu0 %v1203_v29, %s5404_s28  ;;  %1285 = vrot.lane.b32.xlu1 %v1204_v42, %s5401_s14  ;;  %v1023_v36 = vadd.f32 %v980_v56, %v895_v16 }
 0x2a3   : > { %v1039_v19 = vmul.f32 0.35355338, %v1023_v36 }
 0x2a4   : > { %v6210_v1 = vpop.permute.xlu1 %1343  ;;  %v1148_v61 = vpop.permute.xlu0 %1147 }
 0x2a5   : > { %1227 = vrot.lane.b32.xlu0 %v1051_v31, %s5401_s14  ;;  %1301 = vrot.lane.b32.xlu1 %v1204_v42, %s5402_s20  ;;  %v1191_v63 = vadd.f32 %v1148_v61, %v1095_v62  ;;  %v899_v62 = vmul.f32 %v5729_v13, %v6067_v5 }
 0x2a8   : > { %v6218_v51 = vpop.permute.xlu1 %3102  ;;  %v982_v22 = vpop.permute.xlu0 %981 }
 0x2a9   : > { %v1024_v29 = vadd.f32 %v982_v22, %v896_v39  ;;  %1243 = vrot.lane.b32.xlu0 %v1051_v31, %s5402_s20  ;;  %1229 = vrot.lane.b32.xlu1 %v6203_v9, %s5401_s14  ;;  %v1098_v39 = vmul.f32 %v5878_v37, %v6060_v10 }
 0x2ab   : > { %v1040_v43 = vmul.f32 0.35355338, %v1024_v29 }
 0x2ac   : > { %v1150_v17 = vpop.permute.xlu1 %1149  ;;  %v6227_v35 = vpop.permute.xlu0 %1359 }
 0x2ad   : > { %v6229_v21 = vpack.c.bf16 %v1040_v43, %v1039_v19  ;;  %v1192_v24 = vadd.f32 %v1150_v17, %v1096_v55  ;;  %1259 = vrot.lane.b32.xlu0 %v1051_v31, %s5404_s28  ;;  %1245 = vrot.lane.b32.xlu1 %v6203_v9, %s5402_s20 }
 0x2af   : > { %v1205_v38 = vpack.c.bf16 %v1192_v24, %v1191_v63 }
 0x2b0   : > { %v1152_v40 = vpop.permute.xlu1 %1151  ;;  %v984_v26 = vpop.permute.xlu0 %983 }
 0x2b1   : > { %1389 = vrot.lane.b32.xlu0 %v1204_v42, %s5399_s25  ;;  %1261 = vrot.lane.b32.xlu1 %v6203_v9, %s5404_s28  ;;  %v1025_v44 = vadd.f32 %v984_v26, %v897_v4  ;;  %v1100_v4 = vmul.f32 %v5890_v20, %v6090_v2  ;;  %v5351_v20 = vld [vmem:[%s7852_s8 + $0x10] sm:$0xff] }
 0x2b3   : > { %v1041_v56 = vmul.f32 0.35355338, %v1025_v44 }
 0x2b4   : > { %v986_v7 = vpop.permute.xlu1 %985  ;;  %v6241_v31 = vpop.permute.xlu0 %1345 }
 0x2b5   : > { %v1026_v28 = vadd.f32 %v986_v7, %v898_v6  ;;  %1317 = vrot.lane.b32.xlu0 %v1204_v42, %s5404_s28  ;;  %1287 = vrot.lane.b32.xlu1 %v1205_v38, %s5401_s14  ;;  %v1097_v42 = vmul.f32 %v5876_v25, %v6050_v23  ;;  %v900_v23 = vmul.f32 %v5734_v14, %v6090_v2 }
 0x2b6   : > { %v1099_v14 = vmul.f32 %v5888_v58, %v6067_v5  ;;  %v901_v5 = vmul.f32 %v5351_v20, %v6120_v50  ;;  %v5354_v20 = vld [vmem:[%s7852_s8 + $0x30] sm:$0xff] }
 0x2b7   : > { %v1042_v61 = vmul.f32 0.35355338, %v1026_v28  ;;  %v1193_v19 = vadd.f32 %v1152_v40, %v1097_v42  ;;  %v5350_v28 = vld [vmem:[%s7852_s8 + $0x18] sm:$0xff] }
 0x2b8   : > { %v6245_v59 = vpop.permute.xlu1 %1361  ;;  %v988_v60 = vpop.permute.xlu0 %987 }
 0x2b9   : > { %v6247_v16 = vpack.c.bf16 %v1042_v61, %v1041_v56  ;;  %1391 = vrot.lane.b32.xlu1 %v1205_v38, %s5399_s25  ;;  %1231 = vrot.lane.b32.xlu0 %v6229_v21, %s5401_s14  ;;  %v1027_v55 = vadd.f32 %v988_v60, %v899_v62  ;;  %v902_v56 = vmul.f32 %v5350_v28, %v6094_v48 }
 0x2ba   : > { %v1101_v62 = vmul.f32 %v5884_v33, %v6120_v50  ;;  %v5353_v33 = vld [vmem:[%s7852_s8 + $0x28] sm:$0xff]  ;;  %v1103_v28 = vmul.f32 %v5880_v47, %v6099_v15 }
 0x2bb   : > { %v1043_v40 = vmul.f32 0.35355338, %v1027_v55 }
 0x2bc   : > { %v6252_v36 = vpop.permute.xlu1 %3104  ;;  %v1156_v22 = vpop.permute.xlu0 %1155 }
 0x2bd   : > { %1303 = vrot.lane.b32.xlu1 %v1205_v38, %s5402_s20  ;;  %1247 = vrot.lane.b32.xlu0 %v6229_v21, %s5402_s20  ;;  %v1195_v7 = vadd.f32 %v1156_v22, %v1099_v14 }
 0x2c0   : > { %v1154_v29 = vpop.permute.xlu1 %1153  ;;  %v1160_v10 = vpop.permute.xlu0 %1159 }
 0x2c1   : > { %v1194_v43 = vadd.f32 %v1154_v29, %v1098_v39  ;;  %1319 = vrot.lane.b32.xlu1 %v1205_v38, %s5404_s28  ;;  %1263 = vrot.lane.b32.xlu0 %v6229_v21, %s5404_s28 }
 0x2c3   : > { %v1206_v17 = vpack.c.bf16 %v1194_v43, %v1193_v19  ;;  %v1102_v43 = vmul.f32 %v5886_v32, %v6094_v48  ;;  %v904_v32 = vmul.f32 %v5353_v33, %v6149_v46 }
 0x2c4   : > { %v990_v63 = vpop.permute.xlu1 %989  ;;  %v994_v44 = vpop.permute.xlu0 %993 }
 0x2c5   : > { %v1028_v24 = vadd.f32 %v990_v63, %v900_v23  ;;  %1321 = vrot.lane.b32.xlu1 %v1206_v17, %s5404_s28  ;;  %1289 = vrot.lane.b32.xlu0 %v1206_v17, %s5401_s14  ;;  %v1030_v60 = vadd.f32 %v994_v44, %v902_v56  ;;  %v1197_v23 = vadd.f32 %v1160_v10, %v1101_v62  ;;  %v5352_v63 = vld [vmem:[%s7852_s8 + $0x20] sm:$0xff] }
 0x2c6   : > { %v1104_v56 = vmul.f32 %v5882_v45, %v6149_v46  ;;  %v5355_v45 = vld [vmem:[%s7852_s8 + $0x38] sm:$0xff] }
 0x2c7   : > { %v1044_v13 = vmul.f32 0.35355338, %v1028_v24  ;;  %v1046_v39 = vmul.f32 0.35355338, %v1030_v60  ;;  %v903_v24 = vmul.f32 %v5352_v63, %v6099_v15  ;;  %v906_v46 = vmul.f32 %v5355_v45, %v6138_v41 }
 0x2c8   : > { %v6270_v26 = vpop.permute.xlu1 %1347  ;;  %v996_v55 = vpop.permute.xlu0 %995 }
 0x2c9   : > { %7925 = vst [vmem:[#allocation22_spill] sm:$0xff] %v6270_v26  ;;  %v6272_v38 = vpack.c.bf16 %v1044_v13, %v1043_v40  ;;  %1393 = vrot.lane.b32.xlu0 %v1206_v17, %s5399_s25  ;;  %1233 = vrot.lane.b32.xlu1 %v6247_v16, %s5401_s14  ;;  %v1031_v13 = vadd.f32 %v996_v55, %v903_v24 }
 0x2cc   : > { %v1158_v6 = vpop.permute.xlu1 %1157  ;;  %v1164_v10 = vpop.permute.xlu0 %1163 }
 0x2cd   : > { %v1196_v61 = vadd.f32 %v1158_v6, %v1100_v4  ;;  %1305 = vrot.lane.b32.xlu0 %v1206_v17, %s5402_s20  ;;  %1249 = vrot.lane.b32.xlu1 %v6247_v16, %s5402_s20  ;;  %v1047_v4 = vmul.f32 0.35355338, %v1031_v13 }
 0x2cf   : > { %v1207_v58 = vpack.c.bf16 %v1196_v61, %v1195_v7 }
 0x2d0   : > { %v992_v2 = vpop.permute.xlu1 %991  ;;  %v1000_v61 = vpop.permute.xlu0 %999 }
 0x2d1   : > { %v1029_v42 = vadd.f32 %v992_v2, %v901_v5  ;;  %1265 = vrot.lane.b32.xlu0 %v6247_v16, %s5404_s28  ;;  %1323 = vrot.lane.b32.xlu1 %v1207_v58, %s5404_s28  ;;  %v905_v5 = vmul.f32 %v5354_v20, %v6124_v3 }
 0x2d3   : > { %v1045_v22 = vmul.f32 0.35355338, %v1029_v42  ;;  %v1033_v47 = vadd.f32 %v1000_v61, %v905_v5 }
 0x2d4   : > { %v6295_v29 = vpop.permute.xlu1 %1349 }
 0x2d5   : > { %v6297_v19 = vpack.c.bf16 %v1046_v39, %v1045_v22  ;;  %1291 = vrot.lane.b32.xlu0 %v1207_v58, %s5401_s14  ;;  %v1168_v22 = vpop.permute.xlu0 %1167  ;;  %v1049_v62 = vmul.f32 0.35355338, %v1033_v47 }
 0x2d8   : > { %v1162_v17 = vpop.permute.xlu1 %1161 }
 0x2d9   : > { %v1198_v40 = vadd.f32 %v1162_v17, %v1102_v43  ;;  %1485 = vrot.lane.b32.xlu0 %v1207_v58, %s5399_s25  ;;  %v1105_v43 = vmul.f32 %v5876_v25, %v6124_v3  ;;  %v1106_v17 = vmul.f32 %v5878_v37, %v6138_v41  ;;  %v6362_v25 = vpop.permute.xlu0 %1353 }
 0x2db   : > { %v1208_v14 = vpack.c.bf16 %v1198_v40, %v1197_v23  ;;  %v1201_v63 = vadd.f32 %v1168_v22, %v1105_v43 }
 0x2dc   : > { %v998_v48 = vpop.permute.xlu1 %997 }
 0x2dd   : > { %v1032_v50 = vadd.f32 %v998_v48, %v904_v32  ;;  %1307 = vrot.lane.b32.xlu0 %v1207_v58, %s5402_s20  ;;  %1293 = vrot.lane.b32.xlu1 %v1208_v14, %s5401_s14  ;;  %v1199_v58 = vadd.f32 %v1164_v10, %v1103_v28  ;;  %v6369_v37 = vpop.permute.xlu0 %1369 }
 0x2de   : > { %7926 = vst [vmem:[#allocation23_spill] sm:$0xff] %v6369_v37 }
 0x2df   : > { %v1048_v44 = vmul.f32 0.35355338, %v1032_v50 }
 0x2e0   : > { %v6315_v6 = vpop.permute.xlu1 %1351 }
 0x2e1   : > { %v6317_v7 = vpack.c.bf16 %v1048_v44, %v1047_v4  ;;  %1235 = vrot.lane.b32.xlu0 %v6272_v38, %s5401_s14  ;;  %1237 = vrot.lane.b32.xlu1 %v6297_v19, %s5401_s14 }
 0x2e4   : > { %v1166_v60 = vpop.permute.xlu1 %1165 }
 0x2e5   : > { %v1200_v2 = vadd.f32 %v1166_v60, %v1104_v56  ;;  %1251 = vrot.lane.b32.xlu0 %v6272_v38, %s5402_s20  ;;  %1253 = vrot.lane.b32.xlu1 %v6297_v19, %s5402_s20 }
 0x2e7   : > { %v1209_v15 = vpack.c.bf16 %v1200_v2, %v1199_v58 }
 0x2e8   : > { %v1002_v42 = vpop.permute.xlu1 %1001 }
 0x2e9   : > { %v1034_v39 = vadd.f32 %v1002_v42, %v906_v46  ;;  %1267 = vrot.lane.b32.xlu0 %v6272_v38, %s5404_s28  ;;  %1269 = vrot.lane.b32.xlu1 %v6297_v19, %s5404_s28 }
 0x2eb   : > { %v1050_v55 = vmul.f32 0.35355338, %v1034_v39 }
 0x2ec   : > { %v1170_v23 = vpop.permute.xlu1 %1169 }
 0x2ed   : > { %v6347_v24 = vpack.c.bf16 %v1050_v55, %v1049_v62  ;;  %v1202_v40 = vadd.f32 %v1170_v23, %v1106_v17  ;;  %1487 = vrot.lane.b32.xlu0 %v1208_v14, %s5399_s25  ;;  %1295 = vrot.lane.b32.xlu1 %v1209_v15, %s5401_s14 }
 0x2ef   : > { %v1210_v13 = vpack.c.bf16 %v1202_v40, %v1201_v63 }
 0x2f1   : > { %1309 = vrot.lane.b32.xlu0 %v1208_v14, %s5402_s20  ;;  %1489 = vrot.lane.b32.xlu1 %v1209_v15, %s5399_s25 }
 0x2f5   : > { %1325 = vrot.lane.b32.xlu0 %v1208_v14, %s5404_s28  ;;  %1311 = vrot.lane.b32.xlu1 %v1209_v15, %s5402_s20 }
 0x2f9   : > { %1239 = vrot.lane.b32.xlu0 %v6317_v7, %s5401_s14  ;;  %1327 = vrot.lane.b32.xlu1 %v1209_v15, %s5404_s28 }
 0x2fd   : > { %1271 = vrot.lane.b32.xlu0 %v6317_v7, %s5404_s28  ;;  %1255 = vrot.lane.b32.xlu1 %v6317_v7, %s5402_s20 }
 0x301   : > { %1329 = vrot.lane.b32.xlu1 %v1210_v13, %s5404_s28  ;;  %1297 = vrot.lane.b32.xlu0 %v1210_v13, %s5401_s14 }
 0x305   : > { %1241 = vrot.lane.b32.xlu1 %v6347_v24, %s5401_s14  ;;  %1491 = vrot.lane.b32.xlu0 %v1210_v13, %s5399_s25  ;;  %s5406_s14 = smov 16  }
 0x309   : > { %1257 = vrot.lane.b32.xlu1 %v6347_v24, %s5402_s20  ;;  %1313 = vrot.lane.b32.xlu0 %v1210_v13, %s5402_s20 }
 0x30b   : > { %v1284_v3 = vpop.permute.xlu0 %1283  ;;  %v1388_v41 = vpop.permute.xlu1 %1387 }
 0x30d   : > { %1273 = vrot.lane.b32.xlu1 %v6347_v24, %s5404_s28  ;;  %1582 = vrot.lane.b32.xlu0 %v1284_v3, %s5399_s25 }
 0x30f   : > { %v1300_v14 = vpop.permute.xlu0 %1299 }
 0x311   : > { %1776 = vrot.lane.b32.xlu1 %v1300_v14, %s5399_s25 }
 0x313   : > { %v1286_v33 = vpop.permute.xlu1 %1285  ;;  %v1316_v32 = vpop.permute.xlu0 %1315 }
 0x314   : > { %1970 = vrot.lane.b32.xlu0 %v1316_v32, %s5399_s25 }
 0x317   : > { %v1302_v48 = vpop.permute.xlu1 %1301  ;;  %v1228_v50 = vpop.permute.xlu0 %1227 }
 0x318   : > { %1778 = vrot.lane.b32.xlu1 %v1302_v48, %s5399_s25  ;;  %1584 = vrot.lane.b32.xlu0 %v1286_v33, %s5399_s25 }
 0x319   : > { %4614 = vmatprep.mubr.msk.bf16.mxu0 %vm1395_vm8, %v1228_v50  ;;  %v1409_v50 = vsel %vm1395_vm8, %v1388_v41, 0 }
 0x31b   : > { %v6382_v10 = vpop.permute.xlu1 %1229  ;;  %v6384_v4 = vpop.permute.xlu0 %1243 }
 0x31f   : > { %v6386_v44 = vpop.permute.xlu1 %1245  ;;  %v6388_v28 = vpop.permute.xlu0 %1259 }
 0x323   : > { %v6390_v56 = vpop.permute.xlu1 %1261  ;;  %v1390_v61 = vpop.permute.xlu0 %1389 }
 0x324   : > { %v1412_v3 = vsel %vm1395_vm8, %v1390_v61, 0 }
 0x327   : > { %v1288_v60 = vpop.permute.xlu1 %1287  ;;  %v1318_v58 = vpop.permute.xlu0 %1317 }
 0x328   : > { %1972 = vrot.lane.b32.xlu1 %v1318_v58, %s5399_s25 }
 0x32b   : > { %v1392_v20 = vpop.permute.xlu1 %1391  ;;  %v6393_v5 = vpop.permute.xlu0 %1231 }
 0x32c   : > { %1586 = vrot.lane.b32.xlu1 %v1288_v60, %s5399_s25  ;;  %v1415_v17 = vsel %vm1395_vm8, %v1392_v20, 0 }
 0x32f   : > { %v1304_v2 = vpop.permute.xlu1 %1303  ;;  %v6396_v47 = vpop.permute.xlu0 %1247 }
 0x330   : > { %1780 = vrot.lane.b32.xlu0 %v1304_v2, %s5399_s25 }
 0x333   : > { %v1320_v15 = vpop.permute.xlu1 %1319  ;;  %v6399_v45 = vpop.permute.xlu0 %1263 }
 0x334   : > { %1974 = vrot.lane.b32.xlu0 %v1320_v15, %s5399_s25 }
 0x337   : > { %v1290_v46 = vpop.permute.xlu0 %1289  ;;  %v1322_v42 = vpop.permute.xlu1 %1321 }
 0x338   : > { %1588 = vrot.lane.b32.xlu1 %v1290_v46, %s5399_s25 }
 0x33b   : > { %v1394_v39 = vpop.permute.xlu0 %1393  ;;  %v6406_v62 = vpop.permute.xlu1 %1233 }
 0x33c   : > { %4850 = vmatprep.subr.msk.bf16.mxu1 %vm1395_vm8, %v1394_v39  ;;  %v1418_v22 = vsel %vm1395_vm8, %v1394_v39, 0 }
 0x33d   : > { %4575 = vmatpush3.bf16.xpose.msra.mxu1 %v1418_v22 }
 0x33e   : > { %4851 = vmatprep.subr.msk.bf16.mxu1 %vm1395_vm8, %v1392_v20 }
 0x33f   : > { %v1306_v43 = vpop.permute.xlu0 %1305  ;;  %v6413_v23 = vpop.permute.xlu1 %1249 }
 0x340   : > { %1782 = vrot.lane.b32.xlu0 %v1306_v43, %s5399_s25 }
 0x343   : > { %v6409_v55 = vpop.permute.xlu0 %1265  ;;  %v1324_v40 = vpop.permute.xlu1 %1323 }
 0x344   : > { %1976 = vrot.lane.b32.xlu0 %v1322_v42, %s5399_s25 }
 0x345   : > { %4577 = vmatpush3.bf16.xpose.msra.mxu1 %v1415_v17 }
 0x346   : > { %4852 = vmatprep.subr.msk.bf16.mxu1 %vm1395_vm8, %v1390_v61 }
 0x347   : > { %v1292_v63 = vpop.permute.xlu0 %1291 }
 0x348   : > { %1679 = vrot.lane.b32.xlu1 %v1292_v63, %s5399_s25 }
 0x34b   : > { %v6417_v13 = vpop.permute.xlu0 %1485 }
 0x34d   : > { %4579 = vmatpush3.bf16.xpose.msra.mxu1 %v1412_v3 }
 0x34e   : > { %4853 = vmatprep.subr.msk.bf16.mxu1 %vm1395_vm8, %v1388_v41 }
 0x34f   : > { %v1294_v14 = vpop.permute.xlu1 %1293  ;;  %v1308_v33 = vpop.permute.xlu0 %1307 }
 0x350   : > { %1873 = vrot.lane.b32.xlu1 %v1308_v33, %s5399_s25 }
 0x353   : > { %v6422_v32 = vpop.permute.xlu1 %1237  ;;  %v6424_v48 = vpop.permute.xlu0 %1235 }
 0x354   : > { %2067 = vrot.lane.b32.xlu1 %v1324_v40, %s5399_s25 }
 0x355   : > { %4581 = vmatpush3.bf16.xpose.msra.mxu1 %v1409_v50 }
 0x357   : > { %v6428_v60 = vpop.permute.xlu1 %1253  ;;  %v6430_v58 = vpop.permute.xlu0 %1251 }
 0x358   : > { %1681 = vrot.lane.b32.xlu1 %v1294_v14, %s5399_s25 }
 0x35b   : > { %v6433_v61 = vpop.permute.xlu1 %1269  ;;  %v6435_v20 = vpop.permute.xlu0 %1267 }
 0x35c   : > { %4583 = vmatmul.mubr.msk.bf16.vlgmr.msra.gmra.mxu1 %vm1395_vm8, %v6203_v9 }
 0x35d   : > { %4586 = vmatprep.mubr.msk.bf16.mxu1 %vm1395_vm8, %v6229_v21 }
 0x35f   : > { %v1296_v2 = vpop.permute.xlu1 %1295  ;;  %v1488_v15 = vpop.permute.xlu0 %1487 }
 0x363   : > { %v1490_v41 = vpop.permute.xlu1 %1489  ;;  %v1310_v46 = vpop.permute.xlu0 %1309 }
 0x364   : > { %4587 = vmatmul.mubr.msk.bf16.gmra.mxu1 %vm1395_vm8, %v6247_v16  ;;  %1875 = vrot.lane.b32.xlu1 %v1310_v46, %s5399_s25 }
 0x365   : > { %4598 = vmatprep.mubr.msk.bf16.mxu1 %vm1395_vm8, %v6272_v38 }
 0x367   : > { %v1312_v42 = vpop.permute.xlu1 %1311  ;;  %v1326_v39 = vpop.permute.xlu0 %1325 }
 0x368   : > { %1683 = vrot.lane.b32.xlu1 %v1296_v2, %s5399_s25  ;;  %2069 = vrot.lane.b32.xlu0 %v1326_v39, %s5399_s25 }
 0x36b   : > { %v1328_v9 = vpop.permute.xlu1 %1327  ;;  %v6448_v21 = vpop.permute.xlu0 %1239 }
 0x36c   : > { %2071 = vrot.lane.b32.xlu1 %v1328_v9, %s5399_s25  ;;  %1877 = vrot.lane.b32.xlu0 %v1312_v42, %s5399_s25 }
 0x36f   : > { %v6452_v22 = vpop.permute.xlu0 %1271  ;;  %v6465_v17 = vpop.permute.xlu1 %1255 }
 0x370   : > { %1367 = vrot.lane.b32.xlu0 %v6166_v52, %s5402_s20 }
 0x373   : > { %v1298_v16 = vpop.permute.xlu0 %1297  ;;  %v1330_v63 = vpop.permute.xlu1 %1329 }
 0x374   : > { %3098 = vrot.lane.b32.xlu0 %v5991_v53, %s5403_s21  ;;  %1685 = vrot.lane.b32.xlu1 %v1298_v16, %s5399_s25 }
 0x377   : > { %v1492_v38 = vpop.permute.xlu0 %1491  ;;  %v6482_v40 = vpop.permute.xlu1 %1241 }
 0x378   : > { %3193 = vrot.lane.b32.xlu0 %v6153_v30, %s5403_s21  ;;  %1377 = vrot.lane.b32.xlu1 %v6071_v54, %s5404_s28  ;;  %v1515_v43 = vsel %vm1395_vm8, %v1492_v38, 0  ;;  %v1512_v54 = vsel %vm1395_vm8, %v1490_v41, 0 }
 0x379   : > { %4854 = vmatprep.subr.msk.bf16.mxu1 %vm1395_vm8, %v1492_v38 }
 0x37a   : > { %4591 = vmatpush3.bf16.xpose.msra.mxu1 %v1515_v43 }
 0x37b   : > { %4855 = vmatprep.subr.msk.bf16.mxu1 %vm1395_vm8, %v1490_v41  ;;  %v6491_v3 = vpop.permute.xlu1 %1257 }
 0x37c   : > { %1363 = vrot.lane.b32.xlu0 %v6111_v12, %s5402_s20  ;;  %3100 = vrot.lane.b32.xlu1 %v6020_v34, %s5403_s21 }
 0x380   : > { %3191 = vrot.lane.b32.xlu0 %v6166_v52, %s5403_s21  ;;  %1375 = vrot.lane.b32.xlu1 %v6037_v0, %s5404_s28  ;;  %v1509_v0 = vsel %vm1395_vm8, %v1488_v15, 0 }
 0x382   : > { %4593 = vmatpush3.bf16.xpose.msra.mxu1 %v1512_v54 }
 0x383   : > { %4856 = vmatprep.subr.msk.bf16.mxu1 %vm1395_vm8, %v1488_v15 }
 0x384   : > { %1383 = vrot.lane.b32.xlu0 %v6166_v52, %s5404_s28  ;;  %1365 = vrot.lane.b32.xlu1 %v6142_v57, %s5402_s20  ;;  %v6503_v52 = vpop.permute.xlu1 %1273 }
 0x388   : > { %1381 = vrot.lane.b32.xlu0 %v6142_v57, %s5404_s28  ;;  %1373 = vrot.lane.b32.xlu1 %v6020_v34, %s5404_s28  ;;  %v1506_v34 = vsel %vm1395_vm8, %v6417_v13, 0 }
 0x38a   : > { %4595 = vmatpush3.bf16.xpose.msra.mxu1 %v1509_v0 }
 0x38b   : > { %4857 = vmatprep.subr.msk.bf16.mxu1 %vm1395_vm8, %v6417_v13 }
 0x38c   : > { %3282 = vrot.lane.b32.xlu0 %v6241_v31, %s5403_s21  ;;  %1371 = vrot.lane.b32.xlu1 %v5991_v53, %s5404_s28  ;;  %v6509_v31 = vpop.permute.xlu1 %1776 }
 0x390   : > { %1379 = vrot.lane.b32.xlu0 %v6111_v12, %s5404_s28  ;;  %1385 = vrot.lane.b32.xlu1 %v6153_v30, %s5404_s28  ;;  %v1779_v53 = vpop.permute.xlu1 %1778 }
 0x392   : > { %4597 = vmatpush3.bf16.xpose.msra.mxu1 %v1506_v34 }
 0x394   : > { %3278 = vrot.lane.b32.xlu0 %v6201_v8, %s5403_s21  ;;  %3189 = vrot.lane.b32.xlu1 %v6142_v57, %s5403_s21  ;;  %v1314_v57 = vpop.permute.xlu0 %1313 }
 0x398   : > { %3371 = vrot.lane.b32.xlu0 %v6362_v25, %s5403_s21  ;;  %3187 = vrot.lane.b32.xlu1 %v6111_v12, %s5403_s21  ;;  %v1583_v8 = vpop.permute.xlu0 %1582 }
 0x399   : > { %4599 = vmatmul.mubr.msk.bf16.vlgmr.msra.gmra.mxu1 %vm1395_vm8, %v6297_v19  ;;  %v1603_v25 = vsel %vm1395_vm8, %v1583_v8, 0 }
 0x39a   : > { %4602 = vmatprep.mubr.msk.bf16.mxu1 %vm1395_vm8, %v6317_v7  ;;  %v6523_v30 = vpop.permute.xlu1 %1972 }
 0x39c   : > { %3369 = vrot.lane.b32.xlu0 %v6315_v6, %s5403_s21  ;;  %3280 = vrot.lane.b32.xlu1 %v6210_v1, %s5403_s21  ;;  %v6542_v19 = vpop.permute.xlu0 %1970 }
 0x39e   : > { %v1587_v12 = vpop.permute.xlu1 %1586 }
 0x3a0   : > { %3276 = vrot.lane.b32.xlu1 %v6182_v11, %s5403_s21  ;;  %1879 = vrot.lane.b32.xlu0 %v1314_v57, %s5399_s25 }
 0x3a1   : > { %4603 = vmatmul.mubr.msk.bf16.gmra.mxu1 %vm1395_vm8, %v6347_v24 }
 0x3a2   : > { %4630 = vmatprep.mubr.msk.bf16.mxu1 %vm1395_vm8, %v6424_v48 }
 0x3a4   : > { %3460 = vrot.lane.b32.xlu1 %v6245_v59, %s5403_s21  ;;  %2073 = vrot.lane.b32.xlu0 %v1330_v63, %s5399_s25  ;;  %v1609_v59 = vsel %vm1395_vm8, %v1587_v12, 0  ;;  %s5405_s25 = smov 8  }
 0x3a8   : > { %3458 = vrot.lane.b32.xlu1 %v6227_v35, %s5403_s21  ;;  %v1585_v35 = vpop.permute.xlu0 %1584 }
 0x3a9   : > { %v1606_v7 = vsel %vm1395_vm8, %v1585_v35, 0 }
 0x3aa   : > { %v1589_v1 = vpop.permute.xlu1 %1588 }
 0x3ab   : > { %4858 = vmatprep.subr.msk.bf16.mxu0 %vm1395_vm8, %v1589_v1  ;;  %v1612_v11 = vsel %vm1395_vm8, %v1589_v1, 0 }
 0x3ac   : > { %4607 = vmatpush3.bf16.xpose.msra.mxu0 %v1612_v11  ;;  %3367 = vrot.lane.b32.xlu1 %v6295_v29, %s5403_s21  ;;  %v1781_v6 = vpop.permute.xlu0 %1780 }
 0x3ad   : > { %4859 = vmatprep.subr.msk.bf16.mxu0 %vm1395_vm8, %v1587_v12  ;;  %v1803_v50 = vsel %vm1395_vm8, %v1781_v6, 0  ;;  %v1991_v12 = vsel %vm1395_vm8, %v6542_v19, 0 }
 0x3b0   : > { %3456 = vrot.lane.b32.xlu1 %v6206_v49, %s5403_s21  ;;  %v1975_v29 = vpop.permute.xlu0 %1974 }
 0x3b4   : > { %4609 = vmatpush3.bf16.xpose.msra.mxu0 %v1609_v59  ;;  %v1783_v13 = vpop.permute.xlu0 %1782  ;;  %v7944_v59 = vld [vmem:[#allocation6_spill] sm:$0xff] }
 0x3b5   : > { %4860 = vmatprep.subr.msk.bf16.mxu0 %vm1395_vm8, %v1585_v35  ;;  %v1806_v14 = vsel %vm1395_vm8, %v1783_v13, 0 }
 0x3ba   : > { %v1680_v24 = vpop.permute.xlu1 %1679 }
 0x3bc   : > { %4611 = vmatpush3.bf16.xpose.msra.mxu0 %v1606_v7 }
 0x3bd   : > { %4861 = vmatprep.subr.msk.bf16.mxu0 %vm1395_vm8, %v1583_v8 }
 0x3c2   : > { %v6552_v49 = vpop.permute.xlu1 %1873 }
 0x3c4   : > { %4613 = vmatpush3.bf16.xpose.msra.mxu0 %v1603_v25 }
 0x3c5   : > { %4866 = vmatprep.subr.msk.bf16.mxu0 %vm1395_vm8, %v1783_v13 }
 0x3c6   : > { %v6557_v33 = vpop.permute.xlu1 %2067 }
 0x3ca   : > { %v1682_v48 = vpop.permute.xlu1 %1681 }
 0x3cb   : > { %4615 = vmatmul.mubr.msk.bf16.vlgmr.msra.gmra.mxu0 %vm1395_vm8, %v6382_v10  ;;  %v1977_v10 = vpop.permute.xlu0 %1976  ;;  %v1703_v34 = vsel %vm1395_vm8, %v1682_v48, 0 }
 0x3cc   : > { %4618 = vmatprep.mubr.msk.bf16.mxu0 %vm1395_vm8, %v6393_v5  ;;  %4639 = vmatpush3.bf16.xpose.msra.mxu0 %v1806_v14  ;;  %v1800_v5 = vsel %vm1395_vm8, %v1779_v53, 0  ;;  %v2000_v43 = vsel %vm1395_vm8, %v1977_v10, 0  ;;  %v7948_v14 = vld [vmem:[#allocation5_spill] sm:$0xff] }
 0x3cd   : > { %4867 = vmatprep.subr.msk.bf16.mxu0 %vm1395_vm8, %v1781_v6  ;;  %v7946_v6 = vmov -100.0  }
 0x3d3   : > { %4619 = vmatmul.mubr.msk.bf16.gmra.mxu0 %vm1395_vm8, %v6406_v62 }
 0x3d4   : > { %4641 = vmatpush3.bf16.xpose.msra.mxu0 %v1803_v50  ;;  %4646 = vmatprep.mubr.msk.bf16.mxu0 %vm1395_vm8, %v6384_v4  ;;  %v1797_v4 = vsel %vm1395_vm8, %v6509_v31, 0 }
 0x3d5   : > { %4868 = vmatprep.subr.msk.bf16.mxu0 %vm1395_vm8, %v1779_v53  ;;  %v1700_v53 = vsel %vm1395_vm8, %v1680_v24, 0 }
 0x3d6   : > { %v6568_v2 = vpop.permute.xlu1 %1875 }
 0x3da   : > { %v6570_v15 = vpop.permute.xlu0 %2069  ;;  %v1684_v41 = vpop.permute.xlu1 %1683 }
 0x3db   : > { %v1706_v54 = vsel %vm1395_vm8, %v1684_v41, 0 }
 0x3dc   : > { %4643 = vmatpush3.bf16.xpose.msra.mxu0 %v1800_v5 }
 0x3dd   : > { %4869 = vmatprep.subr.msk.bf16.mxu0 %vm1395_vm8, %v6509_v31 }
 0x3de   : > { %v6575_v62 = vpop.permute.xlu0 %1877  ;;  %v6577_v46 = vpop.permute.xlu1 %2071 }
 0x3df   : > { %v1900_v35 = vsel %vm1395_vm8, %v6575_v62, 0 }
 0x3e2   : > { %v6579_v42 = vpop.permute.xlu0 %1367 }
 0x3e3   : > { %7927 = vst [vmem:[#allocation24_spill] sm:$0xff] %v6579_v42 }
 0x3e4   : > { %4645 = vmatpush3.bf16.xpose.msra.mxu0 %v1797_v4  ;;  %v7950_v4 = vld [vmem:[#allocation10_spill] sm:$0xff] }
 0x3e5   : > { %4874 = vmatprep.subr.msk.bf16.mxu0 %vm1395_vm8, %v1977_v10 }
 0x3e6   : > { %v1686_v39 = vpop.permute.xlu1 %1685  ;;  %v3099_v9 = vpop.permute.xlu0 %3098 }
 0x3e7   : > { %4862 = vmatprep.subr.msk.bf16.mxu1 %vm1395_vm8, %v1686_v39  ;;  %v1709_v16 = vsel %vm1395_vm8, %v1686_v39, 0 }
 0x3e8   : > { %4623 = vmatpush3.bf16.xpose.msra.mxu1 %v1709_v16 }
 0x3e9   : > { %4863 = vmatprep.subr.msk.bf16.mxu1 %vm1395_vm8, %v1684_v41 }
 0x3ea   : > { %v6587_v38 = vpop.permute.xlu0 %3193  ;;  %v6625_v8 = vpop.permute.xlu1 %1377 }
 0x3eb   : > { %7928 = vst [vmem:[#allocation25_spill] sm:$0xff] %v6587_v38  ;;  %4647 = vmatmul.mubr.msk.bf16.vlgmr.msra.gmra.mxu0 %vm1395_vm8, %v6386_v44  ;;  %v1997_v44 = vsel %vm1395_vm8, %v1975_v29, 0  ;;  %7935 = vst [vmem:[#allocation32_spill] sm:$0xff] %v6625_v8 }
 0x3ec   : > { %4650 = vmatprep.mubr.msk.bf16.mxu0 %vm1395_vm8, %v6396_v47  ;;  %4671 = vmatpush3.bf16.xpose.msra.mxu0 %v2000_v43 }
 0x3ed   : > { %4875 = vmatprep.subr.msk.bf16.mxu0 %vm1395_vm8, %v1975_v29 }
 0x3ee   : > { %v6595_v63 = vpop.permute.xlu0 %1363  ;;  %v3101_v11 = vpop.permute.xlu1 %3100 }
 0x3ef   : > { %7929 = vst [vmem:[#allocation26_spill] sm:$0xff] %v6595_v63 }
 0x3f0   : > { %4625 = vmatpush3.bf16.xpose.msra.mxu1 %v1706_v54 }
 0x3f1   : > { %4864 = vmatprep.subr.msk.bf16.mxu1 %vm1395_vm8, %v1682_v48  ;;  %v7949_v48 = vld [vmem:[#allocation7_spill] sm:$0xff] }
 0x3f2   : > { %v6599_v0 = vpop.permute.xlu0 %3191 }
 0x3f3   : > { %7930 = vst [vmem:[#allocation27_spill] sm:$0xff] %v6599_v0  ;;  %4651 = vmatmul.mubr.msk.bf16.gmra.mxu0 %vm1395_vm8, %v6413_v23  ;;  %v1994_v23 = vsel %vm1395_vm8, %v6523_v30, 0 }
 0x3f4   : > { %4673 = vmatpush3.bf16.xpose.msra.mxu0 %v1997_v44  ;;  %4678 = vmatprep.mubr.msk.bf16.mxu0 %vm1395_vm8, %v6388_v28  ;;  %v1897_v44 = vsel %vm1395_vm8, %v6568_v2, 0 }
 0x3f5   : > { %4876 = vmatprep.subr.msk.bf16.mxu0 %vm1395_vm8, %v6523_v30 }
 0x3f6   : > { %v6608_v47 = vpop.permute.xlu0 %1383 }
 0x3f7   : > { %7931 = vst [vmem:[#allocation28_spill] sm:$0xff] %v6608_v47 }
 0x3f8   : > { %4627 = vmatpush3.bf16.xpose.msra.mxu1 %v1703_v34 }
 0x3f9   : > { %4865 = vmatprep.subr.msk.bf16.mxu1 %vm1395_vm8, %v1680_v24 }
 0x3fa   : > { %v6612_v31 = vpop.permute.xlu0 %1381 }
 0x3fb   : > { %7932 = vst [vmem:[#allocation29_spill] sm:$0xff] %v6612_v31 }
 0x3fc   : > { %4675 = vmatpush3.bf16.xpose.msra.mxu0 %v1994_v23  ;;  %v7952_v23 = vld [vmem:[#allocation11_spill] sm:$0xff] }
 0x3fd   : > { %4877 = vmatprep.subr.msk.bf16.mxu0 %vm1395_vm8, %v6542_v19 }
 0x3fe   : > { %v6618_v28 = vpop.permute.xlu0 %3282 }
 0x3ff   : > { %7933 = vst [vmem:[#allocation30_spill] sm:$0xff] %v6618_v28 }
 0x400   : > { %4629 = vmatpush3.bf16.xpose.msra.mxu1 %v1700_v53 }
 0x402   : > { %v6621_v57 = vpop.permute.xlu0 %1379 }
 0x403   : > { %7934 = vst [vmem:[#allocation31_spill] sm:$0xff] %v6621_v57 }
 0x404   : > { %4677 = vmatpush3.bf16.xpose.msra.mxu0 %v1991_v12 }
 0x405   : > { %4702 = vmatprep.subr.bf16.mxu0 %v6252_v36 }
 0x406   : > { %v6628_v30 = vpop.permute.xlu0 %3278 }
 0x407   : > { %7936 = vst [vmem:[#allocation33_spill] sm:$0xff] %v6628_v30  ;;  %4631 = vmatmul.mubr.msk.bf16.vlgmr.msra.gmra.mxu1 %vm1395_vm8, %v6422_v32  ;;  %v6649_v32 = vpop.permute.xlu1 %1375 }
 0x408   : > { %4634 = vmatprep.mubr.msk.bf16.mxu1 %vm1395_vm8, %v6448_v21  ;;  %7939 = vst [vmem:[#allocation36_spill] sm:$0xff] %v6649_v32 }
 0x40a   : > { %v6634_v1 = vpop.permute.xlu0 %3371 }
 0x40b   : > { %7937 = vst [vmem:[#allocation34_spill] sm:$0xff] %v6634_v1  ;;  %4679 = vmatmul.mubr.msk.bf16.vlgmr.msra.gmra.mxu0 %vm1395_vm8, %v6390_v56 }
 0x40c   : > { %4682 = vmatprep.mubr.msk.bf16.mxu0 %vm1395_vm8, %v6399_v45  ;;  %4703 = vmatpush3.bf16.msra.mxu0 %v6252_v36  ;;  %v7940_v45 = vld [vmem:[#allocation3_spill] sm:$0xff] }
 0x40d   : > { %4704 = vmatprep.subr.bf16.mxu0 %v6218_v51 }
 0x40e   : > { %v6642_v19 = vpop.permute.xlu0 %3369 }
 0x40f   : > { %7938 = vst [vmem:[#allocation35_spill] sm:$0xff] %v6642_v19  ;;  %4635 = vmatmul.mubr.msk.bf16.gmra.mxu1 %vm1395_vm8, %v6482_v40  ;;  %v6661_v40 = vpop.permute.xlu1 %1365 }
 0x410   : > { %4662 = vmatprep.mubr.msk.bf16.mxu1 %vm1395_vm8, %v6430_v58  ;;  %4705 = vmatpush3.bf16.msra.mxu0 %v6218_v51  ;;  %v7941_v51 = vld [vmem:[#allocation2_spill] sm:$0xff]  ;;  %7943 = vst [vmem:[#allocation3_spill] sm:$0xff] %v6661_v40 }
 0x411   : > { %4706 = vmatprep.subr.bf16.mxu0 %v3101_v11  ;;  %v7942_v58 = vrot.slane %v7940_v45, %v7941_v51 }
 0x412   : > { %v1880_v56 = vpop.permute.xlu0 %1879 }
 0x413   : > { %4870 = vmatprep.subr.msk.bf16.mxu1 %vm1395_vm8, %v1880_v56  ;;  %4683 = vmatmul.mubr.msk.bf16.gmra.mxu0 %vm1395_vm8, %v6409_v55  ;;  %v1903_v36 = vsel %vm1395_vm8, %v1880_v56, 0  ;;  %v2260_v21 = vrot.slane %v7942_v58, %v5783_v27  ;;  %v7945_v55 = vld [vmem:[#allocation4_spill] sm:$0xff]  ;;  %v6671_v24 = vpop.permute.xlu1 %1373 }
 0x414   : > { %4655 = vmatpush3.bf16.xpose.msra.mxu1 %v1903_v36  ;;  %4707 = vmatpush3.bf16.msra.mxu0 %v3101_v11  ;;  %7947 = vst [vmem:[#allocation2_spill] sm:$0xff] %v6671_v24  ;;  %v7953_v56 = vld [vmem:[#allocation8_spill] sm:$0xff]  ;;  %v7954_v36 = vld [vmem:[#allocation9_spill] sm:$0xff] }
 0x415   : > { %4871 = vmatprep.subr.msk.bf16.mxu1 %vm1395_vm8, %v6575_v62  ;;  %4708 = vmatprep.subr.bf16.mxu0 %v3099_v9  ;;  %vm2267_vm9 = vcmp.eq.s32.totalorder %v7944_v59, %v2260_v21  ;;  %vm2265_vm10 = vcmp.eq.s32.totalorder %v7945_v55, %v2260_v21  ;;  %vm2266_vm12 = vcmp.eq.s32.totalorder %v7948_v14, %v2260_v21 }
 0x416   : > { %v6669_v7 = vsel %vm2267_vm9, 0.0, %v7946_v6  ;;  %v6679_v25 = vsel %vm2265_vm10, 0.0, %v7946_v6  ;;  %vm2268_vm13 = vcmp.eq.s32.totalorder %v7949_v48, %v2260_v21  ;;  %v6689_v41 = vsel %vm2266_vm12, 0.0, %v7946_v6 }
 0x417   : > { %v6692_v62 = vsel %vm2268_vm13, 0.0, %v7946_v6  ;;  %vm2271_vm14 = vcmp.eq.s32.totalorder %v7950_v4, %v2260_v21  ;;  %vm2272_vm15 = vcmp.eq.s32.totalorder %v7952_v23, %v2260_v21  ;;  %vm2269_vm1 = vcmp.eq.s32.totalorder %v7953_v56, %v2260_v21  ;;  %v2074_v4 = vpop.permute.xlu0 %2073  ;;  %v7962_v56 = vld [vmem:[#allocation13_spill] sm:$0xff] }
 0x418   : > { %4709 = vmatpush3.bf16.msra.mxu0 %v3099_v9  ;;  %v6695_v9 = vpop.permute.xlu1 %1371  ;;  %v6713_v12 = vsel %vm2271_vm14, 0.0, %v7946_v6  ;;  %vm2270_vm2 = vcmp.eq.s32.totalorder %v7954_v36, %v2260_v21  ;;  %v6723_v51 = vsel %vm2272_vm15, 0.0, %v7946_v6 }
 0x419   : > { %4718 = vmatprep.subr.bf16.mxu0 %v6587_v38  ;;  %7951 = vst [vmem:[#allocation6_spill] sm:$0xff] %v6695_v9  ;;  %v6734_v21 = vsel %vm2270_vm2, 0.0, %v7946_v6 }
 0x41c   : > { %v4584_v29 = vpop.f32.mrf.mxu1  ;;  %4657 = vmatpush3.bf16.xpose.msra.mxu1 %v1900_v35  ;;  %v6725_v59 = vpop.permute.xlu1 %1385  ;;  %v6731_v35 = vsel %vm2269_vm1, 0.0, %v7946_v6 }
 0x41d   : > { %v6674_v27 = vadd.f32 %v4584_v29, %v6669_v7  ;;  %4872 = vmatprep.subr.msk.bf16.mxu1 %vm1395_vm8, %v6568_v2  ;;  %7955 = vst [vmem:[#allocation4_spill] sm:$0xff] %v6725_v59 }
 0x41e   : > { %v1454_v13 = vpop.f32.mrf.mxu1 }
 0x41f   : > { %v6684_v50 = vadd.f32 %v6679_v25, %v1454_v13  ;;  %v2368_v10 = vsel %vm2361_vm11, %v6674_v27, -inf }
 0x420   : > { %v4585_v5 = vpop.f32.mrf.mxu1  ;;  %2369 = vmax.xlane.f32.xlu0 %v2368_v10 }
 0x421   : > { %v6698_v16 = vadd.f32 %v4585_v5, %v6692_v62  ;;  %v2362_v54 = vsel %vm2361_vm11, %v6684_v50, -inf  ;;  %v1894_v5 = vsel %vm1395_vm8, %v6552_v49, 0 }
 0x422   : > { %v1457_v39 = vpop.f32.mrf.mxu1 }
 0x423   : > { %v6701_v43 = vadd.f32 %v6689_v41, %v1457_v39  ;;  %v2371_v45 = vsel %vm2361_vm11, %v6698_v16, -inf  ;;  %v6749_v39 = vpop.permute.xlu1 %3189 }
 0x424   : > { %v4588_v34 = vpop.f32.mrf.mxu1  ;;  %2363 = vmax.xlane.f32.xlu0 %v2362_v54  ;;  %4659 = vmatpush3.bf16.xpose.msra.mxu1 %v1897_v44  ;;  %7956 = vst [vmem:[#allocation5_spill] sm:$0xff] %v6749_v39 }
 0x425   : > { %4873 = vmatprep.subr.msk.bf16.mxu1 %vm1395_vm8, %v6552_v49  ;;  %v2365_v53 = vsel %vm2361_vm11, %v6701_v43, -inf  ;;  %v6718_v2 = vadd.f32 %v4588_v34, %v6713_v12  ;;  %v2097_v34 = vsel %vm1395_vm8, %v2074_v4, 0 }
 0x426   : > { %v1470_v11 = vpop.f32.mrf.mxu1  ;;  %2366 = vmax.xlane.f32.xlu1 %v2365_v53  ;;  %v2094_v53 = vsel %vm1395_vm8, %v6577_v46, 0 }
 0x427   : > { %v6737_v13 = vadd.f32 %v6731_v35, %v1470_v11  ;;  %v2380_v10 = vsel %vm2361_vm11, %v6718_v2, -inf  ;;  %v6758_v49 = vpop.permute.xlu1 %3187 }
 0x428   : > { %v4589_v58 = vpop.f32.mrf.mxu1  ;;  %2372 = vmax.xlane.f32.xlu0 %v2371_v45  ;;  %7957 = vst [vmem:[#allocation7_spill] sm:$0xff] %v6758_v49 }
 0x429   : > { %v6728_v55 = vadd.f32 %v4589_v58, %v6723_v51  ;;  %v2374_v44 = vsel %vm2361_vm11, %v6737_v13, -inf }
 0x42a   : > { %v1473_v29 = vpop.f32.mrf.mxu1 }
 0x42b   : > { %v6740_v14 = vadd.f32 %v6734_v21, %v1473_v29  ;;  %v2383_v48 = vsel %vm2361_vm11, %v6728_v55, -inf  ;;  %v6764_v23 = vpop.permute.xlu1 %3280 }
 0x42c   : > { %2384 = vmax.xlane.f32.xlu1 %v2383_v48  ;;  %2381 = vmax.xlane.f32.xlu0 %v2380_v10  ;;  %7958 = vst [vmem:[#allocation10_spill] sm:$0xff] %v6764_v23 }
 0x42d   : > { %4661 = vmatpush3.bf16.xpose.msra.mxu1 %v1894_v5  ;;  %v2377_v54 = vsel %vm2361_vm11, %v6740_v14, -inf }
 0x42e   : > { %4878 = vmatprep.subr.msk.bf16.mxu1 %vm1395_vm8, %v2074_v4 }
 0x430   : > { %2378 = vmax.xlane.f32.xlu1 %v2377_v54  ;;  %2375 = vmax.xlane.f32.xlu0 %v2374_v44  ;;  %v7965_v54 = vld [vmem:[#allocation15_spill] sm:$0xff] }
 0x434   : > { %4663 = vmatmul.mubr.msk.bf16.vlgmr.msra.gmra.mxu1 %vm1395_vm8, %v6428_v60  ;;  %v6774_v60 = vpop.permute.xlu1 %3276 }
 0x435   : > { %4666 = vmatprep.mubr.msk.bf16.mxu1 %vm1395_vm8, %v6465_v17  ;;  %4687 = vmatpush3.bf16.xpose.msra.mxu1 %v2097_v34  ;;  %7959 = vst [vmem:[#allocation11_spill] sm:$0xff] %v6774_v60  ;;  %v2091_v17 = vsel %vm1395_vm8, %v6570_v15, 0 }
 0x436   : > { %4879 = vmatprep.subr.msk.bf16.mxu1 %vm1395_vm8, %v6577_v46  ;;  %v2088_v46 = vsel %vm1395_vm8, %v6557_v33, 0 }
 0x43c   : > { %4667 = vmatmul.mubr.msk.bf16.gmra.mxu1 %vm1395_vm8, %v6491_v3  ;;  %v3461_v3 = vpop.permute.xlu1 %3460 }
 0x43d   : > { %4689 = vmatpush3.bf16.xpose.msra.mxu1 %v2094_v53  ;;  %4694 = vmatprep.mubr.msk.bf16.mxu1 %vm1395_vm8, %v6435_v20 }
 0x43e   : > { %4880 = vmatprep.subr.msk.bf16.mxu1 %vm1395_vm8, %v6570_v15  ;;  %v7961_v15 = vld [vmem:[#allocation12_spill] sm:$0xff] }
 0x43f   : > { %vm2275_vm3 = vcmp.eq.s32.totalorder %v7962_v56, %v7961_v15 }
 0x440   : > { %v3459_v11 = vpop.permute.xlu1 %3458  ;;  %v6791_v36 = vsel %vm2275_vm3, 0.0, %v7946_v6  ;;  %v7964_v6 = vld [vmem:[#allocation16_spill] sm:$0xff] }
 0x444   : > { %v6782_v20 = vpop.permute.xlu1 %3367 }
 0x445   : > { %4691 = vmatpush3.bf16.xpose.msra.mxu1 %v2091_v17  ;;  %7960 = vst [vmem:[#allocation8_spill] sm:$0xff] %v6782_v20  ;;  %v7966_v17 = vld [vmem:[#allocation19_spill] sm:$0xff] }
 0x446   : > { %4881 = vmatprep.subr.msk.bf16.mxu1 %vm1395_vm8, %v6557_v33 }
 0x448   : > { %v3457_v33 = vpop.permute.xlu1 %3456 }
 0x44d   : > { %4693 = vmatpush3.bf16.xpose.msra.mxu1 %v2088_v46 }
 0x44e   : > { %4766 = vmatprep.subr.bf16.mxu1 %v3461_v3 }
 0x454   : > { %4695 = vmatmul.mubr.msk.bf16.vlgmr.msra.gmra.mxu1 %vm1395_vm8, %v6433_v61  ;;  %v7963_v61 = vld [vmem:[#allocation14_spill] sm:$0xff] }
 0x455   : > { %4698 = vmatprep.mubr.msk.bf16.mxu1 %vm1395_vm8, %v6452_v22  ;;  %4767 = vmatpush3.bf16.msra.mxu1 %v3461_v3 }
 0x456   : > { %4768 = vmatprep.subr.bf16.mxu1 %v3459_v11 }
 0x459   : > { %v4600_v45 = vpop.f32.mrf.mxu1  ;;  %4769 = vmatpush3.bf16.msra.mxu1 %v3459_v11  ;;  %v7967_v11 = vld [vmem:[#allocation17_spill] sm:$0xff] }
 0x45a   : > { %v6794_v58 = vadd.f32 %v4600_v45, %v6791_v36  ;;  %4770 = vmatprep.subr.bf16.mxu1 %v3457_v33 }
 0x45b   : > { %v1551_v29 = vpop.f32.mrf.mxu1 }
 0x45c   : > { %v6797_v48 = vadd.f32 %v7963_v61, %v1551_v29  ;;  %4699 = vmatmul.mubr.msk.bf16.gmra.mxu1 %vm1395_vm8, %v6503_v52  ;;  %v2392_v22 = vsel %vm2361_vm11, %v6794_v58, -inf  ;;  %v7968_v29 = vld [vmem:[#allocation20_spill] sm:$0xff] }
 0x45d   : > { %v4601_v10 = vpop.f32.mrf.mxu1  ;;  %2393 = vmax.xlane.f32.xlu0 %v2392_v22  ;;  %4771 = vmatpush3.bf16.msra.mxu1 %v3457_v33 }
 0x45e   : > { %v6804_v5 = vadd.f32 %v4601_v10, %v7964_v6  ;;  %v2386_v53 = vsel %vm2361_vm11, %v6797_v48, -inf }
 0x45f   : > { %v1554_v4 = vpop.f32.mrf.mxu1 }
 0x460   : > { %v6807_v44 = vadd.f32 %v7965_v54, %v1554_v4  ;;  %v2395_v34 = vsel %vm2361_vm11, %v6804_v5, -inf  ;;  %v7969_v4 = vld [vmem:[#allocation18_spill] sm:$0xff] }
 0x461   : > { %2396 = vmax.xlane.f32.xlu1 %v2395_v34  ;;  %v4604_v52 = vpop.f32.mrf.mxu1  ;;  %2387 = vmax.xlane.f32.xlu0 %v2386_v53 }
 0x462   : > { %v6814_v3 = vadd.f32 %v4604_v52, %v7966_v17  ;;  %v2389_v56 = vsel %vm2361_vm11, %v6807_v44, -inf }
 0x463   : > { %v1567_v46 = vpop.f32.mrf.mxu1 }
 0x464   : > { %v6817_v15 = vadd.f32 %v7967_v11, %v1567_v46  ;;  %v2404_v33 = vsel %vm2361_vm11, %v6814_v3, -inf }
 0x465   : > { %2390 = vmax.xlane.f32.xlu1 %v2389_v56  ;;  %v4605_v45 = vpop.f32.mrf.mxu1  ;;  %2405 = vmax.xlane.f32.xlu0 %v2404_v33 }
 0x466   : > { %v6824_v22 = vadd.f32 %v4605_v45, %v7968_v29  ;;  %v2398_v52 = vsel %vm2361_vm11, %v6817_v15, -inf }
 0x467   : > { %v1570_v10 = vpop.f32.mrf.mxu1 }
 0x468   : > { %v6827_v34 = vadd.f32 %v7969_v4, %v1570_v10  ;;  %v2407_v53 = vsel %vm2361_vm11, %v6824_v22, -inf }
 0x469   : > { %2408 = vmax.xlane.f32.xlu1 %v2407_v53  ;;  %2399 = vmax.xlane.f32.xlu0 %v2398_v52 }
 0x46a   : > { %v2401_v46 = vsel %vm2361_vm11, %v6827_v34, -inf }
 0x46d   : > { %2402 = vmax.xlane.f32.xlu1 %v2401_v46 }
 0x48b   : > { %v4616_v56 = vpop.f32.mrf.mxu0 }
 0x48c   : > { %v6836_v33 = vadd.f32 %v4616_v56, %v6669_v7 }
 0x48d   : > { %v1648_v45 = vpop.f32.mrf.mxu0 }
 0x48e   : > { %v6839_v10 = vadd.f32 %v6679_v25, %v1648_v45  ;;  %v2416_v31 = vsel %vm2361_vm11, %v6836_v33, -inf }
 0x48f   : > { %2417 = vmax.xlane.f32.xlu0 %v2416_v31  ;;  %v4617_v57 = vpop.f32.mrf.mxu0 }
 0x490   : > { %v6844_v53 = vadd.f32 %v4617_v57, %v6692_v62  ;;  %v2410_v46 = vsel %vm2361_vm11, %v6839_v10, -inf }
 0x491   : > { %v1651_v52 = vpop.f32.mrf.mxu0 }
 0x492   : > { %v6847_v63 = vadd.f32 %v6689_v41, %v1651_v52  ;;  %v2419_v56 = vsel %vm2361_vm11, %v6844_v53, -inf }
 0x493   : > { %2411 = vmax.xlane.f32.xlu0 %v2410_v46  ;;  %2420 = vmax.xlane.f32.xlu1 %v2419_v56  ;;  %v4620_v45 = vpop.f32.mrf.mxu0 }
 0x494   : > { %v6854_v47 = vadd.f32 %v4620_v45, %v6713_v12  ;;  %v2413_v52 = vsel %vm2361_vm11, %v6847_v63, -inf }
 0x495   : > { %v1664_v31 = vpop.f32.mrf.mxu0 }
 0x496   : > { %v6857_v57 = vadd.f32 %v6731_v35, %v1664_v31  ;;  %v2428_v59 = vsel %vm2361_vm11, %v6854_v47, -inf }
 0x497   : > { %2414 = vmax.xlane.f32.xlu1 %v2413_v52  ;;  %2429 = vmax.xlane.f32.xlu0 %v2428_v59  ;;  %v4621_v9 = vpop.f32.mrf.mxu0 }
 0x498   : > { %v6864_v46 = vadd.f32 %v4621_v9, %v6723_v51  ;;  %v2422_v31 = vsel %vm2361_vm11, %v6857_v57, -inf }
 0x499   : > { %v1667_v56 = vpop.f32.mrf.mxu0 }
 0x49a   : > { %v6867_v45 = vadd.f32 %v6734_v21, %v1667_v56  ;;  %v2431_v42 = vsel %vm2361_vm11, %v6864_v46, -inf }
 0x49b   : > { %2423 = vmax.xlane.f32.xlu0 %v2422_v31  ;;  %2432 = vmax.xlane.f32.xlu1 %v2431_v42 }
 0x49c   : > { %v2425_v52 = vsel %vm2361_vm11, %v6867_v45, -inf }
 0x49f   : > { %2426 = vmax.xlane.f32.xlu1 %v2425_v52 }
 0x4a9   : > { %v2370_v59 = vpop.xlane.xlu0 %2369 }
 0x4ab   : > { %v4648_v24 = vpop.f32.mrf.mxu0 }
 0x4ac   : > { %v6879_v19 = vadd.f32 %v4648_v24, %v6669_v7 }
 0x4ad   : > { %v2364_v9 = vpop.xlane.xlu0 %2363  ;;  %v1842_v40 = vpop.f32.mrf.mxu0 }
 0x4ae   : > { %v2464_v60 = vsel %vm2361_vm11, %v6879_v19, -inf  ;;  %v6898_v23 = vadd.f32 %v6679_v25, %v1842_v40 }
 0x4af   : > { %v4649_v26 = vpop.f32.mrf.mxu0 }
 0x4b0   : > { %v6887_v1 = vadd.f32 %v4649_v26, %v6692_v62  ;;  %7970 = vst [vmem:[#allocation9_spill] sm:$0xff] %v6898_v23  ;;  %v2458_v0 = vsel %vm2361_vm11, %v6898_v23, -inf }
 0x4b1   : > { %v2373_v31 = vpop.xlane.xlu0 %2372 }
 0x4b2   : > { %v2467_v49 = vsel %vm2361_vm11, %v6887_v1, -inf }
 0x4c7   : > { %v4632_v32 = vpop.f32.mrf.mxu1 }
 0x4c8   : > { %v6876_v56 = vadd.f32 %v4632_v32, %v6791_v36  ;;  %v1845_v32 = vpop.f32.mrf.mxu0 }
 0x4c9   : > { %v1745_v20 = vpop.f32.mrf.mxu1 }
 0x4ca   : > { %v2440_v42 = vsel %vm2361_vm11, %v6876_v56, -inf  ;;  %v6890_v18 = vadd.f32 %v7963_v61, %v1745_v20  ;;  %v4652_v26 = vpop.f32.mrf.mxu0 }
 0x4cb   : > { %v4633_v8 = vpop.f32.mrf.mxu1  ;;  %2441 = vmax.xlane.f32.xlu0 %v2440_v42  ;;  %v2382_v42 = vpop.xlane.xlu0 %2381 }
 0x4cc   : > { %v6884_v52 = vadd.f32 %v4633_v8, %v7964_v6  ;;  %v2556_v8 = vsub.f32 %v6674_v27, %v2370_v59  ;;  %v2434_v20 = vsel %vm2361_vm11, %v6890_v18, -inf  ;;  %v2554_v27 = vsub.f32 %v6684_v50, %v2364_v9  ;;  %v1858_v40 = vpop.f32.mrf.mxu0  ;;  %v2367_v9 = vpop.xlane.xlu1 %2366 }
 0x4cd   : > { %v1748_v37 = vpop.f32.mrf.mxu1  ;;  %v6909_v59 = vadd.f32 %v6689_v41, %v1845_v32  ;;  %v2557_v32 = vsub.f32 %v6698_v16, %v2373_v31 }
 0x4ce   : > { %v2443_v24 = vsel %vm2361_vm11, %v6884_v52, -inf  ;;  %v6901_v28 = vadd.f32 %v7965_v54, %v1748_v37  ;;  %v2618_v50 = vmul.f32 1.442695, %v2554_v27 }
 0x4cf   : > { %v4636_v30 = vpop.f32.mrf.mxu1  ;;  %2444 = vmax.xlane.f32.xlu1 %v2443_v24  ;;  %2465 = vmax.xlane.f32.xlu0 %v2464_v60  ;;  %v2622_v60 = vmul.f32 1.442695, %v2556_v8  ;;  %v2560_v24 = vsub.f32 %v6718_v2, %v2382_v42  ;;  %v6921_v2 = vadd.f32 %v4652_v26, %v6713_v12  ;;  %v4653_v42 = vpop.f32.mrf.mxu0  ;;  %v2624_v16 = vmul.f32 1.442695, %v2557_v32 }
 0x4d0   : > { %7971 = vst [vmem:[#allocation12_spill] sm:$0xff] %v6901_v28  ;;  %v6913_v37 = vadd.f32 %v4636_v30, %v7966_v17  ;;  %v2437_v38 = vsel %vm2361_vm11, %v6901_v28, -inf  ;;  %v2461_v30 = vsel %vm2361_vm11, %v6909_v59, -inf  ;;  %v2385_v31 = vpop.xlane.xlu1 %2384  ;;  %v6933_v26 = vadd.f32 %v4653_v42, %v6723_v51 }
 0x4d1   : > { %v1761_v39 = vpop.f32.mrf.mxu1  ;;  %5094 = vpow2.f32 %v2622_v60  ;;  %v2630_v8 = vmul.f32 1.442695, %v2560_v24  ;;  %v2476_v60 = vsel %vm2361_vm11, %v6921_v2, -inf }
 0x4d2   : > { %5096 = vpow2.f32 %v2618_v50  ;;  %v6938_v27 = vadd.f32 %v7967_v11, %v1761_v39  ;;  %v6944_v50 = vadd.f32 %v6731_v35, %v1858_v40 }
 0x4d3   : > { %2435 = vmax.xlane.f32.xlu0 %v2434_v20  ;;  %2468 = vmax.xlane.f32.xlu1 %v2467_v49  ;;  %v2376_v20 = vpop.xlane.xlu0 %2375  ;;  %v4637_v49 = vpop.f32.mrf.mxu1  ;;  %5098 = vpow2.f32 %v2630_v8 }
 0x4d4   : > { %v2558_v23 = vsub.f32 %v6737_v13, %v2376_v20  ;;  %v6927_v28 = vadd.f32 %v4637_v49, %v7968_v29  ;;  %5100 = vpow2.f32 %v2624_v16  ;;  %v2561_v49 = vsub.f32 %v6728_v55, %v2385_v31  ;;  %v2379_v32 = vpop.xlane.xlu1 %2378 }
 0x4d5   : > { %v1764_v20 = vpop.f32.mrf.mxu1  ;;  %v2446_v39 = vsel %vm2361_vm11, %v6938_v27, -inf  ;;  %v2559_v40 = vsub.f32 %v6740_v14, %v2379_v32 }
 0x4d6   : > { %v2626_v13 = vmul.f32 1.442695, %v2558_v23  ;;  %v2455_v24 = vsel %vm2361_vm11, %v6927_v28, -inf  ;;  %v2479_v23 = vsel %vm2361_vm11, %v6933_v26, -inf  ;;  %v2632_v55 = vmul.f32 1.442695, %v2561_v49 }
 0x4d7   : > { %2459 = vmax.xlane.f32.xlu0 %v2458_v0  ;;  %2438 = vmax.xlane.f32.xlu1 %v2437_v38  ;;  %v2452_v38 = vsel %vm2361_vm11, %v6913_v37, -inf  ;;  %v2555_v0 = vsub.f32 %v6701_v43, %v2367_v9  ;;  %v6947_v9 = vadd.f32 %v7969_v4, %v1764_v20  ;;  %v2628_v31 = vmul.f32 1.442695, %v2559_v40 }
 0x4d8   : > { %5102 = vpow2.f32 %v2626_v13 }
 0x4d9   : > { %v2620_v43 = vmul.f32 1.442695, %v2555_v0  ;;  %v2449_v0 = vsel %vm2361_vm11, %v6947_v9, -inf }
 0x4db   : > { %2453 = vmax.xlane.f32.xlu0 %v2452_v38  ;;  %2462 = vmax.xlane.f32.xlu1 %v2461_v30  ;;  %v1861_v30 = vpop.f32.mrf.mxu0  ;;  %5104 = vpow2.f32 %v2620_v43  ;;  %v2470_v38 = vsel %vm2361_vm11, %v6944_v50, -inf }
 0x4dc   : > { %v6957_v42 = vadd.f32 %v6734_v21, %v1861_v30  ;;  %5106 = vpow2.f32 %v2632_v55 }
 0x4dd   : > { %5108 = vpow2.f32 %v2628_v31 }
 0x4de   : > { %v6953_v8 = vpop.eup %5094 }
 0x4df   : > { %2456 = vmax.xlane.f32.xlu1 %v2455_v24  ;;  %2477 = vmax.xlane.f32.xlu0 %v2476_v60  ;;  %7972 = vst [vmem:[#allocation13_spill] sm:$0xff] %v6953_v8  ;;  %v6963_v16 = vpop.eup %5096  ;;  %v2473_v60 = vsel %vm2361_vm11, %v6957_v42, -inf  ;;  %v2752_v14 = vsel %vm2361_vm11, %v6953_v8, 0.0 }
 0x4e0   : > { %v6969_v13 = vpop.eup %5098  ;;  %v2746_v20 = vsel %vm2361_vm11, %v6963_v16, 0.0 }
 0x4e1   : > { %7973 = vst [vmem:[#allocation14_spill] sm:$0xff] %v6969_v13  ;;  %v6971_v24 = vpop.eup %5100  ;;  %v2764_v43 = vsel %vm2361_vm11, %v6969_v13, 0.0 }
 0x4e2   : > { %v2755_v30 = vsel %vm2361_vm11, %v6971_v24, 0.0 }
 0x4e3   : > { %2447 = vmax.xlane.f32.xlu0 %v2446_v39  ;;  %2480 = vmax.xlane.f32.xlu1 %v2479_v23  ;;  %v4680_v39 = vpop.f32.mrf.mxu0 }
 0x4e5   : > { %v6977_v49 = vpop.eup %5102 }
 0x4e6   : > { %7974 = vst [vmem:[#allocation16_spill] sm:$0xff] %v6977_v49  ;;  %v2394_v23 = vpop.xlane.xlu0 %2393  ;;  %v2758_v55 = vsel %vm2361_vm11, %v6977_v49, 0.0 }
 0x4e7   : > { %2471 = vmax.xlane.f32.xlu0 %v2470_v38  ;;  %2450 = vmax.xlane.f32.xlu1 %v2449_v0  ;;  %v2564_v40 = vsub.f32 %v6794_v58, %v2394_v23  ;;  %v2036_v38 = vpop.f32.mrf.mxu0 }
 0x4e8   : > { %v6979_v32 = vpop.eup %5104 }
 0x4e9   : > { %7975 = vst [vmem:[#allocation15_spill] sm:$0xff] %v6979_v32 }
 0x4eb   : > { %2474 = vmax.xlane.f32.xlu1 %v2473_v60  ;;  %2753 = vadd.xlane.f32.xlu0 %v2752_v14  ;;  %v2749_v60 = vsel %vm2361_vm11, %v6979_v32, 0.0  ;;  %v6988_v14 = vpop.eup %5106 }
 0x4ec   : > { %7976 = vst [vmem:[#allocation19_spill] sm:$0xff] %v6988_v14  ;;  %v2767_v58 = vsel %vm2361_vm11, %v6988_v14, 0.0  ;;  %v6995_v23 = vpop.eup %5108 }
 0x4ed   : > { %7978 = vst [vmem:[#allocation20_spill] sm:$0xff] %v6995_v23 }
 0x4ef   : > { %2747 = vadd.xlane.f32.xlu0 %v2746_v20  ;;  %2765 = vadd.xlane.f32.xlu1 %v2764_v43  ;;  %v2638_v20 = vmul.f32 1.442695, %v2564_v40  ;;  %v4681_v43 = vpop.f32.mrf.mxu0  ;;  %v2388_v40 = vpop.xlane.xlu0 %2387 }
 0x4f0   : > { %v2562_v32 = vsub.f32 %v6797_v48, %v2388_v40 }
 0x4f1   : > { %5110 = vpow2.f32 %v2638_v20  ;;  %v2039_v14 = vpop.f32.mrf.mxu0 }
 0x4f2   : > { %v2634_v40 = vmul.f32 1.442695, %v2562_v32 }
 0x4f3   : > { %2756 = vadd.xlane.f32.xlu0 %v2755_v30  ;;  %2759 = vadd.xlane.f32.xlu1 %v2758_v55  ;;  %v6998_v30 = vadd.f32 %v4681_v43, %v6692_v62  ;;  %v2397_v43 = vpop.xlane.xlu1 %2396  ;;  %v4684_v48 = vpop.f32.mrf.mxu0 }
 0x4f4   : > { %v4664_v0 = vpop.f32.mrf.mxu1  ;;  %5112 = vpow2.f32 %v2634_v40 }
 0x4f5   : > { %7979 = vst [vmem:[#allocation18_spill] sm:$0xff] %v6998_v30  ;;  %v7003_v49 = vadd.f32 %v4664_v0, %v6791_v36  ;;  %v2515_v20 = vsel %vm2361_vm11, %v6998_v30, -inf }
 0x4f6   : > { %v1939_v31 = vpop.f32.mrf.mxu1 }
 0x4f7   : > { %2750 = vadd.xlane.f32.xlu0 %v2749_v60  ;;  %v2488_v0 = vsel %vm2361_vm11, %v7003_v49, -inf  ;;  %v2391_v30 = vpop.xlane.xlu1 %2390 }
 0x4f8   : > { %v4665_v13 = vpop.f32.mrf.mxu1 }
 0x4f9   : > { %v6991_v8 = vadd.f32 %v4665_v13, %v7964_v6  ;;  %v2761_v13 = vsel %vm2361_vm11, %v6995_v23, 0.0  ;;  %v7019_v23 = vadd.f32 %v6689_v41, %v2039_v14 }
 0x4fa   : > { %v1942_v60 = vpop.f32.mrf.mxu1 }
 0x4fb   : > { %7977 = vst [vmem:[#allocation17_spill] sm:$0xff] %v6991_v8  ;;  %2768 = vadd.xlane.f32.xlu0 %v2767_v58  ;;  %v2491_v55 = vsel %vm2361_vm11, %v6991_v8, -inf  ;;  %v7009_v62 = vadd.f32 %v7965_v54, %v1942_v60  ;;  %7982 = vst [vmem:[#allocation39_spill] sm:$0xff] %v7019_v23  ;;  %v2406_v8 = vpop.xlane.xlu0 %2405  ;;  %v2509_v41 = vsel %vm2361_vm11, %v7019_v23, -inf  ;;  %v2409_v23 = vpop.xlane.xlu1 %2408 }
 0x4fc   : > { %2492 = vmax.xlane.f32.xlu1 %v2491_v55  ;;  %v4668_v58 = vpop.f32.mrf.mxu1  ;;  %v7014_v55 = vadd.f32 %v4680_v39, %v6669_v7  ;;  %v2052_v39 = vpop.f32.mrf.mxu0 }
 0x4fd   : > { %7980 = vst [vmem:[#allocation37_spill] sm:$0xff] %v7009_v62  ;;  %v2485_v60 = vsel %vm2361_vm11, %v7009_v62, -inf }
 0x4fe   : > { %7981 = vst [vmem:[#allocation38_spill] sm:$0xff] %v7014_v55  ;;  %v2512_v7 = vsel %vm2361_vm11, %v7014_v55, -inf  ;;  %v7030_v32 = vpop.eup %5110  ;;  %v4685_v62 = vpop.f32.mrf.mxu0  ;;  %v2568_v55 = vsub.f32 %v6814_v3, %v2406_v8 }
 0x4ff   : > { %2762 = vadd.xlane.f32.xlu0 %v2761_v13  ;;  %v1955_v13 = vpop.f32.mrf.mxu1  ;;  %7983 = vst [vmem:[#allocation40_spill] sm:$0xff] %v7030_v32  ;;  %v7051_v3 = vadd.f32 %v4685_v62, %v6723_v51 }
 0x500   : > { %2516 = vmax.xlane.f32.xlu1 %v2515_v20  ;;  %v7024_v20 = vadd.f32 %v7963_v61, %v1939_v31  ;;  %v2646_v8 = vmul.f32 1.442695, %v2568_v55 }
 0x501   : > { %v4669_v14 = vpop.f32.mrf.mxu1  ;;  %v7064_v55 = vpop.eup %5112 }
 0x502   : > { %v2482_v31 = vsel %vm2361_vm11, %v7024_v20, -inf  ;;  %v7040_v40 = vadd.f32 %v4669_v14, %v7968_v29 }
 0x503   : > { %2489 = vmax.xlane.f32.xlu0 %v2488_v0  ;;  %v7033_v0 = vadd.f32 %v6679_v25, %v2036_v38  ;;  %v2563_v38 = vsub.f32 %v6807_v44, %v2391_v30  ;;  %v2569_v30 = vsub.f32 %v6824_v22, %v2409_v23  ;;  %v7068_v22 = vadd.f32 %v7967_v11, %v1955_v13 }
 0x504   : > { %2486 = vmax.xlane.f32.xlu1 %v2485_v60  ;;  %v2565_v60 = vsub.f32 %v6804_v5, %v2397_v43  ;;  %v7046_v5 = vadd.f32 %v4668_v58, %v7966_v17  ;;  %v2403_v58 = vpop.xlane.xlu1 %2402 }
 0x505   : > { %v2506_v43 = vsel %vm2361_vm11, %v7033_v0, -inf  ;;  %v2636_v44 = vmul.f32 1.442695, %v2563_v38  ;;  %v2055_v38 = vpop.f32.mrf.mxu0  ;;  %v2494_v13 = vsel %vm2361_vm11, %v7068_v22, -inf }
 0x506   : > { %v2640_v25 = vmul.f32 1.442695, %v2565_v60  ;;  %v7057_v60 = vadd.f32 %v4684_v48, %v6713_v12  ;;  %v2500_v51 = vsel %vm2361_vm11, %v7046_v5, -inf  ;;  %v2567_v12 = vsub.f32 %v6827_v34, %v2403_v58 }
 0x507   : > { %2513 = vmax.xlane.f32.xlu0 %v2512_v7  ;;  %v2776_v7 = vsel %vm2361_vm11, %v7030_v32, 0.0  ;;  %v2648_v48 = vmul.f32 1.442695, %v2569_v30 }
 0x508   : > { %2510 = vmax.xlane.f32.xlu1 %v2509_v41  ;;  %v2400_v41 = vpop.xlane.xlu0 %2399  ;;  %5114 = vpow2.f32 %v2640_v25  ;;  %v2524_v23 = vsel %vm2361_vm11, %v7057_v60, -inf  ;;  %v2770_v25 = vsel %vm2361_vm11, %v7064_v55, 0.0  ;;  %v2644_v34 = vmul.f32 1.442695, %v2567_v12 }
 0x509   : > { %v2566_v14 = vsub.f32 %v6817_v15, %v2400_v41  ;;  %5116 = vpow2.f32 %v2646_v8  ;;  %v2527_v15 = vsel %vm2361_vm11, %v7051_v3, -inf }
 0x50a   : > { %5118 = vpow2.f32 %v2636_v44 }
 0x50b   : > { %2483 = vmax.xlane.f32.xlu0 %v2482_v31  ;;  %v2503_v31 = vsel %vm2361_vm11, %v7040_v40, -inf  ;;  %v2642_v62 = vmul.f32 1.442695, %v2566_v14  ;;  %v7078_v14 = vadd.f32 %v6731_v35, %v2052_v39 }
 0x50c   : > { %2777 = vadd.xlane.f32.xlu1 %v2776_v7  ;;  %v1958_v7 = vpop.f32.mrf.mxu1 }
 0x50d   : > { %5120 = vpow2.f32 %v2642_v62  ;;  %v7073_v41 = vadd.f32 %v7969_v4, %v1958_v7  ;;  %v2518_v58 = vsel %vm2361_vm11, %v7078_v14, -inf }
 0x50e   : > { %5122 = vpow2.f32 %v2648_v48 }
 0x50f   : > { %2507 = vmax.xlane.f32.xlu0 %v2506_v43  ;;  %v2497_v44 = vsel %vm2361_vm11, %v7073_v41, -inf  ;;  %5124 = vpow2.f32 %v2644_v34 }
 0x510   : > { %2504 = vmax.xlane.f32.xlu1 %v2503_v31  ;;  %v7083_v31 = vadd.f32 %v6734_v21, %v2055_v38 }
 0x512   : > { %v2521_v39 = vsel %vm2361_vm11, %v7083_v31, -inf }
 0x513   : > { %2501 = vmax.xlane.f32.xlu0 %v2500_v51 }
 0x514   : > { %2528 = vmax.xlane.f32.xlu1 %v2527_v15  ;;  %v4696_v43 = vpop.f32.mrf.mxu1 }
 0x515   : > { %v7089_v51 = vpop.eup %5114 }
 0x516   : > { %v2133_v30 = vpop.f32.mrf.mxu1  ;;  %v7093_v62 = vpop.eup %5116  ;;  %v2779_v7 = vsel %vm2361_vm11, %v7089_v51, 0.0 }
 0x517   : > { %2525 = vmax.xlane.f32.xlu0 %v2524_v23  ;;  %7984 = vst [vmem:[#allocation41_spill] sm:$0xff] %v7093_v62  ;;  %v7097_v12 = vpop.eup %5118  ;;  %v2788_v48 = vsel %vm2361_vm11, %v7093_v62, 0.0 }
 0x518   : > { %2771 = vadd.xlane.f32.xlu1 %v2770_v25  ;;  %v2418_v8 = vpop.xlane.xlu0 %2417  ;;  %v4697_v21 = vpop.f32.mrf.mxu1  ;;  %7985 = vst [vmem:[#allocation42_spill] sm:$0xff] %v7097_v12 }
 0x51a   : > { %v7101_v23 = vpop.eup %5120  ;;  %v2136_v25 = vpop.f32.mrf.mxu1 }
 0x51b   : > { %2495 = vmax.xlane.f32.xlu0 %v2494_v13  ;;  %v2773_v13 = vsel %vm2361_vm11, %v7097_v12, 0.0  ;;  %v2782_v62 = vsel %vm2361_vm11, %v7101_v23, 0.0 }
 0x51c   : > { %2498 = vmax.xlane.f32.xlu1 %v2497_v44  ;;  %v2412_v35 = vpop.xlane.xlu0 %2411  ;;  %v2421_v15 = vpop.xlane.xlu1 %2420 }
 0x51d   : > { %v2573_v34 = vsub.f32 %v6844_v53, %v2421_v15  ;;  %v7106_v44 = vpop.eup %5122  ;;  %v4700_v32 = vpop.f32.mrf.mxu1 }
 0x51e   : > { %v2791_v12 = vsel %vm2361_vm11, %v7106_v44, 0.0 }
 0x51f   : > { %2519 = vmax.xlane.f32.xlu0 %v2518_v58  ;;  %v7109_v58 = vadd.f32 %v4696_v43, %v6791_v36  ;;  %v2656_v53 = vmul.f32 1.442695, %v2573_v34  ;;  %v7120_v36 = vadd.f32 %v7963_v61, %v2133_v30  ;;  %v7126_v34 = vadd.f32 %v4697_v21, %v7964_v6 }
 0x520   : > { %2522 = vmax.xlane.f32.xlu1 %v2521_v39  ;;  %v2430_v38 = vpop.xlane.xlu0 %2429  ;;  %v2572_v39 = vsub.f32 %v6836_v33, %v2418_v8  ;;  %v2570_v33 = vsub.f32 %v6839_v10, %v2412_v35 }
 0x521   : > { %5126 = vpow2.f32 %v2656_v53  ;;  %v2530_v6 = vsel %vm2361_vm11, %v7120_v36, -inf }
 0x522   : > { %v2654_v43 = vmul.f32 1.442695, %v2572_v39  ;;  %v2650_v35 = vmul.f32 1.442695, %v2570_v33  ;;  %v7138_v39 = vadd.f32 %v7965_v54, %v2136_v25 }
 0x523   : > { %2780 = vadd.xlane.f32.xlu0 %v2779_v7  ;;  %v2415_v7 = vpop.xlane.xlu1 %2414 }
 0x524   : > { %2789 = vadd.xlane.f32.xlu1 %v2788_v48  ;;  %v7114_v48 = vpop.eup %5124  ;;  %v2571_v15 = vsub.f32 %v6847_v63, %v2415_v7  ;;  %v2424_v8 = vpop.xlane.xlu0 %2423  ;;  %v7131_v7 = vadd.f32 %v4700_v32, %v7966_v17  ;;  %5128 = vpow2.f32 %v2654_v43  ;;  %v2533_v25 = vsel %vm2361_vm11, %v7138_v39, -inf }
 0x525   : > { %v2785_v63 = vsel %vm2361_vm11, %v7114_v48, 0.0  ;;  %v2574_v10 = vsub.f32 %v6857_v57, %v2424_v8 }
 0x526   : > { %v2652_v61 = vmul.f32 1.442695, %v2571_v15  ;;  %v2548_v57 = vsel %vm2361_vm11, %v7131_v7, -inf }
 0x527   : > { %2774 = vadd.xlane.f32.xlu0 %v2773_v13  ;;  %v2536_v13 = vsel %vm2361_vm11, %v7109_v58, -inf  ;;  %v2433_v30 = vpop.xlane.xlu1 %2432  ;;  %v2658_v32 = vmul.f32 1.442695, %v2574_v10 }
 0x528   : > { %2783 = vadd.xlane.f32.xlu1 %v2782_v62  ;;  %v2149_v62 = vpop.f32.mrf.mxu1  ;;  %5130 = vpow2.f32 %v2652_v61 }
 0x529   : > { %v7141_v17 = vadd.f32 %v7967_v11, %v2149_v62  ;;  %5132 = vpow2.f32 %v2650_v35 }
 0x52a   : > { %v4701_v21 = vpop.f32.mrf.mxu1  ;;  %5134 = vpow2.f32 %v2658_v32 }
 0x52b   : > { %2792 = vadd.xlane.f32.xlu0 %v2791_v12  ;;  %v2576_v12 = vsub.f32 %v6854_v47, %v2430_v38  ;;  %v2577_v47 = vsub.f32 %v6864_v46, %v2433_v30  ;;  %v2539_v38 = vsel %vm2361_vm11, %v7126_v34, -inf  ;;  %v2427_v43 = vpop.xlane.xlu1 %2426  ;;  %v7149_v54 = vadd.f32 %v4701_v21, %v7968_v29 }
 0x52c   : > { %2537 = vmax.xlane.f32.xlu1 %v2536_v13  ;;  %v2152_v15 = vpop.f32.mrf.mxu1  ;;  %v2542_v11 = vsel %vm2361_vm11, %v7141_v17, -inf  ;;  %v2575_v8 = vsub.f32 %v6867_v45, %v2427_v43 }
 0x52d   : > { %v2662_v53 = vmul.f32 1.442695, %v2576_v12  ;;  %7986 = vst [vmem:[#allocation43_spill] sm:$0xff] %v7149_v54  ;;  %v7156_v46 = vadd.f32 %v7969_v4, %v2152_v15  ;;  %v2664_v33 = vmul.f32 1.442695, %v2577_v47  ;;  %v2551_v29 = vsel %vm2361_vm11, %v7149_v54, -inf }
 0x52e   : > { %v7161_v13 = vpop.eup %5126  ;;  %v2660_v62 = vmul.f32 1.442695, %v2575_v8 }
 0x52f   : > { %2786 = vadd.xlane.f32.xlu0 %v2785_v63  ;;  %5136 = vpow2.f32 %v2662_v53  ;;  %7987 = vst [vmem:[#allocation44_spill] sm:$0xff] %v7156_v46  ;;  %v2545_v63 = vsel %vm2361_vm11, %v7156_v46, -inf  ;;  %v2803_v4 = vsel %vm2361_vm11, %v7161_v13, 0.0  ;;  %v8009_v46 = vld [vmem:[#allocation14_spill] sm:$0xff] }
 0x530   : > { %2531 = vmax.xlane.f32.xlu1 %v2530_v6  ;;  %5138 = vpow2.f32 %v2664_v33 }
 0x531   : > { %v7165_v61 = vpop.eup %5128  ;;  %5140 = vpow2.f32 %v2660_v62 }
 0x532   : > { %v2800_v30 = vsel %vm2361_vm11, %v7165_v61, 0.0 }
 0x533   : > { %2549 = vmax.xlane.f32.xlu0 %v2548_v57 }
 0x534   : > { %2540 = vmax.xlane.f32.xlu1 %v2539_v38 }
 0x535   : > { %v7169_v45 = vpop.eup %5130 }
 0x536   : > { %v7173_v10 = vpop.eup %5132  ;;  %v2797_v35 = vsel %vm2361_vm11, %v7169_v45, 0.0 }
 0x537   : > { %2543 = vmax.xlane.f32.xlu0 %v2542_v11  ;;  %v7177_v12 = vpop.eup %5134  ;;  %v2794_v6 = vsel %vm2361_vm11, %v7173_v10, 0.0 }
 0x538   : > { %2534 = vmax.xlane.f32.xlu1 %v2533_v25  ;;  %v2806_v32 = vsel %vm2361_vm11, %v7177_v12, 0.0 }
 0x53b   : > { %2552 = vmax.xlane.f32.xlu0 %v2551_v29 }
 0x53c   : > { %2546 = vmax.xlane.f32.xlu1 %v2545_v63  ;;  %v7181_v21 = vpop.eup %5136 }
 0x53d   : > { %v2812_v57 = vsel %vm2361_vm11, %v7181_v21, 0.0  ;;  %v7187_v53 = vpop.eup %5138 }
 0x53e   : > { %v2815_v47 = vsel %vm2361_vm11, %v7187_v53, 0.0  ;;  %v7191_v38 = vpop.eup %5140 }
 0x53f   : > { %2804 = vadd.xlane.f32.xlu0 %v2803_v4  ;;  %v2809_v15 = vsel %vm2361_vm11, %v7191_v38, 0.0 }
 0x540   : > { %2801 = vadd.xlane.f32.xlu1 %v2800_v30 }
 0x543   : > { %2798 = vadd.xlane.f32.xlu0 %v2797_v35 }
 0x544   : > { %2795 = vadd.xlane.f32.xlu1 %v2794_v6 }
 0x547   : > { %2807 = vadd.xlane.f32.xlu0 %v2806_v32 }
 0x548   : > { %2813 = vadd.xlane.f32.xlu1 %v2812_v57 }
 0x54c   : > { %2816 = vadd.xlane.f32.xlu1 %v2815_v47 }
 0x550   : > { %2810 = vadd.xlane.f32.xlu1 %v2809_v15 }
 0x554   : > { %v2442_v43 = vpop.xlane.xlu0 %2441 }
 0x555   : > { %v2580_v11 = vsub.f32 %v6876_v56, %v2442_v43  ;;  %v7988_v43 = vld [vmem:[#allocation12_spill] sm:$0xff] }
 0x557   : > { %v2670_v25 = vmul.f32 1.442695, %v2580_v11 }
 0x558   : > { %v2445_v33 = vpop.xlane.xlu1 %2444  ;;  %v2466_v8 = vpop.xlane.xlu0 %2465 }
 0x559   : > { %5142 = vpow2.f32 %v2670_v25  ;;  %v2581_v29 = vsub.f32 %v6884_v52, %v2445_v33  ;;  %v2588_v62 = vsub.f32 %v6879_v19, %v2466_v8  ;;  %v7989_v25 = vld [vmem:[#allocation9_spill] sm:$0xff] }
 0x55b   : > { %v2686_v63 = vmul.f32 1.442695, %v2588_v62  ;;  %v2672_v4 = vmul.f32 1.442695, %v2581_v29 }
 0x55c   : > { %v2469_v30 = vpop.xlane.xlu1 %2468  ;;  %v2436_v35 = vpop.xlane.xlu0 %2435 }
 0x55d   : > { %v2589_v6 = vsub.f32 %v6887_v1, %v2469_v30  ;;  %v2578_v32 = vsub.f32 %v6890_v18, %v2436_v35  ;;  %5144 = vpow2.f32 %v2686_v63 }
 0x55e   : > { %5146 = vpow2.f32 %v2672_v4 }
 0x55f   : > { %v2666_v57 = vmul.f32 1.442695, %v2578_v32  ;;  %v2688_v56 = vmul.f32 1.442695, %v2589_v6 }
 0x560   : > { %v2439_v47 = vpop.xlane.xlu1 %2438  ;;  %v2460_v15 = vpop.xlane.xlu0 %2459 }
 0x561   : > { %v2579_v11 = vsub.f32 %v7988_v43, %v2439_v47  ;;  %v2586_v52 = vsub.f32 %v7989_v25, %v2460_v15  ;;  %5148 = vpow2.f32 %v2666_v57 }
 0x562   : > { %5150 = vpow2.f32 %v2688_v56 }
 0x563   : > { %v2682_v19 = vmul.f32 1.442695, %v2586_v52  ;;  %v2668_v33 = vmul.f32 1.442695, %v2579_v11 }
 0x564   : > { %v2463_v8 = vpop.xlane.xlu1 %2462  ;;  %v2454_v29 = vpop.xlane.xlu0 %2453 }
 0x565   : > { %v2587_v1 = vsub.f32 %v6909_v59, %v2463_v8  ;;  %v2584_v18 = vsub.f32 %v6913_v37, %v2454_v29  ;;  %5152 = vpow2.f32 %v2682_v19 }
 0x566   : > { %v7204_v62 = vpop.eup %5142  ;;  %5154 = vpow2.f32 %v2668_v33 }
 0x567   : > { %v2684_v63 = vmul.f32 1.442695, %v2587_v1  ;;  %v2824_v4 = vsel %vm2361_vm11, %v7204_v62, 0.0  ;;  %v2678_v30 = vmul.f32 1.442695, %v2584_v18 }
 0x568   : > { %v2457_v35 = vpop.xlane.xlu1 %2456  ;;  %2825 = vadd.xlane.f32.xlu1 %v2824_v4  ;;  %v2478_v6 = vpop.xlane.xlu0 %2477 }
 0x569   : > { %5156 = vpow2.f32 %v2684_v63  ;;  %v2592_v32 = vsub.f32 %v6921_v2, %v2478_v6  ;;  %v2585_v2 = vsub.f32 %v6927_v28, %v2457_v35 }
 0x56a   : > { %v7209_v57 = vpop.eup %5144  ;;  %5158 = vpow2.f32 %v2678_v30 }
 0x56b   : > { %v2694_v59 = vmul.f32 1.442695, %v2592_v32  ;;  %v2848_v56 = vsel %vm2361_vm11, %v7209_v57, 0.0  ;;  %v7213_v15 = vpop.eup %5146  ;;  %v2680_v4 = vmul.f32 1.442695, %v2585_v2 }
 0x56c   : > { %v2481_v37 = vpop.xlane.xlu1 %2480  ;;  %v2448_v47 = vpop.xlane.xlu0 %2447  ;;  %2849 = vadd.xlane.f32.xlu1 %v2848_v56  ;;  %v2827_v19 = vsel %vm2361_vm11, %v7213_v15, 0.0 }
 0x56d   : > { %v2582_v43 = vsub.f32 %v6938_v27, %v2448_v47  ;;  %5160 = vpow2.f32 %v2694_v59  ;;  %v2593_v30 = vsub.f32 %v6933_v26, %v2481_v37 }
 0x56e   : > { %v7216_v11 = vpop.eup %5148 }
 0x56f   : > { %v2674_v25 = vmul.f32 1.442695, %v2582_v43  ;;  %v2818_v33 = vsel %vm2361_vm11, %v7216_v11, 0.0  ;;  %v7223_v29 = vpop.eup %5150  ;;  %v2696_v26 = vmul.f32 1.442695, %v2593_v30 }
 0x570   : > { %v2451_v52 = vpop.xlane.xlu1 %2450  ;;  %v2472_v8 = vpop.xlane.xlu0 %2471  ;;  %2828 = vadd.xlane.f32.xlu1 %v2827_v19  ;;  %2819 = vadd.xlane.f32.xlu0 %v2818_v33  ;;  %v2851_v35 = vsel %vm2361_vm11, %v7223_v29, 0.0 }
 0x571   : > { %v2583_v1 = vsub.f32 %v6947_v9, %v2451_v52  ;;  %v2590_v27 = vsub.f32 %v6944_v50, %v2472_v8  ;;  %5162 = vpow2.f32 %v2674_v25 }
 0x572   : > { %v7227_v18 = vpop.eup %5152 }
 0x573   : > { %v2676_v28 = vmul.f32 1.442695, %v2583_v1  ;;  %v2690_v63 = vmul.f32 1.442695, %v2590_v27  ;;  %v2842_v6 = vsel %vm2361_vm11, %v7227_v18, 0.0  ;;  %v7234_v9 = vpop.eup %5154 }
 0x574   : > { %v2754_v32 = vpop.xlane.xlu0 %2753  ;;  %v2475_v59 = vpop.xlane.xlu1 %2474  ;;  %2852 = vadd.xlane.f32.xlu1 %v2851_v35  ;;  %2843 = vadd.xlane.f32.xlu0 %v2842_v6  ;;  %v2821_v47 = vsel %vm2361_vm11, %v7234_v9, 0.0 }
 0x575   : > { %5164 = vpow2.f32 %v2676_v28  ;;  %v2591_v37 = vsub.f32 %v6957_v42, %v2475_v59 }
 0x576   : > { %v7236_v50 = vpop.eup %5156  ;;  %5166 = vpow2.f32 %v2690_v63 }
 0x577   : > { %v2845_v56 = vsel %vm2361_vm11, %v7236_v50, 0.0  ;;  %5168 = vpow2.f32 %v2680_v4  ;;  %v7243_v25 = vpop.eup %5158  ;;  %v2692_v19 = vmul.f32 1.442695, %v2591_v37 }
 0x578   : > { %v2748_v43 = vpop.xlane.xlu0 %2747  ;;  %7990 = vst [vmem:[#allocation12_spill] sm:$0xff] %v7243_v25  ;;  %2822 = vadd.xlane.f32.xlu1 %v2821_v47  ;;  %2846 = vadd.xlane.f32.xlu0 %v2845_v56  ;;  %v2766_v52 = vpop.xlane.xlu1 %2765  ;;  %5170 = vpow2.f32 %v2696_v26  ;;  %v2836_v33 = vsel %vm2361_vm11, %v7243_v25, 0.0 }
 0x579   : > { %5172 = vrcp.f32 %v2754_v32 }
 0x57a   : > { %v7245_v2 = vpop.eup %5160 }
 0x57b   : > { %7991 = vst [vmem:[#allocation9_spill] sm:$0xff] %v7245_v2  ;;  %v2860_v8 = vsel %vm2361_vm11, %v7245_v2, 0.0 }
 0x57c   : > { %v2757_v42 = vpop.xlane.xlu0 %2756  ;;  %2837 = vadd.xlane.f32.xlu0 %v2836_v33  ;;  %2861 = vadd.xlane.f32.xlu1 %v2860_v8  ;;  %v2760_v63 = vpop.xlane.xlu1 %2759 }
 0x57d   : > { %5174 = vrcp.f32 %v2757_v42 }
 0x57e   : > { %v7251_v1 = vpop.eup %5162  ;;  %5176 = vrcp.f32 %v2748_v43 }
 0x57f   : > { %7992 = vst [vmem:[#allocation45_spill] sm:$0xff] %v7251_v1  ;;  %5178 = vpow2.f32 %v2692_v19  ;;  %v2830_v27 = vsel %vm2361_vm11, %v7251_v1, 0.0 }
 0x580   : > { %v2751_v28 = vpop.xlane.xlu0 %2750  ;;  %2831 = vadd.xlane.f32.xlu0 %v2830_v27 }
 0x581   : > { %5180 = vrcp.f32 %v2751_v28 }
 0x582   : > { %v7255_v4 = vpop.eup %5164 }
 0x583   : > { %7993 = vst [vmem:[#allocation46_spill] sm:$0xff] %v7255_v4  ;;  %v7257_v30 = vpop.eup %5166  ;;  %v2833_v35 = vsel %vm2361_vm11, %v7255_v4, 0.0 }
 0x584   : > { %7994 = vst [vmem:[#allocation47_spill] sm:$0xff] %v7257_v30  ;;  %2834 = vadd.xlane.f32.xlu1 %v2833_v35  ;;  %v2854_v6 = vsel %vm2361_vm11, %v7257_v30, 0.0  ;;  %v2769_v32 = vpop.xlane.xlu0 %2768  ;;  %v7263_v59 = vpop.eup %5168 }
 0x585   : > { %7995 = vst [vmem:[#allocation48_spill] sm:$0xff] %v7263_v59  ;;  %v2493_v56 = vpop.xlane.xlu1 %2492  ;;  %2855 = vadd.xlane.f32.xlu0 %v2854_v6  ;;  %5182 = vrcp.f32 %v2769_v32  ;;  %v2839_v26 = vsel %vm2361_vm11, %v7263_v59, 0.0  ;;  %v7267_v47 = vpop.eup %5170  ;;  %v7999_v59 = vld [vmem:[#allocation13_spill] sm:$0xff] }
 0x586   : > { %5184 = vrcp.f32 %v2760_v63  ;;  %7996 = vst [vmem:[#allocation49_spill] sm:$0xff] %v7267_v47  ;;  %v5173_v19 = vpop.eup %5172  ;;  %v2863_v42 = vsel %vm2361_vm11, %v7267_v47, 0.0 }
 0x587   : > { %5186 = vrcp.f32 %v2766_v52  ;;  %v3004_v2 = vmul.f32 %v5173_v19, %v7999_v59 }
 0x588   : > { %v2763_v37 = vpop.xlane.xlu0 %2762 }
 0x589   : > { %v2517_v43 = vpop.xlane.xlu1 %2516  ;;  %2840 = vadd.xlane.f32.xlu0 %v2839_v26  ;;  %5188 = vrcp.f32 %v2763_v37  ;;  %v7998_v37 = vld [vmem:[#allocation15_spill] sm:$0xff] }
 0x58a   : > { %v5175_v33 = vpop.eup %5174 }
 0x58b   : > { %v5177_v8 = vpop.eup %5176  ;;  %v3005_v6 = vmul.f32 %v5175_v33, %v6971_v24 }
 0x58c   : > { %v2490_v27 = vpop.xlane.xlu0 %2489  ;;  %v7271_v28 = vpop.eup %5178  ;;  %v3002_v26 = vmul.f32 %v5177_v8, %v6963_v16 }
 0x58d   : > { %7997 = vst [vmem:[#allocation50_spill] sm:$0xff] %v7271_v28  ;;  %v2487_v63 = vpop.xlane.xlu1 %2486  ;;  %2864 = vadd.xlane.f32.xlu0 %v2863_v42  ;;  %v2596_v52 = vsub.f32 %v7003_v49, %v2490_v27  ;;  %v2857_v47 = vsel %vm2361_vm11, %v7271_v28, 0.0  ;;  %v8000_v42 = vld [vmem:[#allocation38_spill] sm:$0xff]  ;;  %v8001_v27 = vld [vmem:[#allocation17_spill] sm:$0xff]  ;;  %v3067_v24 = vpack.c.bf16 %v3005_v6, %v3004_v2  ;;  %v8004_v6 = vld [vmem:[#allocation27_spill] sm:$0xff] }
 0x58e   : > { %v5181_v35 = vpop.eup %5180  ;;  %v2597_v54 = vsub.f32 %v8001_v27, %v2493_v56  ;;  %v8003_v56 = vld [vmem:[#allocation18_spill] sm:$0xff] }
 0x58f   : > { %v2702_v32 = vmul.f32 1.442695, %v2596_v52  ;;  %v3003_v25 = vmul.f32 %v5181_v35, %v7998_v37  ;;  %v8002_v35 = vld [vmem:[#allocation25_spill] sm:$0xff]  ;;  %v2605_v2 = vsub.f32 %v8003_v56, %v2517_v43 }
 0x590   : > { %v2514_v1 = vpop.xlane.xlu0 %2513 }
 0x591   : > { %5190 = vpow2.f32 %v2702_v32  ;;  %v2511_v4 = vpop.xlane.xlu1 %2510  ;;  %2858 = vadd.xlane.f32.xlu0 %v2857_v47  ;;  %v2604_v30 = vsub.f32 %v8000_v42, %v2514_v1  ;;  %v3066_v49 = vpack.c.bf16 %v3003_v25, %v3002_v26  ;;  %v2704_v47 = vmul.f32 1.442695, %v2597_v54  ;;  %v8006_v26 = vld [vmem:[#allocation37_spill] sm:$0xff] }
 0x592   : > { %v5183_v33 = vpop.eup %5182  ;;  %v2595_v37 = vsub.f32 %v8006_v26, %v2487_v63  ;;  %v8011_v63 = vld [vmem:[#allocation5_spill] sm:$0xff] }
 0x593   : > { %v2718_v52 = vmul.f32 1.442695, %v2604_v30  ;;  %4710 = vmatprep.mubr.msk.bf16.mxu0 %vm2361_vm11, %v3066_v49  ;;  %v5185_v16 = vpop.eup %5184  ;;  %v8005_v30 = vld [vmem:[#allocation19_spill] sm:$0xff]  ;;  %v8007_v49 = vld [vmem:[#allocation16_spill] sm:$0xff] }
 0x594   : > { %4711 = vmatmul.mubr.msk.bf16.vlgmr.msra.gmra.mxu0 %vm2361_vm11, %v3067_v24  ;;  %v2484_v59 = vpop.xlane.xlu0 %2483  ;;  %v5187_v19 = vpop.eup %5186  ;;  %v3009_v32 = vmul.f32 %v5183_v33, %v8005_v30  ;;  %v3006_v27 = vmul.f32 %v5185_v16, %v8007_v49  ;;  %v8008_v24 = vld [vmem:[#allocation20_spill] sm:$0xff]  ;;  %v8010_v33 = vld [vmem:[#allocation39_spill] sm:$0xff]  ;;  %v2700_v16 = vmul.f32 1.442695, %v2595_v37  ;;  %v8013_v49 = vld [vmem:[#allocation30_spill] sm:$0xff] }
 0x595   : > { %5192 = vpow2.f32 %v2718_v52  ;;  %v7284_v8 = vpop.xlane.xlu1 %2777  ;;  %4719 = vmatpush3.bf16.msra.mxu0 %v8002_v35  ;;  %v2594_v1 = vsub.f32 %v7024_v20, %v2484_v59  ;;  %v3008_v35 = vmul.f32 %v5187_v19, %v8009_v46  ;;  %v2720_v59 = vmul.f32 1.442695, %v2605_v2 }
 0x596   : > { %v5189_v25 = vpop.eup %5188  ;;  %4720 = vmatprep.subr.bf16.mxu0 %v8004_v6  ;;  %v2603_v56 = vsub.f32 %v8010_v33, %v2511_v4 }
 0x597   : > { %v2698_v42 = vmul.f32 1.442695, %v2594_v1  ;;  %v3007_v52 = vmul.f32 %v5189_v25, %v8008_v24  ;;  %v3069_v1 = vpack.c.bf16 %v3009_v32, %v3008_v35 }
 0x598   : > { %v2508_v28 = vpop.xlane.xlu0 %2507  ;;  %v2716_v4 = vmul.f32 1.442695, %v2603_v56 }
 0x599   : > { %5194 = vpow2.f32 %v2698_v42  ;;  %v2505_v20 = vpop.xlane.xlu1 %2504  ;;  %4721 = vmatpush3.bf16.msra.mxu0 %v8004_v6  ;;  %v2602_v54 = vsub.f32 %v7033_v0, %v2508_v28  ;;  %v3068_v43 = vpack.c.bf16 %v3007_v52, %v3006_v27 }
 0x59a   : > { %5196 = vpow2.f32 %v2704_v47  ;;  %4722 = vmatprep.subr.bf16.mxu0 %v8011_v63  ;;  %v2601_v25 = vsub.f32 %v7040_v40, %v2505_v20  ;;  %v8012_v47 = vld [vmem:[#allocation7_spill] sm:$0xff] }
 0x59b   : > { %v2714_v30 = vmul.f32 1.442695, %v2602_v54  ;;  %4714 = vmatprep.mubr.msk.bf16.mxu0 %vm2361_vm11, %v3068_v43 }
 0x59c   : > { %4715 = vmatmul.mubr.msk.bf16.gmra.mxu0 %vm2361_vm11, %v3069_v1  ;;  %v2502_v46 = vpop.xlane.xlu0 %2501  ;;  %v2712_v42 = vmul.f32 1.442695, %v2601_v25 }
 0x59d   : > { %5198 = vpow2.f32 %v2714_v30  ;;  %v2529_v19 = vpop.xlane.xlu1 %2528  ;;  %4723 = vmatpush3.bf16.msra.mxu0 %v8011_v63  ;;  %v2600_v0 = vsub.f32 %v7046_v5, %v2502_v46 }
 0x59e   : > { %v7303_v28 = vpop.eup %5190  ;;  %5200 = vpow2.f32 %v2720_v59  ;;  %4724 = vmatprep.subr.bf16.mxu0 %v8012_v47  ;;  %v2609_v40 = vsub.f32 %v7051_v3, %v2529_v19 }
 0x59f   : > { %5202 = vpow2.f32 %v2700_v16  ;;  %v2710_v2 = vmul.f32 1.442695, %v2600_v0  ;;  %v2872_v6 = vsel %vm2361_vm11, %v7303_v28, 0.0 }
 0x5a0   : > { %2873 = vadd.xlane.f32.xlu0 %v2872_v6  ;;  %v2526_v32 = vpop.xlane.xlu0 %2525  ;;  %5204 = vpow2.f32 %v2716_v4 }
 0x5a1   : > { %v2772_v26 = vpop.xlane.xlu1 %2771  ;;  %4725 = vmatpush3.bf16.msra.mxu0 %v8012_v47  ;;  %v2608_v5 = vsub.f32 %v7057_v60, %v2526_v32  ;;  %5206 = vpow2.f32 %v2710_v2  ;;  %v2728_v60 = vmul.f32 1.442695, %v2609_v40 }
 0x5a2   : > { %v7311_v37 = vpop.eup %5192  ;;  %4734 = vmatprep.subr.bf16.mxu0 %v8013_v49  ;;  %5208 = vpow2.f32 %v2712_v42 }
 0x5a3   : > { %v2726_v27 = vmul.f32 1.442695, %v2608_v5  ;;  %v2896_v24 = vsel %vm2361_vm11, %v7311_v37, 0.0 }
 0x5a4   : > { %2897 = vadd.xlane.f32.xlu0 %v2896_v24  ;;  %v2496_v52 = vpop.xlane.xlu0 %2495 }
 0x5a5   : > { %v2499_v35 = vpop.xlane.xlu1 %2498  ;;  %v2598_v20 = vsub.f32 %v7068_v22, %v2496_v52  ;;  %5210 = vpow2.f32 %v2726_v27 }
 0x5a6   : > { %v7318_v54 = vpop.eup %5194  ;;  %v2599_v43 = vsub.f32 %v7073_v41, %v2499_v35  ;;  %5212 = vpow2.f32 %v2728_v60 }
 0x5a7   : > { %v7321_v59 = vpop.eup %5196  ;;  %v2706_v3 = vmul.f32 1.442695, %v2598_v20  ;;  %v2866_v33 = vsel %vm2361_vm11, %v7318_v54, 0.0 }
 0x5a8   : > { %2867 = vadd.xlane.f32.xlu1 %v2866_v33  ;;  %v2520_v56 = vpop.xlane.xlu0 %2519  ;;  %v2708_v22 = vmul.f32 1.442695, %v2599_v43  ;;  %v2875_v30 = vsel %vm2361_vm11, %v7321_v59, 0.0 }
 0x5a9   : > { %v2523_v63 = vpop.xlane.xlu1 %2522  ;;  %v2606_v1 = vsub.f32 %v7078_v14, %v2520_v56  ;;  %5214 = vpow2.f32 %v2706_v3 }
 0x5aa   : > { %v7326_v16 = vpop.eup %5198  ;;  %v2607_v46 = vsub.f32 %v7083_v31, %v2523_v63  ;;  %5216 = vrcp.f32 %v7284_v8 }
 0x5ab   : > { %v7330_v41 = vpop.eup %5200  ;;  %v2722_v19 = vmul.f32 1.442695, %v2606_v1  ;;  %v2890_v0 = vsel %vm2361_vm11, %v7326_v16, 0.0  ;;  %5218 = vrcp.f32 %v2772_v26 }
 0x5ac   : > { %v7335_v4 = vpop.eup %5202  ;;  %2876 = vadd.xlane.f32.xlu1 %v2875_v30  ;;  %2891 = vadd.xlane.f32.xlu0 %v2890_v0  ;;  %v2781_v14 = vpop.xlane.xlu0 %2780  ;;  %5220 = vpow2.f32 %v2708_v22  ;;  %v2724_v2 = vmul.f32 1.442695, %v2607_v46  ;;  %v2899_v31 = vsel %vm2361_vm11, %v7330_v41, 0.0 }
 0x5ad   : > { %v2790_v25 = vpop.xlane.xlu1 %2789  ;;  %v7338_v47 = vpop.eup %5204  ;;  %5222 = vpow2.f32 %v2722_v19  ;;  %v2869_v6 = vsel %vm2361_vm11, %v7335_v4, 0.0 }
 0x5ae   : > { %v7344_v32 = vpop.eup %5206  ;;  %5224 = vrcp.f32 %v2781_v14  ;;  %v2893_v42 = vsel %vm2361_vm11, %v7338_v47, 0.0 }
 0x5af   : > { %v7346_v26 = vpop.eup %5208  ;;  %v2884_v40 = vsel %vm2361_vm11, %v7344_v32, 0.0 }
 0x5b0   : > { %2900 = vadd.xlane.f32.xlu1 %v2899_v31  ;;  %2870 = vadd.xlane.f32.xlu0 %v2869_v6  ;;  %v2775_v8 = vpop.xlane.xlu0 %2774  ;;  %v2887_v20 = vsel %vm2361_vm11, %v7346_v26, 0.0 }
 0x5b1   : > { %v2784_v5 = vpop.xlane.xlu1 %2783  ;;  %5226 = vrcp.f32 %v2775_v8 }
 0x5b2   : > { %5228 = vpow2.f32 %v2724_v2  ;;  %v7352_v27 = vpop.eup %5210 }
 0x5b3   : > { %v7356_v35 = vpop.eup %5212  ;;  %v2908_v60 = vsel %vm2361_vm11, %v7352_v27, 0.0 }
 0x5b4   : > { %2894 = vadd.xlane.f32.xlu1 %v2893_v42  ;;  %2885 = vadd.xlane.f32.xlu0 %v2884_v40  ;;  %v2793_v24 = vpop.xlane.xlu0 %2792  ;;  %v2911_v22 = vsel %vm2361_vm11, %v7356_v35, 0.0 }
 0x5b5   : > { %v7354_v52 = vpop.xlane.xlu1 %2537  ;;  %5230 = vrcp.f32 %v2793_v24  ;;  %v8016_v24 = vld [vmem:[#allocation40_spill] sm:$0xff] }
 0x5b6   : > { %5232 = vrcp.f32 %v2784_v5  ;;  %v7362_v43 = vpop.eup %5214  ;;  %v8014_v5 = vld [vmem:[#allocation42_spill] sm:$0xff] }
 0x5b7   : > { %5234 = vrcp.f32 %v2790_v25  ;;  %v5217_v33 = vpop.eup %5216  ;;  %v2878_v30 = vsel %vm2361_vm11, %v7362_v43, 0.0 }
 0x5b8   : > { %2888 = vadd.xlane.f32.xlu1 %v2887_v20  ;;  %2909 = vadd.xlane.f32.xlu0 %v2908_v60  ;;  %v2787_v3 = vpop.xlane.xlu0 %2786  ;;  %v5219_v63 = vpop.eup %5218  ;;  %v3012_v20 = vmul.f32 %v5217_v33, %v8016_v24  ;;  %v8018_v24 = vld [vmem:[#allocation41_spill] sm:$0xff] }
 0x5b9   : > { %v7364_v56 = vpop.xlane.xlu1 %2531  ;;  %5236 = vrcp.f32 %v2787_v3  ;;  %v7366_v1 = vpop.eup %5220  ;;  %v3010_v8 = vmul.f32 %v5219_v63, %v7064_v55 }
 0x5ba   : > { %v7372_v46 = vpop.eup %5222  ;;  %v2881_v31 = vsel %vm2361_vm11, %v7366_v1, 0.0 }
 0x5bb   : > { %v5225_v0 = vpop.eup %5224  ;;  %v2902_v6 = vsel %vm2361_vm11, %v7372_v46, 0.0 }
 0x5bc   : > { %2912 = vadd.xlane.f32.xlu1 %v2911_v22  ;;  %2879 = vadd.xlane.f32.xlu0 %v2878_v30  ;;  %v7374_v19 = vpop.xlane.xlu0 %2549  ;;  %v3013_v2 = vmul.f32 %v5225_v0, %v7089_v51 }
 0x5bd   : > { %v7376_v14 = vpop.xlane.xlu1 %2540 }
 0x5be   : > { %v5227_v25 = vpop.eup %5226  ;;  %v3071_v22 = vpack.c.bf16 %v3013_v2, %v3012_v20 }
 0x5bf   : > { %v3011_v42 = vmul.f32 %v5227_v25, %v8014_v5  ;;  %v7385_v40 = vpop.eup %5228 }
 0x5c0   : > { %8015 = vst [vmem:[#allocation15_spill] sm:$0xff] %v7385_v40  ;;  %2882 = vadd.xlane.f32.xlu1 %v2881_v31  ;;  %2903 = vadd.xlane.f32.xlu0 %v2902_v6  ;;  %v7388_v60 = vpop.xlane.xlu0 %2543  ;;  %v2905_v55 = vsel %vm2361_vm11, %v7385_v40, 0.0  ;;  %v8017_v6 = vld [vmem:[#allocation10_spill] sm:$0xff] }
 0x5c1   : > { %v7390_v3 = vpop.xlane.xlu1 %2534  ;;  %v3070_v51 = vpack.c.bf16 %v3011_v42, %v3010_v8 }
 0x5c2   : > { %v5231_v30 = vpop.eup %5230 }
 0x5c3   : > { %4726 = vmatprep.mubr.msk.bf16.mxu0 %vm2361_vm11, %v3070_v51  ;;  %v5233_v63 = vpop.eup %5232  ;;  %v3017_v2 = vmul.f32 %v5231_v30, %v7106_v44  ;;  %v8021_v30 = vld [vmem:[#allocation21_spill] sm:$0xff] }
 0x5c4   : > { %2906 = vadd.xlane.f32.xlu0 %v2905_v55  ;;  %4727 = vmatmul.mubr.msk.bf16.vlgmr.msra.gmra.mxu0 %vm2361_vm11, %v3071_v22  ;;  %v7396_v0 = vpop.xlane.xlu0 %2552  ;;  %v5235_v33 = vpop.eup %5234  ;;  %v3014_v8 = vmul.f32 %v5233_v63, %v7101_v23  ;;  %v8019_v55 = vld [vmem:[#allocation33_spill] sm:$0xff]  ;;  %v8022_v63 = vld [vmem:[#allocation34_spill] sm:$0xff] }
 0x5c5   : > { %v7398_v25 = vpop.xlane.xlu1 %2546  ;;  %4735 = vmatpush3.bf16.msra.mxu0 %v8013_v49  ;;  %v3016_v20 = vmul.f32 %v5235_v33, %v8018_v24  ;;  %v8025_v24 = vld [vmem:[#allocation22_spill] sm:$0xff] }
 0x5c6   : > { %v5237_v31 = vpop.eup %5236  ;;  %4736 = vmatprep.subr.bf16.mxu0 %v8017_v6 }
 0x5c7   : > { %v3015_v5 = vmul.f32 %v5237_v31, %v7114_v48  ;;  %v3073_v40 = vpack.c.bf16 %v3017_v2, %v3016_v20  ;;  %v8020_v48 = vld [vmem:[#allocation11_spill] sm:$0xff] }
 0x5c8   : > { %v2805_v42 = vpop.xlane.xlu0 %2804 }
 0x5c9   : > { %v2802_v51 = vpop.xlane.xlu1 %2801  ;;  %4737 = vmatpush3.bf16.msra.mxu0 %v8017_v6  ;;  %v3072_v22 = vpack.c.bf16 %v3015_v5, %v3014_v8  ;;  %v8024_v5 = vld [vmem:[#allocation32_spill] sm:$0xff] }
 0x5ca   : > { %4738 = vmatprep.subr.bf16.mxu0 %v8019_v55  ;;  %5238 = vrcp.f32 %v2802_v51 }
 0x5cb   : > { %4730 = vmatprep.mubr.msk.bf16.mxu0 %vm2361_vm11, %v3072_v22  ;;  %5240 = vrcp.f32 %v2805_v42 }
 0x5cc   : > { %4731 = vmatmul.mubr.msk.bf16.gmra.mxu0 %vm2361_vm11, %v3073_v40  ;;  %v2799_v44 = vpop.xlane.xlu0 %2798  ;;  %v8023_v40 = vld [vmem:[#allocation23_spill] sm:$0xff] }
 0x5cd   : > { %v2796_v23 = vpop.xlane.xlu1 %2795  ;;  %4739 = vmatpush3.bf16.msra.mxu0 %v8019_v55  ;;  %5242 = vrcp.f32 %v2799_v44 }
 0x5ce   : > { %5244 = vrcp.f32 %v2796_v23  ;;  %4740 = vmatprep.subr.bf16.mxu0 %v8020_v48 }
 0x5d0   : > { %v2808_v33 = vpop.xlane.xlu0 %2807 }
 0x5d1   : > { %v2814_v49 = vpop.xlane.xlu1 %2813  ;;  %4741 = vmatpush3.bf16.msra.mxu0 %v8020_v48  ;;  %3454 = vrot.lane.b32.xlu1 %v8021_v30, %s5403_s21  ;;  %v2610_v48 = vsub.f32 %v7120_v36, %v7364_v56 }
 0x5d2   : > { %4750 = vmatprep.subr.bf16.mxu0 %v8022_v63 }
 0x5d3   : > { %v2730_v30 = vmul.f32 1.442695, %v2610_v48 }
 0x5d5   : > { %v2817_v31 = vpop.xlane.xlu1 %2816  ;;  %3549 = vrot.lane.b32.xlu1 %v8023_v40, %s5403_s21  ;;  %v8027_v40 = vld [vmem:[#allocation8_spill] sm:$0xff] }
 0x5d6   : > { %5246 = vrcp.f32 %v2817_v31 }
 0x5d7   : > { %v5239_v6 = vpop.eup %5238  ;;  %5248 = vrcp.f32 %v2808_v33 }
 0x5d8   : > { %v5241_v2 = vpop.eup %5240  ;;  %5250 = vrcp.f32 %v2814_v49  ;;  %v3020_v51 = vmul.f32 %v5239_v6, %v7165_v61  ;;  %v2612_v61 = vsub.f32 %v7109_v58, %v7354_v52  ;;  %v2613_v58 = vsub.f32 %v7126_v34, %v7376_v14 }
 0x5d9   : > { %v2811_v8 = vpop.xlane.xlu1 %2810  ;;  %3638 = vrot.lane.b32.xlu1 %v8024_v5, %s5403_s21  ;;  %v3021_v22 = vmul.f32 %v5241_v2, %v7161_v13  ;;  %v8026_v13 = vld [vmem:[#allocation35_spill] sm:$0xff] }
 0x5da   : > { %v5243_v42 = vpop.eup %5242  ;;  %5252 = vrcp.f32 %v2811_v8  ;;  %3365 = vrot.lane.b32.xlu0 %v8025_v24, %s5403_s21  ;;  %v2734_v56 = vmul.f32 1.442695, %v2612_v61  ;;  %v2736_v5 = vmul.f32 1.442695, %v2613_v58 }
 0x5db   : > { %v5245_v20 = vpop.eup %5244  ;;  %v3019_v55 = vmul.f32 %v5243_v42, %v7169_v45  ;;  %v3075_v49 = vpack.c.bf16 %v3021_v22, %v3020_v51  ;;  %5254 = vpow2.f32 %v2730_v30 }
 0x5dc   : > { %v3018_v44 = vmul.f32 %v5245_v20, %v7173_v10  ;;  %v2611_v10 = vsub.f32 %v7138_v39, %v7390_v3  ;;  %5256 = vpow2.f32 %v2734_v56 }
 0x5de   : > { %v3074_v23 = vpack.c.bf16 %v3019_v55, %v3018_v44  ;;  %v2732_v52 = vmul.f32 1.442695, %v2611_v10 }
 0x5e0   : > { %4742 = vmatprep.mubr.msk.bf16.mxu0 %vm2361_vm11, %v3074_v23  ;;  %5258 = vpow2.f32 %v2732_v52 }
 0x5e1   : > { %4743 = vmatmul.mubr.msk.bf16.vlgmr.msra.gmra.mxu0 %vm2361_vm11, %v3075_v49  ;;  %5260 = vpow2.f32 %v2736_v5 }
 0x5e2   : > { %4751 = vmatpush3.bf16.msra.mxu0 %v8022_v63 }
 0x5e3   : > { %4752 = vmatprep.subr.bf16.mxu0 %v8026_v13  ;;  %v5247_v45 = vpop.eup %5246 }
 0x5e4   : > { %v5249_v33 = vpop.eup %5248  ;;  %v3025_v63 = vmul.f32 %v5247_v45, %v7187_v53 }
 0x5e5   : > { %v5251_v31 = vpop.eup %5250  ;;  %v3022_v6 = vmul.f32 %v5249_v33, %v7177_v12 }
 0x5e6   : > { %4753 = vmatpush3.bf16.msra.mxu0 %v8026_v13  ;;  %v3024_v39 = vmul.f32 %v5251_v31, %v7181_v21 }
 0x5e7   : > { %v5253_v36 = vpop.eup %5252  ;;  %4754 = vmatprep.subr.bf16.mxu0 %v8027_v40 }
 0x5e8   : > { %v3023_v2 = vmul.f32 %v5253_v36, %v7191_v38  ;;  %v3077_v8 = vpack.c.bf16 %v3025_v63, %v3024_v39  ;;  %v7447_v53 = vpop.eup %5254 }
 0x5e9   : > { %v7449_v14 = vpop.eup %5256  ;;  %v2914_v21 = vsel %vm2361_vm11, %v7447_v53, 0.0 }
 0x5ea   : > { %4755 = vmatpush3.bf16.msra.mxu0 %v8027_v40  ;;  %v3076_v3 = vpack.c.bf16 %v3023_v2, %v3022_v6  ;;  %v2920_v51 = vsel %vm2361_vm11, %v7449_v14, 0.0 }
 0x5ec   : > { %4746 = vmatprep.mubr.msk.bf16.mxu0 %vm2361_vm11, %v3076_v3 }
 0x5ed   : > { %4747 = vmatmul.mubr.msk.bf16.gmra.mxu0 %vm2361_vm11, %v3077_v8  ;;  %v7453_v38 = vpop.eup %5258 }
 0x5ee   : > { %v2917_v20 = vsel %vm2361_vm11, %v7453_v38, 0.0  ;;  %v7459_v22 = vpop.eup %5260 }
 0x5ef   : > { %v2923_v23 = vsel %vm2361_vm11, %v7459_v22, 0.0 }
 0x5f1   : > { %v2826_v34 = vpop.xlane.xlu1 %2825 }
 0x5f2   : > { %5262 = vrcp.f32 %v2826_v34 }
 0x5f5   : > { %v2850_v12 = vpop.xlane.xlu1 %2849 }
 0x5f9   : > { %2915 = vadd.xlane.f32.xlu0 %v2914_v21  ;;  %v2829_v42 = vpop.xlane.xlu1 %2828  ;;  %v2820_v24 = vpop.xlane.xlu0 %2819  ;;  %v8030_v21 = vld [vmem:[#allocation2_spill] sm:$0xff] }
 0x5fa   : > { %5264 = vrcp.f32 %v2829_v42  ;;  %v2614_v42 = vsub.f32 %v7141_v17, %v7388_v60 }
 0x5fb   : > { %5266 = vrcp.f32 %v2850_v12 }
 0x5fd   : > { %2918 = vadd.xlane.f32.xlu1 %v2917_v20  ;;  %2921 = vadd.xlane.f32.xlu0 %v2920_v51  ;;  %v2853_v55 = vpop.xlane.xlu1 %2852  ;;  %v2844_v44 = vpop.xlane.xlu0 %2843 }
 0x5fe   : > { %5268 = vrcp.f32 %v2853_v55 }
 0x5ff   : > { %5270 = vrcp.f32 %v2820_v24  ;;  %v5263_v61 = vpop.eup %5262  ;;  %v8032_v24 = vld [vmem:[#allocation44_spill] sm:$0xff] }
 0x600   : > { %5272 = vrcp.f32 %v2844_v44  ;;  %v7464_v13 = vmul.f32 %v5263_v61, %v7204_v62  ;;  %v8028_v62 = vld [vmem:[#allocation36_spill] sm:$0xff]  ;;  %v2615_v20 = vsub.f32 %v8032_v24, %v7398_v25 }
 0x601   : > { %2924 = vadd.xlane.f32.xlu0 %v2923_v23  ;;  %v2823_v48 = vpop.xlane.xlu1 %2822  ;;  %v2847_v49 = vpop.xlane.xlu0 %2846  ;;  %v8033_v23 = vld [vmem:[#allocation43_spill] sm:$0xff] }
 0x602   : > { %5274 = vrcp.f32 %v2823_v48  ;;  %v2740_v44 = vmul.f32 1.442695, %v2615_v20  ;;  %v2617_v48 = vsub.f32 %v8033_v23, %v7396_v0 }
 0x603   : > { %5276 = vrcp.f32 %v2847_v49 }
 0x604   : > { %v2744_v61 = vmul.f32 1.442695, %v2617_v48 }
 0x605   : > { %v7469_v10 = vpop.xlane.xlu0 %2837 }
 0x607   : > { %v5265_v30 = vpop.eup %5264 }
 0x608   : > { %v7467_v45 = vmul.f32 %v5265_v30, %v7213_v15  ;;  %v5267_v33 = vpop.eup %5266  ;;  %v2862_v30 = vpop.xlane.xlu1 %2861 }
 0x609   : > { %v7474_v56 = vmul.f32 %v5267_v33, %v7209_v57  ;;  %v2832_v52 = vpop.xlane.xlu0 %2831  ;;  %v8029_v57 = vld [vmem:[#allocation3_spill] sm:$0xff] }
 0x60a   : > { %v3079_v31 = vpack.c.bf16 %v7467_v45, %v7464_v13 }
 0x60b   : > { %v5269_v36 = vpop.eup %5268 }
 0x60c   : > { %v7477_v40 = vmul.f32 %v5269_v36, %v7223_v29  ;;  %v5271_v63 = vpop.eup %5270 }
 0x60d   : > { %v5273_v58 = vpop.eup %5272  ;;  %v3026_v39 = vmul.f32 %v5271_v63, %v7216_v11  ;;  %v8031_v11 = vld [vmem:[#allocation24_spill] sm:$0xff]  ;;  %v2835_v60 = vpop.xlane.xlu1 %2834 }
 0x60e   : > { %3636 = vrot.lane.b32.xlu1 %v8028_v62, %s5403_s21  ;;  %v3083_v15 = vpack.c.bf16 %v7477_v40, %v7474_v56  ;;  %v3034_v29 = vmul.f32 %v5273_v58, %v7227_v18  ;;  %v2856_v12 = vpop.xlane.xlu0 %2855  ;;  %v2616_v18 = vsub.f32 %v7131_v7, %v7374_v19  ;;  %v8042_v56 = vld [vmem:[#allocation49_spill] sm:$0xff] }
 0x60f   : > { %v5275_v6 = vpop.eup %5274 }
 0x610   : > { %v5277_v2 = vpop.eup %5276  ;;  %v3027_v3 = vmul.f32 %v5275_v6, %v7234_v9  ;;  %v2742_v55 = vmul.f32 1.442695, %v2616_v18 }
 0x611   : > { %v3035_v8 = vmul.f32 %v5277_v2, %v7236_v50  ;;  %v2738_v50 = vmul.f32 1.442695, %v2614_v42 }
 0x612   : > { %3545 = vrot.lane.b32.xlu1 %v8029_v57, %s5403_s21  ;;  %v3078_v5 = vpack.c.bf16 %v3027_v3, %v3026_v39  ;;  %v2841_v9 = vpop.xlane.xlu0 %2840 }
 0x613   : > { %v3082_v34 = vpack.c.bf16 %v3035_v8, %v3034_v29  ;;  %5278 = vpow2.f32 %v2738_v50 }
 0x614   : > { %4758 = vmatprep.mubr.msk.bf16.mxu0 %vm2361_vm11, %v3078_v5  ;;  %5280 = vpow2.f32 %v2742_v55 }
 0x615   : > { %4774 = vmatprep.mubr.msk.bf16.mxu1 %vm2361_vm11, %v3082_v34  ;;  %5282 = vpow2.f32 %v2740_v44 }
 0x616   : > { %3634 = vrot.lane.b32.xlu1 %v8030_v21, %s5403_s21  ;;  %v2865_v51 = vpop.xlane.xlu0 %2864  ;;  %5284 = vpow2.f32 %v2744_v61  ;;  %v8034_v61 = vld [vmem:[#allocation6_spill] sm:$0xff] }
 0x617   : > { %3547 = vrot.lane.b32.xlu0 %v8031_v11, %s5403_s21 }
 0x61a   : > { %v2859_v49 = vpop.xlane.xlu0 %2858 }
 0x620   : > { %v7503_v33 = vpop.eup %5278 }
 0x621   : > { %v7505_v25 = vpop.eup %5280  ;;  %v2926_v0 = vsel %vm2361_vm11, %v7503_v33, 0.0 }
 0x622   : > { %v7509_v62 = vpop.eup %5282  ;;  %v2932_v39 = vsel %vm2361_vm11, %v7505_v25, 0.0 }
 0x623   : > { %v2929_v2 = vsel %vm2361_vm11, %v7509_v62, 0.0  ;;  %v7515_v3 = vpop.eup %5284 }
 0x624   : > { %v2935_v8 = vsel %vm2361_vm11, %v7515_v3, 0.0 }
 0x629   : > { %v2874_v17 = vpop.xlane.xlu0 %2873 }
 0x62a   : > { %5286 = vrcp.f32 %v2874_v17 }
 0x62d   : > { %v2898_v7 = vpop.xlane.xlu0 %2897 }
 0x631   : > { %v2868_v19 = vpop.xlane.xlu1 %2867 }
 0x635   : > { %v2877_v36 = vpop.xlane.xlu1 %2876  ;;  %v2892_v63 = vpop.xlane.xlu0 %2891 }
 0x636   : > { %5288 = vrcp.f32 %v2877_v36  ;;  %2927 = vadd.xlane.f32.xlu0 %v2926_v0  ;;  %v8036_v0 = vld [vmem:[#allocation4_spill] sm:$0xff] }
 0x637   : > { %5290 = vrcp.f32 %v2898_v7  ;;  %v5287_v5 = vpop.eup %5286  ;;  %v8035_v7 = vld [vmem:[#allocation50_spill] sm:$0xff] }
 0x638   : > { %5292 = vrcp.f32 %v2862_v30 }
 0x639   : > { %v2901_v58 = vpop.xlane.xlu1 %2900  ;;  %v2871_v6 = vpop.xlane.xlu0 %2870 }
 0x63a   : > { %5294 = vrcp.f32 %v2901_v58  ;;  %2930 = vadd.xlane.f32.xlu1 %v2929_v2  ;;  %2933 = vadd.xlane.f32.xlu0 %v2932_v39 }
 0x63b   : > { %5296 = vrcp.f32 %v7469_v10  ;;  %v7521_v10 = vmul.f32 %v5287_v5, %v7303_v28  ;;  %v8038_v5 = vld [vmem:[#allocation46_spill] sm:$0xff] }
 0x63c   : > { %5298 = vrcp.f32 %v2832_v52 }
 0x63d   : > { %5300 = vrcp.f32 %v2835_v60  ;;  %v2895_v57 = vpop.xlane.xlu1 %2894  ;;  %v2886_v29 = vpop.xlane.xlu0 %2885 }
 0x63e   : > { %5302 = vrcp.f32 %v2859_v49  ;;  %2936 = vadd.xlane.f32.xlu0 %v2935_v8 }
 0x63f   : > { %5304 = vrcp.f32 %v2856_v12 }
 0x640   : > { %5306 = vrcp.f32 %v2886_v29 }
 0x641   : > { %5308 = vrcp.f32 %v2841_v9  ;;  %v2889_v34 = vpop.xlane.xlu1 %2888  ;;  %v2910_v21 = vpop.xlane.xlu0 %2909 }
 0x642   : > { %5310 = vrcp.f32 %v2889_v34 }
 0x643   : > { %v5289_v11 = vpop.eup %5288  ;;  %5312 = vrcp.f32 %v2865_v51 }
 0x644   : > { %v7524_v52 = vmul.f32 %v5289_v11, %v7321_v59  ;;  %5314 = vrcp.f32 %v2910_v21  ;;  %v5291_v42 = vpop.eup %5290 }
 0x645   : > { %5316 = vrcp.f32 %v2895_v57  ;;  %v2913_v18 = vpop.xlane.xlu1 %2912  ;;  %v2880_v50 = vpop.xlane.xlu0 %2879  ;;  %v7531_v28 = vmul.f32 %v5291_v42, %v7311_v37 }
 0x646   : > { %v5293_v12 = vpop.eup %5292  ;;  %v3087_v9 = vpack.c.bf16 %v7524_v52, %v7521_v10  ;;  %5318 = vrcp.f32 %v2913_v18  ;;  %v8040_v18 = vld [vmem:[#allocation45_spill] sm:$0xff] }
 0x647   : > { %v5295_v24 = vpop.eup %5294  ;;  %5320 = vrcp.f32 %v2892_v63 }
 0x648   : > { %v7528_v20 = vpop.eup %5296  ;;  %v7534_v59 = vmul.f32 %v5295_v24, %v7330_v41  ;;  %5322 = vrcp.f32 %v2880_v50 }
 0x649   : > { %v5299_v51 = vpop.eup %5298  ;;  %5324 = vrcp.f32 %v2871_v6  ;;  %v2883_v55 = vpop.xlane.xlu1 %2882 }
 0x64a   : > { %v2904_v44 = vpop.xlane.xlu0 %2903  ;;  %v5301_v23 = vpop.eup %5300  ;;  %v3091_v48 = vpack.c.bf16 %v7534_v59, %v7531_v28  ;;  %5326 = vrcp.f32 %v2883_v55  ;;  %v3030_v50 = vmul.f32 %v5299_v51, %v8040_v18  ;;  %v8041_v55 = vld [vmem:[#allocation26_spill] sm:$0xff] }
 0x64b   : > { %v5303_v49 = vpop.eup %5302  ;;  %5328 = vrcp.f32 %v2868_v19  ;;  %3632 = vrot.lane.b32.xlu1 %v8034_v61, %s5403_s21  ;;  %v8037_v19 = vld [vmem:[#allocation47_spill] sm:$0xff]  ;;  %v3031_v34 = vmul.f32 %v5301_v23, %v8038_v5 }
 0x64c   : > { %v5305_v37 = vpop.eup %5304  ;;  %5330 = vrcp.f32 %v2904_v44  ;;  %v3039_v36 = vmul.f32 %v5303_v49, %v8035_v7  ;;  %v8045_v7 = vld [vmem:[#allocation48_spill] sm:$0xff] }
 0x64d   : > { %v5307_v30 = vpop.eup %5306  ;;  %v3455_v41 = vpop.permute.xlu1 %3454  ;;  %v3038_v6 = vmul.f32 %v5305_v37, %v8037_v19  ;;  %v3080_v61 = vpack.c.bf16 %v3031_v34, %v3030_v50 }
 0x64e   : > { %v2907_v17 = vpop.xlane.xlu0 %2906  ;;  %v5309_v60 = vpop.eup %5308  ;;  %4772 = vmatprep.subr.bf16.mxu1 %v3455_v41  ;;  %v7545_v2 = vmul.f32 %v5307_v30, %v7344_v32  ;;  %v8043_v30 = vld [vmem:[#allocation9_spill] sm:$0xff] }
 0x64f   : > { %5332 = vrcp.f32 %v2907_v17  ;;  %v5311_v63 = vpop.eup %5310  ;;  %3727 = vrot.lane.b32.xlu1 %v8036_v0, %s5403_s21  ;;  %4773 = vmatpush3.bf16.msra.mxu1 %v3455_v41  ;;  %v3084_v11 = vpack.c.bf16 %v3039_v36, %v3038_v6  ;;  %v3040_v41 = vmul.f32 %v5293_v12, %v8043_v30  ;;  %v8044_v17 = vld [vmem:[#allocation31_spill] sm:$0xff]  ;;  %v3033_v36 = vmul.f32 %v5309_v60, %v8045_v7  ;;  %v8046_v0 = vld [vmem:[#allocation29_spill] sm:$0xff] }
 0x650   : > { %v5313_v58 = vpop.eup %5312  ;;  %v7548_v39 = vmul.f32 %v5311_v63, %v7346_v26  ;;  %v8039_v26 = vld [vmem:[#allocation28_spill] sm:$0xff] }
 0x651   : > { %v5315_v57 = vpop.eup %5314  ;;  %v3550_v29 = vpop.permute.xlu1 %3549  ;;  %v3041_v40 = vmul.f32 %v5313_v58, %v8042_v56 }
 0x652   : > { %v3366_v8 = vpop.permute.xlu0 %3365  ;;  %v5317_v21 = vpop.eup %5316  ;;  %4775 = vmatmul.mubr.msk.bf16.vlgmr.msra.gmra.mxu1 %vm2361_vm11, %v3083_v15  ;;  %v3089_v32 = vpack.c.bf16 %v7548_v39, %v7545_v2  ;;  %v7565_v15 = vmul.f32 %v5315_v57, %v7352_v27 }
 0x653   : > { %4756 = vmatprep.subr.bf16.mxu0 %v3366_v8  ;;  %v5319_v42 = vpop.eup %5318  ;;  %3725 = vrot.lane.b32.xlu1 %v8039_v26, %s5403_s21  ;;  %v3051_v51 = vmul.f32 %v5317_v21, %v7338_v47  ;;  %v3085_v13 = vpack.c.bf16 %v3041_v40, %v3040_v41 }
 0x654   : > { %4757 = vmatpush3.bf16.msra.mxu0 %v3366_v8  ;;  %v5321_v24 = vpop.eup %5320  ;;  %4778 = vmatprep.mubr.msk.bf16.mxu1 %vm2361_vm11, %v3084_v11  ;;  %v7568_v44 = vmul.f32 %v5319_v42, %v7356_v35  ;;  %v8048_v8 = vld [vmem:[#allocation15_spill] sm:$0xff]  ;;  %v7609_v34 = vpop.f32.mrf.mxu0 }
 0x655   : > { %3543 = vrot.lane.b32.xlu0 %v8041_v55, %s5403_s21  ;;  %v5323_v23 = vpop.eup %5322  ;;  %4782 = vmatprep.subr.bf16.mxu0 %v3550_v29  ;;  %v3639_v49 = vpop.permute.xlu1 %3638  ;;  %v3050_v47 = vmul.f32 %v5321_v24, %v7326_v16  ;;  %v8047_v16 = vld [vmem:[#allocation12_spill] sm:$0xff] }
 0x656   : > { %v5325_v37 = vpop.eup %5324  ;;  %4798 = vmatprep.subr.bf16.mxu1 %v3639_v49  ;;  %v3093_v27 = vpack.c.bf16 %v7568_v44, %v7565_v15  ;;  %v7584_v45 = vmul.f32 %v5323_v23, %v7362_v43  ;;  %v3032_v60 = vmul.f32 %v7528_v20, %v8047_v16  ;;  %v7611_v21 = vpop.f32.mrf.mxu0 }
 0x657   : > { %4759 = vmatmul.mubr.msk.bf16.vlgmr.msra.gmra.mxu0 %vm2361_vm11, %v3079_v31  ;;  %v5327_v35 = vpop.eup %5326  ;;  %3721 = vrot.lane.b32.xlu1 %v8044_v17, %s5403_s21  ;;  %v3090_v58 = vpack.c.bf16 %v3051_v51, %v3050_v47  ;;  %v3043_v19 = vmul.f32 %v5325_v37, %v7335_v4 }
 0x658   : > { %4762 = vmatprep.mubr.msk.bf16.mxu0 %vm2361_vm11, %v3080_v61  ;;  %v5329_v63 = vpop.eup %5328  ;;  %4783 = vmatpush3.bf16.msra.mxu0 %v3550_v29  ;;  %v7587_v31 = vmul.f32 %v5327_v35, %v7366_v1  ;;  %v3081_v57 = vpack.c.bf16 %v3033_v36, %v3032_v60 }
 0x659   : > { %4799 = vmatpush3.bf16.msra.mxu1 %v3639_v49  ;;  %v5331_v12 = vpop.eup %5330  ;;  %3723 = vrot.lane.b32.xlu0 %v8046_v0, %s5403_s21  ;;  %v3042_v1 = vmul.f32 %v5329_v63, %v7318_v54  ;;  %v7613_v54 = vpop.f32.mrf.mxu0 }
 0x65a   : > { %4779 = vmatmul.mubr.msk.bf16.gmra.mxu1 %vm2361_vm11, %v3085_v13  ;;  %v3088_v6 = vpack.c.bf16 %v7587_v31, %v7584_v45  ;;  %v7600_v29 = vmul.f32 %v5331_v12, %v7372_v46 }
 0x65b   : > { %4806 = vmatprep.mubr.msk.bf16.mxu1 %vm2361_vm11, %v3090_v58  ;;  %v3086_v4 = vpack.c.bf16 %v3043_v19, %v3042_v1  ;;  %v7615_v11 = vpop.f32.mrf.mxu0 }
 0x65c   : > { %v5333_v43 = vpop.eup %5332 }
 0x65d   : > { %v7603_v5 = vmul.f32 %v5333_v43, %v8048_v8  ;;  %v7617_v46 = vpop.f32.mrf.mxu0 }
 0x65f   : > { %4763 = vmatmul.mubr.msk.bf16.gmra.mxu0 %vm2361_vm11, %v3081_v57  ;;  %v3092_v20 = vpack.c.bf16 %v7603_v5, %v7600_v29  ;;  %v7619_v42 = vpop.f32.mrf.mxu0 }
 0x660   : > { %4790 = vmatprep.mubr.msk.bf16.mxu0 %vm2361_vm11, %v3086_v4 }
 0x661   : > { %v7621_v26 = vpop.f32.mrf.mxu0 }
 0x663   : > { %v7623_v18 = vpop.f32.mrf.mxu0 }
 0x682   : > { %v2916_v50 = vpop.xlane.xlu0 %2915 }
 0x683   : > { %5334 = vrcp.f32 %v2916_v50 }
 0x684   : > { %v7625_v24 = vpop.f32.mrf.mxu0 }
 0x686   : > { %v2919_v55 = vpop.xlane.xlu1 %2918  ;;  %v7627_v56 = vpop.f32.mrf.mxu0 }
 0x687   : > { %5336 = vrcp.f32 %v2919_v55  ;;  %v2922_v40 = vpop.xlane.xlu0 %2921 }
 0x688   : > { %5338 = vrcp.f32 %v2922_v40  ;;  %v7629_v49 = vpop.f32.mrf.mxu0 }
 0x68a   : > { %v3637_v23 = vpop.permute.xlu1 %3636  ;;  %v7631_v37 = vpop.f32.mrf.mxu0 }
 0x68b   : > { %v2925_v61 = vpop.xlane.xlu0 %2924  ;;  %4800 = vmatprep.subr.bf16.mxu1 %v3637_v23 }
 0x68c   : > { %5340 = vrcp.f32 %v2925_v61  ;;  %4801 = vmatpush3.bf16.msra.mxu1 %v3637_v23  ;;  %v7633_v17 = vpop.f32.mrf.mxu0 }
 0x68e   : > { %v3546_v51 = vpop.permute.xlu1 %3545  ;;  %v7637_v13 = vpop.f32.mrf.mxu0 }
 0x68f   : > { %v3548_v30 = vpop.permute.xlu0 %3547 }
 0x690   : > { %4784 = vmatprep.subr.bf16.mxu0 %v3548_v30  ;;  %v5335_v41 = vpop.eup %5334  ;;  %v7641_v16 = vpop.f32.mrf.mxu0 }
 0x691   : > { %4785 = vmatpush3.bf16.msra.mxu0 %v3548_v30  ;;  %v3058_v7 = vmul.f32 %v5335_v41, %v7447_v53 }
 0x692   : > { %4786 = vmatprep.subr.bf16.mxu0 %v3546_v51  ;;  %v3635_v35 = vpop.permute.xlu1 %3634  ;;  %v7643_v43 = vpop.f32.mrf.mxu0 }
 0x693   : > { %4802 = vmatprep.subr.bf16.mxu1 %v3635_v35 }
 0x694   : > { %v5337_v47 = vpop.eup %5336  ;;  %4803 = vmatpush3.bf16.msra.mxu1 %v3635_v35 }
 0x695   : > { %4787 = vmatpush3.bf16.msra.mxu0 %v3546_v51  ;;  %v3059_v36 = vmul.f32 %v5337_v47, %v7453_v38  ;;  %v5339_v63 = vpop.eup %5338 }
 0x696   : > { %v3060_v58 = vmul.f32 %v5339_v63, %v7449_v14 }
 0x697   : > { %v3094_v12 = vpack.c.bf16 %v3059_v36, %v3058_v7 }
 0x699   : > { %v5341_v0 = vpop.eup %5340 }
 0x69a   : > { %v3061_v19 = vmul.f32 %v5341_v0, %v7459_v22 }
 0x69c   : > { %v3095_v60 = vpack.c.bf16 %v3061_v19, %v3060_v58 }
 0x6a1   : > { %v4744_v1 = vpop.f32.mrf.mxu0 }
 0x6a3   : > { %v3334_v57 = vpop.f32.mrf.mxu0 }
 0x6a5   : > { %v4745_v8 = vpop.f32.mrf.mxu0 }
 0x6a6   : > { %v4934_v53 = vpack.i.bf16 %v4745_v8, %v4744_v1  ;;  %v5060_v8 = vld [vmem:[%s7850_s6 + $0x8] sm:$0xff]  }
 0x6a7   : > { %v3337_v4 = vpop.f32.mrf.mxu0 }
 0x6a8   : > { %v4939_v38 = vpack.i.bf16 %v3337_v4, %v3334_v57  ;;  %4935 = vrot.lane.b32.xlu1 %v4934_v53, %s5405_s25 }
 0x6aa   : > { %4940 = vrot.lane.b32.xlu0 %v4939_v38, %s5405_s25 }
 0x6ad   : > { %v4748_v50 = vpop.f32.mrf.mxu0 }
 0x6af   : > { %v3350_v14 = vpop.f32.mrf.mxu0 }
 0x6b1   : > { %v4749_v55 = vpop.f32.mrf.mxu0 }
 0x6b2   : > { %v4944_v22 = vpack.i.bf16 %v4749_v55, %v4748_v50  ;;  %v5061_v50 = vld [vmem:[%s7850_s6] sm:$0xff]  }
 0x6b3   : > { %v3353_v40 = vpop.f32.mrf.mxu0 }
 0x6b4   : > { %v4949_v23 = vpack.i.bf16 %v3353_v40, %v3350_v14  ;;  %4945 = vrot.lane.b32.xlu1 %v4944_v22, %s5405_s25 }
 0x6b6   : > { %4950 = vrot.lane.b32.xlu0 %v4949_v23, %s5405_s25 }
 0x6bf   : > { %v2928_v61 = vpop.xlane.xlu0 %2927 }
 0x6c3   : > { %v2931_v51 = vpop.xlane.xlu1 %2930  ;;  %v2934_v30 = vpop.xlane.xlu0 %2933 }
 0x6c4   : > { %5342 = vrcp.f32 %v2931_v51 }
 0x6c5   : > { %5344 = vrcp.f32 %v2928_v61 }
 0x6c7   : > { %v3633_v41 = vpop.permute.xlu1 %3632  ;;  %v2937_v35 = vpop.xlane.xlu0 %2936 }
 0x6c8   : > { %4804 = vmatprep.subr.bf16.mxu1 %v3633_v41  ;;  %5346 = vrcp.f32 %v2937_v35 }
 0x6c9   : > { %4805 = vmatpush3.bf16.msra.mxu1 %v3633_v41  ;;  %5348 = vrcp.f32 %v2934_v30 }
 0x6ca   : > { %4830 = vmatprep.subr.bf16.mxu1 %v5060_v8 }
 0x6cb   : > { %v3728_v47 = vpop.permute.xlu1 %3727  ;;  %v3544_v7 = vpop.permute.xlu0 %3543 }
 0x6cc   : > { %4788 = vmatprep.subr.bf16.mxu0 %v3544_v7  ;;  %4807 = vmatmul.mubr.msk.bf16.vlgmr.msra.gmra.mxu1 %vm2361_vm11, %v3091_v48 }
 0x6cd   : > { %4789 = vmatpush3.bf16.msra.mxu0 %v3544_v7  ;;  %4810 = vmatprep.mubr.msk.bf16.mxu1 %vm2361_vm11, %v3092_v20 }
 0x6ce   : > { %4814 = vmatprep.subr.bf16.mxu0 %v3728_v47  ;;  %4831 = vmatpush3.bf16.msra.mxu1 %v5060_v8 }
 0x6cf   : > { %v3726_v36 = vpop.permute.xlu1 %3725  ;;  %v3724_v28 = vpop.permute.xlu0 %3723  ;;  %4832 = vmatprep.subr.bf16.mxu1 %v5061_v50 }
 0x6d0   : > { %4791 = vmatmul.mubr.msk.bf16.vlgmr.msra.gmra.mxu0 %vm2361_vm11, %v3087_v9 }
 0x6d1   : > { %4794 = vmatprep.mubr.msk.bf16.mxu0 %vm2361_vm11, %v3088_v6  ;;  %4815 = vmatpush3.bf16.msra.mxu0 %v3728_v47  ;;  %v5343_v10 = vpop.eup %5342 }
 0x6d2   : > { %4816 = vmatprep.subr.bf16.mxu0 %v3726_v36  ;;  %v5345_v9 = vpop.eup %5344  ;;  %v3063_v59 = vmul.f32 %v5343_v10, %v7509_v62  ;;  %4833 = vmatpush3.bf16.msra.mxu1 %v5061_v50 }
 0x6d3   : > { %v3722_v52 = vpop.permute.xlu1 %3721  ;;  %v3062_v48 = vmul.f32 %v5345_v9, %v7503_v33 }
 0x6d4   : > { %4811 = vmatmul.mubr.msk.bf16.gmra.mxu1 %vm2361_vm11, %v3093_v27 }
 0x6d5   : > { %4817 = vmatpush3.bf16.msra.mxu0 %v3726_v36  ;;  %v5347_v15 = vpop.eup %5346  ;;  %v3096_v44 = vpack.c.bf16 %v3063_v59, %v3062_v48 }
 0x6d6   : > { %4818 = vmatprep.subr.bf16.mxu0 %v3724_v28  ;;  %v5349_v27 = vpop.eup %5348  ;;  %v3065_v2 = vmul.f32 %v5347_v15, %v7515_v3 }
 0x6d7   : > { %v3064_v39 = vmul.f32 %v5349_v27, %v7505_v25 }
 0x6d8   : > { %4795 = vmatmul.mubr.msk.bf16.gmra.mxu0 %vm2361_vm11, %v3089_v32 }
 0x6d9   : > { %4819 = vmatpush3.bf16.msra.mxu0 %v3724_v28  ;;  %4822 = vmatprep.mubr.msk.bf16.mxu0 %vm2361_vm11, %v3094_v12  ;;  %v3097_v32 = vpack.c.bf16 %v3065_v2, %v3064_v39 }
 0x6da   : > { %4820 = vmatprep.subr.bf16.mxu0 %v3722_v52 }
 0x6dd   : > { %4821 = vmatpush3.bf16.msra.mxu0 %v3722_v52 }
 0x6e0   : > { %4823 = vmatmul.mubr.msk.bf16.vlgmr.msra.gmra.mxu0 %vm2361_vm11, %v3095_v60 }
 0x6e1   : > { %4826 = vmatprep.mubr.msk.bf16.mxu0 %vm2361_vm11, %v3096_v44 }
 0x6e8   : > { %4827 = vmatmul.mubr.msk.bf16.gmra.mxu0 %vm2361_vm11, %v3097_v32 }
 0x712   : > { %v4776_v45 = vpop.f32.mrf.mxu1 }
 0x714   : > { %v3512_v31 = vpop.f32.mrf.mxu1 }
 0x716   : > { %v4777_v6 = vpop.f32.mrf.mxu1 }
 0x717   : > { %v4760_v62 = vpop.f32.mrf.mxu0  ;;  %v4954_v29 = vpack.i.bf16 %v4777_v6, %v4776_v45 }
 0x718   : > { %v3515_v5 = vpop.f32.mrf.mxu1 }
 0x719   : > { %v3423_v33 = vpop.f32.mrf.mxu0  ;;  %v4964_v20 = vpack.i.bf16 %v3515_v5, %v3512_v31  ;;  %4955 = vrot.lane.b32.xlu1 %v4954_v29, %s5406_s14 }
 0x71a   : > { %v4780_v0 = vpop.f32.mrf.mxu1 }
 0x71b   : > { %v4761_v63 = vpop.f32.mrf.mxu0  ;;  %4965 = vrot.lane.b32.xlu0 %v4964_v20, %s5406_s14 }
 0x71c   : > { %v4959_v12 = vpack.i.bf16 %v4761_v63, %v4760_v62  ;;  %v3528_v3 = vpop.f32.mrf.mxu1 }
 0x71d   : > { %v3426_v25 = vpop.f32.mrf.mxu0 }
 0x71e   : > { %4960 = vrot.lane.b32.xlu1 %v4959_v12, %s5405_s25  ;;  %v4969_v58 = vpack.i.bf16 %v3426_v25, %v3423_v33  ;;  %v4781_v19 = vpop.f32.mrf.mxu1 }
 0x71f   : > { %v4974_v60 = vpack.i.bf16 %v4781_v19, %v4780_v0  ;;  %v4764_v53 = vpop.f32.mrf.mxu0  ;;  %v4936_v19 = vpop.permute.xlu1 %4935 }
 0x720   : > { %4970 = vrot.lane.b32.xlu0 %v4969_v58, %s5405_s25  ;;  %v3531_v1 = vpop.f32.mrf.mxu1 }
 0x721   : > { %v4979_v57 = vpack.i.bf16 %v3531_v1, %v3528_v3  ;;  %v3439_v4 = vpop.f32.mrf.mxu0 }
 0x722   : > { %4975 = vrot.lane.b32.xlu1 %v4974_v60, %s5406_s14  ;;  %v4941_v60 = vpop.permute.xlu0 %4940 }
 0x723   : > { %v4765_v38 = vpop.f32.mrf.mxu0 }
 0x724   : > { %4980 = vrot.lane.b32.xlu0 %v4979_v57, %s5406_s14  ;;  %v5019_v2 = vpack.i.bf16 %v4765_v38, %v4764_v53 }
 0x725   : > { %v3442_v55 = vpop.f32.mrf.mxu0 }
 0x726   : > { %v5014_v32 = vpack.i.bf16 %v3442_v55, %v3439_v4  ;;  %v4946_v1 = vpop.permute.xlu1 %4945  ;;  %v4937_v55 = vunpack.i.l.bf16 %v4936_v19 }
 0x728   : > { %v4951_v57 = vpop.permute.xlu0 %4950 }
 0x78b   : > { %v4956_v8 = vpop.permute.xlu1 %4955 }
 0x78c   : > { %v4808_v14 = vpop.f32.mrf.mxu1 }
 0x78d   : > { %v4966_v53 = vpop.permute.xlu0 %4965 }
 0x78e   : > { %v3690_v22 = vpop.f32.mrf.mxu1 }
 0x790   : > { %v4792_v40 = vpop.f32.mrf.mxu0  ;;  %v4809_v23 = vpop.f32.mrf.mxu1 }
 0x791   : > { %v4984_v61 = vpack.i.bf16 %v4809_v23, %v4808_v14  ;;  %v7707_v4 = vpop.permute.xlu1 %4960  ;;  %v4938_v14 = vunpack.i.h.bf16 %v4936_v19 }
 0x792   : > { %v3601_v51 = vpop.f32.mrf.mxu0  ;;  %v3693_v30 = vpop.f32.mrf.mxu1 }
 0x793   : > { %4985 = vrot.lane.b32.xlu1 %v4984_v61, %s5407_s30  ;;  %v4994_v41 = vpack.i.bf16 %v3693_v30, %v3690_v22  ;;  %v7709_v38 = vpop.permute.xlu0 %4970  ;;  %v4943_v22 = vunpack.i.h.bf16 %v4941_v60  ;;  %v4958_v61 = vunpack.i.h.bf16 %v4956_v8 }
 0x794   : > { %v4793_v35 = vpop.f32.mrf.mxu0  ;;  %v4812_v47 = vpop.f32.mrf.mxu1 }
 0x795   : > { %v4989_v7 = vpack.i.bf16 %v4793_v35, %v4792_v40  ;;  %4995 = vrot.lane.b32.xlu0 %v4994_v41, %s5407_s30  ;;  %v4976_v50 = vpop.permute.xlu1 %4975  ;;  %v4942_v40 = vunpack.i.l.bf16 %v4941_v60  ;;  %v4968_v41 = vunpack.i.h.bf16 %v4966_v53  ;;  %v4967_v35 = vunpack.i.l.bf16 %v4966_v53 }
 0x796   : > { %v3604_v36 = vpop.f32.mrf.mxu0  ;;  %v3706_v28 = vpop.f32.mrf.mxu1 }
 0x797   : > { %v4999_v10 = vpack.i.bf16 %v3604_v36, %v3601_v51  ;;  %4990 = vrot.lane.b32.xlu1 %v4989_v7, %s5406_s14  ;;  %v4981_v23 = vpop.permute.xlu0 %4980  ;;  %v4957_v51 = vunpack.i.l.bf16 %v4956_v8  ;;  %v4005_v36 = vsel %vm1395_vm8, %v7613_v54, %v4938_v14 }
 0x798   : > { %v4796_v52 = vpop.f32.mrf.mxu0  ;;  %v4813_v9 = vpop.f32.mrf.mxu1 }
 0x799   : > { %v5004_v59 = vpack.i.bf16 %v4813_v9, %v4812_v47  ;;  %5000 = vrot.lane.b32.xlu0 %v4999_v10, %s5406_s14  ;;  %v4003_v10 = vsel %vm1395_vm8, %v7615_v11, %v4943_v22  ;;  %v4948_v11 = vunpack.i.h.bf16 %v4946_v1 }
 0x79a   : > { %v3617_v48 = vpop.f32.mrf.mxu0  ;;  %v3709_v15 = vpop.f32.mrf.mxu1  ;;  %v4020_v54 = vsel %vm4018_vm4, %v4003_v10, %v4968_v41  ;;  %v4973_v41 = vunpack.i.h.bf16 %v7709_v38 }
 0x79b   : > { %v5009_v44 = vpack.i.bf16 %v3709_v15, %v3706_v28  ;;  %5005 = vrot.lane.b32.xlu1 %v5004_v59, %s5407_s30  ;;  %v4004_v28 = vsel %vm1395_vm8, %v7609_v34, %v4937_v55  ;;  %v4022_v59 = vsel %vm4018_vm4, %v4005_v36, %v4958_v61 }
 0x79c   : > { %v4797_v27 = vpop.f32.mrf.mxu0 }
 0x79d   : > { %5010 = vrot.lane.b32.xlu0 %v5009_v44, %s5407_s30  ;;  %v5039_v20 = vpack.i.bf16 %v4797_v27, %v4796_v52  ;;  %v4002_v52 = vsel %vm1395_vm8, %v7611_v21, %v4942_v40 }
 0x79e   : > { %v3620_v39 = vpop.f32.mrf.mxu0  ;;  %v4019_v27 = vsel %vm4018_vm4, %v4002_v52, %v4967_v35  ;;  %v4972_v35 = vunpack.i.l.bf16 %v7709_v38 }
 0x79f   : > { %5020 = vrot.lane.b32.xlu1 %v5019_v2, %s5405_s25  ;;  %v5034_v12 = vpack.i.bf16 %v3620_v39, %v3617_v48  ;;  %v4021_v48 = vsel %vm4018_vm4, %v4004_v28, %v4957_v51  ;;  %v4963_v51 = vunpack.i.h.bf16 %v7707_v4 }
 0x7a0   : > { %v4824_v45 = vpop.f32.mrf.mxu0  ;;  %v4010_v38 = vsel %vm1395_vm8, %v7627_v56, %v4972_v35 }
 0x7a1   : > { %5015 = vrot.lane.b32.xlu0 %v5014_v32, %s5405_s25 }
 0x7a2   : > { %v3779_v31 = vpop.f32.mrf.mxu0 }
 0x7a4   : > { %v4825_v62 = vpop.f32.mrf.mxu0 }
 0x7a5   : > { %v5024_v6 = vpack.i.bf16 %v4825_v62, %v4824_v45  ;;  %v4947_v45 = vunpack.i.l.bf16 %v4946_v1  ;;  %v4952_v62 = vunpack.i.l.bf16 %v4951_v57 }
 0x7a6   : > { %v3782_v29 = vpop.f32.mrf.mxu0 }
 0x7a7   : > { %v5029_v33 = vpack.i.bf16 %v3782_v29, %v3779_v31  ;;  %5025 = vrot.lane.b32.xlu1 %v5024_v6, %s5407_s30  ;;  %v4953_v31 = vunpack.i.h.bf16 %v4951_v57  ;;  %v4008_v19 = vsel %vm1395_vm8, %v7617_v46, %v4947_v45  ;;  %v4006_v1 = vsel %vm1395_vm8, %v7619_v42, %v4952_v62 }
 0x7a8   : > { %v4828_v5 = vpop.f32.mrf.mxu0 }
 0x7a9   : > { %5030 = vrot.lane.b32.xlu0 %v5029_v33, %s5407_s30  ;;  %v4978_v33 = vunpack.i.h.bf16 %v4976_v50  ;;  %v4007_v60 = vsel %vm1395_vm8, %v7623_v18, %v4953_v31 }
 0x7aa   : > { %v3795_v63 = vpop.f32.mrf.mxu0 }
 0x7ab   : > { %5040 = vrot.lane.b32.xlu1 %v5039_v20, %s5406_s14 }
 0x7ac   : > { %v4829_v0 = vpop.f32.mrf.mxu0 }
 0x7ad   : > { %v5049_v25 = vpack.i.bf16 %v4829_v0, %v4828_v5  ;;  %5035 = vrot.lane.b32.xlu0 %v5034_v12, %s5406_s14  ;;  %v4977_v5 = vunpack.i.l.bf16 %v4976_v50  ;;  %v4982_v12 = vunpack.i.l.bf16 %v4981_v23 }
 0x7ae   : > { %v3798_v3 = vpop.f32.mrf.mxu0 }
 0x7af   : > { %v5044_v58 = vpack.i.bf16 %v3798_v3, %v3795_v63  ;;  %5050 = vrot.lane.b32.xlu1 %v5049_v25, %s5407_s30  ;;  %v4983_v63 = vunpack.i.h.bf16 %v4981_v23  ;;  %v4025_v53 = vsel %vm4018_vm4, %v4008_v19, %v4977_v5  ;;  %v4023_v55 = vsel %vm4018_vm4, %v4006_v1, %v4982_v12 }
 0x7b1   : > { %5045 = vrot.lane.b32.xlu0 %v5044_v58, %s5407_s30  ;;  %v4009_v58 = vsel %vm1395_vm8, %v7621_v26, %v4948_v11  ;;  %v4024_v26 = vsel %vm4018_vm4, %v4007_v60, %v4983_v63 }
 0x7b2   : > { %v4026_v8 = vsel %vm4018_vm4, %v4009_v58, %v4978_v33 }
 0x805   : > { %v4986_v30 = vpop.permute.xlu1 %4985 }
 0x806   : > { %v4988_v47 = vunpack.i.h.bf16 %v4986_v30  ;;  %v4987_v7 = vunpack.i.l.bf16 %v4986_v30  ;;  %v4962_v30 = vunpack.i.l.bf16 %v7707_v4 }
 0x807   : > { %v4996_v9 = vpop.permute.xlu0 %4995 }
 0x808   : > { %v4998_v15 = vunpack.i.h.bf16 %v4996_v9  ;;  %v4997_v44 = vunpack.i.l.bf16 %v4996_v9  ;;  %v4039_v2 = vsel %vm4035_vm5, %v4022_v59, %v4988_v47  ;;  %v4038_v34 = vsel %vm4035_vm5, %v4021_v48, %v4987_v7 }
 0x809   : > { %v4991_v39 = vpop.permute.xlu1 %4990  ;;  %v4053_v20 = vpack.c.bf16 %v4039_v2, %v4038_v34  ;;  %v4013_v48 = vsel %vm1395_vm8, %v7629_v49, %v4963_v51  ;;  %v4012_v4 = vsel %vm1395_vm8, %v7625_v24, %v4962_v30 }
 0x80a   : > { %v4036_v32 = vsel %vm4035_vm5, %v4019_v27, %v4997_v44  ;;  %v4037_v21 = vsel %vm4035_vm5, %v4020_v54, %v4998_v15  ;;  %v4993_v7 = vunpack.i.h.bf16 %v4991_v39  ;;  %v4992_v36 = vunpack.i.l.bf16 %v4991_v39 }
 0x80b   : > { %v4052_v6 = vpack.c.bf16 %v4037_v21, %v4036_v32  ;;  %v5001_v29 = vpop.permute.xlu0 %5000  ;;  %v4011_v15 = vsel %vm1395_vm8, %v7631_v37, %v4973_v41 }
 0x80c   : > { %v5003_v28 = vunpack.i.h.bf16 %v5001_v29  ;;  %v5002_v10 = vunpack.i.l.bf16 %v5001_v29  ;;  %v4030_v27 = vsel %vm4018_vm4, %v4013_v48, %v4993_v7  ;;  %v4029_v54 = vsel %vm4018_vm4, %v4012_v4, %v4992_v36 }
 0x80d   : > { %v5006_v0 = vpop.permute.xlu1 %5005  ;;  %4834 = vmatprep.mubr.msk.bf16.mxu1 %vm438_vm0, %v4052_v6 }
 0x80e   : > { %v5008_v25 = vunpack.i.h.bf16 %v5006_v0  ;;  %v5007_v3 = vunpack.i.l.bf16 %v5006_v0  ;;  %4835 = vmatmul.mubr.msk.bf16.vlgmr.msra.gmra.mxu1 %vm438_vm0, %v4053_v20  ;;  %v4027_v39 = vsel %vm4018_vm4, %v4010_v38, %v5002_v10  ;;  %v4028_v49 = vsel %vm4018_vm4, %v4011_v15, %v5003_v28 }
 0x80f   : > { %v5011_v57 = vpop.permute.xlu0 %5010 }
 0x810   : > { %v5013_v50 = vunpack.i.h.bf16 %v5011_v57  ;;  %v5012_v14 = vunpack.i.l.bf16 %v5011_v57  ;;  %v4043_v22 = vsel %vm4035_vm5, %v4026_v8, %v5008_v25  ;;  %v4042_v46 = vsel %vm4035_vm5, %v4025_v53, %v5007_v3 }
 0x811   : > { %v4055_v23 = vpack.c.bf16 %v4043_v22, %v4042_v46  ;;  %v5021_v61 = vpop.permute.xlu1 %5020 }
 0x812   : > { %v4040_v18 = vsel %vm4035_vm5, %v4023_v55, %v5012_v14  ;;  %v4041_v40 = vsel %vm4035_vm5, %v4024_v26, %v5013_v50  ;;  %v5023_v37 = vunpack.i.h.bf16 %v5021_v61  ;;  %v5022_v45 = vunpack.i.l.bf16 %v5021_v61 }
 0x813   : > { %v4054_v42 = vpack.c.bf16 %v4041_v40, %v4040_v18  ;;  %v5016_v47 = vpop.permute.xlu0 %5015  ;;  %v4423_v18 = vld [vmem:[%s7851_s7] ss:$0 sm:$0xff] }
 0x814   : > { %v5018_v31 = vunpack.i.h.bf16 %v5016_v47  ;;  %v5017_v62 = vunpack.i.l.bf16 %v5016_v47  ;;  %v4017_v58 = vsel %vm1395_vm8, %v7641_v16, %v5023_v37  ;;  %v4016_v19 = vsel %vm1395_vm8, %v7633_v17, %v5022_v45 }
 0x815   : > { %4838 = vmatprep.mubr.msk.bf16.mxu1 %vm438_vm0, %v4054_v42 }
 0x816   : > { %4839 = vmatmul.mubr.msk.bf16.gmra.mxu1 %vm438_vm0, %v4055_v23  ;;  %v4015_v60 = vsel %vm1395_vm8, %v7643_v43, %v5018_v31  ;;  %v4014_v1 = vsel %vm1395_vm8, %v7637_v13, %v5017_v62 }
 0x819   : > { %v5026_v52 = vpop.permute.xlu1 %5025 }
 0x81a   : > { %v5028_v9 = vunpack.i.h.bf16 %v5026_v52  ;;  %v5027_v59 = vunpack.i.l.bf16 %v5026_v52 }
 0x81b   : > { %v5031_v44 = vpop.permute.xlu0 %5030 }
 0x81c   : > { %v5033_v2 = vunpack.i.h.bf16 %v5031_v44  ;;  %v5032_v34 = vunpack.i.l.bf16 %v5031_v44  ;;  %v4047_v11 = vsel %vm4035_vm5, %v4030_v27, %v5028_v9  ;;  %v4046_v24 = vsel %vm4035_vm5, %v4029_v54, %v5027_v59 }
 0x81d   : > { %v5041_v32 = vpop.permute.xlu1 %5040  ;;  %v4057_v33 = vpack.c.bf16 %v4047_v11, %v4046_v24 }
 0x81e   : > { %v4044_v21 = vsel %vm4035_vm5, %v4027_v39, %v5032_v34  ;;  %v4045_v56 = vsel %vm4035_vm5, %v4028_v49, %v5033_v2  ;;  %v5043_v5 = vunpack.i.h.bf16 %v5041_v32  ;;  %v5042_v20 = vunpack.i.l.bf16 %v5041_v32 }
 0x81f   : > { %v4056_v6 = vpack.c.bf16 %v4045_v56, %v4044_v21  ;;  %v5036_v29 = vpop.permute.xlu0 %5035 }
 0x820   : > { %v5038_v63 = vunpack.i.h.bf16 %v5036_v29  ;;  %v5037_v12 = vunpack.i.l.bf16 %v5036_v29  ;;  %v4034_v8 = vsel %vm4018_vm4, %v4017_v58, %v5043_v5  ;;  %v4033_v53 = vsel %vm4018_vm4, %v4016_v19, %v5042_v20 }
 0x821   : > { %v5051_v0 = vpop.permute.xlu1 %5050  ;;  %4842 = vmatprep.mubr.msk.bf16.mxu1 %vm438_vm0, %v4056_v6 }
 0x822   : > { %v5053_v25 = vunpack.i.h.bf16 %v5051_v0  ;;  %v5052_v3 = vunpack.i.l.bf16 %v5051_v0  ;;  %4843 = vmatmul.mubr.msk.bf16.gmra.mxu1 %vm438_vm0, %v4057_v33  ;;  %v4031_v55 = vsel %vm4018_vm4, %v4014_v1, %v5037_v12  ;;  %v4032_v16 = vsel %vm4018_vm4, %v4015_v60, %v5038_v63 }
 0x823   : > { %v5046_v57 = vpop.permute.xlu0 %5045 }
 0x824   : > { %v5048_v50 = vunpack.i.h.bf16 %v5046_v57  ;;  %v5047_v14 = vunpack.i.l.bf16 %v5046_v57  ;;  %v4051_v17 = vsel %vm4035_vm5, %v4034_v8, %v5053_v25  ;;  %v4050_v26 = vsel %vm4035_vm5, %v4033_v53, %v5052_v3 }
 0x825   : > { %v4059_v46 = vpack.c.bf16 %v4051_v17, %v4050_v26 }
 0x826   : > { %v4048_v43 = vsel %vm4035_vm5, %v4031_v55, %v5047_v14  ;;  %v4049_v13 = vsel %vm4035_vm5, %v4032_v16, %v5048_v50 }
 0x827   : > { %v4058_v22 = vpack.c.bf16 %v4049_v13, %v4048_v43 }
 0x829   : > { %4846 = vmatprep.mubr.msk.bf16.mxu1 %vm438_vm0, %v4058_v22 }
 0x82a   : > { %4847 = vmatmul.mubr.msk.bf16.gmra.mxu1 %vm438_vm0, %v4059_v46 }
 0x8ce   : > { %v4836_v40 = vpop.f32.mrf.mxu1 }
 0x8cf   : > { %v4150_v42 = vadd.f32 %v4836_v40, %v4423_v18 }
 0x8d0   : > { %v4141_v23 = vpop.f32.mrf.mxu1 }
 0x8d1   : > { %4208 = vst.msk [vmem:[%s7795_s27 + $0x20] sm:$0xff] %vm438_vm0, %v4150_v42  ;;  %v4142_v61 = vadd.f32 %v4423_v18, %v4141_v23 }
 0x8d2   : > { %v4837_v51 = vpop.f32.mrf.mxu1 }
 0x8d3   : > { %4204 = vst.msk [vmem:[%s7795_s27] sm:$0xff] %vm438_vm0, %v4142_v61  ;;  %v4153_v30 = vadd.f32 %v4837_v51, %v4423_v18 }
 0x8d4   : > { %v4144_v41 = vpop.f32.mrf.mxu1 }
 0x8d5   : > { %4210 = vst.msk [vmem:[%s7795_s27 + $0x30] sm:$0xff] %vm438_vm0, %v4153_v30  ;;  %v4145_v35 = vadd.f32 %v4423_v18, %v4144_v41 }
 0x8d6   : > { %v4840_v47 = vpop.f32.mrf.mxu1 }
 0x8d7   : > { %4206 = vst.msk [vmem:[%s7795_s27 + $0x10] sm:$0xff] %vm438_vm0, %v4145_v35  ;;  %v4166_v7 = vadd.f32 %v4840_v47, %v4423_v18 }
 0x8d8   : > { %v4157_v36 = vpop.f32.mrf.mxu1 }
 0x8d9   : > { %4216 = vst.msk [vmem:[%s7795_s27 + $0x60] sm:$0xff] %vm438_vm0, %v4166_v7  ;;  %v4158_v28 = vadd.f32 %v4423_v18, %v4157_v36 }
 0x8da   : > { %v4841_v10 = vpop.f32.mrf.mxu1 }
 0x8db   : > { %4212 = vst.msk [vmem:[%s7795_s27 + $0x40] sm:$0xff] %vm438_vm0, %v4158_v28  ;;  %v4169_v52 = vadd.f32 %v4841_v10, %v4423_v18 }
 0x8dc   : > { %v4160_v9 = vpop.f32.mrf.mxu1 }
 0x8dd   : > { %4218 = vst.msk [vmem:[%s7795_s27 + $0x70] sm:$0xff] %vm438_vm0, %v4169_v52  ;;  %v4161_v59 = vadd.f32 %v4423_v18, %v4160_v9 }
 0x8df   : > { %4214 = vst.msk [vmem:[%s7795_s27 + $0x50] sm:$0xff] %vm438_vm0, %v4161_v59 }
 0x8e2   : > { %v4844_v48 = vpop.f32.mrf.mxu1 }
 0x8e3   : > { %v4182_v4 = vadd.f32 %v4844_v48, %v4423_v18 }
 0x8e4   : > { %v4173_v15 = vpop.f32.mrf.mxu1 }
 0x8e5   : > { %4209 = vst.msk [vmem:[%s7795_s27 + $0x28] sm:$0xff] %vm438_vm0, %v4182_v4  ;;  %v4174_v38 = vadd.f32 %v4423_v18, %v4173_v15 }
 0x8e6   : > { %v4845_v44 = vpop.f32.mrf.mxu1 }
 0x8e7   : > { %4205 = vst.msk [vmem:[%s7795_s27 + $0x8] sm:$0xff] %vm438_vm0, %v4174_v38  ;;  %v4185_v27 = vadd.f32 %v4845_v44, %v4423_v18 }
 0x8e8   : > { %v4176_v54 = vpop.f32.mrf.mxu1 }
 0x8e9   : > { %4211 = vst.msk [vmem:[%s7795_s27 + $0x38] sm:$0xff] %vm438_vm0, %v4185_v27  ;;  %v4177_v2 = vadd.f32 %v4423_v18, %v4176_v54 }
 0x8ea   : > { %v4848_v34 = vpop.f32.mrf.mxu1 }
 0x8eb   : > { %4207 = vst.msk [vmem:[%s7795_s27 + $0x18] sm:$0xff] %vm438_vm0, %v4177_v2  ;;  %v4198_v39 = vadd.f32 %v4848_v34, %v4423_v18 }
 0x8ec   : > { %v4189_v49 = vpop.f32.mrf.mxu1 }
 0x8ed   : > { %4217 = vst.msk [vmem:[%s7795_s27 + $0x68] sm:$0xff] %vm438_vm0, %v4198_v39  ;;  %v4190_v11 = vadd.f32 %v4423_v18, %v4189_v49 }
 0x8ee   : > { %v4849_v24 = vpop.f32.mrf.mxu1 }
 0x8ef   : > { %4213 = vst.msk [vmem:[%s7795_s27 + $0x48] sm:$0xff] %vm438_vm0, %v4190_v11  ;;  %v4201_v32 = vadd.f32 %v4849_v24, %v4423_v18 }
 0x8f0   : > { %v4192_v37 = vpop.f32.mrf.mxu1 }
 0x8f1   : > { %4219 = vst.msk [vmem:[%s7795_s27 + $0x78] sm:$0xff] %vm438_vm0, %v4201_v32  ;;  %v4193_v21 = vadd.f32 %v4423_v18, %v4192_v37 }
 0x8f3   : > { %4215 = vst.msk [vmem:[%s7795_s27 + $0x58] sm:$0xff] %vm438_vm0, %v4193_v21 }
 0x8f4 PF: > { %s20_s17 = sadd.s32 1, %s5394_s17   ;;  %s8049_s13 = smov %s5386_s15 }
 0x8f5   : > { %p17_p8 = scmp.ge.s32.totalorder %s20_s17, 6   ;;  %s8050_s14 = smov %s5390_s16 }
 0x8f6   : > { %s8051_s15 = smov %s8054_s18  ;;  %s8052_s16 = smov %s8058_s19 }
 0x8f7   :  { %19 = sbr.rel (!%p17_p8) target bundleno = 3 (0x3), region = 93 }

</bundles_post_ra>
